<compile_context>
chip_gen: v7x
topology: tpu7x:2x2x1
jax: 0.10.0
libtpu: 0.0.40
codegen_flags: <defaults>
</compile_context>

<pallas_src>
import functools

import jax
import jax.numpy as jnp
from jax import lax
from jax.experimental import pallas as pl
from jax.experimental.pallas import tpu as pltpu

# ----------------------------- configuration --------------------------------
B = 2
IN_CHANS = 3
IMG = 64                      # small synthetic resolution (PyTorch ref uses 416x544)
STEM_DIMS = (16, 32)          # embed_layer1 / embed_layer2 output channels
EMBED_DIMS = (32, 64, 128, 128)
NUM_HEADS = (1, 2, 4, 8)
MLP_RATIOS = (4, 4, 4, 4)
SR_RATIOS = (2, 2, 1, 1)
DEPTHS = (2, 2, 2, 2)
PATCH = 2                     # every patch_embed: Conv2d(k=2, s=2)
NUM_STAGES = 4
BN_EPS = 1e-5
LN_EPS = 1e-6

COMPILER_1D = pltpu.CompilerParams(
    dimension_semantics=("parallel",),
    vmem_limit_bytes=32 * 1024 * 1024,   # audited: largest kernel uses << 4 MiB
)

# ----------------------------- small helpers --------------------------------


def _round_up(x, m):
  return ((x + m - 1) // m) * m


def _row_tile(rows_padded):
  for t in (512, 256, 128, 64, 32, 16):
    if rows_padded % t == 0:
      return t
  return rows_padded


def _pad_rows(x, mult=16):
  """Pad leading (row) dim to a multiple of `mult` (bf16-safe sublane tiling)."""
  rows = x.shape[0]
  rp = max(mult, _round_up(rows, mult))
  if rp != rows:
    x = jnp.pad(x, ((0, rp - rows), (0, 0)))
  return x, rows, rp


def _layernorm(x, g, b, eps=LN_EPS):
  mu = jnp.mean(x, axis=-1, keepdims=True)
  xc = x - mu
  var = jnp.mean(xc * xc, axis=-1, keepdims=True)
  return xc * lax.rsqrt(var + eps) * g + b


def _gelu(x):
  # TODO(synk): PyTorch nn.GELU defaults to the exact erf form; Mosaic-safe
  # tanh approximation used here (f32 math).
  return 0.5 * x * (1.0 + jnp.tanh(0.7978845608028654 * (x + 0.044715 * x * x * x)))


# ----------------------------- Pallas kernels --------------------------------


def _mm_kernel(x_ref, w_ref, scale_ref, shift_ref, *rest, act, ln):
  """y = act((x @ w) * scale + shift) [-> LayerNorm]; bf16 MXU, f32 epilogue."""
  if ln:
    g_ref, b_ref, o_ref = rest
  else:
    (o_ref,) = rest
  y = jnp.dot(x_ref[...], w_ref[...], preferred_element_type=jnp.float32)
  y = y * scale_ref[...] + shift_ref[...]
  if act == "relu":
    y = jnp.maximum(y, 0.0)
  elif act == "gelu":
    y = _gelu(y)
  if ln:
    y = _layernorm(y, g_ref[...], b_ref[...])
  o_ref[...] = y.astype(o_ref.dtype)


def pallas_matmul_fused(x, w, scale=None, shift=None, act="none", ln=None,
                        out_dtype=jnp.float32):
  rows, k = x.shape
  k2, n = w.shape
  assert k == k2
  if scale is None:
    scale = jnp.ones((n,), jnp.float32)
  if shift is None:
    shift = jnp.zeros((n,), jnp.float32)
  xp, rows0, rp = _pad_rows(x.astype(jnp.bfloat16))
  tm = _row_tile(rp)
  ln_flag = ln is not None
  inputs = [xp, w.astype(jnp.bfloat16),
            scale.reshape(1, n).astype(jnp.float32),
            shift.reshape(1, n).astype(jnp.float32)]
  in_specs = [
      pl.BlockSpec((tm, k), lambda i: (i, 0)),
      pl.BlockSpec((k, n), lambda i: (0, 0)),
      pl.BlockSpec((1, n), lambda i: (0, 0)),
      pl.BlockSpec((1, n), lambda i: (0, 0)),
  ]
  if ln_flag:
    g, b = ln
    inputs += [g.reshape(1, n).astype(jnp.float32),
               b.reshape(1, n).astype(jnp.float32)]
    in_specs += [pl.BlockSpec((1, n), lambda i: (0, 0)),
                 pl.BlockSpec((1, n), lambda i: (0, 0))]
  out = pl.pallas_call(
      functools.partial(_mm_kernel, act=act, ln=ln_flag),
      out_shape=jax.ShapeDtypeStruct((rp, n), out_dtype),
      grid=(rp // tm,),
      in_specs=in_specs,
      out_specs=pl.BlockSpec((tm, n), lambda i: (i, 0)),
      compiler_params=COMPILER_1D,
  )(*inputs)
  return out[:rows0]


def _ln_only_kernel(x_ref, g_ref, b_ref, o_ref):
  o_ref[...] = _layernorm(x_ref[...], g_ref[...], b_ref[...]).astype(o_ref.dtype)


def pallas_layernorm(x, g, b, out_dtype=jnp.float32):
  rows, d = x.shape
  xp, rows0, rp = _pad_rows(x.astype(jnp.float32))
  tm = _row_tile(rp)
  out = pl.pallas_call(
      _ln_only_kernel,
      out_shape=jax.ShapeDtypeStruct((rp, d), out_dtype),
      grid=(rp // tm,),
      in_specs=[pl.BlockSpec((tm, d), lambda i: (i, 0)),
                pl.BlockSpec((1, d), lambda i: (0, 0)),
                pl.BlockSpec((1, d), lambda i: (0, 0))],
      out_specs=pl.BlockSpec((tm, d), lambda i: (i, 0)),
      compiler_params=COMPILER_1D,
  )(xp, g.reshape(1, d).astype(jnp.float32), b.reshape(1, d).astype(jnp.float32))
  return out[:rows0]


def _mlp_kernel(x_ref, g_ref, b_ref, w1_ref, b1_ref, w2_ref, b2_ref, o_ref):
  """out = x + fc2(GELU(fc1(LN(x))))  — norm2/MLP/residual fused."""
  x = x_ref[...]                                            # (tm, C) f32
  xn = _layernorm(x, g_ref[...], b_ref[...])
  h = jnp.dot(xn.astype(jnp.bfloat16), w1_ref[...],
              preferred_element_type=jnp.float32) + b1_ref[...]
  h = _gelu(h)
  y = jnp.dot(h.astype(jnp.bfloat16), w2_ref[...],
              preferred_element_type=jnp.float32) + b2_ref[...]
  o_ref[...] = x + y                                        # residual in epilogue


def fused_mlp(x, blk):
  bsz, n, c = x.shape
  hid = blk["fc1_w"].shape[1]
  xf, rows0, rp = _pad_rows(x.reshape(bsz * n, c).astype(jnp.float32))
  tm = _row_tile(rp)
  out = pl.pallas_call(
      _mlp_kernel,
      out_shape=jax.ShapeDtypeStruct((rp, c), jnp.float32),
      grid=(rp // tm,),
      in_specs=[
          pl.BlockSpec((tm, c), lambda i: (i, 0)),
          pl.BlockSpec((1, c), lambda i: (0, 0)),
          pl.BlockSpec((1, c), lambda i: (0, 0)),
          pl.BlockSpec((c, hid), lambda i: (0, 0)),
          pl.BlockSpec((1, hid), lambda i: (0, 0)),
          pl.BlockSpec((hid, c), lambda i: (0, 0)),
          pl.BlockSpec((1, c), lambda i: (0, 0)),
      ],
      out_specs=pl.BlockSpec((tm, c), lambda i: (i, 0)),
      compiler_params=COMPILER_1D,
  )(xf,
    blk["norm2_g"].reshape(1, c).astype(jnp.float32),
    blk["norm2_b"].reshape(1, c).astype(jnp.float32),
    blk["fc1_w"].astype(jnp.bfloat16),
    blk["fc1_b"].reshape(1, hid).astype(jnp.float32),
    blk["fc2_w"].astype(jnp.bfloat16),
    blk["fc2_b"].reshape(1, c).astype(jnp.float32))
  return out[:rows0].reshape(bsz, n, c)


def _attn_kernel(*refs, heads, has_kv):
  """Fused: norm1 -> q/k/v proj -> per-head softmax attn -> out proj -> +residual.

  Output is written lane-dense as (N, C).  Per-head out-projection slices of
  proj_w are accumulated directly (equivalent to proj(concat(heads)))."""
  if has_kv:
    (x_ref, kv_ref, g_ref, b_ref, qw_ref, kw_ref, vw_ref,
     pw_ref, pb_ref, o_ref) = refs
  else:
    (x_ref, g_ref, b_ref, qw_ref, kw_ref, vw_ref, pw_ref, pb_ref, o_ref) = refs
  x = x_ref[0]                                              # (N, C) f32
  xn = _layernorm(x, g_ref[...], b_ref[...])                # f32 stats
  xn_b = xn.astype(jnp.bfloat16)
  q = jnp.dot(xn_b, qw_ref[...], preferred_element_type=jnp.float32)  # scale folded
  kvs = kv_ref[0] if has_kv else xn_b                       # (M, C) bf16
  k = jnp.dot(kvs, kw_ref[...], preferred_element_type=jnp.float32)
  v = jnp.dot(kvs, vw_ref[...], preferred_element_type=jnp.float32)
  n, c = x.shape
  dh = c // heads
  o = None
  for hd in range(heads):
    sl = slice(hd * dh, (hd + 1) * dh)
    qh = q[:, sl].astype(jnp.bfloat16)
    kh = k[:, sl].astype(jnp.bfloat16)
    vh = v[:, sl].astype(jnp.bfloat16)
    s = lax.dot_general(qh, kh, (((1,), (1,)), ((), ())),
                        preferred_element_type=jnp.float32)             # (N, M)
    s = s - jnp.max(s, axis=-1, keepdims=True)
    p = jnp.exp(s)
    inv = pl.reciprocal(jnp.sum(p, axis=-1, keepdims=True), approx=True)
    oh = jnp.dot(p.astype(jnp.bfloat16), vh,
                 preferred_element_type=jnp.float32) * inv              # (N, dh)
    contrib = jnp.dot(oh.astype(jnp.bfloat16), pw_ref[sl, :],
                      preferred_element_type=jnp.float32)               # (N, C)
    o = contrib if o is None else o + contrib
  o_ref[0] = o + pb_ref[...] + x                            # residual in epilogue


def fused_attention(x, blk, heads, kv_src=None):
  bsz, n, c = x.shape
  dh = c // heads
  scale = dh ** -0.5
  has_kv = kv_src is not None
  m = kv_src.shape[1] if has_kv else n
  qw = (blk["q_w"].astype(jnp.float32) * scale).astype(jnp.bfloat16)
  inputs = [x.astype(jnp.float32)]
  in_specs = [pl.BlockSpec((1, n, c), lambda i: (i, 0, 0))]
  if has_kv:
    inputs.append(kv_src.astype(jnp.bfloat16))
    in_specs.append(pl.BlockSpec((1, m, c), lambda i: (i, 0, 0)))
  inputs += [
      blk["norm1_g"].reshape(1, c).astype(jnp.float32),
      blk["norm1_b"].reshape(1, c).astype(jnp.float32),
      qw,
      blk["k_w"].astype(jnp.bfloat16),
      blk["v_w"].astype(jnp.bfloat16),
      blk["proj_w"].astype(jnp.bfloat16),
      blk["proj_b"].reshape(1, c).astype(jnp.float32),
  ]
  in_specs += [
      pl.BlockSpec((1, c), lambda i: (0, 0)),
      pl.BlockSpec((1, c), lambda i: (0, 0)),
      pl.BlockSpec((c, c), lambda i: (0, 0)),
      pl.BlockSpec((c, c), lambda i: (0, 0)),
      pl.BlockSpec((c, c), lambda i: (0, 0)),
      pl.BlockSpec((c, c), lambda i: (0, 0)),
      pl.BlockSpec((1, c), lambda i: (0, 0)),
  ]
  return pl.pallas_call(
      functools.partial(_attn_kernel, heads=heads, has_kv=has_kv),
      out_shape=jax.ShapeDtypeStruct((bsz, n, c), jnp.float32),
      grid=(bsz,),
      in_specs=in_specs,
      out_specs=pl.BlockSpec((1, n, c), lambda i: (i, 0, 0)),
      compiler_params=COMPILER_1D,
  )(*inputs)


def _patch_embed_kernel(cols_ref, w_ref, b_ref, g_ref, beta_ref, pos_ref, o_ref):
  """tokens = LN(cols @ w + b) + pos_embed  (PVT PatchEmbed + pos-add fused)."""
  y = jnp.dot(cols_ref[0], w_ref[...], preferred_element_type=jnp.float32)
  y = y + b_ref[...]
  y = _layernorm(y, g_ref[...], beta_ref[...])
  o_ref[0] = y + pos_ref[...]


def patch_embed_stage(x_img, sp, drop_cls):
  bsz, c, h, w = x_img.shape
  ho, wo = h // PATCH, w // PATCH
  n = ho * wo
  k = c * PATCH * PATCH
  d = sp["patch_proj_w"].shape[1]
  # k == stride, no padding -> pure reshape/transpose (no im2col duplication)
  cols = x_img.reshape(bsz, c, ho, PATCH, wo, PATCH)
  cols = cols.transpose(0, 2, 4, 1, 3, 5).reshape(bsz, n, k)
  pos = sp["pos_embed"][0]
  if drop_cls:
    pos = pos[1:]                     # drop the cls-token slot (last stage)
  out = pl.pallas_call(
      _patch_embed_kernel,
      out_shape=jax.ShapeDtypeStruct((bsz, n, d), jnp.float32),
      grid=(bsz,),
      in_specs=[
          pl.BlockSpec((1, n, k), lambda i: (i, 0, 0)),
          pl.BlockSpec((k, d), lambda i: (0, 0)),
          pl.BlockSpec((1, d), lambda i: (0, 0)),
          pl.BlockSpec((1, d), lambda i: (0, 0)),
          pl.BlockSpec((1, d), lambda i: (0, 0)),
          pl.BlockSpec((n, d), lambda i: (0, 0)),
      ],
      out_specs=pl.BlockSpec((1, n, d), lambda i: (i, 0, 0)),
      compiler_params=COMPILER_1D,
  )(cols.astype(jnp.bfloat16),
    sp["patch_proj_w"].astype(jnp.bfloat16),
    sp["patch_proj_b"].reshape(1, d).astype(jnp.float32),
    sp["patch_norm_g"].reshape(1, d).astype(jnp.float32),
    sp["patch_norm_b"].reshape(1, d).astype(jnp.float32),
    pos.astype(jnp.float32))
  return out, (ho, wo)


# ----------------------------- JAX glue --------------------------------------


def im2col(x, kh, kw, stride, pad):
  """NCHW -> ((B*Ho*Wo), C*kh*kw), feature order (C, kh, kw) (matches torch)."""
  if pad:
    x = jnp.pad(x, ((0, 0), (0, 0), (pad, pad), (pad, pad)))
  b, c, h, w = x.shape
  ho = (h - kh) // stride + 1
  wo = (w - kw) // stride + 1
  cols = []
  for i in range(kh):
    for j in range(kw):
      cols.append(x[:, :, i:i + stride * (ho - 1) + 1:stride,
                    j:j + stride * (wo - 1) + 1:stride])
  p = jnp.stack(cols, axis=2)                    # (B, C, kh*kw, Ho, Wo)
  p = p.transpose(0, 3, 4, 1, 2)                 # (B, Ho, Wo, C, kh*kw)
  return p.reshape(b * ho * wo, c * kh * kw), ho, wo


def stem_layer(x_img, sp):
  """Conv3x3(s2,p1,bias=False) + BatchNorm(eval) + ReLU folded into one matmul."""
  # TODO(synk): overlapping 3x3 im2col still materializes a 2.25x copy in HBM;
  # stem is a tiny fraction of total work at these shapes.
  bsz = x_img.shape[0]
  cols, ho, wo = im2col(x_img, 3, 3, 2, 1)
  k = cols.shape[1]
  kp = _round_up(k, 8)                 # pad contraction dim for alignment
  w = sp["conv_w"]
  if kp != k:
    cols = jnp.pad(cols, ((0, 0), (0, kp - k)))
    w = jnp.pad(w, ((0, kp - k), (0, 0)))
  scale = sp["bn_g"] / jnp.sqrt(sp["bn_var"] + BN_EPS)
  shift = sp["bn_b"] - sp["bn_mean"] * scale
  y = pallas_matmul_fused(cols, w, scale=scale, shift=shift, act="relu")
  c_out = y.shape[-1]
  return y.reshape(bsz, ho, wo, c_out).transpose(0, 3, 1, 2)   # back to NCHW


def sr_reduce_tokens(xn, h, w, sr, blk):
  """KV source: LN'd tokens -> sr-conv (k=s, reshape only) + bias + LN, bf16 out."""
  bsz, n, c = xn.shape
  hs, ws = h // sr, w // sr
  cols = xn.reshape(bsz, h, w, c)
  cols = cols.reshape(bsz, hs, sr, ws, sr, c)
  cols = cols.transpose(0, 1, 3, 5, 2, 4)                  # (B, hs, ws, C, sr, sr)
  cols = cols.reshape(bsz * hs * ws, c * sr * sr)
  kv = pallas_matmul_fused(
      cols, blk["sr_w"], shift=blk["sr_b"],
      ln=(blk["sr_norm_g"], blk["sr_norm_b"]),
      out_dtype=jnp.bfloat16)
  return kv.reshape(bsz, hs * ws, c)


def transformer_block(x, h, w, blk, heads, sr):
  """x = x + Attn(LN(x));  x = x + MLP(LN(x))   (drop_path / dropout rate 0)."""
  if sr > 1:
    bsz, n, c = x.shape
    xn = pallas_layernorm(x.reshape(bsz * n, c), blk["norm1_g"], blk["norm1_b"],
                          out_dtype=jnp.bfloat16).reshape(bsz, n, c)
    kv_src = sr_reduce_tokens(xn, h, w, sr, blk)
    x = fused_attention(x, blk, heads, kv_src=kv_src)
  else:
    x = fused_attention(x, blk, heads, kv_src=None)
  return fused_mlp(x, blk)


# ----------------------------- params ----------------------------------------


def trunc_normal(key, shape, std=0.02):
  return std * jax.random.truncated_normal(key, -2.0, 2.0, shape, jnp.float32)


def init_params(seed=0):
  keys = iter(jax.random.split(jax.random.PRNGKey(seed), 512))
  nk = lambda: next(keys)
  p = {}
  # TODO(synk): foundation.embed_layer1/2 internals are undefined in the source;
  # synthesized as Conv2d(3x3,s2,p1,bias=False)+BN(eval)+ReLU stems.
  c_in = IN_CHANS
  for s, c_out in enumerate(STEM_DIMS, start=1):
    p[f"embed_layer{s}"] = dict(
        conv_w=trunc_normal(nk(), (c_in * 9, c_out)),
        bn_g=1.0 + 0.1 * trunc_normal(nk(), (c_out,)),
        bn_b=0.1 * trunc_normal(nk(), (c_out,)),
        bn_mean=0.1 * trunc_normal(nk(), (c_out,)),
        bn_var=1.0 + jnp.abs(0.1 * trunc_normal(nk(), (c_out,))),
    )
    c_in = c_out
  for i in range(NUM_STAGES):
    d = EMBED_DIMS[i]
    hid = d * MLP_RATIOS[i]
    side = (IMG // 4) // (2 ** (i + 1))
    n_patches = side * side
    extra = 1 if i == NUM_STAGES - 1 else 0       # last-stage cls-token slot
    stage = dict(
        patch_proj_w=trunc_normal(nk(), (c_in * PATCH * PATCH, d)),
        patch_proj_b=jnp.zeros((d,), jnp.float32),
        patch_norm_g=jnp.ones((d,), jnp.float32),
        patch_norm_b=jnp.zeros((d,), jnp.float32),
        pos_embed=trunc_normal(nk(), (1, n_patches + extra, d)),
        blocks=[],
    )
    for _ in range(DEPTHS[i]):
      blk = dict(
          norm1_g=jnp.ones((d,), jnp.float32), norm1_b=jnp.zeros((d,), jnp.float32),
          q_w=trunc_normal(nk(), (d, d)),                     # qkv_bias=False
          k_w=trunc_normal(nk(), (d, d)),
          v_w=trunc_normal(nk(), (d, d)),
          proj_w=trunc_normal(nk(), (d, d)), proj_b=jnp.zeros((d,), jnp.float32),
          norm2_g=jnp.ones((d,), jnp.float32), norm2_b=jnp.zeros((d,), jnp.float32),
          fc1_w=trunc_normal(nk(), (d, hid)), fc1_b=jnp.zeros((hid,), jnp.float32),
          fc2_w=trunc_normal(nk(), (hid, d)), fc2_b=jnp.zeros((d,), jnp.float32),
      )
      if SR_RATIOS[i] > 1:
        blk["sr_w"] = trunc_normal(nk(), (d * SR_RATIOS[i] ** 2, d))
        blk["sr_b"] = jnp.zeros((d,), jnp.float32)
        blk["sr_norm_g"] = jnp.ones((d,), jnp.float32)
        blk["sr_norm_b"] = jnp.zeros((d,), jnp.float32)
      stage["blocks"].append(blk)
    p[f"stage{i + 1}"] = stage
    c_in = d
  return p


# ----------------------------- model forward ---------------------------------


def pvt_forward(x, params):
  """PyramidVisionTransformer.forward_features with use_prompt=False."""
  outs = []
  bsz = x.shape[0]
  x = stem_layer(x, params["embed_layer1"])     # foundation.embed_layer1 (eval)
  outs.append(x)
  x = stem_layer(x, params["embed_layer2"])     # foundation.embed_layer2 (eval)
  outs.append(x)                                # use_prompt=False -> no ModalityPromper
  for i in range(NUM_STAGES):
    sp = params[f"stage{i + 1}"]
    drop_cls = (i == NUM_STAGES - 1)
    # _get_pos_embed: pos grid matches (H, W) here so the bilinear-resize branch
    # is the identity; pos add is fused into the patch-embed kernel.
    # TODO(synk): F.interpolate path for mismatched input sizes not implemented.
    tok, (h, w) = patch_embed_stage(x, sp, drop_cls)     # (B, N, D), +pos_embed
    # pos_drop: drop_rate = 0 -> identity
    for blk in sp["blocks"]:
      tok = transformer_block(tok, h, w, blk, NUM_HEADS[i], SR_RATIOS[i])
    d = tok.shape[-1]
    x = tok.reshape(bsz, h, w, d).transpose(0, 3, 1, 2)  # NCHW, like PyTorch
    outs.append(x)
  return outs


# ----------------------------- main -------------------------------------------

if __name__ == "__main__":
  params = init_params(0)
  x = jax.random.normal(jax.random.PRNGKey(0), (B, IN_CHANS, IMG, IMG), jnp.float32)
  fwd = jax.jit(pvt_forward)
  outs = fwd(x, params)
  outs = jax.block_until_ready(outs)
  expected = [
      (B, STEM_DIMS[0], IMG // 2, IMG // 2),
      (B, STEM_DIMS[1], IMG // 4, IMG // 4),
      (B, EMBED_DIMS[0], IMG // 8, IMG // 8),
      (B, EMBED_DIMS[1], IMG // 16, IMG // 16),
      (B, EMBED_DIMS[2], IMG // 32, IMG // 32),
      (B, EMBED_DIMS[3], IMG // 64, IMG // 64),
  ]
  assert [o.shape for o in outs] == expected, [o.shape for o in outs]
  assert all(bool(jnp.isfinite(o).all()) for o in outs)
  print("KERNEL_OK")
</pallas_src>

<mosaic_0001>
module attributes {stable_mosaic.version = 11 : i64} {
  func.func @_mm_kernel(%arg0: i32, %arg1: memref<512x32xbf16, #tpu.memory_space<vmem>>, %arg2: memref<32x16xbf16, #tpu.memory_space<vmem>>, %arg3: memref<1x16xf32, #tpu.memory_space<vmem>>, %arg4: memref<1x16xf32, #tpu.memory_space<vmem>>, %arg5: memref<512x16xf32, #tpu.memory_space<vmem>>) attributes {dimension_semantics = [#tpu.dimension_semantics<parallel>], iteration_bounds = array<i64: 4>, scalar_prefetch = 0 : i64, scratch_operands = 0 : i64, tpu.core_type = #tpu.core_type<tc>, window_params = [{transform_indices = @transform_0, window_bounds = array<i64: 512, 32>}, {pipeline_mode = #tpu.pipeline_mode<synchronous>, transform_indices = @transform_1, window_bounds = array<i64: 32, 16>}, {pipeline_mode = #tpu.pipeline_mode<synchronous>, transform_indices = @transform_2, window_bounds = array<i64: 1, 16>}, {pipeline_mode = #tpu.pipeline_mode<synchronous>, transform_indices = @transform_3, window_bounds = array<i64: 1, 16>}, {transform_indices = @transform_4, window_bounds = array<i64: 512, 16>}]} {
    %c0 = arith.constant 0 : index
    %c0_0 = arith.constant 0 : index
    %0 = vector.load %arg1[%c0, %c0_0] : memref<512x32xbf16, #tpu.memory_space<vmem>>, vector<512x32xbf16>
    %c0_1 = arith.constant 0 : index
    %c0_2 = arith.constant 0 : index
    %1 = vector.load %arg2[%c0_1, %c0_2] : memref<32x16xbf16, #tpu.memory_space<vmem>>, vector<32x16xbf16>
    %cst = arith.constant dense<0.000000e+00> : vector<512x16xf32>
    %2 = tpu.matmul %0, %1, %cst {dimension_numbers = #tpu.dot_dimension_numbers<[1], [0], [0], [1], [0, 0, 1, 1], [], []>} : vector<512x32xbf16>, vector<32x16xbf16>, vector<512x16xf32> -> vector<512x16xf32>
    %c0_3 = arith.constant 0 : index
    %c0_4 = arith.constant 0 : index
    %3 = vector.load %arg3[%c0_3, %c0_4] : memref<1x16xf32, #tpu.memory_space<vmem>>, vector<1x16xf32>
    %4 = vector.broadcast %3 : vector<1x16xf32> to vector<512x16xf32>
    %5 = arith.mulf %2, %4 : vector<512x16xf32>
    %c0_5 = arith.constant 0 : index
    %c0_6 = arith.constant 0 : index
    %6 = vector.load %arg4[%c0_5, %c0_6] : memref<1x16xf32, #tpu.memory_space<vmem>>, vector<1x16xf32>
    %7 = vector.broadcast %6 : vector<1x16xf32> to vector<512x16xf32>
    %8 = arith.addf %5, %7 : vector<512x16xf32>
    %cst_7 = arith.constant 0.000000e+00 : f32
    %9 = vector.broadcast %cst_7 : f32 to vector<512x16xf32>
    %10 = arith.maximumf %8, %9 : vector<512x16xf32>
    %c0_8 = arith.constant 0 : index
    %c0_9 = arith.constant 0 : index
    %11 = vector.load %arg5[%c0_8, %c0_9] : memref<512x16xf32, #tpu.memory_space<vmem>>, vector<512x16xf32>
    tpu.vector_store %arg5[%c0_8, %c0_9], %10 {strides = array<i32>} : memref<512x16xf32, #tpu.memory_space<vmem>>, vector<512x16xf32>,
    return
  }
  func.func @transform_0(%arg0: i32) -> (i32, i32) {
    %c0_i32 = arith.constant 0 : i32
    %c0_i32_0 = arith.constant 0 : i32
    return %arg0, %c0_i32 : i32, i32
  }
  func.func @transform_1(%arg0: i32) -> (i32, i32) {
    %c0_i32 = arith.constant 0 : i32
    %c0_i32_0 = arith.constant 0 : i32
    %c0_i32_1 = arith.constant 0 : i32
    return %c0_i32, %c0_i32_0 : i32, i32
  }
  func.func @transform_2(%arg0: i32) -> (i32, i32) {
    %c0_i32 = arith.constant 0 : i32
    %c0_i32_0 = arith.constant 0 : i32
    %c0_i32_1 = arith.constant 0 : i32
    return %c0_i32, %c0_i32_0 : i32, i32
  }
  func.func @transform_3(%arg0: i32) -> (i32, i32) {
    %c0_i32 = arith.constant 0 : i32
    %c0_i32_0 = arith.constant 0 : i32
    %c0_i32_1 = arith.constant 0 : i32
    return %c0_i32, %c0_i32_0 : i32, i32
  }
  func.func @transform_4(%arg0: i32) -> (i32, i32) {
    %c0_i32 = arith.constant 0 : i32
    %c0_i32_0 = arith.constant 0 : i32
    return %arg0, %c0_i32 : i32, i32
  }
}

module attributes {stable_mosaic.version = 11 : i64} {
  func.func @_mm_kernel(%arg0: i32, %arg1: memref<512x144xbf16, #tpu.memory_space<vmem>>, %arg2: memref<144x32xbf16, #tpu.memory_space<vmem>>, %arg3: memref<1x32xf32, #tpu.memory_space<vmem>>, %arg4: memref<1x32xf32, #tpu.memory_space<vmem>>, %arg5: memref<512x32xf32, #tpu.memory_space<vmem>>) attributes {dimension_semantics = [#tpu.dimension_semantics<parallel>], iteration_bounds = array<i64: 1>, scalar_prefetch = 0 : i64, scratch_operands = 0 : i64, tpu.core_type = #tpu.core_type<tc>, window_params = [{transform_indices = @transform_0, window_bounds = array<i64: 512, 144>}, {pipeline_mode = #tpu.pipeline_mode<synchronous>, transform_indices = @transform_1, window_bounds = array<i64: 144, 32>}, {pipeline_mode = #tpu.pipeline_mode<synchronous>, transform_indices = @transform_2, window_bounds = array<i64: 1, 32>}, {pipeline_mode = #tpu.pipeline_mode<synchronous>, transform_indices = @transform_3, window_bounds = array<i64: 1, 32>}, {transform_indices = @transform_4, window_bounds = array<i64: 512, 32>}]} {
    %c0 = arith.constant 0 : index
    %c0_0 = arith.constant 0 : index
    %0 = vector.load %arg1[%c0, %c0_0] : memref<512x144xbf16, #tpu.memory_space<vmem>>, vector<512x144xbf16>
    %c0_1 = arith.constant 0 : index
    %c0_2 = arith.constant 0 : index
    %1 = vector.load %arg2[%c0_1, %c0_2] : memref<144x32xbf16, #tpu.memory_space<vmem>>, vector<144x32xbf16>
    %cst = arith.constant dense<0.000000e+00> : vector<512x32xf32>
    %2 = tpu.matmul %0, %1, %cst {dimension_numbers = #tpu.dot_dimension_numbers<[1], [0], [0], [1], [0, 0, 1, 1], [], []>} : vector<512x144xbf16>, vector<144x32xbf16>, vector<512x32xf32> -> vector<512x32xf32>
    %c0_3 = arith.constant 0 : index
    %c0_4 = arith.constant 0 : index
    %3 = vector.load %arg3[%c0_3, %c0_4] : memref<1x32xf32, #tpu.memory_space<vmem>>, vector<1x32xf32>
    %4 = vector.broadcast %3 : vector<1x32xf32> to vector<512x32xf32>
    %5 = arith.mulf %2, %4 : vector<512x32xf32>
    %c0_5 = arith.constant 0 : index
    %c0_6 = arith.constant 0 : index
    %6 = vector.load %arg4[%c0_5, %c0_6] : memref<1x32xf32, #tpu.memory_space<vmem>>, vector<1x32xf32>
    %7 = vector.broadcast %6 : vector<1x32xf32> to vector<512x32xf32>
    %8 = arith.addf %5, %7 : vector<512x32xf32>
    %cst_7 = arith.constant 0.000000e+00 : f32
    %9 = vector.broadcast %cst_7 : f32 to vector<512x32xf32>
    %10 = arith.maximumf %8, %9 : vector<512x32xf32>
    %c0_8 = arith.constant 0 : index
    %c0_9 = arith.constant 0 : index
    %11 = vector.load %arg5[%c0_8, %c0_9] : memref<512x32xf32, #tpu.memory_space<vmem>>, vector<512x32xf32>
    tpu.vector_store %arg5[%c0_8, %c0_9], %10 {strides = array<i32>} : memref<512x32xf32, #tpu.memory_space<vmem>>, vector<512x32xf32>,
    return
  }
  func.func @transform_0(%arg0: i32) -> (i32, i32) {
    %c0_i32 = arith.constant 0 : i32
    %c0_i32_0 = arith.constant 0 : i32
    return %arg0, %c0_i32 : i32, i32
  }
  func.func @transform_1(%arg0: i32) -> (i32, i32) {
    %c0_i32 = arith.constant 0 : i32
    %c0_i32_0 = arith.constant 0 : i32
    %c0_i32_1 = arith.constant 0 : i32
    return %c0_i32, %c0_i32_0 : i32, i32
  }
  func.func @transform_2(%arg0: i32) -> (i32, i32) {
    %c0_i32 = arith.constant 0 : i32
    %c0_i32_0 = arith.constant 0 : i32
    %c0_i32_1 = arith.constant 0 : i32
    return %c0_i32, %c0_i32_0 : i32, i32
  }
  func.func @transform_3(%arg0: i32) -> (i32, i32) {
    %c0_i32 = arith.constant 0 : i32
    %c0_i32_0 = arith.constant 0 : i32
    %c0_i32_1 = arith.constant 0 : i32
    return %c0_i32, %c0_i32_0 : i32, i32
  }
  func.func @transform_4(%arg0: i32) -> (i32, i32) {
    %c0_i32 = arith.constant 0 : i32
    %c0_i32_0 = arith.constant 0 : i32
    return %arg0, %c0_i32 : i32, i32
  }
}

module attributes {stable_mosaic.version = 11 : i64} {
  func.func @_patch_embed_kernel(%arg0: i32, %arg1: memref<1x64x128xbf16, #tpu.memory_space<vmem>>, %arg2: memref<128x32xbf16, #tpu.memory_space<vmem>>, %arg3: memref<1x32xf32, #tpu.memory_space<vmem>>, %arg4: memref<1x32xf32, #tpu.memory_space<vmem>>, %arg5: memref<1x32xf32, #tpu.memory_space<vmem>>, %arg6: memref<64x32xf32, #tpu.memory_space<vmem>>, %arg7: memref<1x64x32xf32, #tpu.memory_space<vmem>>) attributes {dimension_semantics = [#tpu.dimension_semantics<parallel>], iteration_bounds = array<i64: 2>, scalar_prefetch = 0 : i64, scratch_operands = 0 : i64, tpu.core_type = #tpu.core_type<tc>, window_params = [{transform_indices = @transform_0, window_bounds = array<i64: 1, 64, 128>}, {pipeline_mode = #tpu.pipeline_mode<synchronous>, transform_indices = @transform_1, window_bounds = array<i64: 128, 32>}, {pipeline_mode = #tpu.pipeline_mode<synchronous>, transform_indices = @transform_2, window_bounds = array<i64: 1, 32>}, {pipeline_mode = #tpu.pipeline_mode<synchronous>, transform_indices = @transform_3, window_bounds = array<i64: 1, 32>}, {pipeline_mode = #tpu.pipeline_mode<synchronous>, transform_indices = @transform_4, window_bounds = array<i64: 1, 32>}, {pipeline_mode = #tpu.pipeline_mode<synchronous>, transform_indices = @transform_5, window_bounds = array<i64: 64, 32>}, {transform_indices = @transform_6, window_bounds = array<i64: 1, 64, 32>}]} {
    %c0 = arith.constant 0 : index
    %c0_0 = arith.constant 0 : index
    %c0_1 = arith.constant 0 : index
    %0 = vector.load %arg1[%c0, %c0_0, %c0_1] : memref<1x64x128xbf16, #tpu.memory_space<vmem>>, vector<1x64x128xbf16>
    %1 = vector.shape_cast %0 : vector<1x64x128xbf16> to vector<64x128xbf16>
    %c0_2 = arith.constant 0 : index
    %c0_3 = arith.constant 0 : index
    %2 = vector.load %arg2[%c0_2, %c0_3] : memref<128x32xbf16, #tpu.memory_space<vmem>>, vector<128x32xbf16>
    %cst = arith.constant dense<0.000000e+00> : vector<64x32xf32>
    %3 = tpu.matmul %1, %2, %cst {dimension_numbers = #tpu.dot_dimension_numbers<[1], [0], [0], [1], [0, 0, 1, 1], [], []>} : vector<64x128xbf16>, vector<128x32xbf16>, vector<64x32xf32> -> vector<64x32xf32>
    %c0_4 = arith.constant 0 : index
    %c0_5 = arith.constant 0 : index
    %4 = vector.load %arg3[%c0_4, %c0_5] : memref<1x32xf32, #tpu.memory_space<vmem>>, vector<1x32xf32>
    %5 = vector.broadcast %4 : vector<1x32xf32> to vector<64x32xf32>
    %6 = arith.addf %3, %5 : vector<64x32xf32>
    %c0_6 = arith.constant 0 : index
    %c0_7 = arith.constant 0 : index
    %7 = vector.load %arg4[%c0_6, %c0_7] : memref<1x32xf32, #tpu.memory_space<vmem>>, vector<1x32xf32>
    %c0_8 = arith.constant 0 : index
    %c0_9 = arith.constant 0 : index
    %8 = vector.load %arg5[%c0_8, %c0_9] : memref<1x32xf32, #tpu.memory_space<vmem>>, vector<1x32xf32>
    %cst_10 = arith.constant dense<0.000000e+00> : vector<64xf32>
    %9 = vector.multi_reduction <add>, %6, %cst_10 [1] : vector<64x32xf32> to vector<64xf32>
    %10 = vector.shape_cast %9 : vector<64xf32> to vector<64x1xf32>
    %cst_11 = arith.constant 3.200000e+01 : f32
    %11 = vector.broadcast %cst_11 : f32 to vector<64x1xf32>
    %12 = arith.divf %10, %11 : vector<64x1xf32>
    %13 = vector.broadcast %12 : vector<64x1xf32> to vector<64x32xf32>
    %14 = arith.subf %6, %13 : vector<64x32xf32>
    %15 = arith.mulf %14, %14 : vector<64x32xf32>
    %cst_12 = arith.constant dense<0.000000e+00> : vector<64xf32>
    %16 = vector.multi_reduction <add>, %15, %cst_12 [1] : vector<64x32xf32> to vector<64xf32>
    %17 = vector.shape_cast %16 : vector<64xf32> to vector<64x1xf32>
    %cst_13 = arith.constant 3.200000e+01 : f32
    %18 = vector.broadcast %cst_13 : f32 to vector<64x1xf32>
    %19 = arith.divf %17, %18 : vector<64x1xf32>
    %cst_14 = arith.constant 9.99999997E-7 : f32
    %20 = vector.broadcast %cst_14 : f32 to vector<64x1xf32>
    %21 = arith.addf %19, %20 : vector<64x1xf32>
    %22 = math.rsqrt %21 : vector<64x1xf32>
    %23 = vector.broadcast %22 : vector<64x1xf32> to vector<64x32xf32>
    %24 = arith.mulf %14, %23 : vector<64x32xf32>
    %25 = vector.broadcast %7 : vector<1x32xf32> to vector<64x32xf32>
    %26 = arith.mulf %24, %25 : vector<64x32xf32>
    %27 = vector.broadcast %8 : vector<1x32xf32> to vector<64x32xf32>
    %28 = arith.addf %26, %27 : vector<64x32xf32>
    %c0_15 = arith.constant 0 : index
    %c0_16 = arith.constant 0 : index
    %29 = vector.load %arg6[%c0_15, %c0_16] : memref<64x32xf32, #tpu.memory_space<vmem>>, vector<64x32xf32>
    %30 = arith.addf %28, %29 : vector<64x32xf32>
    %c0_17 = arith.constant 0 : index
    %c0_18 = arith.constant 0 : index
    %c0_19 = arith.constant 0 : index
    %31 = vector.load %arg7[%c0_17, %c0_18, %c0_19] : memref<1x64x32xf32, #tpu.memory_space<vmem>>, vector<1x64x32xf32>
    %32 = vector.shape_cast %31 : vector<1x64x32xf32> to vector<64x32xf32>
    %33 = vector.shape_cast %30 : vector<64x32xf32> to vector<1x64x32xf32>
    tpu.vector_store %arg7[%c0_17, %c0_18, %c0_19], %33 {strides = array<i32>} : memref<1x64x32xf32, #tpu.memory_space<vmem>>, vector<1x64x32xf32>,
    return
  }
  func.func @transform_0(%arg0: i32) -> (i32, i32, i32) {
    %c0_i32 = arith.constant 0 : i32
    %c0_i32_0 = arith.constant 0 : i32
    %c0_i32_1 = arith.constant 0 : i32
    return %arg0, %c0_i32, %c0_i32_0 : i32, i32, i32
  }
  func.func @transform_1(%arg0: i32) -> (i32, i32) {
    %c0_i32 = arith.constant 0 : i32
    %c0_i32_0 = arith.constant 0 : i32
    %c0_i32_1 = arith.constant 0 : i32
    return %c0_i32, %c0_i32_0 : i32, i32
  }
  func.func @transform_2(%arg0: i32) -> (i32, i32) {
    %c0_i32 = arith.constant 0 : i32
    %c0_i32_0 = arith.constant 0 : i32
    %c0_i32_1 = arith.constant 0 : i32
    return %c0_i32, %c0_i32_0 : i32, i32
  }
  func.func @transform_3(%arg0: i32) -> (i32, i32) {
    %c0_i32 = arith.constant 0 : i32
    %c0_i32_0 = arith.constant 0 : i32
    %c0_i32_1 = arith.constant 0 : i32
    return %c0_i32, %c0_i32_0 : i32, i32
  }
  func.func @transform_4(%arg0: i32) -> (i32, i32) {
    %c0_i32 = arith.constant 0 : i32
    %c0_i32_0 = arith.constant 0 : i32
    %c0_i32_1 = arith.constant 0 : i32
    return %c0_i32, %c0_i32_0 : i32, i32
  }
  func.func @transform_5(%arg0: i32) -> (i32, i32) {
    %c0_i32 = arith.constant 0 : i32
    %c0_i32_0 = arith.constant 0 : i32
    %c0_i32_1 = arith.constant 0 : i32
    return %c0_i32, %c0_i32_0 : i32, i32
  }
  func.func @transform_6(%arg0: i32) -> (i32, i32, i32) {
    %c0_i32 = arith.constant 0 : i32
    %c0_i32_0 = arith.constant 0 : i32
    %c0_i32_1 = arith.constant 0 : i32
    return %arg0, %c0_i32, %c0_i32_0 : i32, i32, i32
  }
}

module attributes {stable_mosaic.version = 11 : i64} {
  func.func @_ln_only_kernel(%arg0: i32, %arg1: memref<128x32xf32, #tpu.memory_space<vmem>>, %arg2: memref<1x32xf32, #tpu.memory_space<vmem>>, %arg3: memref<1x32xf32, #tpu.memory_space<vmem>>, %arg4: memref<128x32xbf16, #tpu.memory_space<vmem>>) attributes {dimension_semantics = [#tpu.dimension_semantics<parallel>], iteration_bounds = array<i64: 1>, scalar_prefetch = 0 : i64, scratch_operands = 0 : i64, tpu.core_type = #tpu.core_type<tc>, window_params = [{transform_indices = @transform_0, window_bounds = array<i64: 128, 32>}, {pipeline_mode = #tpu.pipeline_mode<synchronous>, transform_indices = @transform_1, window_bounds = array<i64: 1, 32>}, {pipeline_mode = #tpu.pipeline_mode<synchronous>, transform_indices = @transform_2, window_bounds = array<i64: 1, 32>}, {transform_indices = @transform_3, window_bounds = array<i64: 128, 32>}]} {
    %c0 = arith.constant 0 : index
    %c0_0 = arith.constant 0 : index
    %0 = vector.load %arg1[%c0, %c0_0] : memref<128x32xf32, #tpu.memory_space<vmem>>, vector<128x32xf32>
    %c0_1 = arith.constant 0 : index
    %c0_2 = arith.constant 0 : index
    %1 = vector.load %arg2[%c0_1, %c0_2] : memref<1x32xf32, #tpu.memory_space<vmem>>, vector<1x32xf32>
    %c0_3 = arith.constant 0 : index
    %c0_4 = arith.constant 0 : index
    %2 = vector.load %arg3[%c0_3, %c0_4] : memref<1x32xf32, #tpu.memory_space<vmem>>, vector<1x32xf32>
    %cst = arith.constant dense<0.000000e+00> : vector<128xf32>
    %3 = vector.multi_reduction <add>, %0, %cst [1] : vector<128x32xf32> to vector<128xf32>
    %4 = vector.shape_cast %3 : vector<128xf32> to vector<128x1xf32>
    %cst_5 = arith.constant 3.200000e+01 : f32
    %5 = vector.broadcast %cst_5 : f32 to vector<128x1xf32>
    %6 = arith.divf %4, %5 : vector<128x1xf32>
    %7 = vector.broadcast %6 : vector<128x1xf32> to vector<128x32xf32>
    %8 = arith.subf %0, %7 : vector<128x32xf32>
    %9 = arith.mulf %8, %8 : vector<128x32xf32>
    %cst_6 = arith.constant dense<0.000000e+00> : vector<128xf32>
    %10 = vector.multi_reduction <add>, %9, %cst_6 [1] : vector<128x32xf32> to vector<128xf32>
    %11 = vector.shape_cast %10 : vector<128xf32> to vector<128x1xf32>
    %cst_7 = arith.constant 3.200000e+01 : f32
    %12 = vector.broadcast %cst_7 : f32 to vector<128x1xf32>
    %13 = arith.divf %11, %12 : vector<128x1xf32>
    %cst_8 = arith.constant 9.99999997E-7 : f32
    %14 = vector.broadcast %cst_8 : f32 to vector<128x1xf32>
    %15 = arith.addf %13, %14 : vector<128x1xf32>
    %16 = math.rsqrt %15 : vector<128x1xf32>
    %17 = vector.broadcast %16 : vector<128x1xf32> to vector<128x32xf32>
    %18 = arith.mulf %8, %17 : vector<128x32xf32>
    %19 = vector.broadcast %1 : vector<1x32xf32> to vector<128x32xf32>
    %20 = arith.mulf %18, %19 : vector<128x32xf32>
    %21 = vector.broadcast %2 : vector<1x32xf32> to vector<128x32xf32>
    %22 = arith.addf %20, %21 : vector<128x32xf32>
    %23 = arith.truncf %22 : vector<128x32xf32> to vector<128x32xbf16>
    %c0_9 = arith.constant 0 : index
    %c0_10 = arith.constant 0 : index
    %24 = vector.load %arg4[%c0_9, %c0_10] : memref<128x32xbf16, #tpu.memory_space<vmem>>, vector<128x32xbf16>
    tpu.vector_store %arg4[%c0_9, %c0_10], %23 {strides = array<i32>} : memref<128x32xbf16, #tpu.memory_space<vmem>>, vector<128x32xbf16>,
    return
  }
  func.func @transform_0(%arg0: i32) -> (i32, i32) {
    %c0_i32 = arith.constant 0 : i32
    %c0_i32_0 = arith.constant 0 : i32
    return %arg0, %c0_i32 : i32, i32
  }
  func.func @transform_1(%arg0: i32) -> (i32, i32) {
    %c0_i32 = arith.constant 0 : i32
    %c0_i32_0 = arith.constant 0 : i32
    %c0_i32_1 = arith.constant 0 : i32
    return %c0_i32, %c0_i32_0 : i32, i32
  }
  func.func @transform_2(%arg0: i32) -> (i32, i32) {
    %c0_i32 = arith.constant 0 : i32
    %c0_i32_0 = arith.constant 0 : i32
    %c0_i32_1 = arith.constant 0 : i32
    return %c0_i32, %c0_i32_0 : i32, i32
  }
  func.func @transform_3(%arg0: i32) -> (i32, i32) {
    %c0_i32 = arith.constant 0 : i32
    %c0_i32_0 = arith.constant 0 : i32
    return %arg0, %c0_i32 : i32, i32
  }
}

module attributes {stable_mosaic.version = 11 : i64} {
  func.func @_mm_kernel(%arg0: i32, %arg1: memref<32x128xbf16, #tpu.memory_space<vmem>>, %arg2: memref<128x32xbf16, #tpu.memory_space<vmem>>, %arg3: memref<1x32xf32, #tpu.memory_space<vmem>>, %arg4: memref<1x32xf32, #tpu.memory_space<vmem>>, %arg5: memref<1x32xf32, #tpu.memory_space<vmem>>, %arg6: memref<1x32xf32, #tpu.memory_space<vmem>>, %arg7: memref<32x32xbf16, #tpu.memory_space<vmem>>) attributes {dimension_semantics = [#tpu.dimension_semantics<parallel>], iteration_bounds = array<i64: 1>, scalar_prefetch = 0 : i64, scratch_operands = 0 : i64, tpu.core_type = #tpu.core_type<tc>, window_params = [{transform_indices = @transform_0, window_bounds = array<i64: 32, 128>}, {pipeline_mode = #tpu.pipeline_mode<synchronous>, transform_indices = @transform_1, window_bounds = array<i64: 128, 32>}, {pipeline_mode = #tpu.pipeline_mode<synchronous>, transform_indices = @transform_2, window_bounds = array<i64: 1, 32>}, {pipeline_mode = #tpu.pipeline_mode<synchronous>, transform_indices = @transform_3, window_bounds = array<i64: 1, 32>}, {pipeline_mode = #tpu.pipeline_mode<synchronous>, transform_indices = @transform_4, window_bounds = array<i64: 1, 32>}, {pipeline_mode = #tpu.pipeline_mode<synchronous>, transform_indices = @transform_5, window_bounds = array<i64: 1, 32>}, {transform_indices = @transform_6, window_bounds = array<i64: 32, 32>}]} {
    %c0 = arith.constant 0 : index
    %c0_0 = arith.constant 0 : index
    %0 = vector.load %arg1[%c0, %c0_0] : memref<32x128xbf16, #tpu.memory_space<vmem>>, vector<32x128xbf16>
    %c0_1 = arith.constant 0 : index
    %c0_2 = arith.constant 0 : index
    %1 = vector.load %arg2[%c0_1, %c0_2] : memref<128x32xbf16, #tpu.memory_space<vmem>>, vector<128x32xbf16>
    %cst = arith.constant dense<0.000000e+00> : vector<32x32xf32>
    %2 = tpu.matmul %0, %1, %cst {dimension_numbers = #tpu.dot_dimension_numbers<[1], [0], [0], [1], [0, 0, 1, 1], [], []>} : vector<32x128xbf16>, vector<128x32xbf16>, vector<32x32xf32> -> vector<32x32xf32>
    %c0_3 = arith.constant 0 : index
    %c0_4 = arith.constant 0 : index
    %3 = vector.load %arg3[%c0_3, %c0_4] : memref<1x32xf32, #tpu.memory_space<vmem>>, vector<1x32xf32>
    %4 = vector.broadcast %3 : vector<1x32xf32> to vector<32x32xf32>
    %5 = arith.mulf %2, %4 : vector<32x32xf32>
    %c0_5 = arith.constant 0 : index
    %c0_6 = arith.constant 0 : index
    %6 = vector.load %arg4[%c0_5, %c0_6] : memref<1x32xf32, #tpu.memory_space<vmem>>, vector<1x32xf32>
    %7 = vector.broadcast %6 : vector<1x32xf32> to vector<32x32xf32>
    %8 = arith.addf %5, %7 : vector<32x32xf32>
    %c0_7 = arith.constant 0 : index
    %c0_8 = arith.constant 0 : index
    %9 = vector.load %arg5[%c0_7, %c0_8] : memref<1x32xf32, #tpu.memory_space<vmem>>, vector<1x32xf32>
    %c0_9 = arith.constant 0 : index
    %c0_10 = arith.constant 0 : index
    %10 = vector.load %arg6[%c0_9, %c0_10] : memref<1x32xf32, #tpu.memory_space<vmem>>, vector<1x32xf32>
    %cst_11 = arith.constant dense<0.000000e+00> : vector<32xf32>
    %11 = vector.multi_reduction <add>, %8, %cst_11 [1] : vector<32x32xf32> to vector<32xf32>
    %12 = vector.shape_cast %11 : vector<32xf32> to vector<32x1xf32>
    %cst_12 = arith.constant 3.200000e+01 : f32
    %13 = vector.broadcast %cst_12 : f32 to vector<32x1xf32>
    %14 = arith.divf %12, %13 : vector<32x1xf32>
    %15 = vector.broadcast %14 : vector<32x1xf32> to vector<32x32xf32>
    %16 = arith.subf %8, %15 : vector<32x32xf32>
    %17 = arith.mulf %16, %16 : vector<32x32xf32>
    %cst_13 = arith.constant dense<0.000000e+00> : vector<32xf32>
    %18 = vector.multi_reduction <add>, %17, %cst_13 [1] : vector<32x32xf32> to vector<32xf32>
    %19 = vector.shape_cast %18 : vector<32xf32> to vector<32x1xf32>
    %cst_14 = arith.constant 3.200000e+01 : f32
    %20 = vector.broadcast %cst_14 : f32 to vector<32x1xf32>
    %21 = arith.divf %19, %20 : vector<32x1xf32>
    %cst_15 = arith.constant 9.99999997E-7 : f32
    %22 = vector.broadcast %cst_15 : f32 to vector<32x1xf32>
    %23 = arith.addf %21, %22 : vector<32x1xf32>
    %24 = math.rsqrt %23 : vector<32x1xf32>
    %25 = vector.broadcast %24 : vector<32x1xf32> to vector<32x32xf32>
    %26 = arith.mulf %16, %25 : vector<32x32xf32>
    %27 = vector.broadcast %9 : vector<1x32xf32> to vector<32x32xf32>
    %28 = arith.mulf %26, %27 : vector<32x32xf32>
    %29 = vector.broadcast %10 : vector<1x32xf32> to vector<32x32xf32>
    %30 = arith.addf %28, %29 : vector<32x32xf32>
    %31 = arith.truncf %30 : vector<32x32xf32> to vector<32x32xbf16>
    %c0_16 = arith.constant 0 : index
    %c0_17 = arith.constant 0 : index
    %32 = vector.load %arg7[%c0_16, %c0_17] : memref<32x32xbf16, #tpu.memory_space<vmem>>, vector<32x32xbf16>
    tpu.vector_store %arg7[%c0_16, %c0_17], %31 {strides = array<i32>} : memref<32x32xbf16, #tpu.memory_space<vmem>>, vector<32x32xbf16>,
    return
  }
  func.func @transform_0(%arg0: i32) -> (i32, i32) {
    %c0_i32 = arith.constant 0 : i32
    %c0_i32_0 = arith.constant 0 : i32
    return %arg0, %c0_i32 : i32, i32
  }
  func.func @transform_1(%arg0: i32) -> (i32, i32) {
    %c0_i32 = arith.constant 0 : i32
    %c0_i32_0 = arith.constant 0 : i32
    %c0_i32_1 = arith.constant 0 : i32
    return %c0_i32, %c0_i32_0 : i32, i32
  }
  func.func @transform_2(%arg0: i32) -> (i32, i32) {
    %c0_i32 = arith.constant 0 : i32
    %c0_i32_0 = arith.constant 0 : i32
    %c0_i32_1 = arith.constant 0 : i32
    return %c0_i32, %c0_i32_0 : i32, i32
  }
  func.func @transform_3(%arg0: i32) -> (i32, i32) {
    %c0_i32 = arith.constant 0 : i32
    %c0_i32_0 = arith.constant 0 : i32
    %c0_i32_1 = arith.constant 0 : i32
    return %c0_i32, %c0_i32_0 : i32, i32
  }
  func.func @transform_4(%arg0: i32) -> (i32, i32) {
    %c0_i32 = arith.constant 0 : i32
    %c0_i32_0 = arith.constant 0 : i32
    %c0_i32_1 = arith.constant 0 : i32
    return %c0_i32, %c0_i32_0 : i32, i32
  }
  func.func @transform_5(%arg0: i32) -> (i32, i32) {
    %c0_i32 = arith.constant 0 : i32
    %c0_i32_0 = arith.constant 0 : i32
    %c0_i32_1 = arith.constant 0 : i32
    return %c0_i32, %c0_i32_0 : i32, i32
  }
  func.func @transform_6(%arg0: i32) -> (i32, i32) {
    %c0_i32 = arith.constant 0 : i32
    %c0_i32_0 = arith.constant 0 : i32
    return %arg0, %c0_i32 : i32, i32
  }
}

module attributes {stable_mosaic.version = 11 : i64} {
  func.func @_attn_kernel(%arg0: i32, %arg1: memref<1x64x32xf32, #tpu.memory_space<vmem>>, %arg2: memref<1x16x32xbf16, #tpu.memory_space<vmem>>, %arg3: memref<1x32xf32, #tpu.memory_space<vmem>>, %arg4: memref<1x32xf32, #tpu.memory_space<vmem>>, %arg5: memref<32x32xbf16, #tpu.memory_space<vmem>>, %arg6: memref<32x32xbf16, #tpu.memory_space<vmem>>, %arg7: memref<32x32xbf16, #tpu.memory_space<vmem>>, %arg8: memref<32x32xbf16, #tpu.memory_space<vmem>>, %arg9: memref<1x32xf32, #tpu.memory_space<vmem>>, %arg10: memref<1x64x32xf32, #tpu.memory_space<vmem>>) attributes {dimension_semantics = [#tpu.dimension_semantics<parallel>], iteration_bounds = array<i64: 2>, scalar_prefetch = 0 : i64, scratch_operands = 0 : i64, tpu.core_type = #tpu.core_type<tc>, window_params = [{transform_indices = @transform_0, window_bounds = array<i64: 1, 64, 32>}, {transform_indices = @transform_1, window_bounds = array<i64: 1, 16, 32>}, {pipeline_mode = #tpu.pipeline_mode<synchronous>, transform_indices = @transform_2, window_bounds = array<i64: 1, 32>}, {pipeline_mode = #tpu.pipeline_mode<synchronous>, transform_indices = @transform_3, window_bounds = array<i64: 1, 32>}, {pipeline_mode = #tpu.pipeline_mode<synchronous>, transform_indices = @transform_4, window_bounds = array<i64: 32, 32>}, {pipeline_mode = #tpu.pipeline_mode<synchronous>, transform_indices = @transform_5, window_bounds = array<i64: 32, 32>}, {pipeline_mode = #tpu.pipeline_mode<synchronous>, transform_indices = @transform_6, window_bounds = array<i64: 32, 32>}, {pipeline_mode = #tpu.pipeline_mode<synchronous>, transform_indices = @transform_7, window_bounds = array<i64: 32, 32>}, {pipeline_mode = #tpu.pipeline_mode<synchronous>, transform_indices = @transform_8, window_bounds = array<i64: 1, 32>}, {transform_indices = @transform_9, window_bounds = array<i64: 1, 64, 32>}]} {
    %c0 = arith.constant 0 : index
    %c0_0 = arith.constant 0 : index
    %c0_1 = arith.constant 0 : index
    %0 = vector.load %arg1[%c0, %c0_0, %c0_1] : memref<1x64x32xf32, #tpu.memory_space<vmem>>, vector<1x64x32xf32>
    %1 = vector.shape_cast %0 : vector<1x64x32xf32> to vector<64x32xf32>
    %c0_2 = arith.constant 0 : index
    %c0_3 = arith.constant 0 : index
    %2 = vector.load %arg3[%c0_2, %c0_3] : memref<1x32xf32, #tpu.memory_space<vmem>>, vector<1x32xf32>
    %c0_4 = arith.constant 0 : index
    %c0_5 = arith.constant 0 : index
    %3 = vector.load %arg4[%c0_4, %c0_5] : memref<1x32xf32, #tpu.memory_space<vmem>>, vector<1x32xf32>
    %cst = arith.constant dense<0.000000e+00> : vector<64xf32>
    %4 = vector.multi_reduction <add>, %1, %cst [1] : vector<64x32xf32> to vector<64xf32>
    %5 = vector.shape_cast %4 : vector<64xf32> to vector<64x1xf32>
    %cst_6 = arith.constant 3.200000e+01 : f32
    %6 = vector.broadcast %cst_6 : f32 to vector<64x1xf32>
    %7 = arith.divf %5, %6 : vector<64x1xf32>
    %8 = vector.broadcast %7 : vector<64x1xf32> to vector<64x32xf32>
    %9 = arith.subf %1, %8 : vector<64x32xf32>
    %10 = arith.mulf %9, %9 : vector<64x32xf32>
    %cst_7 = arith.constant dense<0.000000e+00> : vector<64xf32>
    %11 = vector.multi_reduction <add>, %10, %cst_7 [1] : vector<64x32xf32> to vector<64xf32>
    %12 = vector.shape_cast %11 : vector<64xf32> to vector<64x1xf32>
    %cst_8 = arith.constant 3.200000e+01 : f32
    %13 = vector.broadcast %cst_8 : f32 to vector<64x1xf32>
    %14 = arith.divf %12, %13 : vector<64x1xf32>
    %cst_9 = arith.constant 9.99999997E-7 : f32
    %15 = vector.broadcast %cst_9 : f32 to vector<64x1xf32>
    %16 = arith.addf %14, %15 : vector<64x1xf32>
    %17 = math.rsqrt %16 : vector<64x1xf32>
    %18 = vector.broadcast %17 : vector<64x1xf32> to vector<64x32xf32>
    %19 = arith.mulf %9, %18 : vector<64x32xf32>
    %20 = vector.broadcast %2 : vector<1x32xf32> to vector<64x32xf32>
    %21 = arith.mulf %19, %20 : vector<64x32xf32>
    %22 = vector.broadcast %3 : vector<1x32xf32> to vector<64x32xf32>
    %23 = arith.addf %21, %22 : vector<64x32xf32>
    %24 = arith.truncf %23 : vector<64x32xf32> to vector<64x32xbf16>
    %c0_10 = arith.constant 0 : index
    %c0_11 = arith.constant 0 : index
    %25 = vector.load %arg5[%c0_10, %c0_11] : memref<32x32xbf16, #tpu.memory_space<vmem>>, vector<32x32xbf16>
    %cst_12 = arith.constant dense<0.000000e+00> : vector<64x32xf32>
    %26 = tpu.matmul %24, %25, %cst_12 {dimension_numbers = #tpu.dot_dimension_numbers<[1], [0], [0], [1], [0, 0, 1, 1], [], []>} : vector<64x32xbf16>, vector<32x32xbf16>, vector<64x32xf32> -> vector<64x32xf32>
    %c0_13 = arith.constant 0 : index
    %c0_14 = arith.constant 0 : index
    %c0_15 = arith.constant 0 : index
    %27 = vector.load %arg2[%c0_13, %c0_14, %c0_15] : memref<1x16x32xbf16, #tpu.memory_space<vmem>>, vector<1x16x32xbf16>
    %28 = vector.shape_cast %27 : vector<1x16x32xbf16> to vector<16x32xbf16>
    %c0_16 = arith.constant 0 : index
    %c0_17 = arith.constant 0 : index
    %29 = vector.load %arg6[%c0_16, %c0_17] : memref<32x32xbf16, #tpu.memory_space<vmem>>, vector<32x32xbf16>
    %cst_18 = arith.constant dense<0.000000e+00> : vector<16x32xf32>
    %30 = tpu.matmul %28, %29, %cst_18 {dimension_numbers = #tpu.dot_dimension_numbers<[1], [0], [0], [1], [0, 0, 1, 1], [], []>} : vector<16x32xbf16>, vector<32x32xbf16>, vector<16x32xf32> -> vector<16x32xf32>
    %c0_19 = arith.constant 0 : index
    %c0_20 = arith.constant 0 : index
    %31 = vector.load %arg7[%c0_19, %c0_20] : memref<32x32xbf16, #tpu.memory_space<vmem>>, vector<32x32xbf16>
    %cst_21 = arith.constant dense<0.000000e+00> : vector<16x32xf32>
    %32 = tpu.matmul %28, %31, %cst_21 {dimension_numbers = #tpu.dot_dimension_numbers<[1], [0], [0], [1], [0, 0, 1, 1], [], []>} : vector<16x32xbf16>, vector<32x32xbf16>, vector<16x32xf32> -> vector<16x32xf32>
    %33 = arith.truncf %26 : vector<64x32xf32> to vector<64x32xbf16>
    %34 = arith.truncf %30 : vector<16x32xf32> to vector<16x32xbf16>
    %35 = arith.truncf %32 : vector<16x32xf32> to vector<16x32xbf16>
    %cst_22 = arith.constant dense<0.000000e+00> : vector<64x16xf32>
    %36 = tpu.matmul %33, %34, %cst_22 {dimension_numbers = #tpu.dot_dimension_numbers<[1], [1], [0], [0], [0, 0, 1, 0], [], []>} : vector<64x32xbf16>, vector<16x32xbf16>, vector<64x16xf32> -> vector<64x16xf32>
    %cst_23 = arith.constant dense<0xFF800000> : vector<64xf32>
    %37 = vector.multi_reduction <maximumf>, %36, %cst_23 [1] : vector<64x16xf32> to vector<64xf32>
    %38 = vector.shape_cast %37 : vector<64xf32> to vector<64x1xf32>
    %39 = vector.broadcast %38 : vector<64x1xf32> to vector<64x16xf32>
    %40 = arith.subf %36, %39 : vector<64x16xf32>
    %41 = math.exp %40 : vector<64x16xf32>
    %cst_24 = arith.constant dense<0.000000e+00> : vector<64xf32>
    %42 = vector.multi_reduction <add>, %41, %cst_24 [1] : vector<64x16xf32> to vector<64xf32>
    %43 = vector.shape_cast %42 : vector<64xf32> to vector<64x1xf32>
    %44 = tpu.reciprocal %43 {approx = true} : vector<64x1xf32> -> vector<64x1xf32>
    %45 = arith.truncf %41 : vector<64x16xf32> to vector<64x16xbf16>
    %cst_25 = arith.constant dense<0.000000e+00> : vector<64x32xf32>
    %46 = tpu.matmul %45, %35, %cst_25 {dimension_numbers = #tpu.dot_dimension_numbers<[1], [0], [0], [1], [0, 0, 1, 1], [], []>} : vector<64x16xbf16>, vector<16x32xbf16>, vector<64x32xf32> -> vector<64x32xf32>
    %47 = vector.broadcast %44 : vector<64x1xf32> to vector<64x32xf32>
    %48 = arith.mulf %46, %47 : vector<64x32xf32>
    %49 = arith.truncf %48 : vector<64x32xf32> to vector<64x32xbf16>
    %c0_26 = arith.constant 0 : index
    %c0_27 = arith.constant 0 : index
    %50 = vector.load %arg8[%c0_26, %c0_27] : memref<32x32xbf16, #tpu.memory_space<vmem>>, vector<32x32xbf16>
    %cst_28 = arith.constant dense<0.000000e+00> : vector<64x32xf32>
    %51 = tpu.matmul %49, %50, %cst_28 {dimension_numbers = #tpu.dot_dimension_numbers<[1], [0], [0], [1], [0, 0, 1, 1], [], []>} : vector<64x32xbf16>, vector<32x32xbf16>, vector<64x32xf32> -> vector<64x32xf32>
    %c0_29 = arith.constant 0 : index
    %c0_30 = arith.constant 0 : index
    %52 = vector.load %arg9[%c0_29, %c0_30] : memref<1x32xf32, #tpu.memory_space<vmem>>, vector<1x32xf32>
    %53 = vector.broadcast %52 : vector<1x32xf32> to vector<64x32xf32>
    %54 = arith.addf %51, %53 : vector<64x32xf32>
    %55 = arith.addf %54, %1 : vector<64x32xf32>
    %c0_31 = arith.constant 0 : index
    %c0_32 = arith.constant 0 : index
    %c0_33 = arith.constant 0 : index
    %56 = vector.load %arg10[%c0_31, %c0_32, %c0_33] : memref<1x64x32xf32, #tpu.memory_space<vmem>>, vector<1x64x32xf32>
    %57 = vector.shape_cast %56 : vector<1x64x32xf32> to vector<64x32xf32>
    %58 = vector.shape_cast %55 : vector<64x32xf32> to vector<1x64x32xf32>
    tpu.vector_store %arg10[%c0_31, %c0_32, %c0_33], %58 {strides = array<i32>} : memref<1x64x32xf32, #tpu.memory_space<vmem>>, vector<1x64x32xf32>,
    return
  }
  func.func @transform_0(%arg0: i32) -> (i32, i32, i32) {
    %c0_i32 = arith.constant 0 : i32
    %c0_i32_0 = arith.constant 0 : i32
    %c0_i32_1 = arith.constant 0 : i32
    return %arg0, %c0_i32, %c0_i32_0 : i32, i32, i32
  }
  func.func @transform_1(%arg0: i32) -> (i32, i32, i32) {
    %c0_i32 = arith.constant 0 : i32
    %c0_i32_0 = arith.constant 0 : i32
    %c0_i32_1 = arith.constant 0 : i32
    return %arg0, %c0_i32, %c0_i32_0 : i32, i32, i32
  }
  func.func @transform_2(%arg0: i32) -> (i32, i32) {
    %c0_i32 = arith.constant 0 : i32
    %c0_i32_0 = arith.constant 0 : i32
    %c0_i32_1 = arith.constant 0 : i32
    return %c0_i32, %c0_i32_0 : i32, i32
  }
  func.func @transform_3(%arg0: i32) -> (i32, i32) {
    %c0_i32 = arith.constant 0 : i32
    %c0_i32_0 = arith.constant 0 : i32
    %c0_i32_1 = arith.constant 0 : i32
    return %c0_i32, %c0_i32_0 : i32, i32
  }
  func.func @transform_4(%arg0: i32) -> (i32, i32) {
    %c0_i32 = arith.constant 0 : i32
    %c0_i32_0 = arith.constant 0 : i32
    %c0_i32_1 = arith.constant 0 : i32
    return %c0_i32, %c0_i32_0 : i32, i32
  }
  func.func @transform_5(%arg0: i32) -> (i32, i32) {
    %c0_i32 = arith.constant 0 : i32
    %c0_i32_0 = arith.constant 0 : i32
    %c0_i32_1 = arith.constant 0 : i32
    return %c0_i32, %c0_i32_0 : i32, i32
  }
  func.func @transform_6(%arg0: i32) -> (i32, i32) {
    %c0_i32 = arith.constant 0 : i32
    %c0_i32_0 = arith.constant 0 : i32
    %c0_i32_1 = arith.constant 0 : i32
    return %c0_i32, %c0_i32_0 : i32, i32
  }
  func.func @transform_7(%arg0: i32) -> (i32, i32) {
    %c0_i32 = arith.constant 0 : i32
    %c0_i32_0 = arith.constant 0 : i32
    %c0_i32_1 = arith.constant 0 : i32
    return %c0_i32, %c0_i32_0 : i32, i32
  }
  func.func @transform_8(%arg0: i32) -> (i32, i32) {
    %c0_i32 = arith.constant 0 : i32
    %c0_i32_0 = arith.constant 0 : i32
    %c0_i32_1 = arith.constant 0 : i32
    return %c0_i32, %c0_i32_0 : i32, i32
  }
  func.func @transform_9(%arg0: i32) -> (i32, i32, i32) {
    %c0_i32 = arith.constant 0 : i32
    %c0_i32_0 = arith.constant 0 : i32
    %c0_i32_1 = arith.constant 0 : i32
    return %arg0, %c0_i32, %c0_i32_0 : i32, i32, i32
  }
}

module attributes {stable_mosaic.version = 11 : i64} {
  func.func @_mlp_kernel(%arg0: i32, %arg1: memref<128x32xf32, #tpu.memory_space<vmem>>, %arg2: memref<1x32xf32, #tpu.memory_space<vmem>>, %arg3: memref<1x32xf32, #tpu.memory_space<vmem>>, %arg4: memref<32x128xbf16, #tpu.memory_space<vmem>>, %arg5: memref<1x128xf32, #tpu.memory_space<vmem>>, %arg6: memref<128x32xbf16, #tpu.memory_space<vmem>>, %arg7: memref<1x32xf32, #tpu.memory_space<vmem>>, %arg8: memref<128x32xf32, #tpu.memory_space<vmem>>) attributes {dimension_semantics = [#tpu.dimension_semantics<parallel>], iteration_bounds = array<i64: 1>, scalar_prefetch = 0 : i64, scratch_operands = 0 : i64, tpu.core_type = #tpu.core_type<tc>, window_params = [{transform_indices = @transform_0, window_bounds = array<i64: 128, 32>}, {pipeline_mode = #tpu.pipeline_mode<synchronous>, transform_indices = @transform_1, window_bounds = array<i64: 1, 32>}, {pipeline_mode = #tpu.pipeline_mode<synchronous>, transform_indices = @transform_2, window_bounds = array<i64: 1, 32>}, {pipeline_mode = #tpu.pipeline_mode<synchronous>, transform_indices = @transform_3, window_bounds = array<i64: 32, 128>}, {pipeline_mode = #tpu.pipeline_mode<synchronous>, transform_indices = @transform_4, window_bounds = array<i64: 1, 128>}, {pipeline_mode = #tpu.pipeline_mode<synchronous>, transform_indices = @transform_5, window_bounds = array<i64: 128, 32>}, {pipeline_mode = #tpu.pipeline_mode<synchronous>, transform_indices = @transform_6, window_bounds = array<i64: 1, 32>}, {transform_indices = @transform_7, window_bounds = array<i64: 128, 32>}]} {
    %c0 = arith.constant 0 : index
    %c0_0 = arith.constant 0 : index
    %0 = vector.load %arg1[%c0, %c0_0] : memref<128x32xf32, #tpu.memory_space<vmem>>, vector<128x32xf32>
    %c0_1 = arith.constant 0 : index
    %c0_2 = arith.constant 0 : index
    %1 = vector.load %arg2[%c0_1, %c0_2] : memref<1x32xf32, #tpu.memory_space<vmem>>, vector<1x32xf32>
    %c0_3 = arith.constant 0 : index
    %c0_4 = arith.constant 0 : index
    %2 = vector.load %arg3[%c0_3, %c0_4] : memref<1x32xf32, #tpu.memory_space<vmem>>, vector<1x32xf32>
    %cst = arith.constant dense<0.000000e+00> : vector<128xf32>
    %3 = vector.multi_reduction <add>, %0, %cst [1] : vector<128x32xf32> to vector<128xf32>
    %4 = vector.shape_cast %3 : vector<128xf32> to vector<128x1xf32>
    %cst_5 = arith.constant 3.200000e+01 : f32
    %5 = vector.broadcast %cst_5 : f32 to vector<128x1xf32>
    %6 = arith.divf %4, %5 : vector<128x1xf32>
    %7 = vector.broadcast %6 : vector<128x1xf32> to vector<128x32xf32>
    %8 = arith.subf %0, %7 : vector<128x32xf32>
    %9 = arith.mulf %8, %8 : vector<128x32xf32>
    %cst_6 = arith.constant dense<0.000000e+00> : vector<128xf32>
    %10 = vector.multi_reduction <add>, %9, %cst_6 [1] : vector<128x32xf32> to vector<128xf32>
    %11 = vector.shape_cast %10 : vector<128xf32> to vector<128x1xf32>
    %cst_7 = arith.constant 3.200000e+01 : f32
    %12 = vector.broadcast %cst_7 : f32 to vector<128x1xf32>
    %13 = arith.divf %11, %12 : vector<128x1xf32>
    %cst_8 = arith.constant 9.99999997E-7 : f32
    %14 = vector.broadcast %cst_8 : f32 to vector<128x1xf32>
    %15 = arith.addf %13, %14 : vector<128x1xf32>
    %16 = math.rsqrt %15 : vector<128x1xf32>
    %17 = vector.broadcast %16 : vector<128x1xf32> to vector<128x32xf32>
    %18 = arith.mulf %8, %17 : vector<128x32xf32>
    %19 = vector.broadcast %1 : vector<1x32xf32> to vector<128x32xf32>
    %20 = arith.mulf %18, %19 : vector<128x32xf32>
    %21 = vector.broadcast %2 : vector<1x32xf32> to vector<128x32xf32>
    %22 = arith.addf %20, %21 : vector<128x32xf32>
    %23 = arith.truncf %22 : vector<128x32xf32> to vector<128x32xbf16>
    %c0_9 = arith.constant 0 : index
    %c0_10 = arith.constant 0 : index
    %24 = vector.load %arg4[%c0_9, %c0_10] : memref<32x128xbf16, #tpu.memory_space<vmem>>, vector<32x128xbf16>
    %cst_11 = arith.constant dense<0.000000e+00> : vector<128x128xf32>
    %25 = tpu.matmul %23, %24, %cst_11 {dimension_numbers = #tpu.dot_dimension_numbers<[1], [0], [0], [1], [0, 0, 1, 1], [], []>} : vector<128x32xbf16>, vector<32x128xbf16>, vector<128x128xf32> -> vector<128x128xf32>
    %c0_12 = arith.constant 0 : index
    %c0_13 = arith.constant 0 : index
    %26 = vector.load %arg5[%c0_12, %c0_13] : memref<1x128xf32, #tpu.memory_space<vmem>>, vector<1x128xf32>
    %27 = vector.broadcast %26 : vector<1x128xf32> to vector<128x128xf32>
    %28 = arith.addf %25, %27 : vector<128x128xf32>
    %cst_14 = arith.constant 5.000000e-01 : f32
    %29 = vector.broadcast %cst_14 : f32 to vector<128x128xf32>
    %30 = arith.mulf %29, %28 : vector<128x128xf32>
    %cst_15 = arith.constant 4.471500e-02 : f32
    %31 = vector.broadcast %cst_15 : f32 to vector<128x128xf32>
    %32 = arith.mulf %31, %28 : vector<128x128xf32>
    %33 = arith.mulf %32, %28 : vector<128x128xf32>
    %34 = arith.mulf %33, %28 : vector<128x128xf32>
    %35 = arith.addf %28, %34 : vector<128x128xf32>
    %cst_16 = arith.constant 0.797884583 : f32
    %36 = vector.broadcast %cst_16 : f32 to vector<128x128xf32>
    %37 = arith.mulf %36, %35 : vector<128x128xf32>
    %38 = math.tanh %37 : vector<128x128xf32>
    %cst_17 = arith.constant 1.000000e+00 : f32
    %39 = vector.broadcast %cst_17 : f32 to vector<128x128xf32>
    %40 = arith.addf %39, %38 : vector<128x128xf32>
    %41 = arith.mulf %30, %40 : vector<128x128xf32>
    %42 = arith.truncf %41 : vector<128x128xf32> to vector<128x128xbf16>
    %c0_18 = arith.constant 0 : index
    %c0_19 = arith.constant 0 : index
    %43 = vector.load %arg6[%c0_18, %c0_19] : memref<128x32xbf16, #tpu.memory_space<vmem>>, vector<128x32xbf16>
    %cst_20 = arith.constant dense<0.000000e+00> : vector<128x32xf32>
    %44 = tpu.matmul %42, %43, %cst_20 {dimension_numbers = #tpu.dot_dimension_numbers<[1], [0], [0], [1], [0, 0, 1, 1], [], []>} : vector<128x128xbf16>, vector<128x32xbf16>, vector<128x32xf32> -> vector<128x32xf32>
    %c0_21 = arith.constant 0 : index
    %c0_22 = arith.constant 0 : index
    %45 = vector.load %arg7[%c0_21, %c0_22] : memref<1x32xf32, #tpu.memory_space<vmem>>, vector<1x32xf32>
    %46 = vector.broadcast %45 : vector<1x32xf32> to vector<128x32xf32>
    %47 = arith.addf %44, %46 : vector<128x32xf32>
    %48 = arith.addf %0, %47 : vector<128x32xf32>
    %c0_23 = arith.constant 0 : index
    %c0_24 = arith.constant 0 : index
    %49 = vector.load %arg8[%c0_23, %c0_24] : memref<128x32xf32, #tpu.memory_space<vmem>>, vector<128x32xf32>
    tpu.vector_store %arg8[%c0_23, %c0_24], %48 {strides = array<i32>} : memref<128x32xf32, #tpu.memory_space<vmem>>, vector<128x32xf32>,
    return
  }
  func.func @transform_0(%arg0: i32) -> (i32, i32) {
    %c0_i32 = arith.constant 0 : i32
    %c0_i32_0 = arith.constant 0 : i32
    return %arg0, %c0_i32 : i32, i32
  }
  func.func @transform_1(%arg0: i32) -> (i32, i32) {
    %c0_i32 = arith.constant 0 : i32
    %c0_i32_0 = arith.constant 0 : i32
    %c0_i32_1 = arith.constant 0 : i32
    return %c0_i32, %c0_i32_0 : i32, i32
  }
  func.func @transform_2(%arg0: i32) -> (i32, i32) {
    %c0_i32 = arith.constant 0 : i32
    %c0_i32_0 = arith.constant 0 : i32
    %c0_i32_1 = arith.constant 0 : i32
    return %c0_i32, %c0_i32_0 : i32, i32
  }
  func.func @transform_3(%arg0: i32) -> (i32, i32) {
    %c0_i32 = arith.constant 0 : i32
    %c0_i32_0 = arith.constant 0 : i32
    %c0_i32_1 = arith.constant 0 : i32
    return %c0_i32, %c0_i32_0 : i32, i32
  }
  func.func @transform_4(%arg0: i32) -> (i32, i32) {
    %c0_i32 = arith.constant 0 : i32
    %c0_i32_0 = arith.constant 0 : i32
    %c0_i32_1 = arith.constant 0 : i32
    return %c0_i32, %c0_i32_0 : i32, i32
  }
  func.func @transform_5(%arg0: i32) -> (i32, i32) {
    %c0_i32 = arith.constant 0 : i32
    %c0_i32_0 = arith.constant 0 : i32
    %c0_i32_1 = arith.constant 0 : i32
    return %c0_i32, %c0_i32_0 : i32, i32
  }
  func.func @transform_6(%arg0: i32) -> (i32, i32) {
    %c0_i32 = arith.constant 0 : i32
    %c0_i32_0 = arith.constant 0 : i32
    %c0_i32_1 = arith.constant 0 : i32
    return %c0_i32, %c0_i32_0 : i32, i32
  }
  func.func @transform_7(%arg0: i32) -> (i32, i32) {
    %c0_i32 = arith.constant 0 : i32
    %c0_i32_0 = arith.constant 0 : i32
    return %arg0, %c0_i32 : i32, i32
  }
}

module attributes {stable_mosaic.version = 11 : i64} {
  func.func @_ln_only_kernel(%arg0: i32, %arg1: memref<32x64xf32, #tpu.memory_space<vmem>>, %arg2: memref<1x64xf32, #tpu.memory_space<vmem>>, %arg3: memref<1x64xf32, #tpu.memory_space<vmem>>, %arg4: memref<32x64xbf16, #tpu.memory_space<vmem>>) attributes {dimension_semantics = [#tpu.dimension_semantics<parallel>], iteration_bounds = array<i64: 1>, scalar_prefetch = 0 : i64, scratch_operands = 0 : i64, tpu.core_type = #tpu.core_type<tc>, window_params = [{transform_indices = @transform_0, window_bounds = array<i64: 32, 64>}, {pipeline_mode = #tpu.pipeline_mode<synchronous>, transform_indices = @transform_1, window_bounds = array<i64: 1, 64>}, {pipeline_mode = #tpu.pipeline_mode<synchronous>, transform_indices = @transform_2, window_bounds = array<i64: 1, 64>}, {transform_indices = @transform_3, window_bounds = array<i64: 32, 64>}]} {
    %c0 = arith.constant 0 : index
    %c0_0 = arith.constant 0 : index
    %0 = vector.load %arg1[%c0, %c0_0] : memref<32x64xf32, #tpu.memory_space<vmem>>, vector<32x64xf32>
    %c0_1 = arith.constant 0 : index
    %c0_2 = arith.constant 0 : index
    %1 = vector.load %arg2[%c0_1, %c0_2] : memref<1x64xf32, #tpu.memory_space<vmem>>, vector<1x64xf32>
    %c0_3 = arith.constant 0 : index
    %c0_4 = arith.constant 0 : index
    %2 = vector.load %arg3[%c0_3, %c0_4] : memref<1x64xf32, #tpu.memory_space<vmem>>, vector<1x64xf32>
    %cst = arith.constant dense<0.000000e+00> : vector<32xf32>
    %3 = vector.multi_reduction <add>, %0, %cst [1] : vector<32x64xf32> to vector<32xf32>
    %4 = vector.shape_cast %3 : vector<32xf32> to vector<32x1xf32>
    %cst_5 = arith.constant 6.400000e+01 : f32
    %5 = vector.broadcast %cst_5 : f32 to vector<32x1xf32>
    %6 = arith.divf %4, %5 : vector<32x1xf32>
    %7 = vector.broadcast %6 : vector<32x1xf32> to vector<32x64xf32>
    %8 = arith.subf %0, %7 : vector<32x64xf32>
    %9 = arith.mulf %8, %8 : vector<32x64xf32>
    %cst_6 = arith.constant dense<0.000000e+00> : vector<32xf32>
    %10 = vector.multi_reduction <add>, %9, %cst_6 [1] : vector<32x64xf32> to vector<32xf32>
    %11 = vector.shape_cast %10 : vector<32xf32> to vector<32x1xf32>
    %cst_7 = arith.constant 6.400000e+01 : f32
    %12 = vector.broadcast %cst_7 : f32 to vector<32x1xf32>
    %13 = arith.divf %11, %12 : vector<32x1xf32>
    %cst_8 = arith.constant 9.99999997E-7 : f32
    %14 = vector.broadcast %cst_8 : f32 to vector<32x1xf32>
    %15 = arith.addf %13, %14 : vector<32x1xf32>
    %16 = math.rsqrt %15 : vector<32x1xf32>
    %17 = vector.broadcast %16 : vector<32x1xf32> to vector<32x64xf32>
    %18 = arith.mulf %8, %17 : vector<32x64xf32>
    %19 = vector.broadcast %1 : vector<1x64xf32> to vector<32x64xf32>
    %20 = arith.mulf %18, %19 : vector<32x64xf32>
    %21 = vector.broadcast %2 : vector<1x64xf32> to vector<32x64xf32>
    %22 = arith.addf %20, %21 : vector<32x64xf32>
    %23 = arith.truncf %22 : vector<32x64xf32> to vector<32x64xbf16>
    %c0_9 = arith.constant 0 : index
    %c0_10 = arith.constant 0 : index
    %24 = vector.load %arg4[%c0_9, %c0_10] : memref<32x64xbf16, #tpu.memory_space<vmem>>, vector<32x64xbf16>
    tpu.vector_store %arg4[%c0_9, %c0_10], %23 {strides = array<i32>} : memref<32x64xbf16, #tpu.memory_space<vmem>>, vector<32x64xbf16>,
    return
  }
  func.func @transform_0(%arg0: i32) -> (i32, i32) {
    %c0_i32 = arith.constant 0 : i32
    %c0_i32_0 = arith.constant 0 : i32
    return %arg0, %c0_i32 : i32, i32
  }
  func.func @transform_1(%arg0: i32) -> (i32, i32) {
    %c0_i32 = arith.constant 0 : i32
    %c0_i32_0 = arith.constant 0 : i32
    %c0_i32_1 = arith.constant 0 : i32
    return %c0_i32, %c0_i32_0 : i32, i32
  }
  func.func @transform_2(%arg0: i32) -> (i32, i32) {
    %c0_i32 = arith.constant 0 : i32
    %c0_i32_0 = arith.constant 0 : i32
    %c0_i32_1 = arith.constant 0 : i32
    return %c0_i32, %c0_i32_0 : i32, i32
  }
  func.func @transform_3(%arg0: i32) -> (i32, i32) {
    %c0_i32 = arith.constant 0 : i32
    %c0_i32_0 = arith.constant 0 : i32
    return %arg0, %c0_i32 : i32, i32
  }
}

module attributes {stable_mosaic.version = 11 : i64} {
  func.func @_patch_embed_kernel(%arg0: i32, %arg1: memref<1x16x128xbf16, #tpu.memory_space<vmem>>, %arg2: memref<128x64xbf16, #tpu.memory_space<vmem>>, %arg3: memref<1x64xf32, #tpu.memory_space<vmem>>, %arg4: memref<1x64xf32, #tpu.memory_space<vmem>>, %arg5: memref<1x64xf32, #tpu.memory_space<vmem>>, %arg6: memref<16x64xf32, #tpu.memory_space<vmem>>, %arg7: memref<1x16x64xf32, #tpu.memory_space<vmem>>) attributes {dimension_semantics = [#tpu.dimension_semantics<parallel>], iteration_bounds = array<i64: 2>, scalar_prefetch = 0 : i64, scratch_operands = 0 : i64, tpu.core_type = #tpu.core_type<tc>, window_params = [{transform_indices = @transform_0, window_bounds = array<i64: 1, 16, 128>}, {pipeline_mode = #tpu.pipeline_mode<synchronous>, transform_indices = @transform_1, window_bounds = array<i64: 128, 64>}, {pipeline_mode = #tpu.pipeline_mode<synchronous>, transform_indices = @transform_2, window_bounds = array<i64: 1, 64>}, {pipeline_mode = #tpu.pipeline_mode<synchronous>, transform_indices = @transform_3, window_bounds = array<i64: 1, 64>}, {pipeline_mode = #tpu.pipeline_mode<synchronous>, transform_indices = @transform_4, window_bounds = array<i64: 1, 64>}, {pipeline_mode = #tpu.pipeline_mode<synchronous>, transform_indices = @transform_5, window_bounds = array<i64: 16, 64>}, {transform_indices = @transform_6, window_bounds = array<i64: 1, 16, 64>}]} {
    %c0 = arith.constant 0 : index
    %c0_0 = arith.constant 0 : index
    %c0_1 = arith.constant 0 : index
    %0 = vector.load %arg1[%c0, %c0_0, %c0_1] : memref<1x16x128xbf16, #tpu.memory_space<vmem>>, vector<1x16x128xbf16>
    %1 = vector.shape_cast %0 : vector<1x16x128xbf16> to vector<16x128xbf16>
    %c0_2 = arith.constant 0 : index
    %c0_3 = arith.constant 0 : index
    %2 = vector.load %arg2[%c0_2, %c0_3] : memref<128x64xbf16, #tpu.memory_space<vmem>>, vector<128x64xbf16>
    %cst = arith.constant dense<0.000000e+00> : vector<16x64xf32>
    %3 = tpu.matmul %1, %2, %cst {dimension_numbers = #tpu.dot_dimension_numbers<[1], [0], [0], [1], [0, 0, 1, 1], [], []>} : vector<16x128xbf16>, vector<128x64xbf16>, vector<16x64xf32> -> vector<16x64xf32>
    %c0_4 = arith.constant 0 : index
    %c0_5 = arith.constant 0 : index
    %4 = vector.load %arg3[%c0_4, %c0_5] : memref<1x64xf32, #tpu.memory_space<vmem>>, vector<1x64xf32>
    %5 = vector.broadcast %4 : vector<1x64xf32> to vector<16x64xf32>
    %6 = arith.addf %3, %5 : vector<16x64xf32>
    %c0_6 = arith.constant 0 : index
    %c0_7 = arith.constant 0 : index
    %7 = vector.load %arg4[%c0_6, %c0_7] : memref<1x64xf32, #tpu.memory_space<vmem>>, vector<1x64xf32>
    %c0_8 = arith.constant 0 : index
    %c0_9 = arith.constant 0 : index
    %8 = vector.load %arg5[%c0_8, %c0_9] : memref<1x64xf32, #tpu.memory_space<vmem>>, vector<1x64xf32>
    %cst_10 = arith.constant dense<0.000000e+00> : vector<16xf32>
    %9 = vector.multi_reduction <add>, %6, %cst_10 [1] : vector<16x64xf32> to vector<16xf32>
    %10 = vector.shape_cast %9 : vector<16xf32> to vector<16x1xf32>
    %cst_11 = arith.constant 6.400000e+01 : f32
    %11 = vector.broadcast %cst_11 : f32 to vector<16x1xf32>
    %12 = arith.divf %10, %11 : vector<16x1xf32>
    %13 = vector.broadcast %12 : vector<16x1xf32> to vector<16x64xf32>
    %14 = arith.subf %6, %13 : vector<16x64xf32>
    %15 = arith.mulf %14, %14 : vector<16x64xf32>
    %cst_12 = arith.constant dense<0.000000e+00> : vector<16xf32>
    %16 = vector.multi_reduction <add>, %15, %cst_12 [1] : vector<16x64xf32> to vector<16xf32>
    %17 = vector.shape_cast %16 : vector<16xf32> to vector<16x1xf32>
    %cst_13 = arith.constant 6.400000e+01 : f32
    %18 = vector.broadcast %cst_13 : f32 to vector<16x1xf32>
    %19 = arith.divf %17, %18 : vector<16x1xf32>
    %cst_14 = arith.constant 9.99999997E-7 : f32
    %20 = vector.broadcast %cst_14 : f32 to vector<16x1xf32>
    %21 = arith.addf %19, %20 : vector<16x1xf32>
    %22 = math.rsqrt %21 : vector<16x1xf32>
    %23 = vector.broadcast %22 : vector<16x1xf32> to vector<16x64xf32>
    %24 = arith.mulf %14, %23 : vector<16x64xf32>
    %25 = vector.broadcast %7 : vector<1x64xf32> to vector<16x64xf32>
    %26 = arith.mulf %24, %25 : vector<16x64xf32>
    %27 = vector.broadcast %8 : vector<1x64xf32> to vector<16x64xf32>
    %28 = arith.addf %26, %27 : vector<16x64xf32>
    %c0_15 = arith.constant 0 : index
    %c0_16 = arith.constant 0 : index
    %29 = vector.load %arg6[%c0_15, %c0_16] : memref<16x64xf32, #tpu.memory_space<vmem>>, vector<16x64xf32>
    %30 = arith.addf %28, %29 : vector<16x64xf32>
    %c0_17 = arith.constant 0 : index
    %c0_18 = arith.constant 0 : index
    %c0_19 = arith.constant 0 : index
    %31 = vector.load %arg7[%c0_17, %c0_18, %c0_19] : memref<1x16x64xf32, #tpu.memory_space<vmem>>, vector<1x16x64xf32>
    %32 = vector.shape_cast %31 : vector<1x16x64xf32> to vector<16x64xf32>
    %33 = vector.shape_cast %30 : vector<16x64xf32> to vector<1x16x64xf32>
    tpu.vector_store %arg7[%c0_17, %c0_18, %c0_19], %33 {strides = array<i32>} : memref<1x16x64xf32, #tpu.memory_space<vmem>>, vector<1x16x64xf32>,
    return
  }
  func.func @transform_0(%arg0: i32) -> (i32, i32, i32) {
    %c0_i32 = arith.constant 0 : i32
    %c0_i32_0 = arith.constant 0 : i32
    %c0_i32_1 = arith.constant 0 : i32
    return %arg0, %c0_i32, %c0_i32_0 : i32, i32, i32
  }
  func.func @transform_1(%arg0: i32) -> (i32, i32) {
    %c0_i32 = arith.constant 0 : i32
    %c0_i32_0 = arith.constant 0 : i32
    %c0_i32_1 = arith.constant 0 : i32
    return %c0_i32, %c0_i32_0 : i32, i32
  }
  func.func @transform_2(%arg0: i32) -> (i32, i32) {
    %c0_i32 = arith.constant 0 : i32
    %c0_i32_0 = arith.constant 0 : i32
    %c0_i32_1 = arith.constant 0 : i32
    return %c0_i32, %c0_i32_0 : i32, i32
  }
  func.func @transform_3(%arg0: i32) -> (i32, i32) {
    %c0_i32 = arith.constant 0 : i32
    %c0_i32_0 = arith.constant 0 : i32
    %c0_i32_1 = arith.constant 0 : i32
    return %c0_i32, %c0_i32_0 : i32, i32
  }
  func.func @transform_4(%arg0: i32) -> (i32, i32) {
    %c0_i32 = arith.constant 0 : i32
    %c0_i32_0 = arith.constant 0 : i32
    %c0_i32_1 = arith.constant 0 : i32
    return %c0_i32, %c0_i32_0 : i32, i32
  }
  func.func @transform_5(%arg0: i32) -> (i32, i32) {
    %c0_i32 = arith.constant 0 : i32
    %c0_i32_0 = arith.constant 0 : i32
    %c0_i32_1 = arith.constant 0 : i32
    return %c0_i32, %c0_i32_0 : i32, i32
  }
  func.func @transform_6(%arg0: i32) -> (i32, i32, i32) {
    %c0_i32 = arith.constant 0 : i32
    %c0_i32_0 = arith.constant 0 : i32
    %c0_i32_1 = arith.constant 0 : i32
    return %arg0, %c0_i32, %c0_i32_0 : i32, i32, i32
  }
}

module attributes {stable_mosaic.version = 11 : i64} {
  func.func @_mm_kernel(%arg0: i32, %arg1: memref<16x256xbf16, #tpu.memory_space<vmem>>, %arg2: memref<256x64xbf16, #tpu.memory_space<vmem>>, %arg3: memref<1x64xf32, #tpu.memory_space<vmem>>, %arg4: memref<1x64xf32, #tpu.memory_space<vmem>>, %arg5: memref<1x64xf32, #tpu.memory_space<vmem>>, %arg6: memref<1x64xf32, #tpu.memory_space<vmem>>, %arg7: memref<16x64xbf16, #tpu.memory_space<vmem>>) attributes {dimension_semantics = [#tpu.dimension_semantics<parallel>], iteration_bounds = array<i64: 1>, scalar_prefetch = 0 : i64, scratch_operands = 0 : i64, tpu.core_type = #tpu.core_type<tc>, window_params = [{transform_indices = @transform_0, window_bounds = array<i64: 16, 256>}, {pipeline_mode = #tpu.pipeline_mode<synchronous>, transform_indices = @transform_1, window_bounds = array<i64: 256, 64>}, {pipeline_mode = #tpu.pipeline_mode<synchronous>, transform_indices = @transform_2, window_bounds = array<i64: 1, 64>}, {pipeline_mode = #tpu.pipeline_mode<synchronous>, transform_indices = @transform_3, window_bounds = array<i64: 1, 64>}, {pipeline_mode = #tpu.pipeline_mode<synchronous>, transform_indices = @transform_4, window_bounds = array<i64: 1, 64>}, {pipeline_mode = #tpu.pipeline_mode<synchronous>, transform_indices = @transform_5, window_bounds = array<i64: 1, 64>}, {transform_indices = @transform_6, window_bounds = array<i64: 16, 64>}]} {
    %c0 = arith.constant 0 : index
    %c0_0 = arith.constant 0 : index
    %0 = vector.load %arg1[%c0, %c0_0] : memref<16x256xbf16, #tpu.memory_space<vmem>>, vector<16x256xbf16>
    %c0_1 = arith.constant 0 : index
    %c0_2 = arith.constant 0 : index
    %1 = vector.load %arg2[%c0_1, %c0_2] : memref<256x64xbf16, #tpu.memory_space<vmem>>, vector<256x64xbf16>
    %cst = arith.constant dense<0.000000e+00> : vector<16x64xf32>
    %2 = tpu.matmul %0, %1, %cst {dimension_numbers = #tpu.dot_dimension_numbers<[1], [0], [0], [1], [0, 0, 1, 1], [], []>} : vector<16x256xbf16>, vector<256x64xbf16>, vector<16x64xf32> -> vector<16x64xf32>
    %c0_3 = arith.constant 0 : index
    %c0_4 = arith.constant 0 : index
    %3 = vector.load %arg3[%c0_3, %c0_4] : memref<1x64xf32, #tpu.memory_space<vmem>>, vector<1x64xf32>
    %4 = vector.broadcast %3 : vector<1x64xf32> to vector<16x64xf32>
    %5 = arith.mulf %2, %4 : vector<16x64xf32>
    %c0_5 = arith.constant 0 : index
    %c0_6 = arith.constant 0 : index
    %6 = vector.load %arg4[%c0_5, %c0_6] : memref<1x64xf32, #tpu.memory_space<vmem>>, vector<1x64xf32>
    %7 = vector.broadcast %6 : vector<1x64xf32> to vector<16x64xf32>
    %8 = arith.addf %5, %7 : vector<16x64xf32>
    %c0_7 = arith.constant 0 : index
    %c0_8 = arith.constant 0 : index
    %9 = vector.load %arg5[%c0_7, %c0_8] : memref<1x64xf32, #tpu.memory_space<vmem>>, vector<1x64xf32>
    %c0_9 = arith.constant 0 : index
    %c0_10 = arith.constant 0 : index
    %10 = vector.load %arg6[%c0_9, %c0_10] : memref<1x64xf32, #tpu.memory_space<vmem>>, vector<1x64xf32>
    %cst_11 = arith.constant dense<0.000000e+00> : vector<16xf32>
    %11 = vector.multi_reduction <add>, %8, %cst_11 [1] : vector<16x64xf32> to vector<16xf32>
    %12 = vector.shape_cast %11 : vector<16xf32> to vector<16x1xf32>
    %cst_12 = arith.constant 6.400000e+01 : f32
    %13 = vector.broadcast %cst_12 : f32 to vector<16x1xf32>
    %14 = arith.divf %12, %13 : vector<16x1xf32>
    %15 = vector.broadcast %14 : vector<16x1xf32> to vector<16x64xf32>
    %16 = arith.subf %8, %15 : vector<16x64xf32>
    %17 = arith.mulf %16, %16 : vector<16x64xf32>
    %cst_13 = arith.constant dense<0.000000e+00> : vector<16xf32>
    %18 = vector.multi_reduction <add>, %17, %cst_13 [1] : vector<16x64xf32> to vector<16xf32>
    %19 = vector.shape_cast %18 : vector<16xf32> to vector<16x1xf32>
    %cst_14 = arith.constant 6.400000e+01 : f32
    %20 = vector.broadcast %cst_14 : f32 to vector<16x1xf32>
    %21 = arith.divf %19, %20 : vector<16x1xf32>
    %cst_15 = arith.constant 9.99999997E-7 : f32
    %22 = vector.broadcast %cst_15 : f32 to vector<16x1xf32>
    %23 = arith.addf %21, %22 : vector<16x1xf32>
    %24 = math.rsqrt %23 : vector<16x1xf32>
    %25 = vector.broadcast %24 : vector<16x1xf32> to vector<16x64xf32>
    %26 = arith.mulf %16, %25 : vector<16x64xf32>
    %27 = vector.broadcast %9 : vector<1x64xf32> to vector<16x64xf32>
    %28 = arith.mulf %26, %27 : vector<16x64xf32>
    %29 = vector.broadcast %10 : vector<1x64xf32> to vector<16x64xf32>
    %30 = arith.addf %28, %29 : vector<16x64xf32>
    %31 = arith.truncf %30 : vector<16x64xf32> to vector<16x64xbf16>
    %c0_16 = arith.constant 0 : index
    %c0_17 = arith.constant 0 : index
    %32 = vector.load %arg7[%c0_16, %c0_17] : memref<16x64xbf16, #tpu.memory_space<vmem>>, vector<16x64xbf16>
    tpu.vector_store %arg7[%c0_16, %c0_17], %31 {strides = array<i32>} : memref<16x64xbf16, #tpu.memory_space<vmem>>, vector<16x64xbf16>,
    return
  }
  func.func @transform_0(%arg0: i32) -> (i32, i32) {
    %c0_i32 = arith.constant 0 : i32
    %c0_i32_0 = arith.constant 0 : i32
    return %arg0, %c0_i32 : i32, i32
  }
  func.func @transform_1(%arg0: i32) -> (i32, i32) {
    %c0_i32 = arith.constant 0 : i32
    %c0_i32_0 = arith.constant 0 : i32
    %c0_i32_1 = arith.constant 0 : i32
    return %c0_i32, %c0_i32_0 : i32, i32
  }
  func.func @transform_2(%arg0: i32) -> (i32, i32) {
    %c0_i32 = arith.constant 0 : i32
    %c0_i32_0 = arith.constant 0 : i32
    %c0_i32_1 = arith.constant 0 : i32
    return %c0_i32, %c0_i32_0 : i32, i32
  }
  func.func @transform_3(%arg0: i32) -> (i32, i32) {
    %c0_i32 = arith.constant 0 : i32
    %c0_i32_0 = arith.constant 0 : i32
    %c0_i32_1 = arith.constant 0 : i32
    return %c0_i32, %c0_i32_0 : i32, i32
  }
  func.func @transform_4(%arg0: i32) -> (i32, i32) {
    %c0_i32 = arith.constant 0 : i32
    %c0_i32_0 = arith.constant 0 : i32
    %c0_i32_1 = arith.constant 0 : i32
    return %c0_i32, %c0_i32_0 : i32, i32
  }
  func.func @transform_5(%arg0: i32) -> (i32, i32) {
    %c0_i32 = arith.constant 0 : i32
    %c0_i32_0 = arith.constant 0 : i32
    %c0_i32_1 = arith.constant 0 : i32
    return %c0_i32, %c0_i32_0 : i32, i32
  }
  func.func @transform_6(%arg0: i32) -> (i32, i32) {
    %c0_i32 = arith.constant 0 : i32
    %c0_i32_0 = arith.constant 0 : i32
    return %arg0, %c0_i32 : i32, i32
  }
}

module attributes {stable_mosaic.version = 11 : i64} {
  func.func @_attn_kernel(%arg0: i32, %arg1: memref<1x16x64xf32, #tpu.memory_space<vmem>>, %arg2: memref<1x4x64xbf16, #tpu.memory_space<vmem>>, %arg3: memref<1x64xf32, #tpu.memory_space<vmem>>, %arg4: memref<1x64xf32, #tpu.memory_space<vmem>>, %arg5: memref<64x64xbf16, #tpu.memory_space<vmem>>, %arg6: memref<64x64xbf16, #tpu.memory_space<vmem>>, %arg7: memref<64x64xbf16, #tpu.memory_space<vmem>>, %arg8: memref<64x64xbf16, #tpu.memory_space<vmem>>, %arg9: memref<1x64xf32, #tpu.memory_space<vmem>>, %arg10: memref<1x16x64xf32, #tpu.memory_space<vmem>>) attributes {dimension_semantics = [#tpu.dimension_semantics<parallel>], iteration_bounds = array<i64: 2>, scalar_prefetch = 0 : i64, scratch_operands = 0 : i64, tpu.core_type = #tpu.core_type<tc>, window_params = [{transform_indices = @transform_0, window_bounds = array<i64: 1, 16, 64>}, {transform_indices = @transform_1, window_bounds = array<i64: 1, 4, 64>}, {pipeline_mode = #tpu.pipeline_mode<synchronous>, transform_indices = @transform_2, window_bounds = array<i64: 1, 64>}, {pipeline_mode = #tpu.pipeline_mode<synchronous>, transform_indices = @transform_3, window_bounds = array<i64: 1, 64>}, {pipeline_mode = #tpu.pipeline_mode<synchronous>, transform_indices = @transform_4, window_bounds = array<i64: 64, 64>}, {pipeline_mode = #tpu.pipeline_mode<synchronous>, transform_indices = @transform_5, window_bounds = array<i64: 64, 64>}, {pipeline_mode = #tpu.pipeline_mode<synchronous>, transform_indices = @transform_6, window_bounds = array<i64: 64, 64>}, {pipeline_mode = #tpu.pipeline_mode<synchronous>, transform_indices = @transform_7, window_bounds = array<i64: 64, 64>}, {pipeline_mode = #tpu.pipeline_mode<synchronous>, transform_indices = @transform_8, window_bounds = array<i64: 1, 64>}, {transform_indices = @transform_9, window_bounds = array<i64: 1, 16, 64>}]} {
    %c0 = arith.constant 0 : index
    %c0_0 = arith.constant 0 : index
    %c0_1 = arith.constant 0 : index
    %0 = vector.load %arg1[%c0, %c0_0, %c0_1] : memref<1x16x64xf32, #tpu.memory_space<vmem>>, vector<1x16x64xf32>
    %1 = vector.shape_cast %0 : vector<1x16x64xf32> to vector<16x64xf32>
    %c0_2 = arith.constant 0 : index
    %c0_3 = arith.constant 0 : index
    %2 = vector.load %arg3[%c0_2, %c0_3] : memref<1x64xf32, #tpu.memory_space<vmem>>, vector<1x64xf32>
    %c0_4 = arith.constant 0 : index
    %c0_5 = arith.constant 0 : index
    %3 = vector.load %arg4[%c0_4, %c0_5] : memref<1x64xf32, #tpu.memory_space<vmem>>, vector<1x64xf32>
    %cst = arith.constant dense<0.000000e+00> : vector<16xf32>
    %4 = vector.multi_reduction <add>, %1, %cst [1] : vector<16x64xf32> to vector<16xf32>
    %5 = vector.shape_cast %4 : vector<16xf32> to vector<16x1xf32>
    %cst_6 = arith.constant 6.400000e+01 : f32
    %6 = vector.broadcast %cst_6 : f32 to vector<16x1xf32>
    %7 = arith.divf %5, %6 : vector<16x1xf32>
    %8 = vector.broadcast %7 : vector<16x1xf32> to vector<16x64xf32>
    %9 = arith.subf %1, %8 : vector<16x64xf32>
    %10 = arith.mulf %9, %9 : vector<16x64xf32>
    %cst_7 = arith.constant dense<0.000000e+00> : vector<16xf32>
    %11 = vector.multi_reduction <add>, %10, %cst_7 [1] : vector<16x64xf32> to vector<16xf32>
    %12 = vector.shape_cast %11 : vector<16xf32> to vector<16x1xf32>
    %cst_8 = arith.constant 6.400000e+01 : f32
    %13 = vector.broadcast %cst_8 : f32 to vector<16x1xf32>
    %14 = arith.divf %12, %13 : vector<16x1xf32>
    %cst_9 = arith.constant 9.99999997E-7 : f32
    %15 = vector.broadcast %cst_9 : f32 to vector<16x1xf32>
    %16 = arith.addf %14, %15 : vector<16x1xf32>
    %17 = math.rsqrt %16 : vector<16x1xf32>
    %18 = vector.broadcast %17 : vector<16x1xf32> to vector<16x64xf32>
    %19 = arith.mulf %9, %18 : vector<16x64xf32>
    %20 = vector.broadcast %2 : vector<1x64xf32> to vector<16x64xf32>
    %21 = arith.mulf %19, %20 : vector<16x64xf32>
    %22 = vector.broadcast %3 : vector<1x64xf32> to vector<16x64xf32>
    %23 = arith.addf %21, %22 : vector<16x64xf32>
    %24 = arith.truncf %23 : vector<16x64xf32> to vector<16x64xbf16>
    %c0_10 = arith.constant 0 : index
    %c0_11 = arith.constant 0 : index
    %25 = vector.load %arg5[%c0_10, %c0_11] : memref<64x64xbf16, #tpu.memory_space<vmem>>, vector<64x64xbf16>
    %cst_12 = arith.constant dense<0.000000e+00> : vector<16x64xf32>
    %26 = tpu.matmul %24, %25, %cst_12 {dimension_numbers = #tpu.dot_dimension_numbers<[1], [0], [0], [1], [0, 0, 1, 1], [], []>} : vector<16x64xbf16>, vector<64x64xbf16>, vector<16x64xf32> -> vector<16x64xf32>
    %c0_13 = arith.constant 0 : index
    %c0_14 = arith.constant 0 : index
    %c0_15 = arith.constant 0 : index
    %27 = vector.load %arg2[%c0_13, %c0_14, %c0_15] : memref<1x4x64xbf16, #tpu.memory_space<vmem>>, vector<1x4x64xbf16>
    %28 = vector.shape_cast %27 : vector<1x4x64xbf16> to vector<4x64xbf16>
    %c0_16 = arith.constant 0 : index
    %c0_17 = arith.constant 0 : index
    %29 = vector.load %arg6[%c0_16, %c0_17] : memref<64x64xbf16, #tpu.memory_space<vmem>>, vector<64x64xbf16>
    %cst_18 = arith.constant dense<0.000000e+00> : vector<4x64xf32>
    %30 = tpu.matmul %28, %29, %cst_18 {dimension_numbers = #tpu.dot_dimension_numbers<[1], [0], [0], [1], [0, 0, 1, 1], [], []>} : vector<4x64xbf16>, vector<64x64xbf16>, vector<4x64xf32> -> vector<4x64xf32>
    %c0_19 = arith.constant 0 : index
    %c0_20 = arith.constant 0 : index
    %31 = vector.load %arg7[%c0_19, %c0_20] : memref<64x64xbf16, #tpu.memory_space<vmem>>, vector<64x64xbf16>
    %cst_21 = arith.constant dense<0.000000e+00> : vector<4x64xf32>
    %32 = tpu.matmul %28, %31, %cst_21 {dimension_numbers = #tpu.dot_dimension_numbers<[1], [0], [0], [1], [0, 0, 1, 1], [], []>} : vector<4x64xbf16>, vector<64x64xbf16>, vector<4x64xf32> -> vector<4x64xf32>
    %33 = vector.extract_strided_slice %26 {offsets = [0, 0], sizes = [16, 32], strides = [1, 1]} : vector<16x64xf32> to vector<16x32xf32>
    %34 = arith.truncf %33 : vector<16x32xf32> to vector<16x32xbf16>
    %35 = vector.extract_strided_slice %30 {offsets = [0, 0], sizes = [4, 32], strides = [1, 1]} : vector<4x64xf32> to vector<4x32xf32>
    %36 = arith.truncf %35 : vector<4x32xf32> to vector<4x32xbf16>
    %37 = vector.extract_strided_slice %32 {offsets = [0, 0], sizes = [4, 32], strides = [1, 1]} : vector<4x64xf32> to vector<4x32xf32>
    %38 = arith.truncf %37 : vector<4x32xf32> to vector<4x32xbf16>
    %cst_22 = arith.constant dense<0.000000e+00> : vector<16x4xf32>
    %39 = tpu.matmul %34, %36, %cst_22 {dimension_numbers = #tpu.dot_dimension_numbers<[1], [1], [0], [0], [0, 0, 1, 0], [], []>} : vector<16x32xbf16>, vector<4x32xbf16>, vector<16x4xf32> -> vector<16x4xf32>
    %cst_23 = arith.constant dense<0xFF800000> : vector<16xf32>
    %40 = vector.multi_reduction <maximumf>, %39, %cst_23 [1] : vector<16x4xf32> to vector<16xf32>
    %41 = vector.shape_cast %40 : vector<16xf32> to vector<16x1xf32>
    %42 = vector.broadcast %41 : vector<16x1xf32> to vector<16x4xf32>
    %43 = arith.subf %39, %42 : vector<16x4xf32>
    %44 = math.exp %43 : vector<16x4xf32>
    %cst_24 = arith.constant dense<0.000000e+00> : vector<16xf32>
    %45 = vector.multi_reduction <add>, %44, %cst_24 [1] : vector<16x4xf32> to vector<16xf32>
    %46 = vector.shape_cast %45 : vector<16xf32> to vector<16x1xf32>
    %47 = tpu.reciprocal %46 {approx = true} : vector<16x1xf32> -> vector<16x1xf32>
    %48 = arith.truncf %44 : vector<16x4xf32> to vector<16x4xbf16>
    %cst_25 = arith.constant dense<0.000000e+00> : vector<16x32xf32>
    %49 = tpu.matmul %48, %38, %cst_25 {dimension_numbers = #tpu.dot_dimension_numbers<[1], [0], [0], [1], [0, 0, 1, 1], [], []>} : vector<16x4xbf16>, vector<4x32xbf16>, vector<16x32xf32> -> vector<16x32xf32>
    %50 = vector.broadcast %47 : vector<16x1xf32> to vector<16x32xf32>
    %51 = arith.mulf %49, %50 : vector<16x32xf32>
    %52 = arith.truncf %51 : vector<16x32xf32> to vector<16x32xbf16>
    %c0_26 = arith.constant 0 : index
    %c0_27 = arith.constant 0 : index
    %53 = vector.load %arg8[%c0_26, %c0_27] : memref<64x64xbf16, #tpu.memory_space<vmem>>, vector<32x64xbf16>
    %cst_28 = arith.constant dense<0.000000e+00> : vector<16x64xf32>
    %54 = tpu.matmul %52, %53, %cst_28 {dimension_numbers = #tpu.dot_dimension_numbers<[1], [0], [0], [1], [0, 0, 1, 1], [], []>} : vector<16x32xbf16>, vector<32x64xbf16>, vector<16x64xf32> -> vector<16x64xf32>
    %55 = vector.extract_strided_slice %26 {offsets = [0, 32], sizes = [16, 32], strides = [1, 1]} : vector<16x64xf32> to vector<16x32xf32>
    %56 = arith.truncf %55 : vector<16x32xf32> to vector<16x32xbf16>
    %57 = vector.extract_strided_slice %30 {offsets = [0, 32], sizes = [4, 32], strides = [1, 1]} : vector<4x64xf32> to vector<4x32xf32>
    %58 = arith.truncf %57 : vector<4x32xf32> to vector<4x32xbf16>
    %59 = vector.extract_strided_slice %32 {offsets = [0, 32], sizes = [4, 32], strides = [1, 1]} : vector<4x64xf32> to vector<4x32xf32>
    %60 = arith.truncf %59 : vector<4x32xf32> to vector<4x32xbf16>
    %cst_29 = arith.constant dense<0.000000e+00> : vector<16x4xf32>
    %61 = tpu.matmul %56, %58, %cst_29 {dimension_numbers = #tpu.dot_dimension_numbers<[1], [1], [0], [0], [0, 0, 1, 0], [], []>} : vector<16x32xbf16>, vector<4x32xbf16>, vector<16x4xf32> -> vector<16x4xf32>
    %cst_30 = arith.constant dense<0xFF800000> : vector<16xf32>
    %62 = vector.multi_reduction <maximumf>, %61, %cst_30 [1] : vector<16x4xf32> to vector<16xf32>
    %63 = vector.shape_cast %62 : vector<16xf32> to vector<16x1xf32>
    %64 = vector.broadcast %63 : vector<16x1xf32> to vector<16x4xf32>
    %65 = arith.subf %61, %64 : vector<16x4xf32>
    %66 = math.exp %65 : vector<16x4xf32>
    %cst_31 = arith.constant dense<0.000000e+00> : vector<16xf32>
    %67 = vector.multi_reduction <add>, %66, %cst_31 [1] : vector<16x4xf32> to vector<16xf32>
    %68 = vector.shape_cast %67 : vector<16xf32> to vector<16x1xf32>
    %69 = tpu.reciprocal %68 {approx = true} : vector<16x1xf32> -> vector<16x1xf32>
    %70 = arith.truncf %66 : vector<16x4xf32> to vector<16x4xbf16>
    %cst_32 = arith.constant dense<0.000000e+00> : vector<16x32xf32>
    %71 = tpu.matmul %70, %60, %cst_32 {dimension_numbers = #tpu.dot_dimension_numbers<[1], [0], [0], [1], [0, 0, 1, 1], [], []>} : vector<16x4xbf16>, vector<4x32xbf16>, vector<16x32xf32> -> vector<16x32xf32>
    %72 = vector.broadcast %69 : vector<16x1xf32> to vector<16x32xf32>
    %73 = arith.mulf %71, %72 : vector<16x32xf32>
    %74 = arith.truncf %73 : vector<16x32xf32> to vector<16x32xbf16>
    %c32 = arith.constant 32 : index
    %c0_33 = arith.constant 0 : index
    %75 = vector.load %arg8[%c32, %c0_33] : memref<64x64xbf16, #tpu.memory_space<vmem>>, vector<32x64xbf16>
    %cst_34 = arith.constant dense<0.000000e+00> : vector<16x64xf32>
    %76 = tpu.matmul %74, %75, %cst_34 {dimension_numbers = #tpu.dot_dimension_numbers<[1], [0], [0], [1], [0, 0, 1, 1], [], []>} : vector<16x32xbf16>, vector<32x64xbf16>, vector<16x64xf32> -> vector<16x64xf32>
    %77 = arith.addf %54, %76 : vector<16x64xf32>
    %c0_35 = arith.constant 0 : index
    %c0_36 = arith.constant 0 : index
    %78 = vector.load %arg9[%c0_35, %c0_36] : memref<1x64xf32, #tpu.memory_space<vmem>>, vector<1x64xf32>
    %79 = vector.broadcast %78 : vector<1x64xf32> to vector<16x64xf32>
    %80 = arith.addf %77, %79 : vector<16x64xf32>
    %81 = arith.addf %80, %1 : vector<16x64xf32>
    %c0_37 = arith.constant 0 : index
    %c0_38 = arith.constant 0 : index
    %c0_39 = arith.constant 0 : index
    %82 = vector.load %arg10[%c0_37, %c0_38, %c0_39] : memref<1x16x64xf32, #tpu.memory_space<vmem>>, vector<1x16x64xf32>
    %83 = vector.shape_cast %82 : vector<1x16x64xf32> to vector<16x64xf32>
    %84 = vector.shape_cast %81 : vector<16x64xf32> to vector<1x16x64xf32>
    tpu.vector_store %arg10[%c0_37, %c0_38, %c0_39], %84 {strides = array<i32>} : memref<1x16x64xf32, #tpu.memory_space<vmem>>, vector<1x16x64xf32>,
    return
  }
  func.func @transform_0(%arg0: i32) -> (i32, i32, i32) {
    %c0_i32 = arith.constant 0 : i32
    %c0_i32_0 = arith.constant 0 : i32
    %c0_i32_1 = arith.constant 0 : i32
    return %arg0, %c0_i32, %c0_i32_0 : i32, i32, i32
  }
  func.func @transform_1(%arg0: i32) -> (i32, i32, i32) {
    %c0_i32 = arith.constant 0 : i32
    %c0_i32_0 = arith.constant 0 : i32
    %c0_i32_1 = arith.constant 0 : i32
    return %arg0, %c0_i32, %c0_i32_0 : i32, i32, i32
  }
  func.func @transform_2(%arg0: i32) -> (i32, i32) {
    %c0_i32 = arith.constant 0 : i32
    %c0_i32_0 = arith.constant 0 : i32
    %c0_i32_1 = arith.constant 0 : i32
    return %c0_i32, %c0_i32_0 : i32, i32
  }
  func.func @transform_3(%arg0: i32) -> (i32, i32) {
    %c0_i32 = arith.constant 0 : i32
    %c0_i32_0 = arith.constant 0 : i32
    %c0_i32_1 = arith.constant 0 : i32
    return %c0_i32, %c0_i32_0 : i32, i32
  }
  func.func @transform_4(%arg0: i32) -> (i32, i32) {
    %c0_i32 = arith.constant 0 : i32
    %c0_i32_0 = arith.constant 0 : i32
    %c0_i32_1 = arith.constant 0 : i32
    return %c0_i32, %c0_i32_0 : i32, i32
  }
  func.func @transform_5(%arg0: i32) -> (i32, i32) {
    %c0_i32 = arith.constant 0 : i32
    %c0_i32_0 = arith.constant 0 : i32
    %c0_i32_1 = arith.constant 0 : i32
    return %c0_i32, %c0_i32_0 : i32, i32
  }
  func.func @transform_6(%arg0: i32) -> (i32, i32) {
    %c0_i32 = arith.constant 0 : i32
    %c0_i32_0 = arith.constant 0 : i32
    %c0_i32_1 = arith.constant 0 : i32
    return %c0_i32, %c0_i32_0 : i32, i32
  }
  func.func @transform_7(%arg0: i32) -> (i32, i32) {
    %c0_i32 = arith.constant 0 : i32
    %c0_i32_0 = arith.constant 0 : i32
    %c0_i32_1 = arith.constant 0 : i32
    return %c0_i32, %c0_i32_0 : i32, i32
  }
  func.func @transform_8(%arg0: i32) -> (i32, i32) {
    %c0_i32 = arith.constant 0 : i32
    %c0_i32_0 = arith.constant 0 : i32
    %c0_i32_1 = arith.constant 0 : i32
    return %c0_i32, %c0_i32_0 : i32, i32
  }
  func.func @transform_9(%arg0: i32) -> (i32, i32, i32) {
    %c0_i32 = arith.constant 0 : i32
    %c0_i32_0 = arith.constant 0 : i32
    %c0_i32_1 = arith.constant 0 : i32
    return %arg0, %c0_i32, %c0_i32_0 : i32, i32, i32
  }
}

module attributes {stable_mosaic.version = 11 : i64} {
  func.func @_mlp_kernel(%arg0: i32, %arg1: memref<32x64xf32, #tpu.memory_space<vmem>>, %arg2: memref<1x64xf32, #tpu.memory_space<vmem>>, %arg3: memref<1x64xf32, #tpu.memory_space<vmem>>, %arg4: memref<64x256xbf16, #tpu.memory_space<vmem>>, %arg5: memref<1x256xf32, #tpu.memory_space<vmem>>, %arg6: memref<256x64xbf16, #tpu.memory_space<vmem>>, %arg7: memref<1x64xf32, #tpu.memory_space<vmem>>, %arg8: memref<32x64xf32, #tpu.memory_space<vmem>>) attributes {dimension_semantics = [#tpu.dimension_semantics<parallel>], iteration_bounds = array<i64: 1>, scalar_prefetch = 0 : i64, scratch_operands = 0 : i64, tpu.core_type = #tpu.core_type<tc>, window_params = [{transform_indices = @transform_0, window_bounds = array<i64: 32, 64>}, {pipeline_mode = #tpu.pipeline_mode<synchronous>, transform_indices = @transform_1, window_bounds = array<i64: 1, 64>}, {pipeline_mode = #tpu.pipeline_mode<synchronous>, transform_indices = @transform_2, window_bounds = array<i64: 1, 64>}, {pipeline_mode = #tpu.pipeline_mode<synchronous>, transform_indices = @transform_3, window_bounds = array<i64: 64, 256>}, {pipeline_mode = #tpu.pipeline_mode<synchronous>, transform_indices = @transform_4, window_bounds = array<i64: 1, 256>}, {pipeline_mode = #tpu.pipeline_mode<synchronous>, transform_indices = @transform_5, window_bounds = array<i64: 256, 64>}, {pipeline_mode = #tpu.pipeline_mode<synchronous>, transform_indices = @transform_6, window_bounds = array<i64: 1, 64>}, {transform_indices = @transform_7, window_bounds = array<i64: 32, 64>}]} {
    %c0 = arith.constant 0 : index
    %c0_0 = arith.constant 0 : index
    %0 = vector.load %arg1[%c0, %c0_0] : memref<32x64xf32, #tpu.memory_space<vmem>>, vector<32x64xf32>
    %c0_1 = arith.constant 0 : index
    %c0_2 = arith.constant 0 : index
    %1 = vector.load %arg2[%c0_1, %c0_2] : memref<1x64xf32, #tpu.memory_space<vmem>>, vector<1x64xf32>
    %c0_3 = arith.constant 0 : index
    %c0_4 = arith.constant 0 : index
    %2 = vector.load %arg3[%c0_3, %c0_4] : memref<1x64xf32, #tpu.memory_space<vmem>>, vector<1x64xf32>
    %cst = arith.constant dense<0.000000e+00> : vector<32xf32>
    %3 = vector.multi_reduction <add>, %0, %cst [1] : vector<32x64xf32> to vector<32xf32>
    %4 = vector.shape_cast %3 : vector<32xf32> to vector<32x1xf32>
    %cst_5 = arith.constant 6.400000e+01 : f32
    %5 = vector.broadcast %cst_5 : f32 to vector<32x1xf32>
    %6 = arith.divf %4, %5 : vector<32x1xf32>
    %7 = vector.broadcast %6 : vector<32x1xf32> to vector<32x64xf32>
    %8 = arith.subf %0, %7 : vector<32x64xf32>
    %9 = arith.mulf %8, %8 : vector<32x64xf32>
    %cst_6 = arith.constant dense<0.000000e+00> : vector<32xf32>
    %10 = vector.multi_reduction <add>, %9, %cst_6 [1] : vector<32x64xf32> to vector<32xf32>
    %11 = vector.shape_cast %10 : vector<32xf32> to vector<32x1xf32>
    %cst_7 = arith.constant 6.400000e+01 : f32
    %12 = vector.broadcast %cst_7 : f32 to vector<32x1xf32>
    %13 = arith.divf %11, %12 : vector<32x1xf32>
    %cst_8 = arith.constant 9.99999997E-7 : f32
    %14 = vector.broadcast %cst_8 : f32 to vector<32x1xf32>
    %15 = arith.addf %13, %14 : vector<32x1xf32>
    %16 = math.rsqrt %15 : vector<32x1xf32>
    %17 = vector.broadcast %16 : vector<32x1xf32> to vector<32x64xf32>
    %18 = arith.mulf %8, %17 : vector<32x64xf32>
    %19 = vector.broadcast %1 : vector<1x64xf32> to vector<32x64xf32>
    %20 = arith.mulf %18, %19 : vector<32x64xf32>
    %21 = vector.broadcast %2 : vector<1x64xf32> to vector<32x64xf32>
    %22 = arith.addf %20, %21 : vector<32x64xf32>
    %23 = arith.truncf %22 : vector<32x64xf32> to vector<32x64xbf16>
    %c0_9 = arith.constant 0 : index
    %c0_10 = arith.constant 0 : index
    %24 = vector.load %arg4[%c0_9, %c0_10] : memref<64x256xbf16, #tpu.memory_space<vmem>>, vector<64x256xbf16>
    %cst_11 = arith.constant dense<0.000000e+00> : vector<32x256xf32>
    %25 = tpu.matmul %23, %24, %cst_11 {dimension_numbers = #tpu.dot_dimension_numbers<[1], [0], [0], [1], [0, 0, 1, 1], [], []>} : vector<32x64xbf16>, vector<64x256xbf16>, vector<32x256xf32> -> vector<32x256xf32>
    %c0_12 = arith.constant 0 : index
    %c0_13 = arith.constant 0 : index
    %26 = vector.load %arg5[%c0_12, %c0_13] : memref<1x256xf32, #tpu.memory_space<vmem>>, vector<1x256xf32>
    %27 = vector.broadcast %26 : vector<1x256xf32> to vector<32x256xf32>
    %28 = arith.addf %25, %27 : vector<32x256xf32>
    %cst_14 = arith.constant 5.000000e-01 : f32
    %29 = vector.broadcast %cst_14 : f32 to vector<32x256xf32>
    %30 = arith.mulf %29, %28 : vector<32x256xf32>
    %cst_15 = arith.constant 4.471500e-02 : f32
    %31 = vector.broadcast %cst_15 : f32 to vector<32x256xf32>
    %32 = arith.mulf %31, %28 : vector<32x256xf32>
    %33 = arith.mulf %32, %28 : vector<32x256xf32>
    %34 = arith.mulf %33, %28 : vector<32x256xf32>
    %35 = arith.addf %28, %34 : vector<32x256xf32>
    %cst_16 = arith.constant 0.797884583 : f32
    %36 = vector.broadcast %cst_16 : f32 to vector<32x256xf32>
    %37 = arith.mulf %36, %35 : vector<32x256xf32>
    %38 = math.tanh %37 : vector<32x256xf32>
    %cst_17 = arith.constant 1.000000e+00 : f32
    %39 = vector.broadcast %cst_17 : f32 to vector<32x256xf32>
    %40 = arith.addf %39, %38 : vector<32x256xf32>
    %41 = arith.mulf %30, %40 : vector<32x256xf32>
    %42 = arith.truncf %41 : vector<32x256xf32> to vector<32x256xbf16>
    %c0_18 = arith.constant 0 : index
    %c0_19 = arith.constant 0 : index
    %43 = vector.load %arg6[%c0_18, %c0_19] : memref<256x64xbf16, #tpu.memory_space<vmem>>, vector<256x64xbf16>
    %cst_20 = arith.constant dense<0.000000e+00> : vector<32x64xf32>
    %44 = tpu.matmul %42, %43, %cst_20 {dimension_numbers = #tpu.dot_dimension_numbers<[1], [0], [0], [1], [0, 0, 1, 1], [], []>} : vector<32x256xbf16>, vector<256x64xbf16>, vector<32x64xf32> -> vector<32x64xf32>
    %c0_21 = arith.constant 0 : index
    %c0_22 = arith.constant 0 : index
    %45 = vector.load %arg7[%c0_21, %c0_22] : memref<1x64xf32, #tpu.memory_space<vmem>>, vector<1x64xf32>
    %46 = vector.broadcast %45 : vector<1x64xf32> to vector<32x64xf32>
    %47 = arith.addf %44, %46 : vector<32x64xf32>
    %48 = arith.addf %0, %47 : vector<32x64xf32>
    %c0_23 = arith.constant 0 : index
    %c0_24 = arith.constant 0 : index
    %49 = vector.load %arg8[%c0_23, %c0_24] : memref<32x64xf32, #tpu.memory_space<vmem>>, vector<32x64xf32>
    tpu.vector_store %arg8[%c0_23, %c0_24], %48 {strides = array<i32>} : memref<32x64xf32, #tpu.memory_space<vmem>>, vector<32x64xf32>,
    return
  }
  func.func @transform_0(%arg0: i32) -> (i32, i32) {
    %c0_i32 = arith.constant 0 : i32
    %c0_i32_0 = arith.constant 0 : i32
    return %arg0, %c0_i32 : i32, i32
  }
  func.func @transform_1(%arg0: i32) -> (i32, i32) {
    %c0_i32 = arith.constant 0 : i32
    %c0_i32_0 = arith.constant 0 : i32
    %c0_i32_1 = arith.constant 0 : i32
    return %c0_i32, %c0_i32_0 : i32, i32
  }
  func.func @transform_2(%arg0: i32) -> (i32, i32) {
    %c0_i32 = arith.constant 0 : i32
    %c0_i32_0 = arith.constant 0 : i32
    %c0_i32_1 = arith.constant 0 : i32
    return %c0_i32, %c0_i32_0 : i32, i32
  }
  func.func @transform_3(%arg0: i32) -> (i32, i32) {
    %c0_i32 = arith.constant 0 : i32
    %c0_i32_0 = arith.constant 0 : i32
    %c0_i32_1 = arith.constant 0 : i32
    return %c0_i32, %c0_i32_0 : i32, i32
  }
  func.func @transform_4(%arg0: i32) -> (i32, i32) {
    %c0_i32 = arith.constant 0 : i32
    %c0_i32_0 = arith.constant 0 : i32
    %c0_i32_1 = arith.constant 0 : i32
    return %c0_i32, %c0_i32_0 : i32, i32
  }
  func.func @transform_5(%arg0: i32) -> (i32, i32) {
    %c0_i32 = arith.constant 0 : i32
    %c0_i32_0 = arith.constant 0 : i32
    %c0_i32_1 = arith.constant 0 : i32
    return %c0_i32, %c0_i32_0 : i32, i32
  }
  func.func @transform_6(%arg0: i32) -> (i32, i32) {
    %c0_i32 = arith.constant 0 : i32
    %c0_i32_0 = arith.constant 0 : i32
    %c0_i32_1 = arith.constant 0 : i32
    return %c0_i32, %c0_i32_0 : i32, i32
  }
  func.func @transform_7(%arg0: i32) -> (i32, i32) {
    %c0_i32 = arith.constant 0 : i32
    %c0_i32_0 = arith.constant 0 : i32
    return %arg0, %c0_i32 : i32, i32
  }
}

module attributes {stable_mosaic.version = 11 : i64} {
  func.func @_patch_embed_kernel(%arg0: i32, %arg1: memref<1x4x256xbf16, #tpu.memory_space<vmem>>, %arg2: memref<256x128xbf16, #tpu.memory_space<vmem>>, %arg3: memref<1x128xf32, #tpu.memory_space<vmem>>, %arg4: memref<1x128xf32, #tpu.memory_space<vmem>>, %arg5: memref<1x128xf32, #tpu.memory_space<vmem>>, %arg6: memref<4x128xf32, #tpu.memory_space<vmem>>, %arg7: memref<1x4x128xf32, #tpu.memory_space<vmem>>) attributes {dimension_semantics = [#tpu.dimension_semantics<parallel>], iteration_bounds = array<i64: 2>, scalar_prefetch = 0 : i64, scratch_operands = 0 : i64, tpu.core_type = #tpu.core_type<tc>, window_params = [{transform_indices = @transform_0, window_bounds = array<i64: 1, 4, 256>}, {pipeline_mode = #tpu.pipeline_mode<synchronous>, transform_indices = @transform_1, window_bounds = array<i64: 256, 128>}, {pipeline_mode = #tpu.pipeline_mode<synchronous>, transform_indices = @transform_2, window_bounds = array<i64: 1, 128>}, {pipeline_mode = #tpu.pipeline_mode<synchronous>, transform_indices = @transform_3, window_bounds = array<i64: 1, 128>}, {pipeline_mode = #tpu.pipeline_mode<synchronous>, transform_indices = @transform_4, window_bounds = array<i64: 1, 128>}, {pipeline_mode = #tpu.pipeline_mode<synchronous>, transform_indices = @transform_5, window_bounds = array<i64: 4, 128>}, {transform_indices = @transform_6, window_bounds = array<i64: 1, 4, 128>}]} {
    %c0 = arith.constant 0 : index
    %c0_0 = arith.constant 0 : index
    %c0_1 = arith.constant 0 : index
    %0 = vector.load %arg1[%c0, %c0_0, %c0_1] : memref<1x4x256xbf16, #tpu.memory_space<vmem>>, vector<1x4x256xbf16>
    %1 = vector.shape_cast %0 : vector<1x4x256xbf16> to vector<4x256xbf16>
    %c0_2 = arith.constant 0 : index
    %c0_3 = arith.constant 0 : index
    %2 = vector.load %arg2[%c0_2, %c0_3] : memref<256x128xbf16, #tpu.memory_space<vmem>>, vector<256x128xbf16>
    %cst = arith.constant dense<0.000000e+00> : vector<4x128xf32>
    %3 = tpu.matmul %1, %2, %cst {dimension_numbers = #tpu.dot_dimension_numbers<[1], [0], [0], [1], [0, 0, 1, 1], [], []>} : vector<4x256xbf16>, vector<256x128xbf16>, vector<4x128xf32> -> vector<4x128xf32>
    %c0_4 = arith.constant 0 : index
    %c0_5 = arith.constant 0 : index
    %4 = vector.load %arg3[%c0_4, %c0_5] : memref<1x128xf32, #tpu.memory_space<vmem>>, vector<1x128xf32>
    %5 = vector.broadcast %4 : vector<1x128xf32> to vector<4x128xf32>
    %6 = arith.addf %3, %5 : vector<4x128xf32>
    %c0_6 = arith.constant 0 : index
    %c0_7 = arith.constant 0 : index
    %7 = vector.load %arg4[%c0_6, %c0_7] : memref<1x128xf32, #tpu.memory_space<vmem>>, vector<1x128xf32>
    %c0_8 = arith.constant 0 : index
    %c0_9 = arith.constant 0 : index
    %8 = vector.load %arg5[%c0_8, %c0_9] : memref<1x128xf32, #tpu.memory_space<vmem>>, vector<1x128xf32>
    %cst_10 = arith.constant dense<0.000000e+00> : vector<4xf32>
    %9 = vector.multi_reduction <add>, %6, %cst_10 [1] : vector<4x128xf32> to vector<4xf32>
    %10 = vector.shape_cast %9 : vector<4xf32> to vector<4x1xf32>
    %cst_11 = arith.constant 1.280000e+02 : f32
    %11 = vector.broadcast %cst_11 : f32 to vector<4x1xf32>
    %12 = arith.divf %10, %11 : vector<4x1xf32>
    %13 = vector.broadcast %12 : vector<4x1xf32> to vector<4x128xf32>
    %14 = arith.subf %6, %13 : vector<4x128xf32>
    %15 = arith.mulf %14, %14 : vector<4x128xf32>
    %cst_12 = arith.constant dense<0.000000e+00> : vector<4xf32>
    %16 = vector.multi_reduction <add>, %15, %cst_12 [1] : vector<4x128xf32> to vector<4xf32>
    %17 = vector.shape_cast %16 : vector<4xf32> to vector<4x1xf32>
    %cst_13 = arith.constant 1.280000e+02 : f32
    %18 = vector.broadcast %cst_13 : f32 to vector<4x1xf32>
    %19 = arith.divf %17, %18 : vector<4x1xf32>
    %cst_14 = arith.constant 9.99999997E-7 : f32
    %20 = vector.broadcast %cst_14 : f32 to vector<4x1xf32>
    %21 = arith.addf %19, %20 : vector<4x1xf32>
    %22 = math.rsqrt %21 : vector<4x1xf32>
    %23 = vector.broadcast %22 : vector<4x1xf32> to vector<4x128xf32>
    %24 = arith.mulf %14, %23 : vector<4x128xf32>
    %25 = vector.broadcast %7 : vector<1x128xf32> to vector<4x128xf32>
    %26 = arith.mulf %24, %25 : vector<4x128xf32>
    %27 = vector.broadcast %8 : vector<1x128xf32> to vector<4x128xf32>
    %28 = arith.addf %26, %27 : vector<4x128xf32>
    %c0_15 = arith.constant 0 : index
    %c0_16 = arith.constant 0 : index
    %29 = vector.load %arg6[%c0_15, %c0_16] : memref<4x128xf32, #tpu.memory_space<vmem>>, vector<4x128xf32>
    %30 = arith.addf %28, %29 : vector<4x128xf32>
    %c0_17 = arith.constant 0 : index
    %c0_18 = arith.constant 0 : index
    %c0_19 = arith.constant 0 : index
    %31 = vector.load %arg7[%c0_17, %c0_18, %c0_19] : memref<1x4x128xf32, #tpu.memory_space<vmem>>, vector<1x4x128xf32>
    %32 = vector.shape_cast %31 : vector<1x4x128xf32> to vector<4x128xf32>
    %33 = vector.shape_cast %30 : vector<4x128xf32> to vector<1x4x128xf32>
    tpu.vector_store %arg7[%c0_17, %c0_18, %c0_19], %33 {strides = array<i32>} : memref<1x4x128xf32, #tpu.memory_space<vmem>>, vector<1x4x128xf32>,
    return
  }
  func.func @transform_0(%arg0: i32) -> (i32, i32, i32) {
    %c0_i32 = arith.constant 0 : i32
    %c0_i32_0 = arith.constant 0 : i32
    %c0_i32_1 = arith.constant 0 : i32
    return %arg0, %c0_i32, %c0_i32_0 : i32, i32, i32
  }
  func.func @transform_1(%arg0: i32) -> (i32, i32) {
    %c0_i32 = arith.constant 0 : i32
    %c0_i32_0 = arith.constant 0 : i32
    %c0_i32_1 = arith.constant 0 : i32
    return %c0_i32, %c0_i32_0 : i32, i32
  }
  func.func @transform_2(%arg0: i32) -> (i32, i32) {
    %c0_i32 = arith.constant 0 : i32
    %c0_i32_0 = arith.constant 0 : i32
    %c0_i32_1 = arith.constant 0 : i32
    return %c0_i32, %c0_i32_0 : i32, i32
  }
  func.func @transform_3(%arg0: i32) -> (i32, i32) {
    %c0_i32 = arith.constant 0 : i32
    %c0_i32_0 = arith.constant 0 : i32
    %c0_i32_1 = arith.constant 0 : i32
    return %c0_i32, %c0_i32_0 : i32, i32
  }
  func.func @transform_4(%arg0: i32) -> (i32, i32) {
    %c0_i32 = arith.constant 0 : i32
    %c0_i32_0 = arith.constant 0 : i32
    %c0_i32_1 = arith.constant 0 : i32
    return %c0_i32, %c0_i32_0 : i32, i32
  }
  func.func @transform_5(%arg0: i32) -> (i32, i32) {
    %c0_i32 = arith.constant 0 : i32
    %c0_i32_0 = arith.constant 0 : i32
    %c0_i32_1 = arith.constant 0 : i32
    return %c0_i32, %c0_i32_0 : i32, i32
  }
  func.func @transform_6(%arg0: i32) -> (i32, i32, i32) {
    %c0_i32 = arith.constant 0 : i32
    %c0_i32_0 = arith.constant 0 : i32
    %c0_i32_1 = arith.constant 0 : i32
    return %arg0, %c0_i32, %c0_i32_0 : i32, i32, i32
  }
}

module attributes {stable_mosaic.version = 11 : i64} {
  func.func @_attn_kernel(%arg0: i32, %arg1: memref<1x4x128xf32, #tpu.memory_space<vmem>>, %arg2: memref<1x128xf32, #tpu.memory_space<vmem>>, %arg3: memref<1x128xf32, #tpu.memory_space<vmem>>, %arg4: memref<128x128xbf16, #tpu.memory_space<vmem>>, %arg5: memref<128x128xbf16, #tpu.memory_space<vmem>>, %arg6: memref<128x128xbf16, #tpu.memory_space<vmem>>, %arg7: memref<128x128xbf16, #tpu.memory_space<vmem>>, %arg8: memref<1x128xf32, #tpu.memory_space<vmem>>, %arg9: memref<1x4x128xf32, #tpu.memory_space<vmem>>) attributes {dimension_semantics = [#tpu.dimension_semantics<parallel>], iteration_bounds = array<i64: 2>, scalar_prefetch = 0 : i64, scratch_operands = 0 : i64, tpu.core_type = #tpu.core_type<tc>, window_params = [{transform_indices = @transform_0, window_bounds = array<i64: 1, 4, 128>}, {pipeline_mode = #tpu.pipeline_mode<synchronous>, transform_indices = @transform_1, window_bounds = array<i64: 1, 128>}, {pipeline_mode = #tpu.pipeline_mode<synchronous>, transform_indices = @transform_2, window_bounds = array<i64: 1, 128>}, {pipeline_mode = #tpu.pipeline_mode<synchronous>, transform_indices = @transform_3, window_bounds = array<i64: 128, 128>}, {pipeline_mode = #tpu.pipeline_mode<synchronous>, transform_indices = @transform_4, window_bounds = array<i64: 128, 128>}, {pipeline_mode = #tpu.pipeline_mode<synchronous>, transform_indices = @transform_5, window_bounds = array<i64: 128, 128>}, {pipeline_mode = #tpu.pipeline_mode<synchronous>, transform_indices = @transform_6, window_bounds = array<i64: 128, 128>}, {pipeline_mode = #tpu.pipeline_mode<synchronous>, transform_indices = @transform_7, window_bounds = array<i64: 1, 128>}, {transform_indices = @transform_8, window_bounds = array<i64: 1, 4, 128>}]} {
    %c0 = arith.constant 0 : index
    %c0_0 = arith.constant 0 : index
    %c0_1 = arith.constant 0 : index
    %0 = vector.load %arg1[%c0, %c0_0, %c0_1] : memref<1x4x128xf32, #tpu.memory_space<vmem>>, vector<1x4x128xf32>
    %1 = vector.shape_cast %0 : vector<1x4x128xf32> to vector<4x128xf32>
    %c0_2 = arith.constant 0 : index
    %c0_3 = arith.constant 0 : index
    %2 = vector.load %arg2[%c0_2, %c0_3] : memref<1x128xf32, #tpu.memory_space<vmem>>, vector<1x128xf32>
    %c0_4 = arith.constant 0 : index
    %c0_5 = arith.constant 0 : index
    %3 = vector.load %arg3[%c0_4, %c0_5] : memref<1x128xf32, #tpu.memory_space<vmem>>, vector<1x128xf32>
    %cst = arith.constant dense<0.000000e+00> : vector<4xf32>
    %4 = vector.multi_reduction <add>, %1, %cst [1] : vector<4x128xf32> to vector<4xf32>
    %5 = vector.shape_cast %4 : vector<4xf32> to vector<4x1xf32>
    %cst_6 = arith.constant 1.280000e+02 : f32
    %6 = vector.broadcast %cst_6 : f32 to vector<4x1xf32>
    %7 = arith.divf %5, %6 : vector<4x1xf32>
    %8 = vector.broadcast %7 : vector<4x1xf32> to vector<4x128xf32>
    %9 = arith.subf %1, %8 : vector<4x128xf32>
    %10 = arith.mulf %9, %9 : vector<4x128xf32>
    %cst_7 = arith.constant dense<0.000000e+00> : vector<4xf32>
    %11 = vector.multi_reduction <add>, %10, %cst_7 [1] : vector<4x128xf32> to vector<4xf32>
    %12 = vector.shape_cast %11 : vector<4xf32> to vector<4x1xf32>
    %cst_8 = arith.constant 1.280000e+02 : f32
    %13 = vector.broadcast %cst_8 : f32 to vector<4x1xf32>
    %14 = arith.divf %12, %13 : vector<4x1xf32>
    %cst_9 = arith.constant 9.99999997E-7 : f32
    %15 = vector.broadcast %cst_9 : f32 to vector<4x1xf32>
    %16 = arith.addf %14, %15 : vector<4x1xf32>
    %17 = math.rsqrt %16 : vector<4x1xf32>
    %18 = vector.broadcast %17 : vector<4x1xf32> to vector<4x128xf32>
    %19 = arith.mulf %9, %18 : vector<4x128xf32>
    %20 = vector.broadcast %2 : vector<1x128xf32> to vector<4x128xf32>
    %21 = arith.mulf %19, %20 : vector<4x128xf32>
    %22 = vector.broadcast %3 : vector<1x128xf32> to vector<4x128xf32>
    %23 = arith.addf %21, %22 : vector<4x128xf32>
    %24 = arith.truncf %23 : vector<4x128xf32> to vector<4x128xbf16>
    %c0_10 = arith.constant 0 : index
    %c0_11 = arith.constant 0 : index
    %25 = vector.load %arg4[%c0_10, %c0_11] : memref<128x128xbf16, #tpu.memory_space<vmem>>, vector<128x128xbf16>
    %cst_12 = arith.constant dense<0.000000e+00> : vector<4x128xf32>
    %26 = tpu.matmul %24, %25, %cst_12 {dimension_numbers = #tpu.dot_dimension_numbers<[1], [0], [0], [1], [0, 0, 1, 1], [], []>} : vector<4x128xbf16>, vector<128x128xbf16>, vector<4x128xf32> -> vector<4x128xf32>
    %c0_13 = arith.constant 0 : index
    %c0_14 = arith.constant 0 : index
    %27 = vector.load %arg5[%c0_13, %c0_14] : memref<128x128xbf16, #tpu.memory_space<vmem>>, vector<128x128xbf16>
    %cst_15 = arith.constant dense<0.000000e+00> : vector<4x128xf32>
    %28 = tpu.matmul %24, %27, %cst_15 {dimension_numbers = #tpu.dot_dimension_numbers<[1], [0], [0], [1], [0, 0, 1, 1], [], []>} : vector<4x128xbf16>, vector<128x128xbf16>, vector<4x128xf32> -> vector<4x128xf32>
    %c0_16 = arith.constant 0 : index
    %c0_17 = arith.constant 0 : index
    %29 = vector.load %arg6[%c0_16, %c0_17] : memref<128x128xbf16, #tpu.memory_space<vmem>>, vector<128x128xbf16>
    %cst_18 = arith.constant dense<0.000000e+00> : vector<4x128xf32>
    %30 = tpu.matmul %24, %29, %cst_18 {dimension_numbers = #tpu.dot_dimension_numbers<[1], [0], [0], [1], [0, 0, 1, 1], [], []>} : vector<4x128xbf16>, vector<128x128xbf16>, vector<4x128xf32> -> vector<4x128xf32>
    %31 = vector.extract_strided_slice %26 {offsets = [0, 0], sizes = [4, 32], strides = [1, 1]} : vector<4x128xf32> to vector<4x32xf32>
    %32 = arith.truncf %31 : vector<4x32xf32> to vector<4x32xbf16>
    %33 = vector.extract_strided_slice %28 {offsets = [0, 0], sizes = [4, 32], strides = [1, 1]} : vector<4x128xf32> to vector<4x32xf32>
    %34 = arith.truncf %33 : vector<4x32xf32> to vector<4x32xbf16>
    %35 = vector.extract_strided_slice %30 {offsets = [0, 0], sizes = [4, 32], strides = [1, 1]} : vector<4x128xf32> to vector<4x32xf32>
    %36 = arith.truncf %35 : vector<4x32xf32> to vector<4x32xbf16>
    %cst_19 = arith.constant dense<0.000000e+00> : vector<4x4xf32>
    %37 = tpu.matmul %32, %34, %cst_19 {dimension_numbers = #tpu.dot_dimension_numbers<[1], [1], [0], [0], [0, 0, 1, 0], [], []>} : vector<4x32xbf16>, vector<4x32xbf16>, vector<4x4xf32> -> vector<4x4xf32>
    %cst_20 = arith.constant dense<0xFF800000> : vector<4xf32>
    %38 = vector.multi_reduction <maximumf>, %37, %cst_20 [1] : vector<4x4xf32> to vector<4xf32>
    %39 = vector.shape_cast %38 : vector<4xf32> to vector<4x1xf32>
    %40 = vector.broadcast %39 : vector<4x1xf32> to vector<4x4xf32>
    %41 = arith.subf %37, %40 : vector<4x4xf32>
    %42 = math.exp %41 : vector<4x4xf32>
    %cst_21 = arith.constant dense<0.000000e+00> : vector<4xf32>
    %43 = vector.multi_reduction <add>, %42, %cst_21 [1] : vector<4x4xf32> to vector<4xf32>
    %44 = vector.shape_cast %43 : vector<4xf32> to vector<4x1xf32>
    %45 = tpu.reciprocal %44 {approx = true} : vector<4x1xf32> -> vector<4x1xf32>
    %46 = arith.truncf %42 : vector<4x4xf32> to vector<4x4xbf16>
    %cst_22 = arith.constant dense<0.000000e+00> : vector<4x32xf32>
    %47 = tpu.matmul %46, %36, %cst_22 {dimension_numbers = #tpu.dot_dimension_numbers<[1], [0], [0], [1], [0, 0, 1, 1], [], []>} : vector<4x4xbf16>, vector<4x32xbf16>, vector<4x32xf32> -> vector<4x32xf32>
    %48 = vector.broadcast %45 : vector<4x1xf32> to vector<4x32xf32>
    %49 = arith.mulf %47, %48 : vector<4x32xf32>
    %50 = arith.truncf %49 : vector<4x32xf32> to vector<4x32xbf16>
    %c0_23 = arith.constant 0 : index
    %c0_24 = arith.constant 0 : index
    %51 = vector.load %arg7[%c0_23, %c0_24] : memref<128x128xbf16, #tpu.memory_space<vmem>>, vector<32x128xbf16>
    %cst_25 = arith.constant dense<0.000000e+00> : vector<4x128xf32>
    %52 = tpu.matmul %50, %51, %cst_25 {dimension_numbers = #tpu.dot_dimension_numbers<[1], [0], [0], [1], [0, 0, 1, 1], [], []>} : vector<4x32xbf16>, vector<32x128xbf16>, vector<4x128xf32> -> vector<4x128xf32>
    %53 = vector.extract_strided_slice %26 {offsets = [0, 32], sizes = [4, 32], strides = [1, 1]} : vector<4x128xf32> to vector<4x32xf32>
    %54 = arith.truncf %53 : vector<4x32xf32> to vector<4x32xbf16>
    %55 = vector.extract_strided_slice %28 {offsets = [0, 32], sizes = [4, 32], strides = [1, 1]} : vector<4x128xf32> to vector<4x32xf32>
    %56 = arith.truncf %55 : vector<4x32xf32> to vector<4x32xbf16>
    %57 = vector.extract_strided_slice %30 {offsets = [0, 32], sizes = [4, 32], strides = [1, 1]} : vector<4x128xf32> to vector<4x32xf32>
    %58 = arith.truncf %57 : vector<4x32xf32> to vector<4x32xbf16>
    %cst_26 = arith.constant dense<0.000000e+00> : vector<4x4xf32>
    %59 = tpu.matmul %54, %56, %cst_26 {dimension_numbers = #tpu.dot_dimension_numbers<[1], [1], [0], [0], [0, 0, 1, 0], [], []>} : vector<4x32xbf16>, vector<4x32xbf16>, vector<4x4xf32> -> vector<4x4xf32>
    %cst_27 = arith.constant dense<0xFF800000> : vector<4xf32>
    %60 = vector.multi_reduction <maximumf>, %59, %cst_27 [1] : vector<4x4xf32> to vector<4xf32>
    %61 = vector.shape_cast %60 : vector<4xf32> to vector<4x1xf32>
    %62 = vector.broadcast %61 : vector<4x1xf32> to vector<4x4xf32>
    %63 = arith.subf %59, %62 : vector<4x4xf32>
    %64 = math.exp %63 : vector<4x4xf32>
    %cst_28 = arith.constant dense<0.000000e+00> : vector<4xf32>
    %65 = vector.multi_reduction <add>, %64, %cst_28 [1] : vector<4x4xf32> to vector<4xf32>
    %66 = vector.shape_cast %65 : vector<4xf32> to vector<4x1xf32>
    %67 = tpu.reciprocal %66 {approx = true} : vector<4x1xf32> -> vector<4x1xf32>
    %68 = arith.truncf %64 : vector<4x4xf32> to vector<4x4xbf16>
    %cst_29 = arith.constant dense<0.000000e+00> : vector<4x32xf32>
    %69 = tpu.matmul %68, %58, %cst_29 {dimension_numbers = #tpu.dot_dimension_numbers<[1], [0], [0], [1], [0, 0, 1, 1], [], []>} : vector<4x4xbf16>, vector<4x32xbf16>, vector<4x32xf32> -> vector<4x32xf32>
    %70 = vector.broadcast %67 : vector<4x1xf32> to vector<4x32xf32>
    %71 = arith.mulf %69, %70 : vector<4x32xf32>
    %72 = arith.truncf %71 : vector<4x32xf32> to vector<4x32xbf16>
    %c32 = arith.constant 32 : index
    %c0_30 = arith.constant 0 : index
    %73 = vector.load %arg7[%c32, %c0_30] : memref<128x128xbf16, #tpu.memory_space<vmem>>, vector<32x128xbf16>
    %cst_31 = arith.constant dense<0.000000e+00> : vector<4x128xf32>
    %74 = tpu.matmul %72, %73, %cst_31 {dimension_numbers = #tpu.dot_dimension_numbers<[1], [0], [0], [1], [0, 0, 1, 1], [], []>} : vector<4x32xbf16>, vector<32x128xbf16>, vector<4x128xf32> -> vector<4x128xf32>
    %75 = arith.addf %52, %74 : vector<4x128xf32>
    %76 = vector.extract_strided_slice %26 {offsets = [0, 64], sizes = [4, 32], strides = [1, 1]} : vector<4x128xf32> to vector<4x32xf32>
    %77 = arith.truncf %76 : vector<4x32xf32> to vector<4x32xbf16>
    %78 = vector.extract_strided_slice %28 {offsets = [0, 64], sizes = [4, 32], strides = [1, 1]} : vector<4x128xf32> to vector<4x32xf32>
    %79 = arith.truncf %78 : vector<4x32xf32> to vector<4x32xbf16>
    %80 = vector.extract_strided_slice %30 {offsets = [0, 64], sizes = [4, 32], strides = [1, 1]} : vector<4x128xf32> to vector<4x32xf32>
    %81 = arith.truncf %80 : vector<4x32xf32> to vector<4x32xbf16>
    %cst_32 = arith.constant dense<0.000000e+00> : vector<4x4xf32>
    %82 = tpu.matmul %77, %79, %cst_32 {dimension_numbers = #tpu.dot_dimension_numbers<[1], [1], [0], [0], [0, 0, 1, 0], [], []>} : vector<4x32xbf16>, vector<4x32xbf16>, vector<4x4xf32> -> vector<4x4xf32>
    %cst_33 = arith.constant dense<0xFF800000> : vector<4xf32>
    %83 = vector.multi_reduction <maximumf>, %82, %cst_33 [1] : vector<4x4xf32> to vector<4xf32>
    %84 = vector.shape_cast %83 : vector<4xf32> to vector<4x1xf32>
    %85 = vector.broadcast %84 : vector<4x1xf32> to vector<4x4xf32>
    %86 = arith.subf %82, %85 : vector<4x4xf32>
    %87 = math.exp %86 : vector<4x4xf32>
    %cst_34 = arith.constant dense<0.000000e+00> : vector<4xf32>
    %88 = vector.multi_reduction <add>, %87, %cst_34 [1] : vector<4x4xf32> to vector<4xf32>
    %89 = vector.shape_cast %88 : vector<4xf32> to vector<4x1xf32>
    %90 = tpu.reciprocal %89 {approx = true} : vector<4x1xf32> -> vector<4x1xf32>
    %91 = arith.truncf %87 : vector<4x4xf32> to vector<4x4xbf16>
    %cst_35 = arith.constant dense<0.000000e+00> : vector<4x32xf32>
    %92 = tpu.matmul %91, %81, %cst_35 {dimension_numbers = #tpu.dot_dimension_numbers<[1], [0], [0], [1], [0, 0, 1, 1], [], []>} : vector<4x4xbf16>, vector<4x32xbf16>, vector<4x32xf32> -> vector<4x32xf32>
    %93 = vector.broadcast %90 : vector<4x1xf32> to vector<4x32xf32>
    %94 = arith.mulf %92, %93 : vector<4x32xf32>
    %95 = arith.truncf %94 : vector<4x32xf32> to vector<4x32xbf16>
    %c64 = arith.constant 64 : index
    %c0_36 = arith.constant 0 : index
    %96 = vector.load %arg7[%c64, %c0_36] : memref<128x128xbf16, #tpu.memory_space<vmem>>, vector<32x128xbf16>
    %cst_37 = arith.constant dense<0.000000e+00> : vector<4x128xf32>
    %97 = tpu.matmul %95, %96, %cst_37 {dimension_numbers = #tpu.dot_dimension_numbers<[1], [0], [0], [1], [0, 0, 1, 1], [], []>} : vector<4x32xbf16>, vector<32x128xbf16>, vector<4x128xf32> -> vector<4x128xf32>
    %98 = arith.addf %75, %97 : vector<4x128xf32>
    %99 = vector.extract_strided_slice %26 {offsets = [0, 96], sizes = [4, 32], strides = [1, 1]} : vector<4x128xf32> to vector<4x32xf32>
    %100 = arith.truncf %99 : vector<4x32xf32> to vector<4x32xbf16>
    %101 = vector.extract_strided_slice %28 {offsets = [0, 96], sizes = [4, 32], strides = [1, 1]} : vector<4x128xf32> to vector<4x32xf32>
    %102 = arith.truncf %101 : vector<4x32xf32> to vector<4x32xbf16>
    %103 = vector.extract_strided_slice %30 {offsets = [0, 96], sizes = [4, 32], strides = [1, 1]} : vector<4x128xf32> to vector<4x32xf32>
    %104 = arith.truncf %103 : vector<4x32xf32> to vector<4x32xbf16>
    %cst_38 = arith.constant dense<0.000000e+00> : vector<4x4xf32>
    %105 = tpu.matmul %100, %102, %cst_38 {dimension_numbers = #tpu.dot_dimension_numbers<[1], [1], [0], [0], [0, 0, 1, 0], [], []>} : vector<4x32xbf16>, vector<4x32xbf16>, vector<4x4xf32> -> vector<4x4xf32>
    %cst_39 = arith.constant dense<0xFF800000> : vector<4xf32>
    %106 = vector.multi_reduction <maximumf>, %105, %cst_39 [1] : vector<4x4xf32> to vector<4xf32>
    %107 = vector.shape_cast %106 : vector<4xf32> to vector<4x1xf32>
    %108 = vector.broadcast %107 : vector<4x1xf32> to vector<4x4xf32>
    %109 = arith.subf %105, %108 : vector<4x4xf32>
    %110 = math.exp %109 : vector<4x4xf32>
    %cst_40 = arith.constant dense<0.000000e+00> : vector<4xf32>
    %111 = vector.multi_reduction <add>, %110, %cst_40 [1] : vector<4x4xf32> to vector<4xf32>
    %112 = vector.shape_cast %111 : vector<4xf32> to vector<4x1xf32>
    %113 = tpu.reciprocal %112 {approx = true} : vector<4x1xf32> -> vector<4x1xf32>
    %114 = arith.truncf %110 : vector<4x4xf32> to vector<4x4xbf16>
    %cst_41 = arith.constant dense<0.000000e+00> : vector<4x32xf32>
    %115 = tpu.matmul %114, %104, %cst_41 {dimension_numbers = #tpu.dot_dimension_numbers<[1], [0], [0], [1], [0, 0, 1, 1], [], []>} : vector<4x4xbf16>, vector<4x32xbf16>, vector<4x32xf32> -> vector<4x32xf32>
    %116 = vector.broadcast %113 : vector<4x1xf32> to vector<4x32xf32>
    %117 = arith.mulf %115, %116 : vector<4x32xf32>
    %118 = arith.truncf %117 : vector<4x32xf32> to vector<4x32xbf16>
    %c96 = arith.constant 96 : index
    %c0_42 = arith.constant 0 : index
    %119 = vector.load %arg7[%c96, %c0_42] : memref<128x128xbf16, #tpu.memory_space<vmem>>, vector<32x128xbf16>
    %cst_43 = arith.constant dense<0.000000e+00> : vector<4x128xf32>
    %120 = tpu.matmul %118, %119, %cst_43 {dimension_numbers = #tpu.dot_dimension_numbers<[1], [0], [0], [1], [0, 0, 1, 1], [], []>} : vector<4x32xbf16>, vector<32x128xbf16>, vector<4x128xf32> -> vector<4x128xf32>
    %121 = arith.addf %98, %120 : vector<4x128xf32>
    %c0_44 = arith.constant 0 : index
    %c0_45 = arith.constant 0 : index
    %122 = vector.load %arg8[%c0_44, %c0_45] : memref<1x128xf32, #tpu.memory_space<vmem>>, vector<1x128xf32>
    %123 = vector.broadcast %122 : vector<1x128xf32> to vector<4x128xf32>
    %124 = arith.addf %121, %123 : vector<4x128xf32>
    %125 = arith.addf %124, %1 : vector<4x128xf32>
    %c0_46 = arith.constant 0 : index
    %c0_47 = arith.constant 0 : index
    %c0_48 = arith.constant 0 : index
    %126 = vector.load %arg9[%c0_46, %c0_47, %c0_48] : memref<1x4x128xf32, #tpu.memory_space<vmem>>, vector<1x4x128xf32>
    %127 = vector.shape_cast %126 : vector<1x4x128xf32> to vector<4x128xf32>
    %128 = vector.shape_cast %125 : vector<4x128xf32> to vector<1x4x128xf32>
    tpu.vector_store %arg9[%c0_46, %c0_47, %c0_48], %128 {strides = array<i32>} : memref<1x4x128xf32, #tpu.memory_space<vmem>>, vector<1x4x128xf32>,
    return
  }
  func.func @transform_0(%arg0: i32) -> (i32, i32, i32) {
    %c0_i32 = arith.constant 0 : i32
    %c0_i32_0 = arith.constant 0 : i32
    %c0_i32_1 = arith.constant 0 : i32
    return %arg0, %c0_i32, %c0_i32_0 : i32, i32, i32
  }
  func.func @transform_1(%arg0: i32) -> (i32, i32) {
    %c0_i32 = arith.constant 0 : i32
    %c0_i32_0 = arith.constant 0 : i32
    %c0_i32_1 = arith.constant 0 : i32
    return %c0_i32, %c0_i32_0 : i32, i32
  }
  func.func @transform_2(%arg0: i32) -> (i32, i32) {
    %c0_i32 = arith.constant 0 : i32
    %c0_i32_0 = arith.constant 0 : i32
    %c0_i32_1 = arith.constant 0 : i32
    return %c0_i32, %c0_i32_0 : i32, i32
  }
  func.func @transform_3(%arg0: i32) -> (i32, i32) {
    %c0_i32 = arith.constant 0 : i32
    %c0_i32_0 = arith.constant 0 : i32
    %c0_i32_1 = arith.constant 0 : i32
    return %c0_i32, %c0_i32_0 : i32, i32
  }
  func.func @transform_4(%arg0: i32) -> (i32, i32) {
    %c0_i32 = arith.constant 0 : i32
    %c0_i32_0 = arith.constant 0 : i32
    %c0_i32_1 = arith.constant 0 : i32
    return %c0_i32, %c0_i32_0 : i32, i32
  }
  func.func @transform_5(%arg0: i32) -> (i32, i32) {
    %c0_i32 = arith.constant 0 : i32
    %c0_i32_0 = arith.constant 0 : i32
    %c0_i32_1 = arith.constant 0 : i32
    return %c0_i32, %c0_i32_0 : i32, i32
  }
  func.func @transform_6(%arg0: i32) -> (i32, i32) {
    %c0_i32 = arith.constant 0 : i32
    %c0_i32_0 = arith.constant 0 : i32
    %c0_i32_1 = arith.constant 0 : i32
    return %c0_i32, %c0_i32_0 : i32, i32
  }
  func.func @transform_7(%arg0: i32) -> (i32, i32) {
    %c0_i32 = arith.constant 0 : i32
    %c0_i32_0 = arith.constant 0 : i32
    %c0_i32_1 = arith.constant 0 : i32
    return %c0_i32, %c0_i32_0 : i32, i32
  }
  func.func @transform_8(%arg0: i32) -> (i32, i32, i32) {
    %c0_i32 = arith.constant 0 : i32
    %c0_i32_0 = arith.constant 0 : i32
    %c0_i32_1 = arith.constant 0 : i32
    return %arg0, %c0_i32, %c0_i32_0 : i32, i32, i32
  }
}

module attributes {stable_mosaic.version = 11 : i64} {
  func.func @_mlp_kernel(%arg0: i32, %arg1: memref<16x128xf32, #tpu.memory_space<vmem>>, %arg2: memref<1x128xf32, #tpu.memory_space<vmem>>, %arg3: memref<1x128xf32, #tpu.memory_space<vmem>>, %arg4: memref<128x512xbf16, #tpu.memory_space<vmem>>, %arg5: memref<1x512xf32, #tpu.memory_space<vmem>>, %arg6: memref<512x128xbf16, #tpu.memory_space<vmem>>, %arg7: memref<1x128xf32, #tpu.memory_space<vmem>>, %arg8: memref<16x128xf32, #tpu.memory_space<vmem>>) attributes {dimension_semantics = [#tpu.dimension_semantics<parallel>], iteration_bounds = array<i64: 1>, scalar_prefetch = 0 : i64, scratch_operands = 0 : i64, tpu.core_type = #tpu.core_type<tc>, window_params = [{transform_indices = @transform_0, window_bounds = array<i64: 16, 128>}, {pipeline_mode = #tpu.pipeline_mode<synchronous>, transform_indices = @transform_1, window_bounds = array<i64: 1, 128>}, {pipeline_mode = #tpu.pipeline_mode<synchronous>, transform_indices = @transform_2, window_bounds = array<i64: 1, 128>}, {pipeline_mode = #tpu.pipeline_mode<synchronous>, transform_indices = @transform_3, window_bounds = array<i64: 128, 512>}, {pipeline_mode = #tpu.pipeline_mode<synchronous>, transform_indices = @transform_4, window_bounds = array<i64: 1, 512>}, {pipeline_mode = #tpu.pipeline_mode<synchronous>, transform_indices = @transform_5, window_bounds = array<i64: 512, 128>}, {pipeline_mode = #tpu.pipeline_mode<synchronous>, transform_indices = @transform_6, window_bounds = array<i64: 1, 128>}, {transform_indices = @transform_7, window_bounds = array<i64: 16, 128>}]} {
    %c0 = arith.constant 0 : index
    %c0_0 = arith.constant 0 : index
    %0 = vector.load %arg1[%c0, %c0_0] : memref<16x128xf32, #tpu.memory_space<vmem>>, vector<16x128xf32>
    %c0_1 = arith.constant 0 : index
    %c0_2 = arith.constant 0 : index
    %1 = vector.load %arg2[%c0_1, %c0_2] : memref<1x128xf32, #tpu.memory_space<vmem>>, vector<1x128xf32>
    %c0_3 = arith.constant 0 : index
    %c0_4 = arith.constant 0 : index
    %2 = vector.load %arg3[%c0_3, %c0_4] : memref<1x128xf32, #tpu.memory_space<vmem>>, vector<1x128xf32>
    %cst = arith.constant dense<0.000000e+00> : vector<16xf32>
    %3 = vector.multi_reduction <add>, %0, %cst [1] : vector<16x128xf32> to vector<16xf32>
    %4 = vector.shape_cast %3 : vector<16xf32> to vector<16x1xf32>
    %cst_5 = arith.constant 1.280000e+02 : f32
    %5 = vector.broadcast %cst_5 : f32 to vector<16x1xf32>
    %6 = arith.divf %4, %5 : vector<16x1xf32>
    %7 = vector.broadcast %6 : vector<16x1xf32> to vector<16x128xf32>
    %8 = arith.subf %0, %7 : vector<16x128xf32>
    %9 = arith.mulf %8, %8 : vector<16x128xf32>
    %cst_6 = arith.constant dense<0.000000e+00> : vector<16xf32>
    %10 = vector.multi_reduction <add>, %9, %cst_6 [1] : vector<16x128xf32> to vector<16xf32>
    %11 = vector.shape_cast %10 : vector<16xf32> to vector<16x1xf32>
    %cst_7 = arith.constant 1.280000e+02 : f32
    %12 = vector.broadcast %cst_7 : f32 to vector<16x1xf32>
    %13 = arith.divf %11, %12 : vector<16x1xf32>
    %cst_8 = arith.constant 9.99999997E-7 : f32
    %14 = vector.broadcast %cst_8 : f32 to vector<16x1xf32>
    %15 = arith.addf %13, %14 : vector<16x1xf32>
    %16 = math.rsqrt %15 : vector<16x1xf32>
    %17 = vector.broadcast %16 : vector<16x1xf32> to vector<16x128xf32>
    %18 = arith.mulf %8, %17 : vector<16x128xf32>
    %19 = vector.broadcast %1 : vector<1x128xf32> to vector<16x128xf32>
    %20 = arith.mulf %18, %19 : vector<16x128xf32>
    %21 = vector.broadcast %2 : vector<1x128xf32> to vector<16x128xf32>
    %22 = arith.addf %20, %21 : vector<16x128xf32>
    %23 = arith.truncf %22 : vector<16x128xf32> to vector<16x128xbf16>
    %c0_9 = arith.constant 0 : index
    %c0_10 = arith.constant 0 : index
    %24 = vector.load %arg4[%c0_9, %c0_10] : memref<128x512xbf16, #tpu.memory_space<vmem>>, vector<128x512xbf16>
    %cst_11 = arith.constant dense<0.000000e+00> : vector<16x512xf32>
    %25 = tpu.matmul %23, %24, %cst_11 {dimension_numbers = #tpu.dot_dimension_numbers<[1], [0], [0], [1], [0, 0, 1, 1], [], []>} : vector<16x128xbf16>, vector<128x512xbf16>, vector<16x512xf32> -> vector<16x512xf32>
    %c0_12 = arith.constant 0 : index
    %c0_13 = arith.constant 0 : index
    %26 = vector.load %arg5[%c0_12, %c0_13] : memref<1x512xf32, #tpu.memory_space<vmem>>, vector<1x512xf32>
    %27 = vector.broadcast %26 : vector<1x512xf32> to vector<16x512xf32>
    %28 = arith.addf %25, %27 : vector<16x512xf32>
    %cst_14 = arith.constant 5.000000e-01 : f32
    %29 = vector.broadcast %cst_14 : f32 to vector<16x512xf32>
    %30 = arith.mulf %29, %28 : vector<16x512xf32>
    %cst_15 = arith.constant 4.471500e-02 : f32
    %31 = vector.broadcast %cst_15 : f32 to vector<16x512xf32>
    %32 = arith.mulf %31, %28 : vector<16x512xf32>
    %33 = arith.mulf %32, %28 : vector<16x512xf32>
    %34 = arith.mulf %33, %28 : vector<16x512xf32>
    %35 = arith.addf %28, %34 : vector<16x512xf32>
    %cst_16 = arith.constant 0.797884583 : f32
    %36 = vector.broadcast %cst_16 : f32 to vector<16x512xf32>
    %37 = arith.mulf %36, %35 : vector<16x512xf32>
    %38 = math.tanh %37 : vector<16x512xf32>
    %cst_17 = arith.constant 1.000000e+00 : f32
    %39 = vector.broadcast %cst_17 : f32 to vector<16x512xf32>
    %40 = arith.addf %39, %38 : vector<16x512xf32>
    %41 = arith.mulf %30, %40 : vector<16x512xf32>
    %42 = arith.truncf %41 : vector<16x512xf32> to vector<16x512xbf16>
    %c0_18 = arith.constant 0 : index
    %c0_19 = arith.constant 0 : index
    %43 = vector.load %arg6[%c0_18, %c0_19] : memref<512x128xbf16, #tpu.memory_space<vmem>>, vector<512x128xbf16>
    %cst_20 = arith.constant dense<0.000000e+00> : vector<16x128xf32>
    %44 = tpu.matmul %42, %43, %cst_20 {dimension_numbers = #tpu.dot_dimension_numbers<[1], [0], [0], [1], [0, 0, 1, 1], [], []>} : vector<16x512xbf16>, vector<512x128xbf16>, vector<16x128xf32> -> vector<16x128xf32>
    %c0_21 = arith.constant 0 : index
    %c0_22 = arith.constant 0 : index
    %45 = vector.load %arg7[%c0_21, %c0_22] : memref<1x128xf32, #tpu.memory_space<vmem>>, vector<1x128xf32>
    %46 = vector.broadcast %45 : vector<1x128xf32> to vector<16x128xf32>
    %47 = arith.addf %44, %46 : vector<16x128xf32>
    %48 = arith.addf %0, %47 : vector<16x128xf32>
    %c0_23 = arith.constant 0 : index
    %c0_24 = arith.constant 0 : index
    %49 = vector.load %arg8[%c0_23, %c0_24] : memref<16x128xf32, #tpu.memory_space<vmem>>, vector<16x128xf32>
    tpu.vector_store %arg8[%c0_23, %c0_24], %48 {strides = array<i32>} : memref<16x128xf32, #tpu.memory_space<vmem>>, vector<16x128xf32>,
    return
  }
  func.func @transform_0(%arg0: i32) -> (i32, i32) {
    %c0_i32 = arith.constant 0 : i32
    %c0_i32_0 = arith.constant 0 : i32
    return %arg0, %c0_i32 : i32, i32
  }
  func.func @transform_1(%arg0: i32) -> (i32, i32) {
    %c0_i32 = arith.constant 0 : i32
    %c0_i32_0 = arith.constant 0 : i32
    %c0_i32_1 = arith.constant 0 : i32
    return %c0_i32, %c0_i32_0 : i32, i32
  }
  func.func @transform_2(%arg0: i32) -> (i32, i32) {
    %c0_i32 = arith.constant 0 : i32
    %c0_i32_0 = arith.constant 0 : i32
    %c0_i32_1 = arith.constant 0 : i32
    return %c0_i32, %c0_i32_0 : i32, i32
  }
  func.func @transform_3(%arg0: i32) -> (i32, i32) {
    %c0_i32 = arith.constant 0 : i32
    %c0_i32_0 = arith.constant 0 : i32
    %c0_i32_1 = arith.constant 0 : i32
    return %c0_i32, %c0_i32_0 : i32, i32
  }
  func.func @transform_4(%arg0: i32) -> (i32, i32) {
    %c0_i32 = arith.constant 0 : i32
    %c0_i32_0 = arith.constant 0 : i32
    %c0_i32_1 = arith.constant 0 : i32
    return %c0_i32, %c0_i32_0 : i32, i32
  }
  func.func @transform_5(%arg0: i32) -> (i32, i32) {
    %c0_i32 = arith.constant 0 : i32
    %c0_i32_0 = arith.constant 0 : i32
    %c0_i32_1 = arith.constant 0 : i32
    return %c0_i32, %c0_i32_0 : i32, i32
  }
  func.func @transform_6(%arg0: i32) -> (i32, i32) {
    %c0_i32 = arith.constant 0 : i32
    %c0_i32_0 = arith.constant 0 : i32
    %c0_i32_1 = arith.constant 0 : i32
    return %c0_i32, %c0_i32_0 : i32, i32
  }
  func.func @transform_7(%arg0: i32) -> (i32, i32) {
    %c0_i32 = arith.constant 0 : i32
    %c0_i32_0 = arith.constant 0 : i32
    return %arg0, %c0_i32 : i32, i32
  }
}

module attributes {stable_mosaic.version = 11 : i64} {
  func.func @_patch_embed_kernel(%arg0: i32, %arg1: memref<1x1x512xbf16, #tpu.memory_space<vmem>>, %arg2: memref<512x128xbf16, #tpu.memory_space<vmem>>, %arg3: memref<1x128xf32, #tpu.memory_space<vmem>>, %arg4: memref<1x128xf32, #tpu.memory_space<vmem>>, %arg5: memref<1x128xf32, #tpu.memory_space<vmem>>, %arg6: memref<1x128xf32, #tpu.memory_space<vmem>>, %arg7: memref<1x1x128xf32, #tpu.memory_space<vmem>>) attributes {dimension_semantics = [#tpu.dimension_semantics<parallel>], iteration_bounds = array<i64: 2>, scalar_prefetch = 0 : i64, scratch_operands = 0 : i64, tpu.core_type = #tpu.core_type<tc>, window_params = [{transform_indices = @transform_0, window_bounds = array<i64: 1, 1, 512>}, {pipeline_mode = #tpu.pipeline_mode<synchronous>, transform_indices = @transform_1, window_bounds = array<i64: 512, 128>}, {pipeline_mode = #tpu.pipeline_mode<synchronous>, transform_indices = @transform_2, window_bounds = array<i64: 1, 128>}, {pipeline_mode = #tpu.pipeline_mode<synchronous>, transform_indices = @transform_3, window_bounds = array<i64: 1, 128>}, {pipeline_mode = #tpu.pipeline_mode<synchronous>, transform_indices = @transform_4, window_bounds = array<i64: 1, 128>}, {pipeline_mode = #tpu.pipeline_mode<synchronous>, transform_indices = @transform_5, window_bounds = array<i64: 1, 128>}, {transform_indices = @transform_6, window_bounds = array<i64: 1, 1, 128>}]} {
    %c0 = arith.constant 0 : index
    %c0_0 = arith.constant 0 : index
    %c0_1 = arith.constant 0 : index
    %0 = vector.load %arg1[%c0, %c0_0, %c0_1] : memref<1x1x512xbf16, #tpu.memory_space<vmem>>, vector<1x1x512xbf16>
    %1 = vector.shape_cast %0 : vector<1x1x512xbf16> to vector<1x512xbf16>
    %c0_2 = arith.constant 0 : index
    %c0_3 = arith.constant 0 : index
    %2 = vector.load %arg2[%c0_2, %c0_3] : memref<512x128xbf16, #tpu.memory_space<vmem>>, vector<512x128xbf16>
    %cst = arith.constant dense<0.000000e+00> : vector<1x128xf32>
    %3 = tpu.matmul %1, %2, %cst {dimension_numbers = #tpu.dot_dimension_numbers<[1], [0], [0], [1], [0, 0, 1, 1], [], []>} : vector<1x512xbf16>, vector<512x128xbf16>, vector<1x128xf32> -> vector<1x128xf32>
    %c0_4 = arith.constant 0 : index
    %c0_5 = arith.constant 0 : index
    %4 = vector.load %arg3[%c0_4, %c0_5] : memref<1x128xf32, #tpu.memory_space<vmem>>, vector<1x128xf32>
    %5 = arith.addf %3, %4 : vector<1x128xf32>
    %c0_6 = arith.constant 0 : index
    %c0_7 = arith.constant 0 : index
    %6 = vector.load %arg4[%c0_6, %c0_7] : memref<1x128xf32, #tpu.memory_space<vmem>>, vector<1x128xf32>
    %c0_8 = arith.constant 0 : index
    %c0_9 = arith.constant 0 : index
    %7 = vector.load %arg5[%c0_8, %c0_9] : memref<1x128xf32, #tpu.memory_space<vmem>>, vector<1x128xf32>
    %cst_10 = arith.constant dense<0.000000e+00> : vector<1xf32>
    %8 = vector.multi_reduction <add>, %5, %cst_10 [1] : vector<1x128xf32> to vector<1xf32>
    %9 = vector.shape_cast %8 : vector<1xf32> to vector<1x1xf32>
    %cst_11 = arith.constant 1.280000e+02 : f32
    %10 = vector.broadcast %cst_11 : f32 to vector<1x1xf32>
    %11 = arith.divf %9, %10 : vector<1x1xf32>
    %12 = vector.broadcast %11 : vector<1x1xf32> to vector<1x128xf32>
    %13 = arith.subf %5, %12 : vector<1x128xf32>
    %14 = arith.mulf %13, %13 : vector<1x128xf32>
    %cst_12 = arith.constant dense<0.000000e+00> : vector<1xf32>
    %15 = vector.multi_reduction <add>, %14, %cst_12 [1] : vector<1x128xf32> to vector<1xf32>
    %16 = vector.shape_cast %15 : vector<1xf32> to vector<1x1xf32>
    %cst_13 = arith.constant 1.280000e+02 : f32
    %17 = vector.broadcast %cst_13 : f32 to vector<1x1xf32>
    %18 = arith.divf %16, %17 : vector<1x1xf32>
    %cst_14 = arith.constant 9.99999997E-7 : f32
    %19 = vector.broadcast %cst_14 : f32 to vector<1x1xf32>
    %20 = arith.addf %18, %19 : vector<1x1xf32>
    %21 = math.rsqrt %20 : vector<1x1xf32>
    %22 = vector.broadcast %21 : vector<1x1xf32> to vector<1x128xf32>
    %23 = arith.mulf %13, %22 : vector<1x128xf32>
    %24 = arith.mulf %23, %6 : vector<1x128xf32>
    %25 = arith.addf %24, %7 : vector<1x128xf32>
    %c0_15 = arith.constant 0 : index
    %c0_16 = arith.constant 0 : index
    %26 = vector.load %arg6[%c0_15, %c0_16] : memref<1x128xf32, #tpu.memory_space<vmem>>, vector<1x128xf32>
    %27 = arith.addf %25, %26 : vector<1x128xf32>
    %c0_17 = arith.constant 0 : index
    %c0_18 = arith.constant 0 : index
    %c0_19 = arith.constant 0 : index
    %28 = vector.load %arg7[%c0_17, %c0_18, %c0_19] : memref<1x1x128xf32, #tpu.memory_space<vmem>>, vector<1x1x128xf32>
    %29 = vector.shape_cast %28 : vector<1x1x128xf32> to vector<1x128xf32>
    %30 = vector.shape_cast %27 : vector<1x128xf32> to vector<1x1x128xf32>
    tpu.vector_store %arg7[%c0_17, %c0_18, %c0_19], %30 {strides = array<i32>} : memref<1x1x128xf32, #tpu.memory_space<vmem>>, vector<1x1x128xf32>,
    return
  }
  func.func @transform_0(%arg0: i32) -> (i32, i32, i32) {
    %c0_i32 = arith.constant 0 : i32
    %c0_i32_0 = arith.constant 0 : i32
    %c0_i32_1 = arith.constant 0 : i32
    return %arg0, %c0_i32, %c0_i32_0 : i32, i32, i32
  }
  func.func @transform_1(%arg0: i32) -> (i32, i32) {
    %c0_i32 = arith.constant 0 : i32
    %c0_i32_0 = arith.constant 0 : i32
    %c0_i32_1 = arith.constant 0 : i32
    return %c0_i32, %c0_i32_0 : i32, i32
  }
  func.func @transform_2(%arg0: i32) -> (i32, i32) {
    %c0_i32 = arith.constant 0 : i32
    %c0_i32_0 = arith.constant 0 : i32
    %c0_i32_1 = arith.constant 0 : i32
    return %c0_i32, %c0_i32_0 : i32, i32
  }
  func.func @transform_3(%arg0: i32) -> (i32, i32) {
    %c0_i32 = arith.constant 0 : i32
    %c0_i32_0 = arith.constant 0 : i32
    %c0_i32_1 = arith.constant 0 : i32
    return %c0_i32, %c0_i32_0 : i32, i32
  }
  func.func @transform_4(%arg0: i32) -> (i32, i32) {
    %c0_i32 = arith.constant 0 : i32
    %c0_i32_0 = arith.constant 0 : i32
    %c0_i32_1 = arith.constant 0 : i32
    return %c0_i32, %c0_i32_0 : i32, i32
  }
  func.func @transform_5(%arg0: i32) -> (i32, i32) {
    %c0_i32 = arith.constant 0 : i32
    %c0_i32_0 = arith.constant 0 : i32
    %c0_i32_1 = arith.constant 0 : i32
    return %c0_i32, %c0_i32_0 : i32, i32
  }
  func.func @transform_6(%arg0: i32) -> (i32, i32, i32) {
    %c0_i32 = arith.constant 0 : i32
    %c0_i32_0 = arith.constant 0 : i32
    %c0_i32_1 = arith.constant 0 : i32
    return %arg0, %c0_i32, %c0_i32_0 : i32, i32, i32
  }
}

module attributes {stable_mosaic.version = 11 : i64} {
  func.func @_attn_kernel(%arg0: i32, %arg1: memref<1x1x128xf32, #tpu.memory_space<vmem>>, %arg2: memref<1x128xf32, #tpu.memory_space<vmem>>, %arg3: memref<1x128xf32, #tpu.memory_space<vmem>>, %arg4: memref<128x128xbf16, #tpu.memory_space<vmem>>, %arg5: memref<128x128xbf16, #tpu.memory_space<vmem>>, %arg6: memref<128x128xbf16, #tpu.memory_space<vmem>>, %arg7: memref<128x128xbf16, #tpu.memory_space<vmem>>, %arg8: memref<1x128xf32, #tpu.memory_space<vmem>>, %arg9: memref<1x1x128xf32, #tpu.memory_space<vmem>>) attributes {dimension_semantics = [#tpu.dimension_semantics<parallel>], iteration_bounds = array<i64: 2>, scalar_prefetch = 0 : i64, scratch_operands = 0 : i64, tpu.core_type = #tpu.core_type<tc>, window_params = [{transform_indices = @transform_0, window_bounds = array<i64: 1, 1, 128>}, {pipeline_mode = #tpu.pipeline_mode<synchronous>, transform_indices = @transform_1, window_bounds = array<i64: 1, 128>}, {pipeline_mode = #tpu.pipeline_mode<synchronous>, transform_indices = @transform_2, window_bounds = array<i64: 1, 128>}, {pipeline_mode = #tpu.pipeline_mode<synchronous>, transform_indices = @transform_3, window_bounds = array<i64: 128, 128>}, {pipeline_mode = #tpu.pipeline_mode<synchronous>, transform_indices = @transform_4, window_bounds = array<i64: 128, 128>}, {pipeline_mode = #tpu.pipeline_mode<synchronous>, transform_indices = @transform_5, window_bounds = array<i64: 128, 128>}, {pipeline_mode = #tpu.pipeline_mode<synchronous>, transform_indices = @transform_6, window_bounds = array<i64: 128, 128>}, {pipeline_mode = #tpu.pipeline_mode<synchronous>, transform_indices = @transform_7, window_bounds = array<i64: 1, 128>}, {transform_indices = @transform_8, window_bounds = array<i64: 1, 1, 128>}]} {
    %c0 = arith.constant 0 : index
    %c0_0 = arith.constant 0 : index
    %c0_1 = arith.constant 0 : index
    %0 = vector.load %arg1[%c0, %c0_0, %c0_1] : memref<1x1x128xf32, #tpu.memory_space<vmem>>, vector<1x1x128xf32>
    %1 = vector.shape_cast %0 : vector<1x1x128xf32> to vector<1x128xf32>
    %c0_2 = arith.constant 0 : index
    %c0_3 = arith.constant 0 : index
    %2 = vector.load %arg2[%c0_2, %c0_3] : memref<1x128xf32, #tpu.memory_space<vmem>>, vector<1x128xf32>
    %c0_4 = arith.constant 0 : index
    %c0_5 = arith.constant 0 : index
    %3 = vector.load %arg3[%c0_4, %c0_5] : memref<1x128xf32, #tpu.memory_space<vmem>>, vector<1x128xf32>
    %cst = arith.constant dense<0.000000e+00> : vector<1xf32>
    %4 = vector.multi_reduction <add>, %1, %cst [1] : vector<1x128xf32> to vector<1xf32>
    %5 = vector.shape_cast %4 : vector<1xf32> to vector<1x1xf32>
    %cst_6 = arith.constant 1.280000e+02 : f32
    %6 = vector.broadcast %cst_6 : f32 to vector<1x1xf32>
    %7 = arith.divf %5, %6 : vector<1x1xf32>
    %8 = vector.broadcast %7 : vector<1x1xf32> to vector<1x128xf32>
    %9 = arith.subf %1, %8 : vector<1x128xf32>
    %10 = arith.mulf %9, %9 : vector<1x128xf32>
    %cst_7 = arith.constant dense<0.000000e+00> : vector<1xf32>
    %11 = vector.multi_reduction <add>, %10, %cst_7 [1] : vector<1x128xf32> to vector<1xf32>
    %12 = vector.shape_cast %11 : vector<1xf32> to vector<1x1xf32>
    %cst_8 = arith.constant 1.280000e+02 : f32
    %13 = vector.broadcast %cst_8 : f32 to vector<1x1xf32>
    %14 = arith.divf %12, %13 : vector<1x1xf32>
    %cst_9 = arith.constant 9.99999997E-7 : f32
    %15 = vector.broadcast %cst_9 : f32 to vector<1x1xf32>
    %16 = arith.addf %14, %15 : vector<1x1xf32>
    %17 = math.rsqrt %16 : vector<1x1xf32>
    %18 = vector.broadcast %17 : vector<1x1xf32> to vector<1x128xf32>
    %19 = arith.mulf %9, %18 : vector<1x128xf32>
    %20 = arith.mulf %19, %2 : vector<1x128xf32>
    %21 = arith.addf %20, %3 : vector<1x128xf32>
    %22 = arith.truncf %21 : vector<1x128xf32> to vector<1x128xbf16>
    %c0_10 = arith.constant 0 : index
    %c0_11 = arith.constant 0 : index
    %23 = vector.load %arg4[%c0_10, %c0_11] : memref<128x128xbf16, #tpu.memory_space<vmem>>, vector<128x128xbf16>
    %cst_12 = arith.constant dense<0.000000e+00> : vector<1x128xf32>
    %24 = tpu.matmul %22, %23, %cst_12 {dimension_numbers = #tpu.dot_dimension_numbers<[1], [0], [0], [1], [0, 0, 1, 1], [], []>} : vector<1x128xbf16>, vector<128x128xbf16>, vector<1x128xf32> -> vector<1x128xf32>
    %c0_13 = arith.constant 0 : index
    %c0_14 = arith.constant 0 : index
    %25 = vector.load %arg5[%c0_13, %c0_14] : memref<128x128xbf16, #tpu.memory_space<vmem>>, vector<128x128xbf16>
    %cst_15 = arith.constant dense<0.000000e+00> : vector<1x128xf32>
    %26 = tpu.matmul %22, %25, %cst_15 {dimension_numbers = #tpu.dot_dimension_numbers<[1], [0], [0], [1], [0, 0, 1, 1], [], []>} : vector<1x128xbf16>, vector<128x128xbf16>, vector<1x128xf32> -> vector<1x128xf32>
    %c0_16 = arith.constant 0 : index
    %c0_17 = arith.constant 0 : index
    %27 = vector.load %arg6[%c0_16, %c0_17] : memref<128x128xbf16, #tpu.memory_space<vmem>>, vector<128x128xbf16>
    %cst_18 = arith.constant dense<0.000000e+00> : vector<1x128xf32>
    %28 = tpu.matmul %22, %27, %cst_18 {dimension_numbers = #tpu.dot_dimension_numbers<[1], [0], [0], [1], [0, 0, 1, 1], [], []>} : vector<1x128xbf16>, vector<128x128xbf16>, vector<1x128xf32> -> vector<1x128xf32>
    %29 = vector.extract_strided_slice %24 {offsets = [0, 0], sizes = [1, 16], strides = [1, 1]} : vector<1x128xf32> to vector<1x16xf32>
    %30 = arith.truncf %29 : vector<1x16xf32> to vector<1x16xbf16>
    %31 = vector.extract_strided_slice %26 {offsets = [0, 0], sizes = [1, 16], strides = [1, 1]} : vector<1x128xf32> to vector<1x16xf32>
    %32 = arith.truncf %31 : vector<1x16xf32> to vector<1x16xbf16>
    %33 = vector.extract_strided_slice %28 {offsets = [0, 0], sizes = [1, 16], strides = [1, 1]} : vector<1x128xf32> to vector<1x16xf32>
    %34 = arith.truncf %33 : vector<1x16xf32> to vector<1x16xbf16>
    %35 = arith.extf %30 : vector<1x16xbf16> to vector<1x16xf32>
    %36 = arith.extf %32 : vector<1x16xbf16> to vector<1x16xf32>
    %cst_19 = arith.constant dense<0.000000e+00> : vector<1xf32>
    %37 = arith.mulf %35, %36 : vector<1x16xf32>
    %38 = vector.multi_reduction <add>, %37, %cst_19 [1] : vector<1x16xf32> to vector<1xf32>
    %39 = vector.shape_cast %38 : vector<1xf32> to vector<1x1xf32>
    %cst_20 = arith.constant dense<0xFF800000> : vector<1xf32>
    %40 = vector.multi_reduction <maximumf>, %39, %cst_20 [1] : vector<1x1xf32> to vector<1xf32>
    %41 = vector.shape_cast %40 : vector<1xf32> to vector<1x1xf32>
    %42 = arith.subf %39, %41 : vector<1x1xf32>
    %43 = math.exp %42 : vector<1x1xf32>
    %cst_21 = arith.constant dense<0.000000e+00> : vector<1xf32>
    %44 = vector.multi_reduction <add>, %43, %cst_21 [1] : vector<1x1xf32> to vector<1xf32>
    %45 = vector.shape_cast %44 : vector<1xf32> to vector<1x1xf32>
    %46 = tpu.reciprocal %45 {approx = true} : vector<1x1xf32> -> vector<1x1xf32>
    %47 = arith.truncf %43 : vector<1x1xf32> to vector<1x1xbf16>
    %cst_22 = arith.constant dense<0.000000e+00> : vector<1x16xf32>
    %48 = tpu.matmul %47, %34, %cst_22 {dimension_numbers = #tpu.dot_dimension_numbers<[1], [0], [0], [1], [0, 0, 1, 1], [], []>} : vector<1x1xbf16>, vector<1x16xbf16>, vector<1x16xf32> -> vector<1x16xf32>
    %49 = vector.broadcast %46 : vector<1x1xf32> to vector<1x16xf32>
    %50 = arith.mulf %48, %49 : vector<1x16xf32>
    %51 = arith.truncf %50 : vector<1x16xf32> to vector<1x16xbf16>
    %c0_23 = arith.constant 0 : index
    %c0_24 = arith.constant 0 : index
    %52 = vector.load %arg7[%c0_23, %c0_24] : memref<128x128xbf16, #tpu.memory_space<vmem>>, vector<16x128xbf16>
    %cst_25 = arith.constant dense<0.000000e+00> : vector<1x128xf32>
    %53 = tpu.matmul %51, %52, %cst_25 {dimension_numbers = #tpu.dot_dimension_numbers<[1], [0], [0], [1], [0, 0, 1, 1], [], []>} : vector<1x16xbf16>, vector<16x128xbf16>, vector<1x128xf32> -> vector<1x128xf32>
    %54 = vector.extract_strided_slice %24 {offsets = [0, 16], sizes = [1, 16], strides = [1, 1]} : vector<1x128xf32> to vector<1x16xf32>
    %55 = arith.truncf %54 : vector<1x16xf32> to vector<1x16xbf16>
    %56 = vector.extract_strided_slice %26 {offsets = [0, 16], sizes = [1, 16], strides = [1, 1]} : vector<1x128xf32> to vector<1x16xf32>
    %57 = arith.truncf %56 : vector<1x16xf32> to vector<1x16xbf16>
    %58 = vector.extract_strided_slice %28 {offsets = [0, 16], sizes = [1, 16], strides = [1, 1]} : vector<1x128xf32> to vector<1x16xf32>
    %59 = arith.truncf %58 : vector<1x16xf32> to vector<1x16xbf16>
    %60 = arith.extf %55 : vector<1x16xbf16> to vector<1x16xf32>
    %61 = arith.extf %57 : vector<1x16xbf16> to vector<1x16xf32>
    %cst_26 = arith.constant dense<0.000000e+00> : vector<1xf32>
    %62 = arith.mulf %60, %61 : vector<1x16xf32>
    %63 = vector.multi_reduction <add>, %62, %cst_26 [1] : vector<1x16xf32> to vector<1xf32>
    %64 = vector.shape_cast %63 : vector<1xf32> to vector<1x1xf32>
    %cst_27 = arith.constant dense<0xFF800000> : vector<1xf32>
    %65 = vector.multi_reduction <maximumf>, %64, %cst_27 [1] : vector<1x1xf32> to vector<1xf32>
    %66 = vector.shape_cast %65 : vector<1xf32> to vector<1x1xf32>
    %67 = arith.subf %64, %66 : vector<1x1xf32>
    %68 = math.exp %67 : vector<1x1xf32>
    %cst_28 = arith.constant dense<0.000000e+00> : vector<1xf32>
    %69 = vector.multi_reduction <add>, %68, %cst_28 [1] : vector<1x1xf32> to vector<1xf32>
    %70 = vector.shape_cast %69 : vector<1xf32> to vector<1x1xf32>
    %71 = tpu.reciprocal %70 {approx = true} : vector<1x1xf32> -> vector<1x1xf32>
    %72 = arith.truncf %68 : vector<1x1xf32> to vector<1x1xbf16>
    %cst_29 = arith.constant dense<0.000000e+00> : vector<1x16xf32>
    %73 = tpu.matmul %72, %59, %cst_29 {dimension_numbers = #tpu.dot_dimension_numbers<[1], [0], [0], [1], [0, 0, 1, 1], [], []>} : vector<1x1xbf16>, vector<1x16xbf16>, vector<1x16xf32> -> vector<1x16xf32>
    %74 = vector.broadcast %71 : vector<1x1xf32> to vector<1x16xf32>
    %75 = arith.mulf %73, %74 : vector<1x16xf32>
    %76 = arith.truncf %75 : vector<1x16xf32> to vector<1x16xbf16>
    %c16 = arith.constant 16 : index
    %c0_30 = arith.constant 0 : index
    %77 = vector.load %arg7[%c16, %c0_30] : memref<128x128xbf16, #tpu.memory_space<vmem>>, vector<16x128xbf16>
    %cst_31 = arith.constant dense<0.000000e+00> : vector<1x128xf32>
    %78 = tpu.matmul %76, %77, %cst_31 {dimension_numbers = #tpu.dot_dimension_numbers<[1], [0], [0], [1], [0, 0, 1, 1], [], []>} : vector<1x16xbf16>, vector<16x128xbf16>, vector<1x128xf32> -> vector<1x128xf32>
    %79 = arith.addf %53, %78 : vector<1x128xf32>
    %80 = vector.extract_strided_slice %24 {offsets = [0, 32], sizes = [1, 16], strides = [1, 1]} : vector<1x128xf32> to vector<1x16xf32>
    %81 = arith.truncf %80 : vector<1x16xf32> to vector<1x16xbf16>
    %82 = vector.extract_strided_slice %26 {offsets = [0, 32], sizes = [1, 16], strides = [1, 1]} : vector<1x128xf32> to vector<1x16xf32>
    %83 = arith.truncf %82 : vector<1x16xf32> to vector<1x16xbf16>
    %84 = vector.extract_strided_slice %28 {offsets = [0, 32], sizes = [1, 16], strides = [1, 1]} : vector<1x128xf32> to vector<1x16xf32>
    %85 = arith.truncf %84 : vector<1x16xf32> to vector<1x16xbf16>
    %86 = arith.extf %81 : vector<1x16xbf16> to vector<1x16xf32>
    %87 = arith.extf %83 : vector<1x16xbf16> to vector<1x16xf32>
    %cst_32 = arith.constant dense<0.000000e+00> : vector<1xf32>
    %88 = arith.mulf %86, %87 : vector<1x16xf32>
    %89 = vector.multi_reduction <add>, %88, %cst_32 [1] : vector<1x16xf32> to vector<1xf32>
    %90 = vector.shape_cast %89 : vector<1xf32> to vector<1x1xf32>
    %cst_33 = arith.constant dense<0xFF800000> : vector<1xf32>
    %91 = vector.multi_reduction <maximumf>, %90, %cst_33 [1] : vector<1x1xf32> to vector<1xf32>
    %92 = vector.shape_cast %91 : vector<1xf32> to vector<1x1xf32>
    %93 = arith.subf %90, %92 : vector<1x1xf32>
    %94 = math.exp %93 : vector<1x1xf32>
    %cst_34 = arith.constant dense<0.000000e+00> : vector<1xf32>
    %95 = vector.multi_reduction <add>, %94, %cst_34 [1] : vector<1x1xf32> to vector<1xf32>
    %96 = vector.shape_cast %95 : vector<1xf32> to vector<1x1xf32>
    %97 = tpu.reciprocal %96 {approx = true} : vector<1x1xf32> -> vector<1x1xf32>
    %98 = arith.truncf %94 : vector<1x1xf32> to vector<1x1xbf16>
    %cst_35 = arith.constant dense<0.000000e+00> : vector<1x16xf32>
    %99 = tpu.matmul %98, %85, %cst_35 {dimension_numbers = #tpu.dot_dimension_numbers<[1], [0], [0], [1], [0, 0, 1, 1], [], []>} : vector<1x1xbf16>, vector<1x16xbf16>, vector<1x16xf32> -> vector<1x16xf32>
    %100 = vector.broadcast %97 : vector<1x1xf32> to vector<1x16xf32>
    %101 = arith.mulf %99, %100 : vector<1x16xf32>
    %102 = arith.truncf %101 : vector<1x16xf32> to vector<1x16xbf16>
    %c32 = arith.constant 32 : index
    %c0_36 = arith.constant 0 : index
    %103 = vector.load %arg7[%c32, %c0_36] : memref<128x128xbf16, #tpu.memory_space<vmem>>, vector<16x128xbf16>
    %cst_37 = arith.constant dense<0.000000e+00> : vector<1x128xf32>
    %104 = tpu.matmul %102, %103, %cst_37 {dimension_numbers = #tpu.dot_dimension_numbers<[1], [0], [0], [1], [0, 0, 1, 1], [], []>} : vector<1x16xbf16>, vector<16x128xbf16>, vector<1x128xf32> -> vector<1x128xf32>
    %105 = arith.addf %79, %104 : vector<1x128xf32>
    %106 = vector.extract_strided_slice %24 {offsets = [0, 48], sizes = [1, 16], strides = [1, 1]} : vector<1x128xf32> to vector<1x16xf32>
    %107 = arith.truncf %106 : vector<1x16xf32> to vector<1x16xbf16>
    %108 = vector.extract_strided_slice %26 {offsets = [0, 48], sizes = [1, 16], strides = [1, 1]} : vector<1x128xf32> to vector<1x16xf32>
    %109 = arith.truncf %108 : vector<1x16xf32> to vector<1x16xbf16>
    %110 = vector.extract_strided_slice %28 {offsets = [0, 48], sizes = [1, 16], strides = [1, 1]} : vector<1x128xf32> to vector<1x16xf32>
    %111 = arith.truncf %110 : vector<1x16xf32> to vector<1x16xbf16>
    %112 = arith.extf %107 : vector<1x16xbf16> to vector<1x16xf32>
    %113 = arith.extf %109 : vector<1x16xbf16> to vector<1x16xf32>
    %cst_38 = arith.constant dense<0.000000e+00> : vector<1xf32>
    %114 = arith.mulf %112, %113 : vector<1x16xf32>
    %115 = vector.multi_reduction <add>, %114, %cst_38 [1] : vector<1x16xf32> to vector<1xf32>
    %116 = vector.shape_cast %115 : vector<1xf32> to vector<1x1xf32>
    %cst_39 = arith.constant dense<0xFF800000> : vector<1xf32>
    %117 = vector.multi_reduction <maximumf>, %116, %cst_39 [1] : vector<1x1xf32> to vector<1xf32>
    %118 = vector.shape_cast %117 : vector<1xf32> to vector<1x1xf32>
    %119 = arith.subf %116, %118 : vector<1x1xf32>
    %120 = math.exp %119 : vector<1x1xf32>
    %cst_40 = arith.constant dense<0.000000e+00> : vector<1xf32>
    %121 = vector.multi_reduction <add>, %120, %cst_40 [1] : vector<1x1xf32> to vector<1xf32>
    %122 = vector.shape_cast %121 : vector<1xf32> to vector<1x1xf32>
    %123 = tpu.reciprocal %122 {approx = true} : vector<1x1xf32> -> vector<1x1xf32>
    %124 = arith.truncf %120 : vector<1x1xf32> to vector<1x1xbf16>
    %cst_41 = arith.constant dense<0.000000e+00> : vector<1x16xf32>
    %125 = tpu.matmul %124, %111, %cst_41 {dimension_numbers = #tpu.dot_dimension_numbers<[1], [0], [0], [1], [0, 0, 1, 1], [], []>} : vector<1x1xbf16>, vector<1x16xbf16>, vector<1x16xf32> -> vector<1x16xf32>
    %126 = vector.broadcast %123 : vector<1x1xf32> to vector<1x16xf32>
    %127 = arith.mulf %125, %126 : vector<1x16xf32>
    %128 = arith.truncf %127 : vector<1x16xf32> to vector<1x16xbf16>
    %c48 = arith.constant 48 : index
    %c0_42 = arith.constant 0 : index
    %129 = vector.load %arg7[%c48, %c0_42] : memref<128x128xbf16, #tpu.memory_space<vmem>>, vector<16x128xbf16>
    %cst_43 = arith.constant dense<0.000000e+00> : vector<1x128xf32>
    %130 = tpu.matmul %128, %129, %cst_43 {dimension_numbers = #tpu.dot_dimension_numbers<[1], [0], [0], [1], [0, 0, 1, 1], [], []>} : vector<1x16xbf16>, vector<16x128xbf16>, vector<1x128xf32> -> vector<1x128xf32>
    %131 = arith.addf %105, %130 : vector<1x128xf32>
    %132 = vector.extract_strided_slice %24 {offsets = [0, 64], sizes = [1, 16], strides = [1, 1]} : vector<1x128xf32> to vector<1x16xf32>
    %133 = arith.truncf %132 : vector<1x16xf32> to vector<1x16xbf16>
    %134 = vector.extract_strided_slice %26 {offsets = [0, 64], sizes = [1, 16], strides = [1, 1]} : vector<1x128xf32> to vector<1x16xf32>
    %135 = arith.truncf %134 : vector<1x16xf32> to vector<1x16xbf16>
    %136 = vector.extract_strided_slice %28 {offsets = [0, 64], sizes = [1, 16], strides = [1, 1]} : vector<1x128xf32> to vector<1x16xf32>
    %137 = arith.truncf %136 : vector<1x16xf32> to vector<1x16xbf16>
    %138 = arith.extf %133 : vector<1x16xbf16> to vector<1x16xf32>
    %139 = arith.extf %135 : vector<1x16xbf16> to vector<1x16xf32>
    %cst_44 = arith.constant dense<0.000000e+00> : vector<1xf32>
    %140 = arith.mulf %138, %139 : vector<1x16xf32>
    %141 = vector.multi_reduction <add>, %140, %cst_44 [1] : vector<1x16xf32> to vector<1xf32>
    %142 = vector.shape_cast %141 : vector<1xf32> to vector<1x1xf32>
    %cst_45 = arith.constant dense<0xFF800000> : vector<1xf32>
    %143 = vector.multi_reduction <maximumf>, %142, %cst_45 [1] : vector<1x1xf32> to vector<1xf32>
    %144 = vector.shape_cast %143 : vector<1xf32> to vector<1x1xf32>
    %145 = arith.subf %142, %144 : vector<1x1xf32>
    %146 = math.exp %145 : vector<1x1xf32>
    %cst_46 = arith.constant dense<0.000000e+00> : vector<1xf32>
    %147 = vector.multi_reduction <add>, %146, %cst_46 [1] : vector<1x1xf32> to vector<1xf32>
    %148 = vector.shape_cast %147 : vector<1xf32> to vector<1x1xf32>
    %149 = tpu.reciprocal %148 {approx = true} : vector<1x1xf32> -> vector<1x1xf32>
    %150 = arith.truncf %146 : vector<1x1xf32> to vector<1x1xbf16>
    %cst_47 = arith.constant dense<0.000000e+00> : vector<1x16xf32>
    %151 = tpu.matmul %150, %137, %cst_47 {dimension_numbers = #tpu.dot_dimension_numbers<[1], [0], [0], [1], [0, 0, 1, 1], [], []>} : vector<1x1xbf16>, vector<1x16xbf16>, vector<1x16xf32> -> vector<1x16xf32>
    %152 = vector.broadcast %149 : vector<1x1xf32> to vector<1x16xf32>
    %153 = arith.mulf %151, %152 : vector<1x16xf32>
    %154 = arith.truncf %153 : vector<1x16xf32> to vector<1x16xbf16>
    %c64 = arith.constant 64 : index
    %c0_48 = arith.constant 0 : index
    %155 = vector.load %arg7[%c64, %c0_48] : memref<128x128xbf16, #tpu.memory_space<vmem>>, vector<16x128xbf16>
    %cst_49 = arith.constant dense<0.000000e+00> : vector<1x128xf32>
    %156 = tpu.matmul %154, %155, %cst_49 {dimension_numbers = #tpu.dot_dimension_numbers<[1], [0], [0], [1], [0, 0, 1, 1], [], []>} : vector<1x16xbf16>, vector<16x128xbf16>, vector<1x128xf32> -> vector<1x128xf32>
    %157 = arith.addf %131, %156 : vector<1x128xf32>
    %158 = vector.extract_strided_slice %24 {offsets = [0, 80], sizes = [1, 16], strides = [1, 1]} : vector<1x128xf32> to vector<1x16xf32>
    %159 = arith.truncf %158 : vector<1x16xf32> to vector<1x16xbf16>
    %160 = vector.extract_strided_slice %26 {offsets = [0, 80], sizes = [1, 16], strides = [1, 1]} : vector<1x128xf32> to vector<1x16xf32>
    %161 = arith.truncf %160 : vector<1x16xf32> to vector<1x16xbf16>
    %162 = vector.extract_strided_slice %28 {offsets = [0, 80], sizes = [1, 16], strides = [1, 1]} : vector<1x128xf32> to vector<1x16xf32>
    %163 = arith.truncf %162 : vector<1x16xf32> to vector<1x16xbf16>
    %164 = arith.extf %159 : vector<1x16xbf16> to vector<1x16xf32>
    %165 = arith.extf %161 : vector<1x16xbf16> to vector<1x16xf32>
    %cst_50 = arith.constant dense<0.000000e+00> : vector<1xf32>
    %166 = arith.mulf %164, %165 : vector<1x16xf32>
    %167 = vector.multi_reduction <add>, %166, %cst_50 [1] : vector<1x16xf32> to vector<1xf32>
    %168 = vector.shape_cast %167 : vector<1xf32> to vector<1x1xf32>
    %cst_51 = arith.constant dense<0xFF800000> : vector<1xf32>
    %169 = vector.multi_reduction <maximumf>, %168, %cst_51 [1] : vector<1x1xf32> to vector<1xf32>
    %170 = vector.shape_cast %169 : vector<1xf32> to vector<1x1xf32>
    %171 = arith.subf %168, %170 : vector<1x1xf32>
    %172 = math.exp %171 : vector<1x1xf32>
    %cst_52 = arith.constant dense<0.000000e+00> : vector<1xf32>
    %173 = vector.multi_reduction <add>, %172, %cst_52 [1] : vector<1x1xf32> to vector<1xf32>
    %174 = vector.shape_cast %173 : vector<1xf32> to vector<1x1xf32>
    %175 = tpu.reciprocal %174 {approx = true} : vector<1x1xf32> -> vector<1x1xf32>
    %176 = arith.truncf %172 : vector<1x1xf32> to vector<1x1xbf16>
    %cst_53 = arith.constant dense<0.000000e+00> : vector<1x16xf32>
    %177 = tpu.matmul %176, %163, %cst_53 {dimension_numbers = #tpu.dot_dimension_numbers<[1], [0], [0], [1], [0, 0, 1, 1], [], []>} : vector<1x1xbf16>, vector<1x16xbf16>, vector<1x16xf32> -> vector<1x16xf32>
    %178 = vector.broadcast %175 : vector<1x1xf32> to vector<1x16xf32>
    %179 = arith.mulf %177, %178 : vector<1x16xf32>
    %180 = arith.truncf %179 : vector<1x16xf32> to vector<1x16xbf16>
    %c80 = arith.constant 80 : index
    %c0_54 = arith.constant 0 : index
    %181 = vector.load %arg7[%c80, %c0_54] : memref<128x128xbf16, #tpu.memory_space<vmem>>, vector<16x128xbf16>
    %cst_55 = arith.constant dense<0.000000e+00> : vector<1x128xf32>
    %182 = tpu.matmul %180, %181, %cst_55 {dimension_numbers = #tpu.dot_dimension_numbers<[1], [0], [0], [1], [0, 0, 1, 1], [], []>} : vector<1x16xbf16>, vector<16x128xbf16>, vector<1x128xf32> -> vector<1x128xf32>
    %183 = arith.addf %157, %182 : vector<1x128xf32>
    %184 = vector.extract_strided_slice %24 {offsets = [0, 96], sizes = [1, 16], strides = [1, 1]} : vector<1x128xf32> to vector<1x16xf32>
    %185 = arith.truncf %184 : vector<1x16xf32> to vector<1x16xbf16>
    %186 = vector.extract_strided_slice %26 {offsets = [0, 96], sizes = [1, 16], strides = [1, 1]} : vector<1x128xf32> to vector<1x16xf32>
    %187 = arith.truncf %186 : vector<1x16xf32> to vector<1x16xbf16>
    %188 = vector.extract_strided_slice %28 {offsets = [0, 96], sizes = [1, 16], strides = [1, 1]} : vector<1x128xf32> to vector<1x16xf32>
    %189 = arith.truncf %188 : vector<1x16xf32> to vector<1x16xbf16>
    %190 = arith.extf %185 : vector<1x16xbf16> to vector<1x16xf32>
    %191 = arith.extf %187 : vector<1x16xbf16> to vector<1x16xf32>
    %cst_56 = arith.constant dense<0.000000e+00> : vector<1xf32>
    %192 = arith.mulf %190, %191 : vector<1x16xf32>
    %193 = vector.multi_reduction <add>, %192, %cst_56 [1] : vector<1x16xf32> to vector<1xf32>
    %194 = vector.shape_cast %193 : vector<1xf32> to vector<1x1xf32>
    %cst_57 = arith.constant dense<0xFF800000> : vector<1xf32>
    %195 = vector.multi_reduction <maximumf>, %194, %cst_57 [1] : vector<1x1xf32> to vector<1xf32>
    %196 = vector.shape_cast %195 : vector<1xf32> to vector<1x1xf32>
    %197 = arith.subf %194, %196 : vector<1x1xf32>
    %198 = math.exp %197 : vector<1x1xf32>
    %cst_58 = arith.constant dense<0.000000e+00> : vector<1xf32>
    %199 = vector.multi_reduction <add>, %198, %cst_58 [1] : vector<1x1xf32> to vector<1xf32>
    %200 = vector.shape_cast %199 : vector<1xf32> to vector<1x1xf32>
    %201 = tpu.reciprocal %200 {approx = true} : vector<1x1xf32> -> vector<1x1xf32>
    %202 = arith.truncf %198 : vector<1x1xf32> to vector<1x1xbf16>
    %cst_59 = arith.constant dense<0.000000e+00> : vector<1x16xf32>
    %203 = tpu.matmul %202, %189, %cst_59 {dimension_numbers = #tpu.dot_dimension_numbers<[1], [0], [0], [1], [0, 0, 1, 1], [], []>} : vector<1x1xbf16>, vector<1x16xbf16>, vector<1x16xf32> -> vector<1x16xf32>
    %204 = vector.broadcast %201 : vector<1x1xf32> to vector<1x16xf32>
    %205 = arith.mulf %203, %204 : vector<1x16xf32>
    %206 = arith.truncf %205 : vector<1x16xf32> to vector<1x16xbf16>
    %c96 = arith.constant 96 : index
    %c0_60 = arith.constant 0 : index
    %207 = vector.load %arg7[%c96, %c0_60] : memref<128x128xbf16, #tpu.memory_space<vmem>>, vector<16x128xbf16>
    %cst_61 = arith.constant dense<0.000000e+00> : vector<1x128xf32>
    %208 = tpu.matmul %206, %207, %cst_61 {dimension_numbers = #tpu.dot_dimension_numbers<[1], [0], [0], [1], [0, 0, 1, 1], [], []>} : vector<1x16xbf16>, vector<16x128xbf16>, vector<1x128xf32> -> vector<1x128xf32>
    %209 = arith.addf %183, %208 : vector<1x128xf32>
    %210 = vector.extract_strided_slice %24 {offsets = [0, 112], sizes = [1, 16], strides = [1, 1]} : vector<1x128xf32> to vector<1x16xf32>
    %211 = arith.truncf %210 : vector<1x16xf32> to vector<1x16xbf16>
    %212 = vector.extract_strided_slice %26 {offsets = [0, 112], sizes = [1, 16], strides = [1, 1]} : vector<1x128xf32> to vector<1x16xf32>
    %213 = arith.truncf %212 : vector<1x16xf32> to vector<1x16xbf16>
    %214 = vector.extract_strided_slice %28 {offsets = [0, 112], sizes = [1, 16], strides = [1, 1]} : vector<1x128xf32> to vector<1x16xf32>
    %215 = arith.truncf %214 : vector<1x16xf32> to vector<1x16xbf16>
    %216 = arith.extf %211 : vector<1x16xbf16> to vector<1x16xf32>
    %217 = arith.extf %213 : vector<1x16xbf16> to vector<1x16xf32>
    %cst_62 = arith.constant dense<0.000000e+00> : vector<1xf32>
    %218 = arith.mulf %216, %217 : vector<1x16xf32>
    %219 = vector.multi_reduction <add>, %218, %cst_62 [1] : vector<1x16xf32> to vector<1xf32>
    %220 = vector.shape_cast %219 : vector<1xf32> to vector<1x1xf32>
    %cst_63 = arith.constant dense<0xFF800000> : vector<1xf32>
    %221 = vector.multi_reduction <maximumf>, %220, %cst_63 [1] : vector<1x1xf32> to vector<1xf32>
    %222 = vector.shape_cast %221 : vector<1xf32> to vector<1x1xf32>
    %223 = arith.subf %220, %222 : vector<1x1xf32>
    %224 = math.exp %223 : vector<1x1xf32>
    %cst_64 = arith.constant dense<0.000000e+00> : vector<1xf32>
    %225 = vector.multi_reduction <add>, %224, %cst_64 [1] : vector<1x1xf32> to vector<1xf32>
    %226 = vector.shape_cast %225 : vector<1xf32> to vector<1x1xf32>
    %227 = tpu.reciprocal %226 {approx = true} : vector<1x1xf32> -> vector<1x1xf32>
    %228 = arith.truncf %224 : vector<1x1xf32> to vector<1x1xbf16>
    %cst_65 = arith.constant dense<0.000000e+00> : vector<1x16xf32>
    %229 = tpu.matmul %228, %215, %cst_65 {dimension_numbers = #tpu.dot_dimension_numbers<[1], [0], [0], [1], [0, 0, 1, 1], [], []>} : vector<1x1xbf16>, vector<1x16xbf16>, vector<1x16xf32> -> vector<1x16xf32>
    %230 = vector.broadcast %227 : vector<1x1xf32> to vector<1x16xf32>
    %231 = arith.mulf %229, %230 : vector<1x16xf32>
    %232 = arith.truncf %231 : vector<1x16xf32> to vector<1x16xbf16>
    %c112 = arith.constant 112 : index
    %c0_66 = arith.constant 0 : index
    %233 = vector.load %arg7[%c112, %c0_66] : memref<128x128xbf16, #tpu.memory_space<vmem>>, vector<16x128xbf16>
    %cst_67 = arith.constant dense<0.000000e+00> : vector<1x128xf32>
    %234 = tpu.matmul %232, %233, %cst_67 {dimension_numbers = #tpu.dot_dimension_numbers<[1], [0], [0], [1], [0, 0, 1, 1], [], []>} : vector<1x16xbf16>, vector<16x128xbf16>, vector<1x128xf32> -> vector<1x128xf32>
    %235 = arith.addf %209, %234 : vector<1x128xf32>
    %c0_68 = arith.constant 0 : index
    %c0_69 = arith.constant 0 : index
    %236 = vector.load %arg8[%c0_68, %c0_69] : memref<1x128xf32, #tpu.memory_space<vmem>>, vector<1x128xf32>
    %237 = arith.addf %235, %236 : vector<1x128xf32>
    %238 = arith.addf %237, %1 : vector<1x128xf32>
    %c0_70 = arith.constant 0 : index
    %c0_71 = arith.constant 0 : index
    %c0_72 = arith.constant 0 : index
    %239 = vector.load %arg9[%c0_70, %c0_71, %c0_72] : memref<1x1x128xf32, #tpu.memory_space<vmem>>, vector<1x1x128xf32>
    %240 = vector.shape_cast %239 : vector<1x1x128xf32> to vector<1x128xf32>
    %241 = vector.shape_cast %238 : vector<1x128xf32> to vector<1x1x128xf32>
    tpu.vector_store %arg9[%c0_70, %c0_71, %c0_72], %241 {strides = array<i32>} : memref<1x1x128xf32, #tpu.memory_space<vmem>>, vector<1x1x128xf32>,
    return
  }
  func.func @transform_0(%arg0: i32) -> (i32, i32, i32) {
    %c0_i32 = arith.constant 0 : i32
    %c0_i32_0 = arith.constant 0 : i32
    %c0_i32_1 = arith.constant 0 : i32
    return %arg0, %c0_i32, %c0_i32_0 : i32, i32, i32
  }
  func.func @transform_1(%arg0: i32) -> (i32, i32) {
    %c0_i32 = arith.constant 0 : i32
    %c0_i32_0 = arith.constant 0 : i32
    %c0_i32_1 = arith.constant 0 : i32
    return %c0_i32, %c0_i32_0 : i32, i32
  }
  func.func @transform_2(%arg0: i32) -> (i32, i32) {
    %c0_i32 = arith.constant 0 : i32
    %c0_i32_0 = arith.constant 0 : i32
    %c0_i32_1 = arith.constant 0 : i32
    return %c0_i32, %c0_i32_0 : i32, i32
  }
  func.func @transform_3(%arg0: i32) -> (i32, i32) {
    %c0_i32 = arith.constant 0 : i32
    %c0_i32_0 = arith.constant 0 : i32
    %c0_i32_1 = arith.constant 0 : i32
    return %c0_i32, %c0_i32_0 : i32, i32
  }
  func.func @transform_4(%arg0: i32) -> (i32, i32) {
    %c0_i32 = arith.constant 0 : i32
    %c0_i32_0 = arith.constant 0 : i32
    %c0_i32_1 = arith.constant 0 : i32
    return %c0_i32, %c0_i32_0 : i32, i32
  }
  func.func @transform_5(%arg0: i32) -> (i32, i32) {
    %c0_i32 = arith.constant 0 : i32
    %c0_i32_0 = arith.constant 0 : i32
    %c0_i32_1 = arith.constant 0 : i32
    return %c0_i32, %c0_i32_0 : i32, i32
  }
  func.func @transform_6(%arg0: i32) -> (i32, i32) {
    %c0_i32 = arith.constant 0 : i32
    %c0_i32_0 = arith.constant 0 : i32
    %c0_i32_1 = arith.constant 0 : i32
    return %c0_i32, %c0_i32_0 : i32, i32
  }
  func.func @transform_7(%arg0: i32) -> (i32, i32) {
    %c0_i32 = arith.constant 0 : i32
    %c0_i32_0 = arith.constant 0 : i32
    %c0_i32_1 = arith.constant 0 : i32
    return %c0_i32, %c0_i32_0 : i32, i32
  }
  func.func @transform_8(%arg0: i32) -> (i32, i32, i32) {
    %c0_i32 = arith.constant 0 : i32
    %c0_i32_0 = arith.constant 0 : i32
    %c0_i32_1 = arith.constant 0 : i32
    return %arg0, %c0_i32, %c0_i32_0 : i32, i32, i32
  }
}

</mosaic_0001>

<bundles_post_ra>
// kernel: pvt_forward.30
= control target key start
LH: loop header
LB: loop body
LE: loop exit
PB: predicated region body
PF: predicated region fallthrough
CT: control target
= control target key end

     0   :  { %s1415_s15 = smov 0   ;;  %s1776_s0 = inlined_call_operand.vmem [shape: bf16[2048,32], index: 0, kind: input, shape index: {}]   ;;  %s1777_s1 = inlined_call_operand.vmem [shape: bf16[32,16], index: 1, kind: input, shape index: {}]   ;;  %s1778_s2 = inlined_call_operand.vmem [shape: f32[1,16], index: 2, kind: input, shape index: {}]   ;;  %s1779_s3 = inlined_call_operand.vmem [shape: f32[1,16], index: 3, kind: input, shape index: {}]   ;;  %s1780_s4 = inlined_call_operand.vmem [shape: f32[2048,16], index: 4, kind: output, shape index: {}]  }
   0x1 LB: > { %s1155_s16 = sadd.s32 4294967295, %s1388_s15   ;;  %p1159_p0 = scmp.ge.s32.totalorder %s1388_s15, 1  ;;  %s1388_s15 = sphi %s1415_s15, %s14_s15  }
   0x2   : > { %p163_p1 = scmp.lt.s32.totalorder %s1388_s15, 5 }
   0x4   : > { %p164_p2 = pnand %p1159_p0, %p163_p1 }
   0x5   : > { %v1348_v0 = vld [vmem:[%s1777_s1] sm:$0xff] (!%p164_p2)   ;;  %s1160_s19 = sshll.u32 (!%p164_p2), %s1155_s16, 6  ;;  %v1349_v1 = vld [vmem:[%s1777_s1 + $0x8] sm:$0xff] (!%p164_p2)   ;;  %vm442_vm0 = vcmask (!%p164_p2), 261120   ;;  %vm1034_vm1 = vcmask (!%p164_p2), 130048  }
   0x6   : > { %167 = sbr.rel (%p164_p2) target bundleno = 297 (0x129), region = 36  ;;  %p190_p3 = scmp.lt.s32.totalorder (!%p164_p2), %s1160_s19, 255  ;;  %1268 = vmatprep.subr.bf16.mxu0 (!%p164_p2), %v1348_v0  ;;  %1336 = vmatprep.subr.bf16.mxu1 (!%p164_p2), %v1348_v0  ;;  %v1504_v34 = vld [vmem:[%s1778_s2] ss:$0 sm:$0xff] (!%p164_p2) }
   0x7   : > { %1269 = vmatpush3.bf16.msra.mxu0 (!%p164_p2), %v1348_v0  ;;  %1338 = vmatpush3.bf16.msra.mxu1 (!%p164_p2), %v1348_v0  ;;  %v1509_v36 = vld [vmem:[%s1779_s3] ss:$0 sm:$0xff] (!%p164_p2) }
   0x8   : > { %1270 = vmatprep.subr.bf16.mxu0 (!%p164_p2), %v1349_v1  ;;  %1337 = vmatprep.subr.bf16.mxu1 (!%p164_p2), %v1349_v1 }
   0xb   : > { %1271 = vmatpush3.bf16.msra.mxu0 (!%p164_p2), %v1349_v1  ;;  %1339 = vmatpush3.bf16.msra.mxu1 (!%p164_p2), %v1349_v1 }
   0xd   : > { %s1782_s19 = smov (!%p190_p3, %s1160_s19), 255 }
   0xe   : > { %s1161_s22 = sshll.u32 %s1782_s19, 2  ;;  %s1163_s30 = sshll.u32 %s1782_s19, 3 }
   0xf   : > { %s1435_s25 = scalar_lea.vmem %s1776_s0, %s1161_s22  ;;  %s1521_s7 = scalar_lea.vmem %s1780_s4, %s1163_s30 }
  0x10   : > { %v1350_v2 = vld [vmem:[%s1435_s25] sm:$0xff]   ;;  %v1352_v4 = vld [vmem:[%s1435_s25 + $0x8] sm:$0xff]   ;;  %v1354_v6 = vld [vmem:[%s1435_s25 + $0x10] sm:$0xff]  }
  0x11   : > { %v1351_v3 = vld [vmem:[%s1435_s25 + $0x80] sm:$0xff]   ;;  %1272 = vmatprep.mubr.msk.bf16.mxu0 %vm442_vm0, %v1350_v2  ;;  %v1353_v5 = vld [vmem:[%s1435_s25 + $0x88] sm:$0xff]   ;;  %v1355_v7 = vld [vmem:[%s1435_s25 + $0x90] sm:$0xff]  }
  0x12   : > { %1304 = vmatprep.mubr.msk.bf16.mxu1 %vm442_vm0, %v1351_v3  ;;  %1273 = vmatmul.mubr.msk.bf16.vlgmr.msra.gmra.mrb[0].mxu0 %vm442_vm0, %v1352_v4  ;;  %v1356_v8 = vld [vmem:[%s1435_s25 + $0x18] sm:$0xff]   ;;  %v1358_v10 = vld [vmem:[%s1435_s25 + $0x20] sm:$0xff]   ;;  %v1360_v12 = vld [vmem:[%s1435_s25 + $0x28] sm:$0xff]  }
  0x13   : > { %1305 = vmatmul.mubr.msk.bf16.vlgmr.msra.gmra.mrb[0].mxu1 %vm442_vm0, %v1353_v5  ;;  %1276 = vmatprep.mubr.msk.bf16.mxu0 %vm442_vm0, %v1354_v6  ;;  %v1357_v9 = vld [vmem:[%s1435_s25 + $0x98] sm:$0xff]   ;;  %v1359_v11 = vld [vmem:[%s1435_s25 + $0xa0] sm:$0xff]   ;;  %v1361_v13 = vld [vmem:[%s1435_s25 + $0xa8] sm:$0xff]  }
  0x14   : > { %1308 = vmatprep.mubr.msk.bf16.mxu1 %vm442_vm0, %v1355_v7  ;;  %v1362_v14 = vld [vmem:[%s1435_s25 + $0x30] sm:$0xff]   ;;  %v1364_v16 = vld [vmem:[%s1435_s25 + $0x38] sm:$0xff]   ;;  %v1366_v18 = vld [vmem:[%s1435_s25 + $0x40] sm:$0xff]  }
  0x15   : > { %v1363_v15 = vld [vmem:[%s1435_s25 + $0xb0] sm:$0xff]   ;;  %v1365_v17 = vld [vmem:[%s1435_s25 + $0xb8] sm:$0xff]   ;;  %v1367_v19 = vld [vmem:[%s1435_s25 + $0xc0] sm:$0xff]  }
  0x16   : > { %v1368_v20 = vld [vmem:[%s1435_s25 + $0x48] sm:$0xff]   ;;  %v1370_v22 = vld [vmem:[%s1435_s25 + $0x50] sm:$0xff]   ;;  %v1372_v24 = vld [vmem:[%s1435_s25 + $0x58] sm:$0xff]  }
  0x17   : > { %v1369_v21 = vld [vmem:[%s1435_s25 + $0xc8] sm:$0xff]   ;;  %v1371_v23 = vld [vmem:[%s1435_s25 + $0xd0] sm:$0xff]   ;;  %v1373_v25 = vld [vmem:[%s1435_s25 + $0xd8] sm:$0xff]  }
  0x18   : > { %v1374_v26 = vld [vmem:[%s1435_s25 + $0x60] sm:$0xff]   ;;  %v1376_v28 = vld [vmem:[%s1435_s25 + $0x68] sm:$0xff]   ;;  %v1378_v30 = vld [vmem:[%s1435_s25 + $0x70] sm:$0xff]  }
  0x19   : > { %v1375_v27 = vld [vmem:[%s1435_s25 + $0xe0] sm:$0xff]   ;;  %v1377_v29 = vld [vmem:[%s1435_s25 + $0xe8] sm:$0xff]   ;;  %v1379_v31 = vld [vmem:[%s1435_s25 + $0xf0] sm:$0xff]  }
  0x1a   : > { %1277 = vmatmul.mubr.msk.bf16.gmra.mrb[4].mxu0 %vm442_vm0, %v1356_v8  ;;  %v1380_v32 = vld [vmem:[%s1435_s25 + $0x78] sm:$0xff]  }
  0x1b   : > { %1309 = vmatmul.mubr.msk.bf16.gmra.mrb[4].mxu1 %vm442_vm0, %v1357_v9  ;;  %1280 = vmatprep.mubr.msk.bf16.mxu0 %vm442_vm0, %v1358_v10  ;;  %v1381_v33 = vld [vmem:[%s1435_s25 + $0xf8] sm:$0xff]  }
  0x1c   : > { %1312 = vmatprep.mubr.msk.bf16.mxu1 %vm442_vm0, %v1359_v11 }
  0x22   : > { %1281 = vmatmul.mubr.msk.bf16.gmra.mrb[8].mxu0 %vm442_vm0, %v1360_v12 }
  0x23   : > { %1313 = vmatmul.mubr.msk.bf16.gmra.mrb[8].mxu1 %vm442_vm0, %v1361_v13  ;;  %1284 = vmatprep.mubr.msk.bf16.mxu0 %vm442_vm0, %v1362_v14 }
  0x24   : > { %1316 = vmatprep.mubr.msk.bf16.mxu1 %vm442_vm0, %v1363_v15 }
  0x2a   : > { %1285 = vmatmul.mubr.msk.bf16.gmra.mrb[12].mxu0 %vm442_vm0, %v1364_v16 }
  0x2b   : > { %1317 = vmatmul.mubr.msk.bf16.gmra.mrb[12].mxu1 %vm442_vm0, %v1365_v17  ;;  %1288 = vmatprep.mubr.msk.bf16.mxu0 %vm442_vm0, %v1366_v18 }
  0x2c   : > { %1320 = vmatprep.mubr.msk.bf16.mxu1 %vm442_vm0, %v1367_v19 }
  0x32   : > { %1289 = vmatmul.mubr.msk.bf16.gmra.mrb[16].mxu0 %vm442_vm0, %v1368_v20 }
  0x33   : > { %1321 = vmatmul.mubr.msk.bf16.gmra.mrb[16].mxu1 %vm442_vm0, %v1369_v21  ;;  %1292 = vmatprep.mubr.msk.bf16.mxu0 %vm442_vm0, %v1370_v22 }
  0x34   : > { %1324 = vmatprep.mubr.msk.bf16.mxu1 %vm442_vm0, %v1371_v23 }
  0x3a   : > { %1293 = vmatmul.mubr.msk.bf16.gmra.mrb[20].mxu0 %vm442_vm0, %v1372_v24 }
  0x3b   : > { %1325 = vmatmul.mubr.msk.bf16.gmra.mrb[20].mxu1 %vm442_vm0, %v1373_v25  ;;  %1296 = vmatprep.mubr.msk.bf16.mxu0 %vm442_vm0, %v1374_v26 }
  0x3c   : > { %1328 = vmatprep.mubr.msk.bf16.mxu1 %vm442_vm0, %v1375_v27 }
  0x42   : > { %1297 = vmatmul.mubr.msk.bf16.gmra.mrb[24].mxu0 %vm442_vm0, %v1376_v28 }
  0x43   : > { %1329 = vmatmul.mubr.msk.bf16.gmra.mrb[24].mxu1 %vm442_vm0, %v1377_v29  ;;  %1300 = vmatprep.mubr.msk.bf16.mxu0 %vm442_vm0, %v1378_v30 }
  0x44   : > { %1332 = vmatprep.mubr.msk.bf16.mxu1 %vm442_vm0, %v1379_v31 }
  0x4a   : > { %1301 = vmatmul.mubr.msk.bf16.gmra.mrb[28].mxu0 %vm442_vm0, %v1380_v32 }
  0x4b   : > { %1333 = vmatmul.mubr.msk.bf16.gmra.mrb[28].mxu1 %vm442_vm0, %v1381_v33 }
  0xe5   : > { %v1274_v35 = vpop.f32.mrb[0].mxu0 }
  0xe6   : > { %v837_v37 = vmul.f32 %v1274_v35, %v1504_v34  ;;  %v1306_v38 = vpop.f32.mrb[0].mxu1  ;;  %v573_v39 = vpop.f32.mrb[1].mxu0 }
  0xe7   : > { %v869_v40 = vmul.f32 %v1306_v38, %v1504_v34  ;;  %v835_v41 = vmul.f32 %v1504_v34, %v573_v39  ;;  %v701_v42 = vpop.f32.mrb[1].mxu1  ;;  %v1275_v43 = vpop.f32.mrb[2].mxu0 }
  0xe8   : > { %v908_v44 = vadd.f32 %v1509_v36, %v837_v37  ;;  %v867_v45 = vmul.f32 %v1504_v34, %v701_v42  ;;  %v838_v46 = vmul.f32 %v1275_v43, %v1504_v34  ;;  %v1307_v47 = vpop.f32.mrb[2].mxu1  ;;  %v576_v48 = vpop.f32.mrb[3].mxu0 }
  0xe9   : > { %v940_v49 = vadd.f32 %v1509_v36, %v869_v40  ;;  %v906_v50 = vadd.f32 %v1509_v36, %v835_v41  ;;  %v870_v51 = vmul.f32 %v1307_v47, %v1504_v34  ;;  %v836_v52 = vmul.f32 %v1504_v34, %v576_v48  ;;  %v704_v53 = vpop.f32.mrb[3].mxu1 }
  0xea   : > { %v972_v54 = vmax.f32 %v908_v44, 0.0  ;;  %v938_v55 = vadd.f32 %v1509_v36, %v867_v45  ;;  %v909_v56 = vadd.f32 %v1509_v36, %v838_v46  ;;  %v868_v57 = vmul.f32 %v1504_v34, %v704_v53 }
  0xeb   : > { %v1004_v58 = vmax.f32 %v940_v49, 0.0  ;;  %v970_v59 = vmax.f32 %v906_v50, 0.0  ;;  %v941_v60 = vadd.f32 %v1509_v36, %v870_v51  ;;  %v907_v61 = vadd.f32 %v1509_v36, %v836_v52 }
  0xec   : > { %1037 = vst.msk [vmem:[%s1521_s7 + $0x10] sm:$0xff] %vm1034_vm1, %v972_v54  ;;  %v1002_v62 = vmax.f32 %v938_v55, 0.0  ;;  %v973_v63 = vmax.f32 %v909_v56, 0.0  ;;  %v939_v0 = vadd.f32 %v1509_v36, %v868_v57 }
  0xed   : > { %1069 = vst.msk [vmem:[%s1521_s7 + $0x110] sm:$0xff] %vm1034_vm1, %v1004_v58  ;;  %1035 = vst.msk [vmem:[%s1521_s7] sm:$0xff] %vm1034_vm1, %v970_v59  ;;  %v1005_v1 = vmax.f32 %v941_v60, 0.0  ;;  %v971_v2 = vmax.f32 %v907_v61, 0.0  ;;  %v1278_v3 = vpop.f32.mrb[4].mxu0 }
  0xee   : > { %1067 = vst.msk [vmem:[%s1521_s7 + $0x100] sm:$0xff] %vm1034_vm1, %v1002_v62  ;;  %1038 = vst.msk [vmem:[%s1521_s7 + $0x18] sm:$0xff] %vm1034_vm1, %v973_v63  ;;  %v1003_v4 = vmax.f32 %v939_v0, 0.0  ;;  %v841_v5 = vmul.f32 %v1278_v3, %v1504_v34  ;;  %v1310_v6 = vpop.f32.mrb[4].mxu1  ;;  %v589_v7 = vpop.f32.mrb[5].mxu0 }
  0xef   : > { %1070 = vst.msk [vmem:[%s1521_s7 + $0x118] sm:$0xff] %vm1034_vm1, %v1005_v1  ;;  %1036 = vst.msk [vmem:[%s1521_s7 + $0x8] sm:$0xff] %vm1034_vm1, %v971_v2  ;;  %v873_v8 = vmul.f32 %v1310_v6, %v1504_v34  ;;  %v839_v9 = vmul.f32 %v1504_v34, %v589_v7  ;;  %v717_v10 = vpop.f32.mrb[5].mxu1  ;;  %v1279_v11 = vpop.f32.mrb[6].mxu0 }
  0xf0   : > { %1068 = vst.msk [vmem:[%s1521_s7 + $0x108] sm:$0xff] %vm1034_vm1, %v1003_v4  ;;  %v912_v12 = vadd.f32 %v1509_v36, %v841_v5  ;;  %v871_v13 = vmul.f32 %v1504_v34, %v717_v10  ;;  %v842_v14 = vmul.f32 %v1279_v11, %v1504_v34  ;;  %v1311_v15 = vpop.f32.mrb[6].mxu1  ;;  %v592_v16 = vpop.f32.mrb[7].mxu0 }
  0xf1   : > { %v944_v17 = vadd.f32 %v1509_v36, %v873_v8  ;;  %v910_v18 = vadd.f32 %v1509_v36, %v839_v9  ;;  %v874_v19 = vmul.f32 %v1311_v15, %v1504_v34  ;;  %v840_v20 = vmul.f32 %v1504_v34, %v592_v16  ;;  %v720_v21 = vpop.f32.mrb[7].mxu1 }
  0xf2   : > { %v976_v22 = vmax.f32 %v912_v12, 0.0  ;;  %v942_v23 = vadd.f32 %v1509_v36, %v871_v13  ;;  %v913_v24 = vadd.f32 %v1509_v36, %v842_v14  ;;  %v872_v25 = vmul.f32 %v1504_v34, %v720_v21 }
  0xf3   : > { %v1008_v26 = vmax.f32 %v944_v17, 0.0  ;;  %v974_v27 = vmax.f32 %v910_v18, 0.0  ;;  %v945_v28 = vadd.f32 %v1509_v36, %v874_v19  ;;  %v911_v29 = vadd.f32 %v1509_v36, %v840_v20 }
  0xf4   : > { %1041 = vst.msk [vmem:[%s1521_s7 + $0x30] sm:$0xff] %vm1034_vm1, %v976_v22  ;;  %v1006_v30 = vmax.f32 %v942_v23, 0.0  ;;  %v977_v31 = vmax.f32 %v913_v24, 0.0  ;;  %v943_v32 = vadd.f32 %v1509_v36, %v872_v25 }
  0xf5   : > { %1073 = vst.msk [vmem:[%s1521_s7 + $0x130] sm:$0xff] %vm1034_vm1, %v1008_v26  ;;  %1039 = vst.msk [vmem:[%s1521_s7 + $0x20] sm:$0xff] %vm1034_vm1, %v974_v27  ;;  %v1009_v33 = vmax.f32 %v945_v28, 0.0  ;;  %v975_v35 = vmax.f32 %v911_v29, 0.0  ;;  %v1282_v37 = vpop.f32.mrb[8].mxu0 }
  0xf6   : > { %1071 = vst.msk [vmem:[%s1521_s7 + $0x120] sm:$0xff] %vm1034_vm1, %v1006_v30  ;;  %1042 = vst.msk [vmem:[%s1521_s7 + $0x38] sm:$0xff] %vm1034_vm1, %v977_v31  ;;  %v1007_v38 = vmax.f32 %v943_v32, 0.0  ;;  %v845_v39 = vmul.f32 %v1282_v37, %v1504_v34  ;;  %v1314_v40 = vpop.f32.mrb[8].mxu1  ;;  %v605_v41 = vpop.f32.mrb[9].mxu0 }
  0xf7   : > { %1074 = vst.msk [vmem:[%s1521_s7 + $0x138] sm:$0xff] %vm1034_vm1, %v1009_v33  ;;  %1040 = vst.msk [vmem:[%s1521_s7 + $0x28] sm:$0xff] %vm1034_vm1, %v975_v35  ;;  %v877_v42 = vmul.f32 %v1314_v40, %v1504_v34  ;;  %v843_v43 = vmul.f32 %v1504_v34, %v605_v41  ;;  %v733_v44 = vpop.f32.mrb[9].mxu1  ;;  %v1283_v45 = vpop.f32.mrb[10].mxu0 }
  0xf8   : > { %1072 = vst.msk [vmem:[%s1521_s7 + $0x128] sm:$0xff] %vm1034_vm1, %v1007_v38  ;;  %v916_v46 = vadd.f32 %v1509_v36, %v845_v39  ;;  %v875_v47 = vmul.f32 %v1504_v34, %v733_v44  ;;  %v846_v48 = vmul.f32 %v1283_v45, %v1504_v34  ;;  %v1315_v49 = vpop.f32.mrb[10].mxu1  ;;  %v608_v50 = vpop.f32.mrb[11].mxu0 }
  0xf9   : > { %v948_v51 = vadd.f32 %v1509_v36, %v877_v42  ;;  %v914_v52 = vadd.f32 %v1509_v36, %v843_v43  ;;  %v878_v53 = vmul.f32 %v1315_v49, %v1504_v34  ;;  %v844_v54 = vmul.f32 %v1504_v34, %v608_v50  ;;  %v736_v55 = vpop.f32.mrb[11].mxu1 }
  0xfa   : > { %v980_v56 = vmax.f32 %v916_v46, 0.0  ;;  %v946_v57 = vadd.f32 %v1509_v36, %v875_v47  ;;  %v917_v58 = vadd.f32 %v1509_v36, %v846_v48  ;;  %v876_v59 = vmul.f32 %v1504_v34, %v736_v55 }
  0xfb   : > { %v1012_v60 = vmax.f32 %v948_v51, 0.0  ;;  %v978_v61 = vmax.f32 %v914_v52, 0.0  ;;  %v949_v62 = vadd.f32 %v1509_v36, %v878_v53  ;;  %v915_v63 = vadd.f32 %v1509_v36, %v844_v54 }
  0xfc   : > { %1045 = vst.msk [vmem:[%s1521_s7 + $0x50] sm:$0xff] %vm1034_vm1, %v980_v56  ;;  %v1010_v0 = vmax.f32 %v946_v57, 0.0  ;;  %v981_v1 = vmax.f32 %v917_v58, 0.0  ;;  %v947_v2 = vadd.f32 %v1509_v36, %v876_v59 }
  0xfd   : > { %1077 = vst.msk [vmem:[%s1521_s7 + $0x150] sm:$0xff] %vm1034_vm1, %v1012_v60  ;;  %1043 = vst.msk [vmem:[%s1521_s7 + $0x40] sm:$0xff] %vm1034_vm1, %v978_v61  ;;  %v1013_v3 = vmax.f32 %v949_v62, 0.0  ;;  %v979_v4 = vmax.f32 %v915_v63, 0.0  ;;  %v1286_v5 = vpop.f32.mrb[12].mxu0 }
  0xfe   : > { %1075 = vst.msk [vmem:[%s1521_s7 + $0x140] sm:$0xff] %vm1034_vm1, %v1010_v0  ;;  %1046 = vst.msk [vmem:[%s1521_s7 + $0x58] sm:$0xff] %vm1034_vm1, %v981_v1  ;;  %v1011_v6 = vmax.f32 %v947_v2, 0.0  ;;  %v849_v7 = vmul.f32 %v1286_v5, %v1504_v34  ;;  %v1318_v8 = vpop.f32.mrb[12].mxu1  ;;  %v621_v9 = vpop.f32.mrb[13].mxu0 }
  0xff   : > { %1078 = vst.msk [vmem:[%s1521_s7 + $0x158] sm:$0xff] %vm1034_vm1, %v1013_v3  ;;  %1044 = vst.msk [vmem:[%s1521_s7 + $0x48] sm:$0xff] %vm1034_vm1, %v979_v4  ;;  %v881_v10 = vmul.f32 %v1318_v8, %v1504_v34  ;;  %v847_v11 = vmul.f32 %v1504_v34, %v621_v9  ;;  %v749_v12 = vpop.f32.mrb[13].mxu1  ;;  %v1287_v13 = vpop.f32.mrb[14].mxu0 }
 0x100   : > { %1076 = vst.msk [vmem:[%s1521_s7 + $0x148] sm:$0xff] %vm1034_vm1, %v1011_v6  ;;  %v920_v14 = vadd.f32 %v1509_v36, %v849_v7  ;;  %v879_v15 = vmul.f32 %v1504_v34, %v749_v12  ;;  %v850_v16 = vmul.f32 %v1287_v13, %v1504_v34  ;;  %v1319_v17 = vpop.f32.mrb[14].mxu1  ;;  %v624_v18 = vpop.f32.mrb[15].mxu0 }
 0x101   : > { %v952_v19 = vadd.f32 %v1509_v36, %v881_v10  ;;  %v918_v20 = vadd.f32 %v1509_v36, %v847_v11  ;;  %v882_v21 = vmul.f32 %v1319_v17, %v1504_v34  ;;  %v848_v22 = vmul.f32 %v1504_v34, %v624_v18  ;;  %v752_v23 = vpop.f32.mrb[15].mxu1 }
 0x102   : > { %v984_v24 = vmax.f32 %v920_v14, 0.0  ;;  %v950_v25 = vadd.f32 %v1509_v36, %v879_v15  ;;  %v921_v26 = vadd.f32 %v1509_v36, %v850_v16  ;;  %v880_v27 = vmul.f32 %v1504_v34, %v752_v23 }
 0x103   : > { %v1016_v28 = vmax.f32 %v952_v19, 0.0  ;;  %v982_v29 = vmax.f32 %v918_v20, 0.0  ;;  %v953_v30 = vadd.f32 %v1509_v36, %v882_v21  ;;  %v919_v31 = vadd.f32 %v1509_v36, %v848_v22 }
 0x104   : > { %1049 = vst.msk [vmem:[%s1521_s7 + $0x70] sm:$0xff] %vm1034_vm1, %v984_v24  ;;  %v1014_v32 = vmax.f32 %v950_v25, 0.0  ;;  %v985_v33 = vmax.f32 %v921_v26, 0.0  ;;  %v951_v35 = vadd.f32 %v1509_v36, %v880_v27 }
 0x105   : > { %1081 = vst.msk [vmem:[%s1521_s7 + $0x170] sm:$0xff] %vm1034_vm1, %v1016_v28  ;;  %1047 = vst.msk [vmem:[%s1521_s7 + $0x60] sm:$0xff] %vm1034_vm1, %v982_v29  ;;  %v1017_v37 = vmax.f32 %v953_v30, 0.0  ;;  %v983_v38 = vmax.f32 %v919_v31, 0.0  ;;  %v1290_v39 = vpop.f32.mrb[16].mxu0 }
 0x106   : > { %1079 = vst.msk [vmem:[%s1521_s7 + $0x160] sm:$0xff] %vm1034_vm1, %v1014_v32  ;;  %1050 = vst.msk [vmem:[%s1521_s7 + $0x78] sm:$0xff] %vm1034_vm1, %v985_v33  ;;  %v1015_v40 = vmax.f32 %v951_v35, 0.0  ;;  %v853_v41 = vmul.f32 %v1290_v39, %v1504_v34  ;;  %v1322_v42 = vpop.f32.mrb[16].mxu1  ;;  %v637_v43 = vpop.f32.mrb[17].mxu0 }
 0x107   : > { %1082 = vst.msk [vmem:[%s1521_s7 + $0x178] sm:$0xff] %vm1034_vm1, %v1017_v37  ;;  %1048 = vst.msk [vmem:[%s1521_s7 + $0x68] sm:$0xff] %vm1034_vm1, %v983_v38  ;;  %v885_v44 = vmul.f32 %v1322_v42, %v1504_v34  ;;  %v851_v45 = vmul.f32 %v1504_v34, %v637_v43  ;;  %v765_v46 = vpop.f32.mrb[17].mxu1  ;;  %v1291_v47 = vpop.f32.mrb[18].mxu0 }
 0x108   : > { %1080 = vst.msk [vmem:[%s1521_s7 + $0x168] sm:$0xff] %vm1034_vm1, %v1015_v40  ;;  %v924_v48 = vadd.f32 %v1509_v36, %v853_v41  ;;  %v883_v49 = vmul.f32 %v1504_v34, %v765_v46  ;;  %v854_v50 = vmul.f32 %v1291_v47, %v1504_v34  ;;  %v1323_v51 = vpop.f32.mrb[18].mxu1  ;;  %v640_v52 = vpop.f32.mrb[19].mxu0 }
 0x109   : > { %v956_v53 = vadd.f32 %v1509_v36, %v885_v44  ;;  %v922_v54 = vadd.f32 %v1509_v36, %v851_v45  ;;  %v886_v55 = vmul.f32 %v1323_v51, %v1504_v34  ;;  %v852_v56 = vmul.f32 %v1504_v34, %v640_v52  ;;  %v768_v57 = vpop.f32.mrb[19].mxu1 }
 0x10a   : > { %v988_v58 = vmax.f32 %v924_v48, 0.0  ;;  %v954_v59 = vadd.f32 %v1509_v36, %v883_v49  ;;  %v925_v60 = vadd.f32 %v1509_v36, %v854_v50  ;;  %v884_v61 = vmul.f32 %v1504_v34, %v768_v57 }
 0x10b   : > { %v1020_v62 = vmax.f32 %v956_v53, 0.0  ;;  %v986_v63 = vmax.f32 %v922_v54, 0.0  ;;  %v957_v0 = vadd.f32 %v1509_v36, %v886_v55  ;;  %v923_v1 = vadd.f32 %v1509_v36, %v852_v56 }
 0x10c   : > { %1053 = vst.msk [vmem:[%s1521_s7 + $0x90] sm:$0xff] %vm1034_vm1, %v988_v58  ;;  %v1018_v2 = vmax.f32 %v954_v59, 0.0  ;;  %v989_v3 = vmax.f32 %v925_v60, 0.0  ;;  %v955_v4 = vadd.f32 %v1509_v36, %v884_v61 }
 0x10d   : > { %1085 = vst.msk [vmem:[%s1521_s7 + $0x190] sm:$0xff] %vm1034_vm1, %v1020_v62  ;;  %1051 = vst.msk [vmem:[%s1521_s7 + $0x80] sm:$0xff] %vm1034_vm1, %v986_v63  ;;  %v1021_v5 = vmax.f32 %v957_v0, 0.0  ;;  %v987_v6 = vmax.f32 %v923_v1, 0.0  ;;  %v1294_v7 = vpop.f32.mrb[20].mxu0 }
 0x10e   : > { %1083 = vst.msk [vmem:[%s1521_s7 + $0x180] sm:$0xff] %vm1034_vm1, %v1018_v2  ;;  %1054 = vst.msk [vmem:[%s1521_s7 + $0x98] sm:$0xff] %vm1034_vm1, %v989_v3  ;;  %v1019_v8 = vmax.f32 %v955_v4, 0.0  ;;  %v857_v9 = vmul.f32 %v1294_v7, %v1504_v34  ;;  %v1326_v10 = vpop.f32.mrb[20].mxu1  ;;  %v653_v11 = vpop.f32.mrb[21].mxu0 }
 0x10f   : > { %1086 = vst.msk [vmem:[%s1521_s7 + $0x198] sm:$0xff] %vm1034_vm1, %v1021_v5  ;;  %1052 = vst.msk [vmem:[%s1521_s7 + $0x88] sm:$0xff] %vm1034_vm1, %v987_v6  ;;  %v889_v12 = vmul.f32 %v1326_v10, %v1504_v34  ;;  %v855_v13 = vmul.f32 %v1504_v34, %v653_v11  ;;  %v781_v14 = vpop.f32.mrb[21].mxu1  ;;  %v1295_v15 = vpop.f32.mrb[22].mxu0 }
 0x110   : > { %1084 = vst.msk [vmem:[%s1521_s7 + $0x188] sm:$0xff] %vm1034_vm1, %v1019_v8  ;;  %v928_v16 = vadd.f32 %v1509_v36, %v857_v9  ;;  %v887_v17 = vmul.f32 %v1504_v34, %v781_v14  ;;  %v858_v18 = vmul.f32 %v1295_v15, %v1504_v34  ;;  %v1327_v19 = vpop.f32.mrb[22].mxu1  ;;  %v656_v20 = vpop.f32.mrb[23].mxu0 }
 0x111   : > { %v960_v21 = vadd.f32 %v1509_v36, %v889_v12  ;;  %v926_v22 = vadd.f32 %v1509_v36, %v855_v13  ;;  %v890_v23 = vmul.f32 %v1327_v19, %v1504_v34  ;;  %v856_v24 = vmul.f32 %v1504_v34, %v656_v20  ;;  %v784_v25 = vpop.f32.mrb[23].mxu1 }
 0x112   : > { %v992_v26 = vmax.f32 %v928_v16, 0.0  ;;  %v958_v27 = vadd.f32 %v1509_v36, %v887_v17  ;;  %v929_v28 = vadd.f32 %v1509_v36, %v858_v18  ;;  %v888_v29 = vmul.f32 %v1504_v34, %v784_v25 }
 0x113   : > { %v1024_v30 = vmax.f32 %v960_v21, 0.0  ;;  %v990_v31 = vmax.f32 %v926_v22, 0.0  ;;  %v961_v32 = vadd.f32 %v1509_v36, %v890_v23  ;;  %v927_v33 = vadd.f32 %v1509_v36, %v856_v24 }
 0x114   : > { %1057 = vst.msk [vmem:[%s1521_s7 + $0xb0] sm:$0xff] %vm1034_vm1, %v992_v26  ;;  %v1022_v35 = vmax.f32 %v958_v27, 0.0  ;;  %v993_v37 = vmax.f32 %v929_v28, 0.0  ;;  %v959_v38 = vadd.f32 %v1509_v36, %v888_v29 }
 0x115   : > { %1089 = vst.msk [vmem:[%s1521_s7 + $0x1b0] sm:$0xff] %vm1034_vm1, %v1024_v30  ;;  %1055 = vst.msk [vmem:[%s1521_s7 + $0xa0] sm:$0xff] %vm1034_vm1, %v990_v31  ;;  %v1025_v39 = vmax.f32 %v961_v32, 0.0  ;;  %v991_v40 = vmax.f32 %v927_v33, 0.0  ;;  %v1298_v41 = vpop.f32.mrb[24].mxu0 }
 0x116   : > { %1087 = vst.msk [vmem:[%s1521_s7 + $0x1a0] sm:$0xff] %vm1034_vm1, %v1022_v35  ;;  %1058 = vst.msk [vmem:[%s1521_s7 + $0xb8] sm:$0xff] %vm1034_vm1, %v993_v37  ;;  %v1023_v42 = vmax.f32 %v959_v38, 0.0  ;;  %v861_v43 = vmul.f32 %v1298_v41, %v1504_v34  ;;  %v1330_v44 = vpop.f32.mrb[24].mxu1  ;;  %v669_v45 = vpop.f32.mrb[25].mxu0 }
 0x117   : > { %1090 = vst.msk [vmem:[%s1521_s7 + $0x1b8] sm:$0xff] %vm1034_vm1, %v1025_v39  ;;  %1056 = vst.msk [vmem:[%s1521_s7 + $0xa8] sm:$0xff] %vm1034_vm1, %v991_v40  ;;  %v893_v46 = vmul.f32 %v1330_v44, %v1504_v34  ;;  %v859_v47 = vmul.f32 %v1504_v34, %v669_v45  ;;  %v797_v48 = vpop.f32.mrb[25].mxu1  ;;  %v1299_v49 = vpop.f32.mrb[26].mxu0 }
 0x118   : > { %1088 = vst.msk [vmem:[%s1521_s7 + $0x1a8] sm:$0xff] %vm1034_vm1, %v1023_v42  ;;  %v932_v50 = vadd.f32 %v1509_v36, %v861_v43  ;;  %v891_v51 = vmul.f32 %v1504_v34, %v797_v48  ;;  %v862_v52 = vmul.f32 %v1299_v49, %v1504_v34  ;;  %v1331_v53 = vpop.f32.mrb[26].mxu1  ;;  %v672_v54 = vpop.f32.mrb[27].mxu0 }
 0x119   : > { %v964_v55 = vadd.f32 %v1509_v36, %v893_v46  ;;  %v930_v56 = vadd.f32 %v1509_v36, %v859_v47  ;;  %v894_v57 = vmul.f32 %v1331_v53, %v1504_v34  ;;  %v860_v58 = vmul.f32 %v1504_v34, %v672_v54  ;;  %v800_v59 = vpop.f32.mrb[27].mxu1 }
 0x11a   : > { %v996_v60 = vmax.f32 %v932_v50, 0.0  ;;  %v962_v61 = vadd.f32 %v1509_v36, %v891_v51  ;;  %v933_v62 = vadd.f32 %v1509_v36, %v862_v52  ;;  %v892_v63 = vmul.f32 %v1504_v34, %v800_v59 }
 0x11b   : > { %v1028_v0 = vmax.f32 %v964_v55, 0.0  ;;  %v994_v1 = vmax.f32 %v930_v56, 0.0  ;;  %v965_v2 = vadd.f32 %v1509_v36, %v894_v57  ;;  %v931_v3 = vadd.f32 %v1509_v36, %v860_v58 }
 0x11c   : > { %1061 = vst.msk [vmem:[%s1521_s7 + $0xd0] sm:$0xff] %vm1034_vm1, %v996_v60  ;;  %v1026_v4 = vmax.f32 %v962_v61, 0.0  ;;  %v997_v5 = vmax.f32 %v933_v62, 0.0  ;;  %v963_v6 = vadd.f32 %v1509_v36, %v892_v63 }
 0x11d   : > { %1093 = vst.msk [vmem:[%s1521_s7 + $0x1d0] sm:$0xff] %vm1034_vm1, %v1028_v0  ;;  %1059 = vst.msk [vmem:[%s1521_s7 + $0xc0] sm:$0xff] %vm1034_vm1, %v994_v1  ;;  %v1029_v7 = vmax.f32 %v965_v2, 0.0  ;;  %v995_v8 = vmax.f32 %v931_v3, 0.0  ;;  %v1302_v9 = vpop.f32.mrb[28].mxu0 }
 0x11e   : > { %1091 = vst.msk [vmem:[%s1521_s7 + $0x1c0] sm:$0xff] %vm1034_vm1, %v1026_v4  ;;  %1062 = vst.msk [vmem:[%s1521_s7 + $0xd8] sm:$0xff] %vm1034_vm1, %v997_v5  ;;  %v1027_v10 = vmax.f32 %v963_v6, 0.0  ;;  %v865_v11 = vmul.f32 %v1302_v9, %v1504_v34  ;;  %v1334_v12 = vpop.f32.mrb[28].mxu1  ;;  %v685_v13 = vpop.f32.mrb[29].mxu0 }
 0x11f   : > { %1094 = vst.msk [vmem:[%s1521_s7 + $0x1d8] sm:$0xff] %vm1034_vm1, %v1029_v7  ;;  %1060 = vst.msk [vmem:[%s1521_s7 + $0xc8] sm:$0xff] %vm1034_vm1, %v995_v8  ;;  %v897_v14 = vmul.f32 %v1334_v12, %v1504_v34  ;;  %v863_v15 = vmul.f32 %v1504_v34, %v685_v13  ;;  %v813_v16 = vpop.f32.mrb[29].mxu1  ;;  %v1303_v17 = vpop.f32.mrb[30].mxu0 }
 0x120   : > { %1092 = vst.msk [vmem:[%s1521_s7 + $0x1c8] sm:$0xff] %vm1034_vm1, %v1027_v10  ;;  %v936_v18 = vadd.f32 %v1509_v36, %v865_v11  ;;  %v895_v19 = vmul.f32 %v1504_v34, %v813_v16  ;;  %v866_v20 = vmul.f32 %v1303_v17, %v1504_v34  ;;  %v1335_v21 = vpop.f32.mrb[30].mxu1  ;;  %v688_v22 = vpop.f32.mrb[31].mxu0 }
 0x121   : > { %v968_v23 = vadd.f32 %v1509_v36, %v897_v14  ;;  %v934_v24 = vadd.f32 %v1509_v36, %v863_v15  ;;  %v898_v25 = vmul.f32 %v1335_v21, %v1504_v34  ;;  %v864_v26 = vmul.f32 %v1504_v34, %v688_v22  ;;  %v816_v27 = vpop.f32.mrb[31].mxu1 }
 0x122   : > { %v1000_v28 = vmax.f32 %v936_v18, 0.0  ;;  %v966_v29 = vadd.f32 %v1509_v36, %v895_v19  ;;  %v937_v30 = vadd.f32 %v1509_v36, %v866_v20  ;;  %v896_v31 = vmul.f32 %v1504_v34, %v816_v27 }
 0x123   : > { %v1032_v32 = vmax.f32 %v968_v23, 0.0  ;;  %v998_v33 = vmax.f32 %v934_v24, 0.0  ;;  %v969_v35 = vadd.f32 %v1509_v36, %v898_v25  ;;  %v935_v37 = vadd.f32 %v1509_v36, %v864_v26 }
 0x124   : > { %1065 = vst.msk [vmem:[%s1521_s7 + $0xf0] sm:$0xff] %vm1034_vm1, %v1000_v28  ;;  %v1030_v38 = vmax.f32 %v966_v29, 0.0  ;;  %v1001_v39 = vmax.f32 %v937_v30, 0.0  ;;  %v967_v40 = vadd.f32 %v1509_v36, %v896_v31 }
 0x125   : > { %1097 = vst.msk [vmem:[%s1521_s7 + $0x1f0] sm:$0xff] %vm1034_vm1, %v1032_v32  ;;  %1063 = vst.msk [vmem:[%s1521_s7 + $0xe0] sm:$0xff] %vm1034_vm1, %v998_v33  ;;  %v1033_v34 = vmax.f32 %v969_v35, 0.0  ;;  %v999_v41 = vmax.f32 %v935_v37, 0.0 }
 0x126   : > { %1095 = vst.msk [vmem:[%s1521_s7 + $0x1e0] sm:$0xff] %vm1034_vm1, %v1030_v38  ;;  %1066 = vst.msk [vmem:[%s1521_s7 + $0xf8] sm:$0xff] %vm1034_vm1, %v1001_v39  ;;  %v1031_v42 = vmax.f32 %v967_v40, 0.0 }
 0x127   : > { %1098 = vst.msk [vmem:[%s1521_s7 + $0x1f8] sm:$0xff] %vm1034_vm1, %v1033_v34  ;;  %1064 = vst.msk [vmem:[%s1521_s7 + $0xe8] sm:$0xff] %vm1034_vm1, %v999_v41 }
 0x128   : > { %1096 = vst.msk [vmem:[%s1521_s7 + $0x1e8] sm:$0xff] %vm1034_vm1, %v1031_v42 }
 0x129 PF: > { %s14_s15 = sadd.s32 1, %s1388_s15  }
 0x12a   : > { %p11_p4 = scmp.ge.s32.totalorder %s14_s15, 6  }
 0x12c   :  { %13 = sbr.rel (!%p11_p4) target bundleno = 1 (0x1), region = 66 }

// kernel: pvt_forward.31
= control target key start
LH: loop header
LB: loop body
LE: loop exit
PB: predicated region body
PF: predicated region fallthrough
CT: control target
= control target key end

     0   :  { %v1334_v0 = vmov 0   ;;  %vm442_vm0 = vcmask 130048   ;;  %vm1034_vm1 = vcmask 261120   ;;  %s2005_s1 = inlined_call_operand.vmem [shape: bf16[144,32], index: 1, kind: input, shape index: {}]   ;;  %s2006_s0 = inlined_call_operand.vmem [shape: bf16[512,144], index: 0, kind: input, shape index: {}]   ;;  %s2007_s2 = inlined_call_operand.vmem [shape: f32[1,32], index: 2, kind: input, shape index: {}]   ;;  %s2008_s3 = inlined_call_operand.vmem [shape: f32[1,32], index: 3, kind: input, shape index: {}]   ;;  %s2009_s4 = inlined_call_operand.vmem [shape: f32[512,32], index: 4, kind: output, shape index: {}]  }
   0x1   :  { %539 = vmatprep.subr.bf16.mxu0 %v1334_v0  ;;  %1210 = vmatprep.subr.bf16.mxu1 %v1334_v0  ;;  %v1229_v1 = vld [vmem:[%s2005_s1] sm:$0xff]   ;;  %v1230_v2 = vld [vmem:[%s2005_s1 + $0x8] sm:$0xff]   ;;  %v1231_v3 = vld [vmem:[%s2005_s1 + $0x10] sm:$0xff]  }
   0x2   :  { %540 = vmatpush1.bf16.msra.mxu0 %v1229_v1  ;;  %1219 = vmatpush1.bf16.msra.mxu1 %v1229_v1  ;;  %v1232_v4 = vld [vmem:[%s2005_s1 + $0x18] sm:$0xff]   ;;  %v1240_v5 = vld [vmem:[%s2006_s0 + $0x4] ss:$8 sps:$4 sm:$0xff]   ;;  %v1235_v9 = vld [vmem:[%s2005_s1 + $0x30] sm:$0xff]  }
   0x3   :  { %541 = vmatprep.subr.bf16.mxu0 %v1334_v0  ;;  %1211 = vmatprep.subr.bf16.mxu1 %v1334_v0  ;;  %v1243_v6 = vld [vmem:[%s2006_s0 + $0x104] ss:$8 sps:$4 sm:$0xff]   ;;  %v1236_v10 = vld [vmem:[%s2005_s1 + $0x38] sm:$0xff]   ;;  %v1238_v12 = vld [vmem:[%s2006_s0] ss:$8 sps:$4 sm:$0xff]  }
   0x4   :  { %1176 = vmatprep.mubr.msk.bf16.mxu0 %vm442_vm0, %v1240_v5  ;;  %1192 = vmatprep.mubr.msk.bf16.mxu1 %vm442_vm0, %v1243_v6  ;;  %v1233_v7 = vld [vmem:[%s2005_s1 + $0x20] sm:$0xff]   ;;  %v1234_v8 = vld [vmem:[%s2005_s1 + $0x28] sm:$0xff]   ;;  %v1244_v14 = vld [vmem:[%s2006_s0 + $0x14] ss:$8 sps:$4 sm:$0xff]  }
   0x5   :  { %v1237_v11 = vld [vmem:[%s2005_s1 + $0x40] sm:$0xff]   ;;  %v1246_v15 = vld [vmem:[%s2006_s0 + $0x114] ss:$8 sps:$4 sm:$0xff]   ;;  %v1248_v16 = vld [vmem:[%s2006_s0 + $0x10] ss:$8 sps:$4 sm:$0xff]  }
   0x6   :  { %542 = vmatpush1.bf16.msra.mxu0 %v1230_v2  ;;  %1220 = vmatpush1.bf16.msra.mxu1 %v1230_v2  ;;  %v1241_v13 = vld [vmem:[%s2006_s0 + $0x100] ss:$8 sps:$4 sm:$0xff]   ;;  %v1249_v17 = vld [vmem:[%s2006_s0 + $0x110] ss:$8 sps:$4 sm:$0xff]   ;;  %v1250_v18 = vld [vmem:[%s2006_s0 + $0x24] ss:$8 sps:$4 sm:$0xff]  }
   0x7   :  { %543 = vmatprep.subr.bf16.mxu0 %v1334_v0  ;;  %1212 = vmatprep.subr.bf16.mxu1 %v1334_v0  ;;  %v1252_v19 = vld [vmem:[%s2006_s0 + $0x124] ss:$8 sps:$4 sm:$0xff]   ;;  %v1254_v20 = vld [vmem:[%s2006_s0 + $0x20] ss:$8 sps:$4 sm:$0xff]   ;;  %v1256_v22 = vld [vmem:[%s2006_s0 + $0x34] ss:$8 sps:$4 sm:$0xff]  }
   0x8   :  { %v1255_v21 = vld [vmem:[%s2006_s0 + $0x120] ss:$8 sps:$4 sm:$0xff]   ;;  %v1258_v23 = vld [vmem:[%s2006_s0 + $0x134] ss:$8 sps:$4 sm:$0xff]   ;;  %v1260_v24 = vld [vmem:[%s2006_s0 + $0x30] ss:$8 sps:$4 sm:$0xff]  }
   0x9   :  { %v1261_v25 = vld [vmem:[%s2006_s0 + $0x130] ss:$8 sps:$4 sm:$0xff]   ;;  %v1262_v26 = vld [vmem:[%s2006_s0 + $0x44] ss:$8 sps:$4 sm:$0xff]   ;;  %v1266_v28 = vld [vmem:[%s2006_s0 + $0x40] ss:$8 sps:$4 sm:$0xff]  }
   0xa   :  { %544 = vmatpush1.bf16.msra.mxu0 %v1231_v3  ;;  %1221 = vmatpush1.bf16.msra.mxu1 %v1231_v3  ;;  %v1264_v27 = vld [vmem:[%s2006_s0 + $0x144] ss:$8 sps:$4 sm:$0xff]   ;;  %v1267_v29 = vld [vmem:[%s2006_s0 + $0x140] ss:$8 sps:$4 sm:$0xff]   ;;  %v1268_v30 = vld [vmem:[%s2006_s0 + $0x54] ss:$8 sps:$4 sm:$0xff]  }
   0xb   :  { %545 = vmatprep.subr.bf16.mxu0 %v1334_v0  ;;  %1213 = vmatprep.subr.bf16.mxu1 %v1334_v0  ;;  %v1270_v31 = vld [vmem:[%s2006_s0 + $0x154] ss:$8 sps:$4 sm:$0xff]   ;;  %v1272_v32 = vld [vmem:[%s2006_s0 + $0x50] ss:$8 sps:$4 sm:$0xff]   ;;  %v1274_v34 = vld [vmem:[%s2006_s0 + $0x64] ss:$8 sps:$4 sm:$0xff]  }
   0xc   :  { %v1273_v33 = vld [vmem:[%s2006_s0 + $0x150] ss:$8 sps:$4 sm:$0xff]   ;;  %v1276_v35 = vld [vmem:[%s2006_s0 + $0x164] ss:$8 sps:$4 sm:$0xff]   ;;  %v1278_v36 = vld [vmem:[%s2006_s0 + $0x60] ss:$8 sps:$4 sm:$0xff]  }
   0xd   :  { %v1279_v37 = vld [vmem:[%s2006_s0 + $0x160] ss:$8 sps:$4 sm:$0xff]   ;;  %v1280_v38 = vld [vmem:[%s2006_s0 + $0x74] ss:$8 sps:$4 sm:$0xff]   ;;  %v1284_v40 = vld [vmem:[%s2006_s0 + $0x70] ss:$8 sps:$4 sm:$0xff]  }
   0xe   :  { %546 = vmatpush1.bf16.msra.mxu0 %v1232_v4  ;;  %1222 = vmatpush1.bf16.msra.mxu1 %v1232_v4  ;;  %v1282_v39 = vld [vmem:[%s2006_s0 + $0x174] ss:$8 sps:$4 sm:$0xff]   ;;  %v1285_v41 = vld [vmem:[%s2006_s0 + $0x170] ss:$8 sps:$4 sm:$0xff]   ;;  %v1286_v42 = vld [vmem:[%s2006_s0 + $0x84] ss:$8 sps:$4 sm:$0xff]  }
   0xf   :  { %547 = vmatprep.subr.bf16.mxu0 %v1334_v0  ;;  %1214 = vmatprep.subr.bf16.mxu1 %v1334_v0  ;;  %v1288_v43 = vld [vmem:[%s2006_s0 + $0x184] ss:$8 sps:$4 sm:$0xff]   ;;  %v1290_v44 = vld [vmem:[%s2006_s0 + $0x80] ss:$8 sps:$4 sm:$0xff]   ;;  %v1292_v46 = vld [vmem:[%s2006_s0 + $0x94] ss:$8 sps:$4 sm:$0xff]  }
  0x10   :  { %v1291_v45 = vld [vmem:[%s2006_s0 + $0x180] ss:$8 sps:$4 sm:$0xff]   ;;  %v1294_v47 = vld [vmem:[%s2006_s0 + $0x194] ss:$8 sps:$4 sm:$0xff]   ;;  %v1296_v48 = vld [vmem:[%s2006_s0 + $0x90] ss:$8 sps:$4 sm:$0xff]  }
  0x11   :  { %v1297_v49 = vld [vmem:[%s2006_s0 + $0x190] ss:$8 sps:$4 sm:$0xff]   ;;  %v1298_v50 = vld [vmem:[%s2006_s0 + $0xa4] ss:$8 sps:$4 sm:$0xff]   ;;  %v1302_v52 = vld [vmem:[%s2006_s0 + $0xa0] ss:$8 sps:$4 sm:$0xff]  }
  0x12   :  { %548 = vmatpush1.bf16.msra.mxu0 %v1233_v7  ;;  %1223 = vmatpush1.bf16.msra.mxu1 %v1233_v7  ;;  %v1300_v51 = vld [vmem:[%s2006_s0 + $0x1a4] ss:$8 sps:$4 sm:$0xff]   ;;  %v1303_v53 = vld [vmem:[%s2006_s0 + $0x1a0] ss:$8 sps:$4 sm:$0xff]   ;;  %v1304_v54 = vld [vmem:[%s2006_s0 + $0xb4] ss:$8 sps:$4 sm:$0xff]  }
  0x13   :  { %549 = vmatprep.subr.bf16.mxu0 %v1334_v0  ;;  %1215 = vmatprep.subr.bf16.mxu1 %v1334_v0  ;;  %v1306_v55 = vld [vmem:[%s2006_s0 + $0x1b4] ss:$8 sps:$4 sm:$0xff]   ;;  %v1308_v56 = vld [vmem:[%s2006_s0 + $0xb0] ss:$8 sps:$4 sm:$0xff]   ;;  %v1310_v58 = vld [vmem:[%s2006_s0 + $0xc4] ss:$8 sps:$4 sm:$0xff]  }
  0x14   :  { %v1309_v57 = vld [vmem:[%s2006_s0 + $0x1b0] ss:$8 sps:$4 sm:$0xff]   ;;  %v1312_v59 = vld [vmem:[%s2006_s0 + $0x1c4] ss:$8 sps:$4 sm:$0xff]   ;;  %v1314_v60 = vld [vmem:[%s2006_s0 + $0xc0] ss:$8 sps:$4 sm:$0xff]  }
  0x15   :  { %v1315_v61 = vld [vmem:[%s2006_s0 + $0x1c0] ss:$8 sps:$4 sm:$0xff]   ;;  %v1316_v62 = vld [vmem:[%s2006_s0 + $0xd4] ss:$8 sps:$4 sm:$0xff]   ;;  %v1321_v1 = vld [vmem:[%s2006_s0 + $0x1d0] ss:$8 sps:$4 sm:$0xff]  }
  0x16   :  { %550 = vmatpush1.bf16.msra.mxu0 %v1234_v8  ;;  %1224 = vmatpush1.bf16.msra.mxu1 %v1234_v8  ;;  %v1318_v63 = vld [vmem:[%s2006_s0 + $0x1d4] ss:$8 sps:$4 sm:$0xff]   ;;  %v1322_v2 = vld [vmem:[%s2006_s0 + $0xe4] ss:$8 sps:$4 sm:$0xff]   ;;  %v1326_v4 = vld [vmem:[%s2006_s0 + $0xe0] ss:$8 sps:$4 sm:$0xff]  }
  0x17   :  { %551 = vmatprep.subr.bf16.mxu0 %v1334_v0  ;;  %1216 = vmatprep.subr.bf16.mxu1 %v1334_v0  ;;  %v1324_v3 = vld [vmem:[%s2006_s0 + $0x1e4] ss:$8 sps:$4 sm:$0xff]   ;;  %v1327_v5 = vld [vmem:[%s2006_s0 + $0x1e0] ss:$8 sps:$4 sm:$0xff]   ;;  %v1328_v6 = vld [vmem:[%s2006_s0 + $0xf4] ss:$8 sps:$4 sm:$0xff]  }
  0x18   :  { %v1330_v7 = vld [vmem:[%s2006_s0 + $0x1f4] ss:$8 sps:$4 sm:$0xff]   ;;  %v1332_v8 = vld [vmem:[%s2006_s0 + $0xf0] ss:$8 sps:$4 sm:$0xff]  }
  0x1a   :  { %552 = vmatpush1.bf16.msra.mxu0 %v1235_v9  ;;  %1225 = vmatpush1.bf16.msra.mxu1 %v1235_v9  ;;  %v1333_v9 = vld [vmem:[%s2006_s0 + $0x1f0] ss:$8 sps:$4 sm:$0xff]  }
  0x1b   :  { %553 = vmatprep.subr.bf16.mxu0 %v1334_v0  ;;  %1217 = vmatprep.subr.bf16.mxu1 %v1334_v0 }
  0x1e   :  { %554 = vmatpush1.bf16.msra.mxu0 %v1236_v10  ;;  %1226 = vmatpush1.bf16.msra.mxu1 %v1236_v10  ;;  %v1614_v10 = vld [vmem:[%s2007_s2] ss:$0 sm:$0xff] }
  0x1f   :  { %555 = vmatprep.subr.bf16.mxu0 %v1334_v0  ;;  %1218 = vmatprep.subr.bf16.mxu1 %v1334_v0  ;;  %v1320_v0 = vld [vmem:[%s2006_s0 + $0xd0] ss:$8 sps:$4 sm:$0xff]  }
  0x22   :  { %556 = vmatpush1.bf16.msra.mxu0 %v1237_v11  ;;  %1227 = vmatpush1.bf16.msra.mxu1 %v1237_v11 }
  0x25   :  { %572 = vmatmul.mubr.bf16.vlgmr.msra.gmra.mrb[0].mxu0 %v1238_v12  ;;  %700 = vmatmul.mubr.bf16.vlgmr.msra.gmra.mrb[0].mxu1 %v1241_v13  ;;  %v1619_v12 = vld [vmem:[%s2008_s3] ss:$0 sm:$0xff] }
  0x26   :  { %1177 = vmatprep.mubr.msk.bf16.mxu0 %vm442_vm0, %v1244_v14  ;;  %1193 = vmatprep.mubr.msk.bf16.mxu1 %vm442_vm0, %v1246_v15 }
  0x2d   :  { %580 = vmatmul.mubr.bf16.gmra.mrb[4].mxu0 %v1248_v16  ;;  %708 = vmatmul.mubr.bf16.gmra.mrb[4].mxu1 %v1249_v17 }
  0x2e   :  { %1178 = vmatprep.mubr.msk.bf16.mxu0 %vm442_vm0, %v1250_v18  ;;  %1194 = vmatprep.mubr.msk.bf16.mxu1 %vm442_vm0, %v1252_v19 }
  0x35   :  { %588 = vmatmul.mubr.bf16.gmra.mrb[8].mxu0 %v1254_v20  ;;  %716 = vmatmul.mubr.bf16.gmra.mrb[8].mxu1 %v1255_v21 }
  0x36   :  { %1179 = vmatprep.mubr.msk.bf16.mxu0 %vm442_vm0, %v1256_v22  ;;  %1195 = vmatprep.mubr.msk.bf16.mxu1 %vm442_vm0, %v1258_v23 }
  0x3d   :  { %596 = vmatmul.mubr.bf16.gmra.mrb[12].mxu0 %v1260_v24  ;;  %724 = vmatmul.mubr.bf16.gmra.mrb[12].mxu1 %v1261_v25 }
  0x3e   :  { %1180 = vmatprep.mubr.msk.bf16.mxu0 %vm442_vm0, %v1262_v26  ;;  %1196 = vmatprep.mubr.msk.bf16.mxu1 %vm442_vm0, %v1264_v27 }
  0x45   :  { %604 = vmatmul.mubr.bf16.gmra.mrb[16].mxu0 %v1266_v28  ;;  %732 = vmatmul.mubr.bf16.gmra.mrb[16].mxu1 %v1267_v29 }
  0x46   :  { %1181 = vmatprep.mubr.msk.bf16.mxu0 %vm442_vm0, %v1268_v30  ;;  %1197 = vmatprep.mubr.msk.bf16.mxu1 %vm442_vm0, %v1270_v31 }
  0x4d   :  { %612 = vmatmul.mubr.bf16.gmra.mrb[20].mxu0 %v1272_v32  ;;  %740 = vmatmul.mubr.bf16.gmra.mrb[20].mxu1 %v1273_v33 }
  0x4e   :  { %1182 = vmatprep.mubr.msk.bf16.mxu0 %vm442_vm0, %v1274_v34  ;;  %1198 = vmatprep.mubr.msk.bf16.mxu1 %vm442_vm0, %v1276_v35 }
  0x55   :  { %620 = vmatmul.mubr.bf16.gmra.mrb[24].mxu0 %v1278_v36  ;;  %748 = vmatmul.mubr.bf16.gmra.mrb[24].mxu1 %v1279_v37 }
  0x56   :  { %1183 = vmatprep.mubr.msk.bf16.mxu0 %vm442_vm0, %v1280_v38  ;;  %1199 = vmatprep.mubr.msk.bf16.mxu1 %vm442_vm0, %v1282_v39 }
  0x5d   :  { %628 = vmatmul.mubr.bf16.gmra.mrb[28].mxu0 %v1284_v40  ;;  %756 = vmatmul.mubr.bf16.gmra.mrb[28].mxu1 %v1285_v41 }
  0x5e   :  { %1184 = vmatprep.mubr.msk.bf16.mxu0 %vm442_vm0, %v1286_v42  ;;  %1200 = vmatprep.mubr.msk.bf16.mxu1 %vm442_vm0, %v1288_v43 }
  0x65   :  { %636 = vmatmul.mubr.bf16.gmra.mrb[32].mxu0 %v1290_v44  ;;  %764 = vmatmul.mubr.bf16.gmra.mrb[32].mxu1 %v1291_v45 }
  0x66   :  { %1185 = vmatprep.mubr.msk.bf16.mxu0 %vm442_vm0, %v1292_v46  ;;  %1201 = vmatprep.mubr.msk.bf16.mxu1 %vm442_vm0, %v1294_v47 }
  0x6d   :  { %644 = vmatmul.mubr.bf16.gmra.mrb[36].mxu0 %v1296_v48  ;;  %772 = vmatmul.mubr.bf16.gmra.mrb[36].mxu1 %v1297_v49 }
  0x6e   :  { %1186 = vmatprep.mubr.msk.bf16.mxu0 %vm442_vm0, %v1298_v50  ;;  %1202 = vmatprep.mubr.msk.bf16.mxu1 %vm442_vm0, %v1300_v51 }
  0x75   :  { %652 = vmatmul.mubr.bf16.gmra.mrb[40].mxu0 %v1302_v52  ;;  %780 = vmatmul.mubr.bf16.gmra.mrb[40].mxu1 %v1303_v53 }
  0x76   :  { %1187 = vmatprep.mubr.msk.bf16.mxu0 %vm442_vm0, %v1304_v54  ;;  %1203 = vmatprep.mubr.msk.bf16.mxu1 %vm442_vm0, %v1306_v55 }
  0x7d   :  { %660 = vmatmul.mubr.bf16.gmra.mrb[44].mxu0 %v1308_v56  ;;  %788 = vmatmul.mubr.bf16.gmra.mrb[44].mxu1 %v1309_v57 }
  0x7e   :  { %1188 = vmatprep.mubr.msk.bf16.mxu0 %vm442_vm0, %v1310_v58  ;;  %1204 = vmatprep.mubr.msk.bf16.mxu1 %vm442_vm0, %v1312_v59 }
  0x85   :  { %668 = vmatmul.mubr.bf16.gmra.mrb[48].mxu0 %v1314_v60  ;;  %796 = vmatmul.mubr.bf16.gmra.mrb[48].mxu1 %v1315_v61 }
  0x86   :  { %1189 = vmatprep.mubr.msk.bf16.mxu0 %vm442_vm0, %v1316_v62  ;;  %1205 = vmatprep.mubr.msk.bf16.mxu1 %vm442_vm0, %v1318_v63 }
  0x8d   :  { %676 = vmatmul.mubr.bf16.gmra.mrb[52].mxu0 %v1320_v0  ;;  %804 = vmatmul.mubr.bf16.gmra.mrb[52].mxu1 %v1321_v1 }
  0x8e   :  { %1190 = vmatprep.mubr.msk.bf16.mxu0 %vm442_vm0, %v1322_v2  ;;  %1206 = vmatprep.mubr.msk.bf16.mxu1 %vm442_vm0, %v1324_v3 }
  0x95   :  { %684 = vmatmul.mubr.bf16.gmra.mrb[56].mxu0 %v1326_v4  ;;  %812 = vmatmul.mubr.bf16.gmra.mrb[56].mxu1 %v1327_v5 }
  0x96   :  { %1191 = vmatprep.mubr.msk.bf16.mxu0 %vm442_vm0, %v1328_v6  ;;  %1207 = vmatprep.mubr.msk.bf16.mxu1 %vm442_vm0, %v1330_v7 }
  0x9d   :  { %692 = vmatmul.mubr.bf16.gmra.mrb[60].mxu0 %v1332_v8  ;;  %820 = vmatmul.mubr.bf16.gmra.mrb[60].mxu1 %v1333_v9 }
  0xf8   :  { %v573_v11 = vpop.f32.mrb[0].mxu0  ;;  %v701_v13 = vpop.f32.mrb[0].mxu1 }
  0xf9   :  { %v835_v14 = vmul.f32 %v1614_v10, %v573_v11  ;;  %v867_v15 = vmul.f32 %v1614_v10, %v701_v13  ;;  %v575_v16 = vpop.f32.mrb[1].mxu0  ;;  %v703_v17 = vpop.f32.mrb[1].mxu1 }
  0xfa   :  { %v576_v18 = vpop.f32.mrb[2].mxu0  ;;  %v704_v19 = vpop.f32.mrb[2].mxu1 }
  0xfb   :  { %v906_v20 = vadd.f32 %v1619_v12, %v835_v14  ;;  %v938_v21 = vadd.f32 %v1619_v12, %v867_v15  ;;  %v836_v22 = vmul.f32 %v1614_v10, %v576_v18  ;;  %v868_v23 = vmul.f32 %v1614_v10, %v704_v19  ;;  %v578_v24 = vpop.f32.mrb[3].mxu0  ;;  %v706_v25 = vpop.f32.mrb[3].mxu1 }
  0xfd   :  { %v970_v26 = vmax.f32 %v906_v20, 0.0  ;;  %v1002_v27 = vmax.f32 %v938_v21, 0.0  ;;  %v907_v28 = vadd.f32 %v1619_v12, %v836_v22  ;;  %v939_v29 = vadd.f32 %v1619_v12, %v868_v23 }
  0xff   :  { %1035 = vst.msk [vmem:[%s2009_s4] sm:$0xff] %vm1034_vm1, %v970_v26  ;;  %1067 = vst.msk [vmem:[%s2009_s4 + $0x100] sm:$0xff] %vm1034_vm1, %v1002_v27  ;;  %v971_v30 = vmax.f32 %v907_v28, 0.0  ;;  %v1003_v31 = vmax.f32 %v939_v29, 0.0 }
 0x100   :  { %v581_v32 = vpop.f32.mrb[4].mxu0  ;;  %v709_v33 = vpop.f32.mrb[4].mxu1 }
 0x101   :  { %1036 = vst.msk [vmem:[%s2009_s4 + $0x8] sm:$0xff] %vm1034_vm1, %v971_v30  ;;  %1068 = vst.msk [vmem:[%s2009_s4 + $0x108] sm:$0xff] %vm1034_vm1, %v1003_v31  ;;  %v837_v34 = vmul.f32 %v1614_v10, %v581_v32  ;;  %v869_v35 = vmul.f32 %v1614_v10, %v709_v33  ;;  %v583_v36 = vpop.f32.mrb[5].mxu0  ;;  %v711_v37 = vpop.f32.mrb[5].mxu1 }
 0x102   :  { %v584_v38 = vpop.f32.mrb[6].mxu0  ;;  %v712_v39 = vpop.f32.mrb[6].mxu1 }
 0x103   :  { %v908_v40 = vadd.f32 %v1619_v12, %v837_v34  ;;  %v940_v41 = vadd.f32 %v1619_v12, %v869_v35  ;;  %v838_v42 = vmul.f32 %v1614_v10, %v584_v38  ;;  %v870_v43 = vmul.f32 %v1614_v10, %v712_v39  ;;  %v586_v44 = vpop.f32.mrb[7].mxu0  ;;  %v714_v45 = vpop.f32.mrb[7].mxu1 }
 0x105   :  { %v972_v46 = vmax.f32 %v908_v40, 0.0  ;;  %v1004_v47 = vmax.f32 %v940_v41, 0.0  ;;  %v909_v48 = vadd.f32 %v1619_v12, %v838_v42  ;;  %v941_v49 = vadd.f32 %v1619_v12, %v870_v43 }
 0x107   :  { %1037 = vst.msk [vmem:[%s2009_s4 + $0x10] sm:$0xff] %vm1034_vm1, %v972_v46  ;;  %1069 = vst.msk [vmem:[%s2009_s4 + $0x110] sm:$0xff] %vm1034_vm1, %v1004_v47  ;;  %v973_v50 = vmax.f32 %v909_v48, 0.0  ;;  %v1005_v51 = vmax.f32 %v941_v49, 0.0 }
 0x108   :  { %v589_v52 = vpop.f32.mrb[8].mxu0  ;;  %v717_v53 = vpop.f32.mrb[8].mxu1 }
 0x109   :  { %1038 = vst.msk [vmem:[%s2009_s4 + $0x18] sm:$0xff] %vm1034_vm1, %v973_v50  ;;  %1070 = vst.msk [vmem:[%s2009_s4 + $0x118] sm:$0xff] %vm1034_vm1, %v1005_v51  ;;  %v839_v54 = vmul.f32 %v1614_v10, %v589_v52  ;;  %v871_v55 = vmul.f32 %v1614_v10, %v717_v53  ;;  %v591_v56 = vpop.f32.mrb[9].mxu0  ;;  %v719_v57 = vpop.f32.mrb[9].mxu1 }
 0x10a   :  { %v592_v58 = vpop.f32.mrb[10].mxu0  ;;  %v720_v59 = vpop.f32.mrb[10].mxu1 }
 0x10b   :  { %v910_v60 = vadd.f32 %v1619_v12, %v839_v54  ;;  %v942_v61 = vadd.f32 %v1619_v12, %v871_v55  ;;  %v840_v62 = vmul.f32 %v1614_v10, %v592_v58  ;;  %v872_v63 = vmul.f32 %v1614_v10, %v720_v59  ;;  %v594_v0 = vpop.f32.mrb[11].mxu0  ;;  %v722_v1 = vpop.f32.mrb[11].mxu1 }
 0x10d   :  { %v974_v2 = vmax.f32 %v910_v60, 0.0  ;;  %v1006_v3 = vmax.f32 %v942_v61, 0.0  ;;  %v911_v4 = vadd.f32 %v1619_v12, %v840_v62  ;;  %v943_v5 = vadd.f32 %v1619_v12, %v872_v63 }
 0x10f   :  { %1039 = vst.msk [vmem:[%s2009_s4 + $0x20] sm:$0xff] %vm1034_vm1, %v974_v2  ;;  %1071 = vst.msk [vmem:[%s2009_s4 + $0x120] sm:$0xff] %vm1034_vm1, %v1006_v3  ;;  %v975_v6 = vmax.f32 %v911_v4, 0.0  ;;  %v1007_v7 = vmax.f32 %v943_v5, 0.0 }
 0x110   :  { %v597_v8 = vpop.f32.mrb[12].mxu0  ;;  %v725_v9 = vpop.f32.mrb[12].mxu1 }
 0x111   :  { %1040 = vst.msk [vmem:[%s2009_s4 + $0x28] sm:$0xff] %vm1034_vm1, %v975_v6  ;;  %1072 = vst.msk [vmem:[%s2009_s4 + $0x128] sm:$0xff] %vm1034_vm1, %v1007_v7  ;;  %v841_v11 = vmul.f32 %v1614_v10, %v597_v8  ;;  %v873_v13 = vmul.f32 %v1614_v10, %v725_v9  ;;  %v599_v14 = vpop.f32.mrb[13].mxu0  ;;  %v727_v15 = vpop.f32.mrb[13].mxu1 }
 0x112   :  { %v600_v16 = vpop.f32.mrb[14].mxu0  ;;  %v728_v17 = vpop.f32.mrb[14].mxu1 }
 0x113   :  { %v912_v18 = vadd.f32 %v1619_v12, %v841_v11  ;;  %v944_v19 = vadd.f32 %v1619_v12, %v873_v13  ;;  %v842_v20 = vmul.f32 %v1614_v10, %v600_v16  ;;  %v874_v21 = vmul.f32 %v1614_v10, %v728_v17  ;;  %v602_v22 = vpop.f32.mrb[15].mxu0  ;;  %v730_v23 = vpop.f32.mrb[15].mxu1 }
 0x115   :  { %v976_v24 = vmax.f32 %v912_v18, 0.0  ;;  %v1008_v25 = vmax.f32 %v944_v19, 0.0  ;;  %v913_v26 = vadd.f32 %v1619_v12, %v842_v20  ;;  %v945_v27 = vadd.f32 %v1619_v12, %v874_v21 }
 0x117   :  { %1041 = vst.msk [vmem:[%s2009_s4 + $0x30] sm:$0xff] %vm1034_vm1, %v976_v24  ;;  %1073 = vst.msk [vmem:[%s2009_s4 + $0x130] sm:$0xff] %vm1034_vm1, %v1008_v25  ;;  %v977_v28 = vmax.f32 %v913_v26, 0.0  ;;  %v1009_v29 = vmax.f32 %v945_v27, 0.0 }
 0x118   :  { %v605_v30 = vpop.f32.mrb[16].mxu0  ;;  %v733_v31 = vpop.f32.mrb[16].mxu1 }
 0x119   :  { %1042 = vst.msk [vmem:[%s2009_s4 + $0x38] sm:$0xff] %vm1034_vm1, %v977_v28  ;;  %1074 = vst.msk [vmem:[%s2009_s4 + $0x138] sm:$0xff] %vm1034_vm1, %v1009_v29  ;;  %v843_v32 = vmul.f32 %v1614_v10, %v605_v30  ;;  %v875_v33 = vmul.f32 %v1614_v10, %v733_v31  ;;  %v607_v34 = vpop.f32.mrb[17].mxu0  ;;  %v735_v35 = vpop.f32.mrb[17].mxu1 }
 0x11a   :  { %v608_v36 = vpop.f32.mrb[18].mxu0  ;;  %v736_v37 = vpop.f32.mrb[18].mxu1 }
 0x11b   :  { %v914_v38 = vadd.f32 %v1619_v12, %v843_v32  ;;  %v946_v39 = vadd.f32 %v1619_v12, %v875_v33  ;;  %v844_v40 = vmul.f32 %v1614_v10, %v608_v36  ;;  %v876_v41 = vmul.f32 %v1614_v10, %v736_v37  ;;  %v610_v42 = vpop.f32.mrb[19].mxu0  ;;  %v738_v43 = vpop.f32.mrb[19].mxu1 }
 0x11d   :  { %v978_v44 = vmax.f32 %v914_v38, 0.0  ;;  %v1010_v45 = vmax.f32 %v946_v39, 0.0  ;;  %v915_v46 = vadd.f32 %v1619_v12, %v844_v40  ;;  %v947_v47 = vadd.f32 %v1619_v12, %v876_v41 }
 0x11f   :  { %1043 = vst.msk [vmem:[%s2009_s4 + $0x40] sm:$0xff] %vm1034_vm1, %v978_v44  ;;  %1075 = vst.msk [vmem:[%s2009_s4 + $0x140] sm:$0xff] %vm1034_vm1, %v1010_v45  ;;  %v979_v48 = vmax.f32 %v915_v46, 0.0  ;;  %v1011_v49 = vmax.f32 %v947_v47, 0.0 }
 0x120   :  { %v613_v50 = vpop.f32.mrb[20].mxu0  ;;  %v741_v51 = vpop.f32.mrb[20].mxu1 }
 0x121   :  { %1044 = vst.msk [vmem:[%s2009_s4 + $0x48] sm:$0xff] %vm1034_vm1, %v979_v48  ;;  %1076 = vst.msk [vmem:[%s2009_s4 + $0x148] sm:$0xff] %vm1034_vm1, %v1011_v49  ;;  %v845_v52 = vmul.f32 %v1614_v10, %v613_v50  ;;  %v877_v53 = vmul.f32 %v1614_v10, %v741_v51  ;;  %v615_v54 = vpop.f32.mrb[21].mxu0  ;;  %v743_v55 = vpop.f32.mrb[21].mxu1 }
 0x122   :  { %v616_v56 = vpop.f32.mrb[22].mxu0  ;;  %v744_v57 = vpop.f32.mrb[22].mxu1 }
 0x123   :  { %v916_v58 = vadd.f32 %v1619_v12, %v845_v52  ;;  %v948_v59 = vadd.f32 %v1619_v12, %v877_v53  ;;  %v846_v60 = vmul.f32 %v1614_v10, %v616_v56  ;;  %v878_v61 = vmul.f32 %v1614_v10, %v744_v57  ;;  %v618_v62 = vpop.f32.mrb[23].mxu0  ;;  %v746_v63 = vpop.f32.mrb[23].mxu1 }
 0x125   :  { %v980_v0 = vmax.f32 %v916_v58, 0.0  ;;  %v1012_v1 = vmax.f32 %v948_v59, 0.0  ;;  %v917_v2 = vadd.f32 %v1619_v12, %v846_v60  ;;  %v949_v3 = vadd.f32 %v1619_v12, %v878_v61 }
 0x127   :  { %1045 = vst.msk [vmem:[%s2009_s4 + $0x50] sm:$0xff] %vm1034_vm1, %v980_v0  ;;  %1077 = vst.msk [vmem:[%s2009_s4 + $0x150] sm:$0xff] %vm1034_vm1, %v1012_v1  ;;  %v981_v4 = vmax.f32 %v917_v2, 0.0  ;;  %v1013_v5 = vmax.f32 %v949_v3, 0.0 }
 0x128   :  { %v621_v6 = vpop.f32.mrb[24].mxu0  ;;  %v749_v7 = vpop.f32.mrb[24].mxu1 }
 0x129   :  { %1046 = vst.msk [vmem:[%s2009_s4 + $0x58] sm:$0xff] %vm1034_vm1, %v981_v4  ;;  %1078 = vst.msk [vmem:[%s2009_s4 + $0x158] sm:$0xff] %vm1034_vm1, %v1013_v5  ;;  %v847_v8 = vmul.f32 %v1614_v10, %v621_v6  ;;  %v879_v9 = vmul.f32 %v1614_v10, %v749_v7  ;;  %v623_v11 = vpop.f32.mrb[25].mxu0  ;;  %v751_v13 = vpop.f32.mrb[25].mxu1 }
 0x12a   :  { %v624_v14 = vpop.f32.mrb[26].mxu0  ;;  %v752_v15 = vpop.f32.mrb[26].mxu1 }
 0x12b   :  { %v918_v16 = vadd.f32 %v1619_v12, %v847_v8  ;;  %v950_v17 = vadd.f32 %v1619_v12, %v879_v9  ;;  %v848_v18 = vmul.f32 %v1614_v10, %v624_v14  ;;  %v880_v19 = vmul.f32 %v1614_v10, %v752_v15  ;;  %v626_v20 = vpop.f32.mrb[27].mxu0  ;;  %v754_v21 = vpop.f32.mrb[27].mxu1 }
 0x12d   :  { %v982_v22 = vmax.f32 %v918_v16, 0.0  ;;  %v1014_v23 = vmax.f32 %v950_v17, 0.0  ;;  %v919_v24 = vadd.f32 %v1619_v12, %v848_v18  ;;  %v951_v25 = vadd.f32 %v1619_v12, %v880_v19 }
 0x12f   :  { %1047 = vst.msk [vmem:[%s2009_s4 + $0x60] sm:$0xff] %vm1034_vm1, %v982_v22  ;;  %1079 = vst.msk [vmem:[%s2009_s4 + $0x160] sm:$0xff] %vm1034_vm1, %v1014_v23  ;;  %v983_v26 = vmax.f32 %v919_v24, 0.0  ;;  %v1015_v27 = vmax.f32 %v951_v25, 0.0 }
 0x130   :  { %v629_v28 = vpop.f32.mrb[28].mxu0  ;;  %v757_v29 = vpop.f32.mrb[28].mxu1 }
 0x131   :  { %1048 = vst.msk [vmem:[%s2009_s4 + $0x68] sm:$0xff] %vm1034_vm1, %v983_v26  ;;  %1080 = vst.msk [vmem:[%s2009_s4 + $0x168] sm:$0xff] %vm1034_vm1, %v1015_v27  ;;  %v849_v30 = vmul.f32 %v1614_v10, %v629_v28  ;;  %v881_v31 = vmul.f32 %v1614_v10, %v757_v29  ;;  %v631_v32 = vpop.f32.mrb[29].mxu0  ;;  %v759_v33 = vpop.f32.mrb[29].mxu1 }
 0x132   :  { %v632_v34 = vpop.f32.mrb[30].mxu0  ;;  %v760_v35 = vpop.f32.mrb[30].mxu1 }
 0x133   :  { %v920_v36 = vadd.f32 %v1619_v12, %v849_v30  ;;  %v952_v37 = vadd.f32 %v1619_v12, %v881_v31  ;;  %v850_v38 = vmul.f32 %v1614_v10, %v632_v34  ;;  %v882_v39 = vmul.f32 %v1614_v10, %v760_v35  ;;  %v634_v40 = vpop.f32.mrb[31].mxu0  ;;  %v762_v41 = vpop.f32.mrb[31].mxu1 }
 0x135   :  { %v984_v42 = vmax.f32 %v920_v36, 0.0  ;;  %v1016_v43 = vmax.f32 %v952_v37, 0.0  ;;  %v921_v44 = vadd.f32 %v1619_v12, %v850_v38  ;;  %v953_v45 = vadd.f32 %v1619_v12, %v882_v39 }
 0x137   :  { %1049 = vst.msk [vmem:[%s2009_s4 + $0x70] sm:$0xff] %vm1034_vm1, %v984_v42  ;;  %1081 = vst.msk [vmem:[%s2009_s4 + $0x170] sm:$0xff] %vm1034_vm1, %v1016_v43  ;;  %v985_v46 = vmax.f32 %v921_v44, 0.0  ;;  %v1017_v47 = vmax.f32 %v953_v45, 0.0 }
 0x138   :  { %v637_v48 = vpop.f32.mrb[32].mxu0  ;;  %v765_v49 = vpop.f32.mrb[32].mxu1 }
 0x139   :  { %1050 = vst.msk [vmem:[%s2009_s4 + $0x78] sm:$0xff] %vm1034_vm1, %v985_v46  ;;  %1082 = vst.msk [vmem:[%s2009_s4 + $0x178] sm:$0xff] %vm1034_vm1, %v1017_v47  ;;  %v851_v50 = vmul.f32 %v1614_v10, %v637_v48  ;;  %v883_v51 = vmul.f32 %v1614_v10, %v765_v49  ;;  %v639_v52 = vpop.f32.mrb[33].mxu0  ;;  %v767_v53 = vpop.f32.mrb[33].mxu1 }
 0x13a   :  { %v640_v54 = vpop.f32.mrb[34].mxu0  ;;  %v768_v55 = vpop.f32.mrb[34].mxu1 }
 0x13b   :  { %v922_v56 = vadd.f32 %v1619_v12, %v851_v50  ;;  %v954_v57 = vadd.f32 %v1619_v12, %v883_v51  ;;  %v852_v58 = vmul.f32 %v1614_v10, %v640_v54  ;;  %v884_v59 = vmul.f32 %v1614_v10, %v768_v55  ;;  %v642_v60 = vpop.f32.mrb[35].mxu0  ;;  %v770_v61 = vpop.f32.mrb[35].mxu1 }
 0x13d   :  { %v986_v62 = vmax.f32 %v922_v56, 0.0  ;;  %v1018_v63 = vmax.f32 %v954_v57, 0.0  ;;  %v923_v0 = vadd.f32 %v1619_v12, %v852_v58  ;;  %v955_v1 = vadd.f32 %v1619_v12, %v884_v59 }
 0x13f   :  { %1051 = vst.msk [vmem:[%s2009_s4 + $0x80] sm:$0xff] %vm1034_vm1, %v986_v62  ;;  %1083 = vst.msk [vmem:[%s2009_s4 + $0x180] sm:$0xff] %vm1034_vm1, %v1018_v63  ;;  %v987_v2 = vmax.f32 %v923_v0, 0.0  ;;  %v1019_v3 = vmax.f32 %v955_v1, 0.0 }
 0x140   :  { %v645_v4 = vpop.f32.mrb[36].mxu0  ;;  %v773_v5 = vpop.f32.mrb[36].mxu1 }
 0x141   :  { %1052 = vst.msk [vmem:[%s2009_s4 + $0x88] sm:$0xff] %vm1034_vm1, %v987_v2  ;;  %1084 = vst.msk [vmem:[%s2009_s4 + $0x188] sm:$0xff] %vm1034_vm1, %v1019_v3  ;;  %v853_v6 = vmul.f32 %v1614_v10, %v645_v4  ;;  %v885_v7 = vmul.f32 %v1614_v10, %v773_v5  ;;  %v647_v8 = vpop.f32.mrb[37].mxu0  ;;  %v775_v9 = vpop.f32.mrb[37].mxu1 }
 0x142   :  { %v648_v11 = vpop.f32.mrb[38].mxu0  ;;  %v776_v13 = vpop.f32.mrb[38].mxu1 }
 0x143   :  { %v924_v14 = vadd.f32 %v1619_v12, %v853_v6  ;;  %v956_v15 = vadd.f32 %v1619_v12, %v885_v7  ;;  %v854_v16 = vmul.f32 %v1614_v10, %v648_v11  ;;  %v886_v17 = vmul.f32 %v1614_v10, %v776_v13  ;;  %v650_v18 = vpop.f32.mrb[39].mxu0  ;;  %v778_v19 = vpop.f32.mrb[39].mxu1 }
 0x145   :  { %v988_v20 = vmax.f32 %v924_v14, 0.0  ;;  %v1020_v21 = vmax.f32 %v956_v15, 0.0  ;;  %v925_v22 = vadd.f32 %v1619_v12, %v854_v16  ;;  %v957_v23 = vadd.f32 %v1619_v12, %v886_v17 }
 0x147   :  { %1053 = vst.msk [vmem:[%s2009_s4 + $0x90] sm:$0xff] %vm1034_vm1, %v988_v20  ;;  %1085 = vst.msk [vmem:[%s2009_s4 + $0x190] sm:$0xff] %vm1034_vm1, %v1020_v21  ;;  %v989_v24 = vmax.f32 %v925_v22, 0.0  ;;  %v1021_v25 = vmax.f32 %v957_v23, 0.0 }
 0x148   :  { %v653_v26 = vpop.f32.mrb[40].mxu0  ;;  %v781_v27 = vpop.f32.mrb[40].mxu1 }
 0x149   :  { %1054 = vst.msk [vmem:[%s2009_s4 + $0x98] sm:$0xff] %vm1034_vm1, %v989_v24  ;;  %1086 = vst.msk [vmem:[%s2009_s4 + $0x198] sm:$0xff] %vm1034_vm1, %v1021_v25  ;;  %v855_v28 = vmul.f32 %v1614_v10, %v653_v26  ;;  %v887_v29 = vmul.f32 %v1614_v10, %v781_v27  ;;  %v655_v30 = vpop.f32.mrb[41].mxu0  ;;  %v783_v31 = vpop.f32.mrb[41].mxu1 }
 0x14a   :  { %v656_v32 = vpop.f32.mrb[42].mxu0  ;;  %v784_v33 = vpop.f32.mrb[42].mxu1 }
 0x14b   :  { %v926_v34 = vadd.f32 %v1619_v12, %v855_v28  ;;  %v958_v35 = vadd.f32 %v1619_v12, %v887_v29  ;;  %v856_v36 = vmul.f32 %v1614_v10, %v656_v32  ;;  %v888_v37 = vmul.f32 %v1614_v10, %v784_v33  ;;  %v658_v38 = vpop.f32.mrb[43].mxu0  ;;  %v786_v39 = vpop.f32.mrb[43].mxu1 }
 0x14d   :  { %v990_v40 = vmax.f32 %v926_v34, 0.0  ;;  %v1022_v41 = vmax.f32 %v958_v35, 0.0  ;;  %v927_v42 = vadd.f32 %v1619_v12, %v856_v36  ;;  %v959_v43 = vadd.f32 %v1619_v12, %v888_v37 }
 0x14f   :  { %1055 = vst.msk [vmem:[%s2009_s4 + $0xa0] sm:$0xff] %vm1034_vm1, %v990_v40  ;;  %1087 = vst.msk [vmem:[%s2009_s4 + $0x1a0] sm:$0xff] %vm1034_vm1, %v1022_v41  ;;  %v991_v44 = vmax.f32 %v927_v42, 0.0  ;;  %v1023_v45 = vmax.f32 %v959_v43, 0.0 }
 0x150   :  { %v661_v46 = vpop.f32.mrb[44].mxu0  ;;  %v789_v47 = vpop.f32.mrb[44].mxu1 }
 0x151   :  { %1056 = vst.msk [vmem:[%s2009_s4 + $0xa8] sm:$0xff] %vm1034_vm1, %v991_v44  ;;  %1088 = vst.msk [vmem:[%s2009_s4 + $0x1a8] sm:$0xff] %vm1034_vm1, %v1023_v45  ;;  %v857_v48 = vmul.f32 %v1614_v10, %v661_v46  ;;  %v889_v49 = vmul.f32 %v1614_v10, %v789_v47  ;;  %v663_v50 = vpop.f32.mrb[45].mxu0  ;;  %v791_v51 = vpop.f32.mrb[45].mxu1 }
 0x152   :  { %v664_v52 = vpop.f32.mrb[46].mxu0  ;;  %v792_v53 = vpop.f32.mrb[46].mxu1 }
 0x153   :  { %v928_v54 = vadd.f32 %v1619_v12, %v857_v48  ;;  %v960_v55 = vadd.f32 %v1619_v12, %v889_v49  ;;  %v858_v56 = vmul.f32 %v1614_v10, %v664_v52  ;;  %v890_v57 = vmul.f32 %v1614_v10, %v792_v53  ;;  %v666_v58 = vpop.f32.mrb[47].mxu0  ;;  %v794_v59 = vpop.f32.mrb[47].mxu1 }
 0x155   :  { %v992_v60 = vmax.f32 %v928_v54, 0.0  ;;  %v1024_v61 = vmax.f32 %v960_v55, 0.0  ;;  %v929_v62 = vadd.f32 %v1619_v12, %v858_v56  ;;  %v961_v63 = vadd.f32 %v1619_v12, %v890_v57 }
 0x157   :  { %1057 = vst.msk [vmem:[%s2009_s4 + $0xb0] sm:$0xff] %vm1034_vm1, %v992_v60  ;;  %1089 = vst.msk [vmem:[%s2009_s4 + $0x1b0] sm:$0xff] %vm1034_vm1, %v1024_v61  ;;  %v993_v0 = vmax.f32 %v929_v62, 0.0  ;;  %v1025_v1 = vmax.f32 %v961_v63, 0.0 }
 0x158   :  { %v669_v2 = vpop.f32.mrb[48].mxu0  ;;  %v797_v3 = vpop.f32.mrb[48].mxu1 }
 0x159   :  { %1058 = vst.msk [vmem:[%s2009_s4 + $0xb8] sm:$0xff] %vm1034_vm1, %v993_v0  ;;  %1090 = vst.msk [vmem:[%s2009_s4 + $0x1b8] sm:$0xff] %vm1034_vm1, %v1025_v1  ;;  %v859_v4 = vmul.f32 %v1614_v10, %v669_v2  ;;  %v891_v5 = vmul.f32 %v1614_v10, %v797_v3  ;;  %v671_v6 = vpop.f32.mrb[49].mxu0  ;;  %v799_v7 = vpop.f32.mrb[49].mxu1 }
 0x15a   :  { %v672_v8 = vpop.f32.mrb[50].mxu0  ;;  %v800_v9 = vpop.f32.mrb[50].mxu1 }
 0x15b   :  { %v930_v11 = vadd.f32 %v1619_v12, %v859_v4  ;;  %v962_v13 = vadd.f32 %v1619_v12, %v891_v5  ;;  %v860_v14 = vmul.f32 %v1614_v10, %v672_v8  ;;  %v892_v15 = vmul.f32 %v1614_v10, %v800_v9  ;;  %v674_v16 = vpop.f32.mrb[51].mxu0  ;;  %v802_v17 = vpop.f32.mrb[51].mxu1 }
 0x15d   :  { %v994_v18 = vmax.f32 %v930_v11, 0.0  ;;  %v1026_v19 = vmax.f32 %v962_v13, 0.0  ;;  %v931_v20 = vadd.f32 %v1619_v12, %v860_v14  ;;  %v963_v21 = vadd.f32 %v1619_v12, %v892_v15 }
 0x15f   :  { %1059 = vst.msk [vmem:[%s2009_s4 + $0xc0] sm:$0xff] %vm1034_vm1, %v994_v18  ;;  %1091 = vst.msk [vmem:[%s2009_s4 + $0x1c0] sm:$0xff] %vm1034_vm1, %v1026_v19  ;;  %v995_v22 = vmax.f32 %v931_v20, 0.0  ;;  %v1027_v23 = vmax.f32 %v963_v21, 0.0 }
 0x160   :  { %v677_v24 = vpop.f32.mrb[52].mxu0  ;;  %v805_v25 = vpop.f32.mrb[52].mxu1 }
 0x161   :  { %1060 = vst.msk [vmem:[%s2009_s4 + $0xc8] sm:$0xff] %vm1034_vm1, %v995_v22  ;;  %1092 = vst.msk [vmem:[%s2009_s4 + $0x1c8] sm:$0xff] %vm1034_vm1, %v1027_v23  ;;  %v861_v26 = vmul.f32 %v1614_v10, %v677_v24  ;;  %v893_v27 = vmul.f32 %v1614_v10, %v805_v25  ;;  %v679_v28 = vpop.f32.mrb[53].mxu0  ;;  %v807_v29 = vpop.f32.mrb[53].mxu1 }
 0x162   :  { %v680_v30 = vpop.f32.mrb[54].mxu0  ;;  %v808_v31 = vpop.f32.mrb[54].mxu1 }
 0x163   :  { %v932_v32 = vadd.f32 %v1619_v12, %v861_v26  ;;  %v964_v33 = vadd.f32 %v1619_v12, %v893_v27  ;;  %v862_v34 = vmul.f32 %v1614_v10, %v680_v30  ;;  %v894_v35 = vmul.f32 %v1614_v10, %v808_v31  ;;  %v682_v36 = vpop.f32.mrb[55].mxu0  ;;  %v810_v37 = vpop.f32.mrb[55].mxu1 }
 0x165   :  { %v996_v38 = vmax.f32 %v932_v32, 0.0  ;;  %v1028_v39 = vmax.f32 %v964_v33, 0.0  ;;  %v933_v40 = vadd.f32 %v1619_v12, %v862_v34  ;;  %v965_v41 = vadd.f32 %v1619_v12, %v894_v35 }
 0x167   :  { %1061 = vst.msk [vmem:[%s2009_s4 + $0xd0] sm:$0xff] %vm1034_vm1, %v996_v38  ;;  %1093 = vst.msk [vmem:[%s2009_s4 + $0x1d0] sm:$0xff] %vm1034_vm1, %v1028_v39  ;;  %v997_v42 = vmax.f32 %v933_v40, 0.0  ;;  %v1029_v43 = vmax.f32 %v965_v41, 0.0 }
 0x168   :  { %v685_v44 = vpop.f32.mrb[56].mxu0  ;;  %v813_v45 = vpop.f32.mrb[56].mxu1 }
 0x169   :  { %1062 = vst.msk [vmem:[%s2009_s4 + $0xd8] sm:$0xff] %vm1034_vm1, %v997_v42  ;;  %1094 = vst.msk [vmem:[%s2009_s4 + $0x1d8] sm:$0xff] %vm1034_vm1, %v1029_v43  ;;  %v863_v46 = vmul.f32 %v1614_v10, %v685_v44  ;;  %v895_v47 = vmul.f32 %v1614_v10, %v813_v45  ;;  %v687_v48 = vpop.f32.mrb[57].mxu0  ;;  %v815_v49 = vpop.f32.mrb[57].mxu1 }
 0x16a   :  { %v688_v50 = vpop.f32.mrb[58].mxu0  ;;  %v816_v51 = vpop.f32.mrb[58].mxu1 }
 0x16b   :  { %v934_v52 = vadd.f32 %v1619_v12, %v863_v46  ;;  %v966_v53 = vadd.f32 %v1619_v12, %v895_v47  ;;  %v864_v54 = vmul.f32 %v1614_v10, %v688_v50  ;;  %v896_v55 = vmul.f32 %v1614_v10, %v816_v51  ;;  %v690_v56 = vpop.f32.mrb[59].mxu0  ;;  %v818_v57 = vpop.f32.mrb[59].mxu1 }
 0x16d   :  { %v998_v58 = vmax.f32 %v934_v52, 0.0  ;;  %v1030_v59 = vmax.f32 %v966_v53, 0.0  ;;  %v935_v60 = vadd.f32 %v1619_v12, %v864_v54  ;;  %v967_v61 = vadd.f32 %v1619_v12, %v896_v55 }
 0x16f   :  { %1063 = vst.msk [vmem:[%s2009_s4 + $0xe0] sm:$0xff] %vm1034_vm1, %v998_v58  ;;  %1095 = vst.msk [vmem:[%s2009_s4 + $0x1e0] sm:$0xff] %vm1034_vm1, %v1030_v59  ;;  %v999_v62 = vmax.f32 %v935_v60, 0.0  ;;  %v1031_v63 = vmax.f32 %v967_v61, 0.0 }
 0x170   :  { %v693_v0 = vpop.f32.mrb[60].mxu0  ;;  %v821_v1 = vpop.f32.mrb[60].mxu1 }
 0x171   :  { %1064 = vst.msk [vmem:[%s2009_s4 + $0xe8] sm:$0xff] %vm1034_vm1, %v999_v62  ;;  %1096 = vst.msk [vmem:[%s2009_s4 + $0x1e8] sm:$0xff] %vm1034_vm1, %v1031_v63  ;;  %v865_v2 = vmul.f32 %v1614_v10, %v693_v0  ;;  %v897_v3 = vmul.f32 %v1614_v10, %v821_v1  ;;  %v695_v4 = vpop.f32.mrb[61].mxu0  ;;  %v823_v5 = vpop.f32.mrb[61].mxu1 }
 0x172   :  { %v696_v6 = vpop.f32.mrb[62].mxu0  ;;  %v824_v7 = vpop.f32.mrb[62].mxu1 }
 0x173   :  { %v936_v8 = vadd.f32 %v1619_v12, %v865_v2  ;;  %v968_v9 = vadd.f32 %v1619_v12, %v897_v3  ;;  %v866_v11 = vmul.f32 %v1614_v10, %v696_v6  ;;  %v898_v13 = vmul.f32 %v1614_v10, %v824_v7  ;;  %v698_v14 = vpop.f32.mrb[63].mxu0  ;;  %v826_v15 = vpop.f32.mrb[63].mxu1 }
 0x175   :  { %v1000_v16 = vmax.f32 %v936_v8, 0.0  ;;  %v1032_v17 = vmax.f32 %v968_v9, 0.0  ;;  %v937_v18 = vadd.f32 %v1619_v12, %v866_v11  ;;  %v969_v19 = vadd.f32 %v1619_v12, %v898_v13 }
 0x177   :  { %1065 = vst.msk [vmem:[%s2009_s4 + $0xf0] sm:$0xff] %vm1034_vm1, %v1000_v16  ;;  %1097 = vst.msk [vmem:[%s2009_s4 + $0x1f0] sm:$0xff] %vm1034_vm1, %v1032_v17  ;;  %v1001_v20 = vmax.f32 %v937_v18, 0.0  ;;  %v1033_v10 = vmax.f32 %v969_v19, 0.0 }
 0x179   :  { %1066 = vst.msk [vmem:[%s2009_s4 + $0xf8] sm:$0xff] %vm1034_vm1, %v1001_v20  ;;  %1098 = vst.msk [vmem:[%s2009_s4 + $0x1f8] sm:$0xff] %vm1034_vm1, %v1033_v10 }

// kernel: pvt_forward.32
= control target key start
LH: loop header
LB: loop body
LE: loop exit
PB: predicated region body
PF: predicated region fallthrough
CT: control target
= control target key end

     0   :  { %s795_s21 = smov 0   ;;  %s953_s0 = inlined_call_operand.vmem [shape: bf16[2,64,128], index: 0, kind: input, shape index: {}]   ;;  %s954_s1 = inlined_call_operand.vmem [shape: bf16[128,32], index: 1, kind: input, shape index: {}]   ;;  %s955_s2 = inlined_call_operand.vmem [shape: f32[1,32], index: 2, kind: input, shape index: {}]   ;;  %s956_s3 = inlined_call_operand.vmem [shape: f32[1,32], index: 3, kind: input, shape index: {}]   ;;  %s957_s4 = inlined_call_operand.vmem [shape: f32[1,32], index: 4, kind: input, shape index: {}]   ;;  %s958_s5 = inlined_call_operand.vmem [shape: f32[64,32], index: 5, kind: input, shape index: {}]   ;;  %s959_s6 = inlined_call_operand.vmem [shape: f32[2,64,32], index: 6, kind: output, shape index: {}]  }
   0x1 LB: > { %s636_s22 = sadd.s32 4294967295, %s758_s21   ;;  %p640_p0 = scmp.ge.s32.totalorder %s758_s21, 1  ;;  %s758_s21 = sphi %s795_s21, %s16_s21  }
   0x2   : > { %p212_p1 = scmp.lt.s32.totalorder %s758_s21, 3 }
   0x4   : > { %p213_p2 = pnand %p640_p0, %p212_p1 }
   0x5   : > { %v724_v0 = vld [vmem:[%s954_s1] sm:$0xff] (!%p213_p2)   ;;  %p242_p3 = scmp.lt.s32.totalorder (!%p213_p2), %s636_s22, 1  ;;  %v725_v1 = vld [vmem:[%s954_s1 + $0x8] sm:$0xff] (!%p213_p2)   ;;  %v726_v2 = vld [vmem:[%s954_s1 + $0x10] sm:$0xff] (!%p213_p2)   ;;  %vm423_vm0 = vcmask (!%p213_p2), 261120  }
   0x6   : > { %216 = sbr.rel (%p213_p2) target bundleno = 585 (0x249), region = 44  ;;  %676 = vmatprep.subr.bf16.mxu0 (!%p213_p2), %v724_v0  ;;  %700 = vmatprep.subr.bf16.mxu1 (!%p213_p2), %v724_v0  ;;  %v727_v3 = vld [vmem:[%s954_s1 + $0x18] sm:$0xff] (!%p213_p2)   ;;  %v728_v6 = vld [vmem:[%s954_s1 + $0x20] sm:$0xff] (!%p213_p2)   ;;  %v729_v7 = vld [vmem:[%s954_s1 + $0x28] sm:$0xff] (!%p213_p2)  }
   0x7   : > { %677 = vmatpush3.bf16.msra.mxu0 (!%p213_p2), %v724_v0  ;;  %708 = vmatpush3.bf16.msra.mxu1 (!%p213_p2), %v724_v0  ;;  %v730_v8 = vld [vmem:[%s954_s1 + $0x30] sm:$0xff] (!%p213_p2)   ;;  %v731_v9 = vld [vmem:[%s954_s1 + $0x38] sm:$0xff] (!%p213_p2)   ;;  %v645_v12 = vld [vmem:[%s955_s2] ss:$0 sm:$0xff] (!%p213_p2) }
   0x8   : > { %678 = vmatprep.subr.bf16.mxu0 (!%p213_p2), %v725_v1  ;;  %701 = vmatprep.subr.bf16.mxu1 (!%p213_p2), %v725_v1 }
   0xb   : > { %679 = vmatpush3.bf16.msra.mxu0 (!%p213_p2), %v725_v1  ;;  %709 = vmatpush3.bf16.msra.mxu1 (!%p213_p2), %v725_v1 }
   0xc   : > { %680 = vmatprep.subr.bf16.mxu0 (!%p213_p2), %v726_v2  ;;  %702 = vmatprep.subr.bf16.mxu1 (!%p213_p2), %v726_v2 }
   0xd   : > { %s961_s22 = smov (!%p242_p3, %s636_s22), 1 }
   0xe   : > { %s662_s29 = sshll.u32 %s961_s22, 5  ;;  %s663_s27 = sshll.u32 %s961_s22, 6 }
   0xf   : > { %s818_s8 = scalar_lea.vmem %s953_s0, %s662_s29  ;;  %681 = vmatpush3.bf16.msra.mxu0 %v726_v2  ;;  %710 = vmatpush3.bf16.msra.mxu1 %v726_v2 }
  0x10   : > { %v732_v4 = vld [vmem:[%s818_s8] sm:$0xff]   ;;  %v734_v5 = vld [vmem:[%s818_s8 + $0x10] sm:$0xff]   ;;  %682 = vmatprep.subr.bf16.mxu0 %v727_v3  ;;  %703 = vmatprep.subr.bf16.mxu1 %v727_v3  ;;  %v733_v10 = vld [vmem:[%s818_s8 + $0x8] sm:$0xff]  }
  0x11   : > { %692 = vmatprep.mubr.bf16.mxu0 %v732_v4  ;;  %696 = vmatprep.mubr.bf16.mxu1 %v734_v5  ;;  %v735_v11 = vld [vmem:[%s818_s8 + $0x18] sm:$0xff]   ;;  %s905_s8 = scalar_lea.vmem %s959_s6, %s663_s27 }
  0x13   : > { %683 = vmatpush3.bf16.msra.mxu0 %v727_v3  ;;  %711 = vmatpush3.bf16.msra.mxu1 %v727_v3 }
  0x14   : > { %684 = vmatprep.subr.bf16.mxu0 %v728_v6  ;;  %704 = vmatprep.subr.bf16.mxu1 %v728_v6 }
  0x17   : > { %685 = vmatpush3.bf16.msra.mxu0 %v728_v6  ;;  %712 = vmatpush3.bf16.msra.mxu1 %v728_v6 }
  0x18   : > { %686 = vmatprep.subr.bf16.mxu0 %v729_v7  ;;  %705 = vmatprep.subr.bf16.mxu1 %v729_v7 }
  0x1b   : > { %687 = vmatpush3.bf16.msra.mxu0 %v729_v7  ;;  %713 = vmatpush3.bf16.msra.mxu1 %v729_v7 }
  0x1c   : > { %688 = vmatprep.subr.bf16.mxu0 %v730_v8  ;;  %706 = vmatprep.subr.bf16.mxu1 %v730_v8 }
  0x1f   : > { %689 = vmatpush3.bf16.msra.mxu0 %v730_v8  ;;  %714 = vmatpush3.bf16.msra.mxu1 %v730_v8 }
  0x20   : > { %690 = vmatprep.subr.bf16.mxu0 %v731_v9  ;;  %707 = vmatprep.subr.bf16.mxu1 %v731_v9 }
  0x23   : > { %691 = vmatpush3.bf16.msra.mxu0 %v731_v9  ;;  %715 = vmatpush3.bf16.msra.mxu1 %v731_v9 }
  0x26   : > { %693 = vmatmul.mubr.bf16.vlgmr.msra.gmra.mrb[0].mxu0 %v733_v10  ;;  %697 = vmatmul.mubr.bf16.vlgmr.msra.gmra.mrb[0].mxu1 %v735_v11 }
  0xf9   : > { %v694_v13 = vpop.f32.mrb[0].mxu0  ;;  %v698_v14 = vpop.f32.mrb[0].mxu1 }
  0xfa   : > { %v399_v15 = vadd.f32 %v694_v13, %v645_v12  ;;  %v390_v16 = vpop.f32.mrb[1].mxu0  ;;  %v406_v17 = vpop.f32.mrb[1].mxu1  ;;  %v415_v33 = vadd.f32 %v698_v14, %v645_v12 }
  0xfb   : > { %v391_v18 = vadd.f32 %v645_v12, %v390_v16  ;;  %v695_v19 = vpop.f32.mrb[2].mxu0  ;;  %v407_v20 = vadd.f32 %v645_v12, %v406_v17  ;;  %v699_v21 = vpop.f32.mrb[2].mxu1 }
  0xfc   : > { %v402_v22 = vadd.f32 %v695_v19, %v645_v12  ;;  %v393_v23 = vpop.f32.mrb[3].mxu0  ;;  %v409_v24 = vpop.f32.mrb[3].mxu1  ;;  %v430_v25 = vsel %vm423_vm0, %v399_v15, 0.0  ;;  %v418_v31 = vadd.f32 %v699_v21, %v645_v12  ;;  %v442_v36 = vsel %vm423_vm0, %v415_v33, 0.0 }
  0xfd   : > { %431 = vadd.xlane.f32.xlu1 %v430_v25  ;;  %v424_v26 = vsel %vm423_vm0, %v391_v18, 0.0  ;;  %v436_v27 = vsel %vm423_vm0, %v407_v20, 0.0  ;;  %v410_v28 = vadd.f32 %v645_v12, %v409_v24  ;;  %v394_v30 = vadd.f32 %v645_v12, %v393_v23 }
  0xfe   : > { %425 = vadd.xlane.f32.xlu0 %v424_v26  ;;  %v433_v29 = vsel %vm423_vm0, %v402_v22, 0.0  ;;  %v445_v35 = vsel %vm423_vm0, %v418_v31, 0.0 }
  0xff   : > { %v439_v32 = vsel %vm423_vm0, %v410_v28, 0.0  ;;  %v427_v34 = vsel %vm423_vm0, %v394_v30, 0.0 }
 0x101   : > { %434 = vadd.xlane.f32.xlu1 %v433_v29 }
 0x102   : > { %437 = vadd.xlane.f32.xlu0 %v436_v27 }
 0x105   : > { %440 = vadd.xlane.f32.xlu1 %v439_v32 }
 0x106   : > { %428 = vadd.xlane.f32.xlu0 %v427_v34 }
 0x109   : > { %446 = vadd.xlane.f32.xlu1 %v445_v35 }
 0x10a   : > { %443 = vadd.xlane.f32.xlu0 %v442_v36 }
 0x18a   : > { %v432_v37 = vpop.xlane.xlu1 %431 }
 0x18b   : > { %v451_v38 = vmul.f32 0.03125, %v432_v37  ;;  %v426_v39 = vpop.xlane.xlu0 %425  ;;  %v659_v37 = vld [vmem:[%s957_s4] ss:$0 sm:$0xff] }
 0x18c   : > { %v449_v40 = vmul.f32 0.03125, %v426_v39 }
 0x18d   : > { %v850_v41 = vsub.f32 %v399_v15, %v451_v38 }
 0x18e   : > { %v852_v42 = vsub.f32 %v391_v18, %v449_v40  ;;  %v435_v43 = vpop.xlane.xlu1 %434 }
 0x18f   : > { %v452_v44 = vmul.f32 0.03125, %v435_v43  ;;  %v438_v45 = vpop.xlane.xlu0 %437  ;;  %v467_v46 = vmul.f32 %v850_v41, %v850_v41 }
 0x190   : > { %v453_v47 = vmul.f32 0.03125, %v438_v45  ;;  %v465_v50 = vmul.f32 %v852_v42, %v852_v42 }
 0x191   : > { %v856_v48 = vsub.f32 %v402_v22, %v452_v44  ;;  %v479_v49 = vsel %vm423_vm0, %v467_v46, 0.0  ;;  %v559_v44 = vld [vmem:[%s958_s5 + $0x10] sm:$0xff] }
 0x192   : > { %v861_v51 = vsub.f32 %v407_v20, %v453_v47  ;;  %v441_v52 = vpop.xlane.xlu1 %440  ;;  %480 = vadd.xlane.f32.xlu0 %v479_v49  ;;  %v473_v58 = vsel %vm423_vm0, %v465_v50, 0.0 }
 0x193   : > { %v454_v53 = vmul.f32 0.03125, %v441_v52  ;;  %v429_v54 = vpop.xlane.xlu0 %428  ;;  %v468_v55 = vmul.f32 %v856_v48, %v856_v48 }
 0x194   : > { %v450_v56 = vmul.f32 0.03125, %v429_v54  ;;  %v469_v59 = vmul.f32 %v861_v51, %v861_v51  ;;  %v560_v54 = vld [vmem:[%s958_s5 + $0x18] sm:$0xff] }
 0x195   : > { %v482_v57 = vsel %vm423_vm0, %v468_v55, 0.0  ;;  %v869_v60 = vsub.f32 %v410_v28, %v454_v53 }
 0x196   : > { %v871_v61 = vsub.f32 %v394_v30, %v450_v56  ;;  %483 = vadd.xlane.f32.xlu1 %v482_v57  ;;  %v447_v62 = vpop.xlane.xlu1 %446  ;;  %474 = vadd.xlane.f32.xlu0 %v473_v58  ;;  %v485_v3 = vsel %vm423_vm0, %v469_v59, 0.0  ;;  %v557_v57 = vld [vmem:[%s958_s5] sm:$0xff] }
 0x197   : > { %v456_v63 = vmul.f32 0.03125, %v447_v62  ;;  %v444_v0 = vpop.xlane.xlu0 %443  ;;  %v470_v7 = vmul.f32 %v869_v60, %v869_v60 }
 0x198   : > { %v455_v1 = vmul.f32 0.03125, %v444_v0  ;;  %v466_v2 = vmul.f32 %v871_v61, %v871_v61 }
 0x199   : > { %v876_v4 = vsub.f32 %v418_v31, %v456_v63  ;;  %v488_v9 = vsel %vm423_vm0, %v470_v7, 0.0 }
 0x19a   : > { %v878_v5 = vsub.f32 %v415_v33, %v455_v1  ;;  %486 = vadd.xlane.f32.xlu0 %v485_v3  ;;  %v476_v6 = vsel %vm423_vm0, %v466_v2, 0.0  ;;  %v658_v33 = vld [vmem:[%s956_s3] ss:$0 sm:$0xff] }
 0x19b   : > { %477 = vadd.xlane.f32.xlu1 %v476_v6  ;;  %v472_v11 = vmul.f32 %v876_v4, %v876_v4  ;;  %v561_v1 = vld [vmem:[%s958_s5 + $0x20] sm:$0xff] }
 0x19c   : > { %v471_v8 = vmul.f32 %v878_v5, %v878_v5 }
 0x19d   : > { %v494_v12 = vsel %vm423_vm0, %v472_v11, 0.0 }
 0x19e   : > { %v491_v10 = vsel %vm423_vm0, %v471_v8, 0.0 }
 0x19f   : > { %489 = vadd.xlane.f32.xlu1 %v488_v9  ;;  %492 = vadd.xlane.f32.xlu0 %v491_v10 }
 0x1a3   : > { %495 = vadd.xlane.f32.xlu1 %v494_v12 }
 0x21f   : > { %v481_v13 = vpop.xlane.xlu0 %480 }
 0x220   : > { %v499_v14 = vmul.f32 0.03125, %v481_v13 }
 0x222   : > { %v507_v15 = vadd.f32 1e-06, %v499_v14  ;;  %v562_v14 = vld [vmem:[%s958_s5 + $0x28] sm:$0xff] }
 0x223   : > { %v484_v16 = vpop.xlane.xlu1 %483  ;;  %v475_v17 = vpop.xlane.xlu0 %474 }
 0x224   : > { %736 = vrsqrt.f32 %v507_v15  ;;  %v500_v18 = vmul.f32 0.03125, %v484_v16  ;;  %v497_v19 = vmul.f32 0.03125, %v475_v17 }
 0x226   : > { %v508_v20 = vadd.f32 1e-06, %v500_v18  ;;  %v505_v21 = vadd.f32 1e-06, %v497_v19 }
 0x227   : > { %v487_v22 = vpop.xlane.xlu0 %486 }
 0x228   : > { %738 = vrsqrt.f32 %v508_v20  ;;  %v501_v23 = vmul.f32 0.03125, %v487_v22  ;;  %v478_v24 = vpop.xlane.xlu1 %477 }
 0x229   : > { %740 = vrsqrt.f32 %v505_v21  ;;  %v498_v25 = vmul.f32 0.03125, %v478_v24  ;;  %v564_v21 = vld [vmem:[%s958_s5 + $0x38] sm:$0xff] }
 0x22a   : > { %v509_v26 = vadd.f32 1e-06, %v501_v23 }
 0x22b   : > { %v506_v27 = vadd.f32 1e-06, %v498_v25 }
 0x22c   : > { %742 = vrsqrt.f32 %v509_v26  ;;  %v490_v28 = vpop.xlane.xlu1 %489  ;;  %v493_v29 = vpop.xlane.xlu0 %492 }
 0x22d   : > { %744 = vrsqrt.f32 %v506_v27  ;;  %v502_v30 = vmul.f32 0.03125, %v490_v28  ;;  %v503_v31 = vmul.f32 0.03125, %v493_v29 }
 0x22e   : > { %v737_v32 = vpop.eup %736 }
 0x22f   : > { %v523_v34 = vmul.f32 %v737_v32, %v850_v41  ;;  %v510_v35 = vadd.f32 1e-06, %v502_v30  ;;  %v511_v36 = vadd.f32 1e-06, %v503_v31 }
 0x230   : > { %v496_v38 = vpop.xlane.xlu1 %495 }
 0x231   : > { %v537_v39 = vmul.f32 %v658_v33, %v523_v34  ;;  %746 = vrsqrt.f32 %v510_v35  ;;  %v504_v40 = vmul.f32 0.03125, %v496_v38 }
 0x232   : > { %v739_v43 = vpop.eup %738  ;;  %748 = vrsqrt.f32 %v511_v36 }
 0x233   : > { %v741_v45 = vpop.eup %740  ;;  %v551_v46 = vadd.f32 %v659_v37, %v537_v39  ;;  %v524_v41 = vmul.f32 %v739_v43, %v856_v48  ;;  %v512_v47 = vadd.f32 1e-06, %v504_v40 }
 0x234   : > { %v521_v49 = vmul.f32 %v741_v45, %v852_v42 }
 0x235   : > { %v567_v50 = vadd.f32 %v559_v44, %v551_v46  ;;  %v538_v52 = vmul.f32 %v658_v33, %v524_v41  ;;  %750 = vrsqrt.f32 %v512_v47 }
 0x236   : > { %v743_v53 = vpop.eup %742  ;;  %v535_v55 = vmul.f32 %v658_v33, %v521_v49 }
 0x237   : > { %v745_v48 = vpop.eup %744  ;;  %575 = vst.msk [vmem:[%s905_s8 + $0x10] sm:$0xff] %vm423_vm0, %v567_v50  ;;  %v552_v56 = vadd.f32 %v659_v37, %v538_v52  ;;  %v525_v42 = vmul.f32 %v743_v53, %v861_v51  ;;  %v558_v51 = vld [vmem:[%s958_s5 + $0x8] sm:$0xff] }
 0x238   : > { %v549_v58 = vadd.f32 %v659_v37, %v535_v55  ;;  %v522_v59 = vmul.f32 %v745_v48, %v871_v61 }
 0x239   : > { %v568_v62 = vadd.f32 %v560_v54, %v552_v56  ;;  %v539_v63 = vmul.f32 %v658_v33, %v525_v42 }
 0x23a   : > { %v565_v0 = vadd.f32 %v557_v57, %v549_v58  ;;  %v536_v2 = vmul.f32 %v658_v33, %v522_v59 }
 0x23b   : > { %v747_v3 = vpop.eup %746  ;;  %576 = vst.msk [vmem:[%s905_s8 + $0x18] sm:$0xff] %vm423_vm0, %v568_v62  ;;  %v553_v6 = vadd.f32 %v659_v37, %v539_v63 }
 0x23c   : > { %v749_v7 = vpop.eup %748  ;;  %573 = vst.msk [vmem:[%s905_s8] sm:$0xff] %vm423_vm0, %v565_v0  ;;  %v550_v61 = vadd.f32 %v659_v37, %v536_v2  ;;  %v526_v8 = vmul.f32 %v747_v3, %v869_v60  ;;  %v563_v60 = vld [vmem:[%s958_s5 + $0x30] sm:$0xff] }
 0x23d   : > { %v569_v9 = vadd.f32 %v561_v1, %v553_v6  ;;  %v527_v10 = vmul.f32 %v749_v7, %v878_v5 }
 0x23e   : > { %v566_v11 = vadd.f32 %v558_v51, %v550_v61  ;;  %v540_v12 = vmul.f32 %v658_v33, %v526_v8 }
 0x23f   : > { %v751_v13 = vpop.eup %750  ;;  %577 = vst.msk [vmem:[%s905_s8 + $0x20] sm:$0xff] %vm423_vm0, %v569_v9  ;;  %v541_v15 = vmul.f32 %v658_v33, %v527_v10 }
 0x240   : > { %574 = vst.msk [vmem:[%s905_s8 + $0x8] sm:$0xff] %vm423_vm0, %v566_v11  ;;  %v554_v16 = vadd.f32 %v659_v37, %v540_v12  ;;  %v528_v5 = vmul.f32 %v751_v13, %v876_v4 }
 0x241   : > { %v555_v17 = vadd.f32 %v659_v37, %v541_v15 }
 0x242   : > { %v570_v18 = vadd.f32 %v562_v14, %v554_v16  ;;  %v542_v19 = vmul.f32 %v658_v33, %v528_v5 }
 0x243   : > { %v571_v20 = vadd.f32 %v563_v60, %v555_v17 }
 0x244   : > { %578 = vst.msk [vmem:[%s905_s8 + $0x28] sm:$0xff] %vm423_vm0, %v570_v18  ;;  %v556_v22 = vadd.f32 %v659_v37, %v542_v19 }
 0x245   : > { %579 = vst.msk [vmem:[%s905_s8 + $0x30] sm:$0xff] %vm423_vm0, %v571_v20 }
 0x246   : > { %v572_v23 = vadd.f32 %v564_v21, %v556_v22 }
 0x248   : > { %580 = vst.msk [vmem:[%s905_s8 + $0x38] sm:$0xff] %vm423_vm0, %v572_v23 }
 0x249 PF: > { %s16_s21 = sadd.s32 1, %s758_s21  }
 0x24a   : > { %p13_p4 = scmp.ge.s32.totalorder %s16_s21, 4  }
 0x24c   :  { %15 = sbr.rel (!%p13_p4) target bundleno = 1 (0x1), region = 74 }

// kernel: pvt_forward.33
= control target key start
LH: loop header
LB: loop body
LE: loop exit
PB: predicated region body
PF: predicated region fallthrough
CT: control target
= control target key end

     0   :  { %vm32_vm0 = vcmask 261120   ;;  %vm350_vm1 = vcmask 257024   ;;  %s763_s0 = inlined_call_operand.vmem [shape: f32[128,32], index: 0, kind: input, shape index: {}]   ;;  %s764_s1 = inlined_call_operand.vmem [shape: f32[1,32], index: 1, kind: input, shape index: {}]   ;;  %s765_s2 = inlined_call_operand.vmem [shape: f32[1,32], index: 2, kind: input, shape index: {}]   ;;  %s766_s3 = inlined_call_operand.vmem [shape: bf16[128,32], index: 3, kind: output, shape index: {}]  }
   0x1   :  { %v14_v0 = vld [vmem:[%s763_s0] sm:$0xff]  ;;  %v16_v1 = vld [vmem:[%s763_s0 + $0x10] sm:$0xff]  ;;  %v15_v2 = vld [vmem:[%s763_s0 + $0x8] sm:$0xff] }
   0x2   :  { %v33_v3 = vsel %vm32_vm0, %v14_v0, 0.0  ;;  %v39_v4 = vsel %vm32_vm0, %v16_v1, 0.0  ;;  %v17_v5 = vld [vmem:[%s763_s0 + $0x18] sm:$0xff]  ;;  %v36_v6 = vsel %vm32_vm0, %v15_v2, 0.0  ;;  %v18_v8 = vld [vmem:[%s763_s0 + $0x20] sm:$0xff]  ;;  %v19_v9 = vld [vmem:[%s763_s0 + $0x28] sm:$0xff] }
   0x3   :  { %34 = vadd.xlane.f32.xlu0 %v33_v3  ;;  %40 = vadd.xlane.f32.xlu1 %v39_v4  ;;  %v42_v7 = vsel %vm32_vm0, %v17_v5, 0.0  ;;  %v45_v10 = vsel %vm32_vm0, %v18_v8, 0.0  ;;  %v48_v11 = vsel %vm32_vm0, %v19_v9, 0.0  ;;  %v484_v12 = vld [vmem:[%s763_s0 + $0x30] sm:$0xff]  ;;  %v489_v13 = vld [vmem:[%s763_s0 + $0x38] sm:$0xff]  ;;  %v498_v16 = vld [vmem:[%s763_s0 + $0x40] sm:$0xff] }
   0x4   :  { %v51_v14 = vsel %vm32_vm0, %v484_v12, 0.0  ;;  %v54_v15 = vsel %vm32_vm0, %v489_v13, 0.0  ;;  %v503_v17 = vld [vmem:[%s763_s0 + $0x48] sm:$0xff]  ;;  %v57_v18 = vsel %vm32_vm0, %v498_v16, 0.0  ;;  %v512_v20 = vld [vmem:[%s763_s0 + $0x50] sm:$0xff]  ;;  %v517_v21 = vld [vmem:[%s763_s0 + $0x58] sm:$0xff] }
   0x5   :  { %v60_v19 = vsel %vm32_vm0, %v503_v17, 0.0  ;;  %v63_v22 = vsel %vm32_vm0, %v512_v20, 0.0  ;;  %v66_v23 = vsel %vm32_vm0, %v517_v21, 0.0  ;;  %v526_v24 = vld [vmem:[%s763_s0 + $0x60] sm:$0xff]  ;;  %v531_v25 = vld [vmem:[%s763_s0 + $0x68] sm:$0xff]  ;;  %v540_v28 = vld [vmem:[%s763_s0 + $0x70] sm:$0xff] }
   0x6   :  { %v69_v26 = vsel %vm32_vm0, %v526_v24, 0.0  ;;  %v72_v27 = vsel %vm32_vm0, %v531_v25, 0.0  ;;  %v545_v29 = vld [vmem:[%s763_s0 + $0x78] sm:$0xff]  ;;  %v75_v30 = vsel %vm32_vm0, %v540_v28, 0.0 }
   0x7   :  { %37 = vadd.xlane.f32.xlu0 %v36_v6  ;;  %43 = vadd.xlane.f32.xlu1 %v42_v7  ;;  %v78_v31 = vsel %vm32_vm0, %v545_v29, 0.0 }
   0xb   :  { %46 = vadd.xlane.f32.xlu0 %v45_v10  ;;  %49 = vadd.xlane.f32.xlu1 %v48_v11 }
   0xf   :  { %52 = vadd.xlane.f32.xlu0 %v51_v14  ;;  %55 = vadd.xlane.f32.xlu1 %v54_v15 }
  0x13   :  { %58 = vadd.xlane.f32.xlu0 %v57_v18  ;;  %61 = vadd.xlane.f32.xlu1 %v60_v19 }
  0x17   :  { %64 = vadd.xlane.f32.xlu0 %v63_v22  ;;  %67 = vadd.xlane.f32.xlu1 %v66_v23 }
  0x1b   :  { %70 = vadd.xlane.f32.xlu0 %v69_v26  ;;  %73 = vadd.xlane.f32.xlu1 %v72_v27 }
  0x1f   :  { %76 = vadd.xlane.f32.xlu0 %v75_v30  ;;  %79 = vadd.xlane.f32.xlu1 %v78_v31 }
  0x90   :  { %v35_v32 = vpop.xlane.xlu0 %34  ;;  %v41_v33 = vpop.xlane.xlu1 %40 }
  0x91   :  { %v82_v34 = vmul.f32 0.03125, %v35_v32  ;;  %v84_v35 = vmul.f32 0.03125, %v41_v33 }
  0x93   :  { %v551_v36 = vsub.f32 %v14_v0, %v82_v34  ;;  %v553_v37 = vsub.f32 %v16_v1, %v84_v35 }
  0x94   :  { %v38_v38 = vpop.xlane.xlu0 %37  ;;  %v44_v39 = vpop.xlane.xlu1 %43 }
  0x95   :  { %v83_v40 = vmul.f32 0.03125, %v38_v38  ;;  %v85_v41 = vmul.f32 0.03125, %v44_v39  ;;  %v114_v42 = vmul.f32 %v551_v36, %v551_v36  ;;  %v116_v43 = vmul.f32 %v553_v37, %v553_v37 }
  0x97   :  { %v559_v44 = vsub.f32 %v15_v2, %v83_v40  ;;  %v561_v45 = vsub.f32 %v17_v5, %v85_v41  ;;  %v130_v46 = vsel %vm32_vm0, %v114_v42, 0.0  ;;  %v136_v49 = vsel %vm32_vm0, %v116_v43, 0.0 }
  0x98   :  { %131 = vadd.xlane.f32.xlu0 %v130_v46  ;;  %v47_v47 = vpop.xlane.xlu0 %46  ;;  %v50_v48 = vpop.xlane.xlu1 %49 }
  0x99   :  { %v86_v50 = vmul.f32 0.03125, %v47_v47  ;;  %v87_v51 = vmul.f32 0.03125, %v50_v48  ;;  %v115_v52 = vmul.f32 %v559_v44, %v559_v44  ;;  %v117_v53 = vmul.f32 %v561_v45, %v561_v45 }
  0x9b   :  { %v569_v54 = vsub.f32 %v18_v8, %v86_v50  ;;  %v571_v55 = vsub.f32 %v19_v9, %v87_v51  ;;  %v133_v56 = vsel %vm32_vm0, %v115_v52, 0.0  ;;  %v139_v59 = vsel %vm32_vm0, %v117_v53, 0.0 }
  0x9c   :  { %137 = vadd.xlane.f32.xlu0 %v136_v49  ;;  %134 = vadd.xlane.f32.xlu1 %v133_v56  ;;  %v53_v57 = vpop.xlane.xlu0 %52  ;;  %v56_v58 = vpop.xlane.xlu1 %55 }
  0x9d   :  { %v88_v60 = vmul.f32 0.03125, %v53_v57  ;;  %v89_v61 = vmul.f32 0.03125, %v56_v58  ;;  %v118_v62 = vmul.f32 %v569_v54, %v569_v54  ;;  %v119_v63 = vmul.f32 %v571_v55, %v571_v55 }
  0x9f   :  { %v580_v0 = vsub.f32 %v484_v12, %v88_v60  ;;  %v583_v1 = vsub.f32 %v489_v13, %v89_v61  ;;  %v142_v2 = vsel %vm32_vm0, %v118_v62, 0.0  ;;  %v145_v5 = vsel %vm32_vm0, %v119_v63, 0.0 }
  0xa0   :  { %140 = vadd.xlane.f32.xlu1 %v139_v59  ;;  %143 = vadd.xlane.f32.xlu0 %v142_v2  ;;  %v59_v3 = vpop.xlane.xlu0 %58  ;;  %v62_v4 = vpop.xlane.xlu1 %61 }
  0xa1   :  { %v90_v6 = vmul.f32 0.03125, %v59_v3  ;;  %v91_v7 = vmul.f32 0.03125, %v62_v4  ;;  %v120_v8 = vmul.f32 %v580_v0, %v580_v0  ;;  %v121_v9 = vmul.f32 %v583_v1, %v583_v1 }
  0xa3   :  { %v592_v10 = vsub.f32 %v498_v16, %v90_v6  ;;  %v595_v11 = vsub.f32 %v503_v17, %v91_v7  ;;  %v148_v12 = vsel %vm32_vm0, %v120_v8, 0.0  ;;  %v151_v15 = vsel %vm32_vm0, %v121_v9, 0.0 }
  0xa4   :  { %146 = vadd.xlane.f32.xlu1 %v145_v5  ;;  %149 = vadd.xlane.f32.xlu0 %v148_v12  ;;  %v65_v13 = vpop.xlane.xlu0 %64  ;;  %v68_v14 = vpop.xlane.xlu1 %67 }
  0xa5   :  { %v92_v18 = vmul.f32 0.03125, %v65_v13  ;;  %v93_v19 = vmul.f32 0.03125, %v68_v14  ;;  %v122_v22 = vmul.f32 %v592_v10, %v592_v10  ;;  %v123_v16 = vmul.f32 %v595_v11, %v595_v11  ;;  %v644_v14 = vld [vmem:[%s764_s1] ss:$0 sm:$0xff] }
  0xa7   :  { %v604_v23 = vsub.f32 %v512_v20, %v92_v18  ;;  %v607_v17 = vsub.f32 %v517_v21, %v93_v19  ;;  %v154_v26 = vsel %vm32_vm0, %v122_v22, 0.0  ;;  %v157_v31 = vsel %vm32_vm0, %v123_v16, 0.0 }
  0xa8   :  { %152 = vadd.xlane.f32.xlu1 %v151_v15  ;;  %155 = vadd.xlane.f32.xlu0 %v154_v26  ;;  %v71_v27 = vpop.xlane.xlu0 %70  ;;  %v74_v30 = vpop.xlane.xlu1 %73  ;;  %v650_v26 = vld [vmem:[%s765_s2] ss:$0 sm:$0xff] }
  0xa9   :  { %v94_v32 = vmul.f32 0.03125, %v71_v27  ;;  %v95_v33 = vmul.f32 0.03125, %v74_v30  ;;  %v124_v34 = vmul.f32 %v604_v23, %v604_v23  ;;  %v125_v20 = vmul.f32 %v607_v17, %v607_v17 }
  0xab   :  { %v616_v35 = vsub.f32 %v526_v24, %v94_v32  ;;  %v619_v21 = vsub.f32 %v531_v25, %v95_v33  ;;  %v160_v38 = vsel %vm32_vm0, %v124_v34, 0.0  ;;  %v163_v41 = vsel %vm32_vm0, %v125_v20, 0.0 }
  0xac   :  { %158 = vadd.xlane.f32.xlu1 %v157_v31  ;;  %161 = vadd.xlane.f32.xlu0 %v160_v38  ;;  %v77_v39 = vpop.xlane.xlu0 %76  ;;  %v80_v40 = vpop.xlane.xlu1 %79 }
  0xad   :  { %v96_v42 = vmul.f32 0.03125, %v77_v39  ;;  %v97_v43 = vmul.f32 0.03125, %v80_v40  ;;  %v126_v46 = vmul.f32 %v616_v35, %v616_v35  ;;  %v127_v24 = vmul.f32 %v619_v21, %v619_v21 }
  0xaf   :  { %v628_v47 = vsub.f32 %v540_v28, %v96_v42  ;;  %v631_v25 = vsub.f32 %v545_v29, %v97_v43  ;;  %v166_v48 = vsel %vm32_vm0, %v126_v46, 0.0  ;;  %v169_v49 = vsel %vm32_vm0, %v127_v24, 0.0 }
  0xb0   :  { %164 = vadd.xlane.f32.xlu1 %v163_v41  ;;  %167 = vadd.xlane.f32.xlu0 %v166_v48 }
  0xb1   :  { %v128_v50 = vmul.f32 %v628_v47, %v628_v47  ;;  %v129_v51 = vmul.f32 %v631_v25, %v631_v25 }
  0xb3   :  { %v172_v52 = vsel %vm32_vm0, %v128_v50, 0.0  ;;  %v175_v28 = vsel %vm32_vm0, %v129_v51, 0.0 }
  0xb4   :  { %170 = vadd.xlane.f32.xlu1 %v169_v49  ;;  %173 = vadd.xlane.f32.xlu0 %v172_v52 }
  0xb8   :  { %176 = vadd.xlane.f32.xlu1 %v175_v28 }
 0x125   :  { %v132_v29 = vpop.xlane.xlu0 %131 }
 0x126   :  { %v178_v53 = vmul.f32 0.03125, %v132_v29 }
 0x128   :  { %v194_v56 = vadd.f32 1e-06, %v178_v53 }
 0x129   :  { %v135_v57 = vpop.xlane.xlu1 %134  ;;  %v138_v58 = vpop.xlane.xlu0 %137 }
 0x12a   :  { %405 = vrsqrt.f32 %v194_v56  ;;  %v179_v59 = vmul.f32 0.03125, %v135_v57  ;;  %v180_v60 = vmul.f32 0.03125, %v138_v58 }
 0x12c   :  { %v195_v61 = vadd.f32 1e-06, %v179_v59  ;;  %v196_v62 = vadd.f32 1e-06, %v180_v60 }
 0x12d   :  { %v141_v63 = vpop.xlane.xlu1 %140  ;;  %v144_v2 = vpop.xlane.xlu0 %143 }
 0x12e   :  { %407 = vrsqrt.f32 %v195_v61  ;;  %v181_v3 = vmul.f32 0.03125, %v141_v63  ;;  %v182_v4 = vmul.f32 0.03125, %v144_v2 }
 0x12f   :  { %409 = vrsqrt.f32 %v196_v62 }
 0x130   :  { %v197_v5 = vadd.f32 1e-06, %v181_v3  ;;  %v198_v6 = vadd.f32 1e-06, %v182_v4 }
 0x131   :  { %v147_v7 = vpop.xlane.xlu1 %146  ;;  %v150_v8 = vpop.xlane.xlu0 %149 }
 0x132   :  { %411 = vrsqrt.f32 %v197_v5  ;;  %v183_v9 = vmul.f32 0.03125, %v147_v7  ;;  %v184_v12 = vmul.f32 0.03125, %v150_v8 }
 0x133   :  { %413 = vrsqrt.f32 %v198_v6 }
 0x134   :  { %v406_v13 = vpop.eup %405  ;;  %v199_v15 = vadd.f32 1e-06, %v183_v9  ;;  %v200_v18 = vadd.f32 1e-06, %v184_v12 }
 0x135   :  { %v226_v19 = vmul.f32 %v406_v13, %v551_v36  ;;  %v153_v22 = vpop.xlane.xlu1 %152  ;;  %v156_v16 = vpop.xlane.xlu0 %155 }
 0x136   :  { %415 = vrsqrt.f32 %v199_v15  ;;  %v185_v27 = vmul.f32 0.03125, %v153_v22  ;;  %v186_v30 = vmul.f32 0.03125, %v156_v16 }
 0x137   :  { %v248_v31 = vmul.f32 %v644_v14, %v226_v19  ;;  %417 = vrsqrt.f32 %v200_v18 }
 0x138   :  { %v408_v32 = vpop.eup %407  ;;  %v201_v33 = vadd.f32 1e-06, %v185_v27  ;;  %v202_v34 = vadd.f32 1e-06, %v186_v30 }
 0x139   :  { %v410_v20 = vpop.eup %409  ;;  %v270_v36 = vadd.f32 %v650_v26, %v248_v31  ;;  %v227_v38 = vmul.f32 %v408_v32, %v559_v44  ;;  %v159_v39 = vpop.xlane.xlu1 %158 }
 0x13a   :  { %v162_v40 = vpop.xlane.xlu0 %161  ;;  %v228_v41 = vmul.f32 %v410_v20, %v553_v37  ;;  %419 = vrsqrt.f32 %v201_v33  ;;  %v187_v42 = vmul.f32 0.03125, %v159_v39 }
 0x13b   :  { %v188_v43 = vmul.f32 0.03125, %v162_v40  ;;  %v389_v46 = vpack.c.bf16 %v270_v36, %v270_v36  ;;  %v249_v24 = vmul.f32 %v644_v14, %v227_v38  ;;  %421 = vrsqrt.f32 %v202_v34 }
 0x13c   :  { %v412_v48 = vpop.eup %411  ;;  %v250_v49 = vmul.f32 %v644_v14, %v228_v41  ;;  %v203_v50 = vadd.f32 1e-06, %v187_v42 }
 0x13d   :  { %v204_v51 = vadd.f32 1e-06, %v188_v43  ;;  %v414_v52 = vpop.eup %413  ;;  %351 = vst.msk [vmem:[%s766_s3] sm:$0xf] %vm350_vm1, %v389_v46  ;;  %v271_v37 = vadd.f32 %v650_v26, %v249_v24  ;;  %v229_v44 = vmul.f32 %v412_v48, %v561_v45  ;;  %v165_v28 = vpop.xlane.xlu1 %164 }
 0x13e   :  { %v168_v29 = vpop.xlane.xlu0 %167  ;;  %v272_v53 = vadd.f32 %v650_v26, %v250_v49  ;;  %v230_v56 = vmul.f32 %v414_v52, %v569_v54  ;;  %423 = vrsqrt.f32 %v203_v50  ;;  %v189_v57 = vmul.f32 0.03125, %v165_v28 }
 0x13f   :  { %v390_v58 = vpack.c.bf16 %v271_v37, %v271_v37  ;;  %v251_v59 = vmul.f32 %v644_v14, %v229_v44  ;;  %425 = vrsqrt.f32 %v204_v51  ;;  %v190_v60 = vmul.f32 0.03125, %v168_v29 }
 0x140   :  { %v416_v61 = vpop.eup %415  ;;  %v391_v62 = vpack.c.bf16 %v272_v53, %v272_v53  ;;  %v252_v63 = vmul.f32 %v644_v14, %v230_v56  ;;  %v205_v2 = vadd.f32 1e-06, %v189_v57 }
 0x141   :  { %v418_v3 = vpop.eup %417  ;;  %352 = vst.msk [vmem:[%s766_s3 + $0x4] sm:$0xf] %vm350_vm1, %v390_v58  ;;  %v273_v45 = vadd.f32 %v650_v26, %v251_v59  ;;  %v231_v54 = vmul.f32 %v416_v61, %v571_v55  ;;  %v206_v4 = vadd.f32 1e-06, %v190_v60  ;;  %v171_v5 = vpop.xlane.xlu1 %170 }
 0x142   :  { %v174_v6 = vpop.xlane.xlu0 %173  ;;  %353 = vst.msk [vmem:[%s766_s3 + $0x8] sm:$0xf] %vm350_vm1, %v391_v62  ;;  %v274_v7 = vadd.f32 %v650_v26, %v252_v63  ;;  %v232_v8 = vmul.f32 %v418_v3, %v580_v0  ;;  %427 = vrsqrt.f32 %v205_v2  ;;  %v191_v9 = vmul.f32 0.03125, %v171_v5 }
 0x143   :  { %v392_v12 = vpack.c.bf16 %v273_v45, %v273_v45  ;;  %v253_v13 = vmul.f32 %v644_v14, %v231_v54  ;;  %429 = vrsqrt.f32 %v206_v4  ;;  %v192_v15 = vmul.f32 0.03125, %v174_v6 }
 0x144   :  { %v420_v55 = vpop.eup %419  ;;  %v393_v18 = vpack.c.bf16 %v274_v7, %v274_v7  ;;  %v254_v19 = vmul.f32 %v644_v14, %v232_v8  ;;  %v207_v22 = vadd.f32 1e-06, %v191_v9 }
 0x145   :  { %v422_v16 = vpop.eup %421  ;;  %354 = vst.msk [vmem:[%s766_s3 + $0xc] sm:$0xf] %vm350_vm1, %v392_v12  ;;  %v275_v0 = vadd.f32 %v650_v26, %v253_v13  ;;  %v233_v27 = vmul.f32 %v420_v55, %v583_v1  ;;  %v208_v30 = vadd.f32 1e-06, %v192_v15  ;;  %v177_v31 = vpop.xlane.xlu1 %176 }
 0x146   :  { %355 = vst.msk [vmem:[%s766_s3 + $0x10] sm:$0xf] %vm350_vm1, %v393_v18  ;;  %v276_v32 = vadd.f32 %v650_v26, %v254_v19  ;;  %v234_v33 = vmul.f32 %v422_v16, %v592_v10  ;;  %431 = vrsqrt.f32 %v207_v22  ;;  %v193_v34 = vmul.f32 0.03125, %v177_v31 }
 0x147   :  { %v394_v20 = vpack.c.bf16 %v275_v0, %v275_v0  ;;  %v255_v36 = vmul.f32 %v644_v14, %v233_v27  ;;  %433 = vrsqrt.f32 %v208_v30 }
 0x148   :  { %v424_v38 = vpop.eup %423  ;;  %v395_v39 = vpack.c.bf16 %v276_v32, %v276_v32  ;;  %v256_v1 = vmul.f32 %v644_v14, %v234_v33  ;;  %v209_v40 = vadd.f32 1e-06, %v193_v34 }
 0x149   :  { %v426_v41 = vpop.eup %425  ;;  %356 = vst.msk [vmem:[%s766_s3 + $0x14] sm:$0xf] %vm350_vm1, %v394_v20  ;;  %v277_v42 = vadd.f32 %v650_v26, %v255_v36  ;;  %v235_v10 = vmul.f32 %v424_v38, %v595_v11 }
 0x14a   :  { %357 = vst.msk [vmem:[%s766_s3 + $0x18] sm:$0xf] %vm350_vm1, %v395_v39  ;;  %v278_v43 = vadd.f32 %v650_v26, %v256_v1  ;;  %v236_v46 = vmul.f32 %v426_v41, %v604_v23  ;;  %435 = vrsqrt.f32 %v209_v40 }
 0x14b   :  { %v396_v24 = vpack.c.bf16 %v277_v42, %v277_v42  ;;  %v257_v48 = vmul.f32 %v644_v14, %v235_v10 }
 0x14c   :  { %v428_v49 = vpop.eup %427  ;;  %v397_v50 = vpack.c.bf16 %v278_v43, %v278_v43  ;;  %v258_v51 = vmul.f32 %v644_v14, %v236_v46 }
 0x14d   :  { %v430_v52 = vpop.eup %429  ;;  %358 = vst.msk [vmem:[%s766_s3 + $0x1c] sm:$0xf] %vm350_vm1, %v396_v24  ;;  %v279_v11 = vadd.f32 %v650_v26, %v257_v48  ;;  %v237_v37 = vmul.f32 %v428_v49, %v607_v17 }
 0x14e   :  { %359 = vst.msk [vmem:[%s766_s3 + $0x20] sm:$0xf] %vm350_vm1, %v397_v50  ;;  %v280_v23 = vadd.f32 %v650_v26, %v258_v51  ;;  %v238_v44 = vmul.f32 %v430_v52, %v616_v35 }
 0x14f   :  { %v398_v28 = vpack.c.bf16 %v279_v11, %v279_v11  ;;  %v259_v29 = vmul.f32 %v644_v14, %v237_v37 }
 0x150   :  { %v432_v53 = vpop.eup %431  ;;  %v399_v56 = vpack.c.bf16 %v280_v23, %v280_v23  ;;  %v260_v57 = vmul.f32 %v644_v14, %v238_v44 }
 0x151   :  { %v434_v58 = vpop.eup %433  ;;  %360 = vst.msk [vmem:[%s766_s3 + $0x24] sm:$0xf] %vm350_vm1, %v398_v28  ;;  %v281_v17 = vadd.f32 %v650_v26, %v259_v29  ;;  %v239_v59 = vmul.f32 %v432_v53, %v619_v21 }
 0x152   :  { %361 = vst.msk [vmem:[%s766_s3 + $0x28] sm:$0xf] %vm350_vm1, %v399_v56  ;;  %v282_v35 = vadd.f32 %v650_v26, %v260_v57  ;;  %v240_v60 = vmul.f32 %v434_v58, %v628_v47 }
 0x153   :  { %v400_v61 = vpack.c.bf16 %v281_v17, %v281_v17  ;;  %v261_v62 = vmul.f32 %v644_v14, %v239_v59 }
 0x154   :  { %v436_v63 = vpop.eup %435  ;;  %v401_v2 = vpack.c.bf16 %v282_v35, %v282_v35  ;;  %v262_v3 = vmul.f32 %v644_v14, %v240_v60 }
 0x155   :  { %362 = vst.msk [vmem:[%s766_s3 + $0x2c] sm:$0xf] %vm350_vm1, %v400_v61  ;;  %v283_v21 = vadd.f32 %v650_v26, %v261_v62  ;;  %v241_v45 = vmul.f32 %v436_v63, %v631_v25 }
 0x156   :  { %363 = vst.msk [vmem:[%s766_s3 + $0x30] sm:$0xf] %vm350_vm1, %v401_v2  ;;  %v284_v47 = vadd.f32 %v650_v26, %v262_v3 }
 0x157   :  { %v402_v54 = vpack.c.bf16 %v283_v21, %v283_v21  ;;  %v263_v4 = vmul.f32 %v644_v14, %v241_v45 }
 0x158   :  { %v403_v5 = vpack.c.bf16 %v284_v47, %v284_v47 }
 0x159   :  { %364 = vst.msk [vmem:[%s766_s3 + $0x34] sm:$0xf] %vm350_vm1, %v402_v54  ;;  %v285_v6 = vadd.f32 %v650_v26, %v263_v4 }
 0x15a   :  { %365 = vst.msk [vmem:[%s766_s3 + $0x38] sm:$0xf] %vm350_vm1, %v403_v5 }
 0x15b   :  { %v404_v25 = vpack.c.bf16 %v285_v6, %v285_v6 }
 0x15d   :  { %366 = vst.msk [vmem:[%s766_s3 + $0x3c] sm:$0xf] %vm350_vm1, %v404_v25 }

// kernel: pvt_forward.34
= control target key start
LH: loop header
LB: loop body
LE: loop exit
PB: predicated region body
PF: predicated region fallthrough
CT: control target
= control target key end

     0   :  { %vm177_vm0 = vcmask 261120   ;;  %vm267_vm1 = vcmask 257024   ;;  %s447_s1 = inlined_call_operand.vmem [shape: bf16[128,32], index: 1, kind: input, shape index: {}]   ;;  %s448_s0 = inlined_call_operand.vmem [shape: bf16[32,128], index: 0, kind: input, shape index: {}]   ;;  %s449_s2 = inlined_call_operand.vmem [shape: f32[1,32], index: 2, kind: input, shape index: {}]   ;;  %s450_s3 = inlined_call_operand.vmem [shape: f32[1,32], index: 3, kind: input, shape index: {}]   ;;  %s451_s4 = inlined_call_operand.vmem [shape: f32[1,32], index: 4, kind: input, shape index: {}]   ;;  %s452_s5 = inlined_call_operand.vmem [shape: f32[1,32], index: 5, kind: input, shape index: {}]   ;;  %s453_s6 = inlined_call_operand.vmem [shape: bf16[32,32], index: 6, kind: output, shape index: {}]  }
   0x1   :  { %v328_v0 = vld [vmem:[%s447_s1] sm:$0xff]   ;;  %v329_v1 = vld [vmem:[%s447_s1 + $0x8] sm:$0xff]   ;;  %v330_v2 = vld [vmem:[%s447_s1 + $0x10] sm:$0xff]  }
   0x2   :  { %308 = vmatprep.subr.bf16.mxu0 %v328_v0  ;;  %v331_v3 = vld [vmem:[%s447_s1 + $0x18] sm:$0xff]   ;;  %v336_v4 = vld [vmem:[%s448_s0] sm:$0xff]   ;;  %v333_v6 = vld [vmem:[%s447_s1 + $0x28] sm:$0xff]  }
   0x3   :  { %309 = vmatpush3.bf16.msra.mxu0 %v328_v0  ;;  %324 = vmatprep.mubr.bf16.mxu0 %v336_v4  ;;  %v332_v5 = vld [vmem:[%s447_s1 + $0x20] sm:$0xff]   ;;  %v334_v7 = vld [vmem:[%s447_s1 + $0x30] sm:$0xff]   ;;  %v335_v8 = vld [vmem:[%s447_s1 + $0x38] sm:$0xff]  }
   0x4   :  { %310 = vmatprep.subr.bf16.mxu0 %v329_v1  ;;  %v337_v9 = vld [vmem:[%s448_s0 + $0x8] sm:$0xff]   ;;  %v286_v10 = vld [vmem:[%s449_s2] ss:$0 sm:$0xff] }
   0x5   :  { %v287_v12 = vld [vmem:[%s450_s3] ss:$0 sm:$0xff] }
   0x6   :  { %v288_v61 = vld [vmem:[%s451_s4] ss:$0 sm:$0xff] }
   0x7   :  { %311 = vmatpush3.bf16.msra.mxu0 %v329_v1  ;;  %v289_v63 = vld [vmem:[%s452_s5] ss:$0 sm:$0xff] }
   0x8   :  { %312 = vmatprep.subr.bf16.mxu0 %v330_v2 }
   0xb   :  { %313 = vmatpush3.bf16.msra.mxu0 %v330_v2 }
   0xc   :  { %314 = vmatprep.subr.bf16.mxu0 %v331_v3 }
   0xf   :  { %315 = vmatpush3.bf16.msra.mxu0 %v331_v3 }
  0x10   :  { %316 = vmatprep.subr.bf16.mxu0 %v332_v5 }
  0x13   :  { %317 = vmatpush3.bf16.msra.mxu0 %v332_v5 }
  0x14   :  { %318 = vmatprep.subr.bf16.mxu0 %v333_v6 }
  0x17   :  { %319 = vmatpush3.bf16.msra.mxu0 %v333_v6 }
  0x18   :  { %320 = vmatprep.subr.bf16.mxu0 %v334_v7 }
  0x1b   :  { %321 = vmatpush3.bf16.msra.mxu0 %v334_v7 }
  0x1c   :  { %322 = vmatprep.subr.bf16.mxu0 %v335_v8 }
  0x1f   :  { %323 = vmatpush3.bf16.msra.mxu0 %v335_v8 }
  0x22   :  { %325 = vmatmul.mubr.bf16.vlgmr.msra.gmra.mrb[0].mxu0 %v337_v9 }
  0xf5   :  { %v326_v11 = vpop.f32.mrb[0].mxu0 }
  0xf6   :  { %v162_v13 = vmul.f32 %v326_v11, %v286_v10  ;;  %v138_v14 = vpop.f32.mrb[1].mxu0 }
  0xf7   :  { %v160_v15 = vmul.f32 %v286_v10, %v138_v14  ;;  %v327_v16 = vpop.f32.mrb[2].mxu0 }
  0xf8   :  { %v163_v17 = vmul.f32 %v327_v16, %v286_v10  ;;  %v141_v18 = vpop.f32.mrb[3].mxu0  ;;  %v173_v19 = vadd.f32 %v287_v12, %v162_v13 }
  0xf9   :  { %v161_v20 = vmul.f32 %v286_v10, %v141_v18  ;;  %v171_v21 = vadd.f32 %v287_v12, %v160_v15 }
  0xfa   :  { %v184_v22 = vsel %vm177_vm0, %v173_v19, 0.0  ;;  %v174_v23 = vadd.f32 %v287_v12, %v163_v17 }
  0xfb   :  { %185 = vadd.xlane.f32.xlu1 %v184_v22  ;;  %v178_v24 = vsel %vm177_vm0, %v171_v21, 0.0  ;;  %v172_v25 = vadd.f32 %v287_v12, %v161_v20 }
  0xfc   :  { %179 = vadd.xlane.f32.xlu0 %v178_v24  ;;  %v187_v26 = vsel %vm177_vm0, %v174_v23, 0.0 }
  0xfd   :  { %v181_v27 = vsel %vm177_vm0, %v172_v25, 0.0 }
  0xff   :  { %188 = vadd.xlane.f32.xlu1 %v187_v26 }
 0x100   :  { %182 = vadd.xlane.f32.xlu0 %v181_v27 }
 0x188   :  { %v186_v28 = vpop.xlane.xlu1 %185 }
 0x189   :  { %v193_v29 = vmul.f32 0.03125, %v186_v28  ;;  %v180_v30 = vpop.xlane.xlu0 %179 }
 0x18a   :  { %v191_v31 = vmul.f32 0.03125, %v180_v30 }
 0x18b   :  { %v197_v32 = vsub.f32 %v173_v19, %v193_v29 }
 0x18c   :  { %v195_v33 = vsub.f32 %v171_v21, %v191_v31  ;;  %v189_v34 = vpop.xlane.xlu1 %188 }
 0x18d   :  { %v194_v35 = vmul.f32 0.03125, %v189_v34  ;;  %v183_v36 = vpop.xlane.xlu0 %182  ;;  %v201_v42 = vmul.f32 %v197_v32, %v197_v32 }
 0x18e   :  { %v192_v37 = vmul.f32 0.03125, %v183_v36  ;;  %v199_v38 = vmul.f32 %v195_v33, %v195_v33 }
 0x18f   :  { %v198_v39 = vsub.f32 %v174_v23, %v194_v35  ;;  %v209_v44 = vsel %vm177_vm0, %v201_v42, 0.0 }
 0x190   :  { %v196_v40 = vsub.f32 %v172_v25, %v192_v37  ;;  %v203_v41 = vsel %vm177_vm0, %v199_v38, 0.0 }
 0x191   :  { %204 = vadd.xlane.f32.xlu0 %v203_v41  ;;  %v202_v46 = vmul.f32 %v198_v39, %v198_v39 }
 0x192   :  { %v200_v43 = vmul.f32 %v196_v40, %v196_v40 }
 0x193   :  { %v212_v47 = vsel %vm177_vm0, %v202_v46, 0.0 }
 0x194   :  { %v206_v45 = vsel %vm177_vm0, %v200_v43, 0.0 }
 0x195   :  { %210 = vadd.xlane.f32.xlu0 %v209_v44  ;;  %207 = vadd.xlane.f32.xlu1 %v206_v45 }
 0x199   :  { %213 = vadd.xlane.f32.xlu1 %v212_v47 }
 0x21e   :  { %v205_v48 = vpop.xlane.xlu0 %204 }
 0x21f   :  { %v215_v49 = vmul.f32 0.03125, %v205_v48 }
 0x221   :  { %v219_v50 = vadd.f32 1e-06, %v215_v49 }
 0x222   :  { %v208_v51 = vpop.xlane.xlu1 %207  ;;  %v211_v52 = vpop.xlane.xlu0 %210 }
 0x223   :  { %338 = vrsqrt.f32 %v219_v50  ;;  %v216_v53 = vmul.f32 0.03125, %v208_v51  ;;  %v217_v54 = vmul.f32 0.03125, %v211_v52 }
 0x225   :  { %v220_v55 = vadd.f32 1e-06, %v216_v53  ;;  %v221_v56 = vadd.f32 1e-06, %v217_v54 }
 0x226   :  { %v214_v57 = vpop.xlane.xlu1 %213 }
 0x227   :  { %340 = vrsqrt.f32 %v220_v55  ;;  %v218_v58 = vmul.f32 0.03125, %v214_v57 }
 0x228   :  { %342 = vrsqrt.f32 %v221_v56 }
 0x229   :  { %v222_v59 = vadd.f32 1e-06, %v218_v58 }
 0x22b   :  { %344 = vrsqrt.f32 %v222_v59 }
 0x22d   :  { %v339_v60 = vpop.eup %338 }
 0x22e   :  { %v227_v62 = vmul.f32 %v339_v60, %v195_v33 }
 0x230   :  { %v237_v0 = vmul.f32 %v288_v61, %v227_v62 }
 0x231   :  { %v341_v1 = vpop.eup %340 }
 0x232   :  { %v343_v2 = vpop.eup %342  ;;  %v247_v3 = vadd.f32 %v289_v63, %v237_v0  ;;  %v228_v4 = vmul.f32 %v341_v1, %v196_v40 }
 0x233   :  { %v229_v5 = vmul.f32 %v343_v2, %v197_v32 }
 0x234   :  { %v294_v6 = vpack.c.bf16 %v247_v3, %v247_v3  ;;  %v238_v7 = vmul.f32 %v288_v61, %v228_v4 }
 0x235   :  { %v345_v8 = vpop.eup %344  ;;  %v239_v9 = vmul.f32 %v288_v61, %v229_v5 }
 0x236   :  { %268 = vst.msk [vmem:[%s453_s6] sm:$0xf] %vm267_vm1, %v294_v6  ;;  %v248_v10 = vadd.f32 %v289_v63, %v238_v7  ;;  %v230_v11 = vmul.f32 %v345_v8, %v198_v39 }
 0x237   :  { %v249_v12 = vadd.f32 %v289_v63, %v239_v9 }
 0x238   :  { %v295_v13 = vpack.c.bf16 %v248_v10, %v248_v10  ;;  %v240_v14 = vmul.f32 %v288_v61, %v230_v11 }
 0x239   :  { %v296_v15 = vpack.c.bf16 %v249_v12, %v249_v12 }
 0x23a   :  { %269 = vst.msk [vmem:[%s453_s6 + $0x4] sm:$0xf] %vm267_vm1, %v295_v13  ;;  %v250_v16 = vadd.f32 %v289_v63, %v240_v14 }
 0x23b   :  { %270 = vst.msk [vmem:[%s453_s6 + $0x8] sm:$0xf] %vm267_vm1, %v296_v15 }
 0x23c   :  { %v297_v17 = vpack.c.bf16 %v250_v16, %v250_v16 }
 0x23e   :  { %271 = vst.msk [vmem:[%s453_s6 + $0xc] sm:$0xf] %vm267_vm1, %v297_v17 }

// kernel: pvt_forward.35
= control target key start
LH: loop header
LB: loop body
LE: loop exit
PB: predicated region body
PF: predicated region fallthrough
CT: control target
= control target key end

     0   :  { %s1428_s30 = smov 0   ;;  %s1638_s0 = inlined_call_operand.vmem [shape: f32[2,64,32], index: 0, kind: input, shape index: {}]   ;;  %s1639_s1 = inlined_call_operand.vmem [shape: bf16[2,16,32], index: 1, kind: input, shape index: {}]   ;;  %s1640_s2 = inlined_call_operand.vmem [shape: f32[1,32], index: 2, kind: input, shape index: {}]   ;;  %s1641_s3 = inlined_call_operand.vmem [shape: f32[1,32], index: 3, kind: input, shape index: {}]   ;;  %s1642_s4 = inlined_call_operand.vmem [shape: bf16[32,32], index: 4, kind: input, shape index: {}]   ;;  %s1643_s5 = inlined_call_operand.vmem [shape: bf16[32,32], index: 5, kind: input, shape index: {}]   ;;  %s1644_s6 = inlined_call_operand.vmem [shape: bf16[32,32], index: 6, kind: input, shape index: {}]   ;;  %s1645_s7 = inlined_call_operand.vmem [shape: bf16[32,32], index: 7, kind: input, shape index: {}]   ;;  %s1646_s8 = inlined_call_operand.vmem [shape: f32[1,32], index: 8, kind: input, shape index: {}]   ;;  %s1647_s9 = inlined_call_operand.vmem [shape: f32[2,64,32], index: 9, kind: output, shape index: {}]  }
   0x1 LB: > { %s1162_s10 = sadd.s32 4294967295, %s1374_s30   ;;  %p1166_p0 = scmp.ge.s32.totalorder %s1374_s30, 1  ;;  %s1374_s30 = sphi %s1428_s30, %s19_s30  }
   0x2   : > { %p297_p1 = scmp.lt.s32.totalorder %s1374_s30, 3 }
   0x4   : > { %p298_p2 = pnand %p1166_p0, %p297_p1 }
   0x5   : > { %p338_p3 = scmp.lt.s32.totalorder (!%p298_p2), %s1162_s10, 1  ;;  %vm364_vm0 = vcmask (!%p298_p2), 261120   ;;  %v1311_v56 = vld [vmem:[%s1642_s4] sm:$0xff] (!%p298_p2)   ;;  %v1312_v57 = vld [vmem:[%s1642_s4 + $0x8] sm:$0xff] (!%p298_p2)   ;;  %v1376_v58 = vmov (!%p298_p2), 0.0   ;;  %vm1377_vm1 = vmmov (!%p298_p2), 0  }
   0x6   : > { %301 = sbr.rel (%p298_p2) target bundleno = 1399 (0x577), region = 56  ;;  %1296 = vmatprep.subr.bf16.mxu1 (!%p298_p2), %v1311_v56  ;;  %1236 = vmatprep.subr.bf16.mxu0 (!%p298_p2), %v1311_v56  ;;  %vm805_vm2 = vcmask (!%p298_p2), 130048  }
   0x7   : > { %1298 = vmatpush3.bf16.msra.mxu1 (!%p298_p2), %v1311_v56  ;;  %1237 = vmatpush3.bf16.msra.mxu0 (!%p298_p2), %v1311_v56 }
   0x8   : > { %1297 = vmatprep.subr.bf16.mxu1 (!%p298_p2), %v1312_v57  ;;  %1238 = vmatprep.subr.bf16.mxu0 (!%p298_p2), %v1312_v57 }
   0xb   : > { %1299 = vmatpush3.bf16.msra.mxu1 (!%p298_p2), %v1312_v57  ;;  %1239 = vmatpush3.bf16.msra.mxu0 (!%p298_p2), %v1312_v57 }
   0xc   : > { %1248 = vmatprep.subr.bf16.mxu1 (!%p298_p2), %v1376_v58 }
   0xd   : > { %s1649_s10 = smov (!%p338_p3, %s1162_s10), 1 }
   0xe   : > { %s1205_s11 = sshll.u32 %s1649_s10, 6  ;;  %s1206_s19 = sshll.u32 %s1649_s10, 3 }
   0xf   : > { %s342_s14 = scalar_lea.vmem %s1638_s0, %s1205_s11  ;;  %s1535_s22 = scalar_lea.vmem %s1639_s1, %s1206_s19 }
  0x10   : > { %v1444_v0 = vld [vmem:[%s342_s14 + $0x20] sm:$0xff]  ;;  %v1446_v1 = vld [vmem:[%s342_s14 + $0x30] sm:$0xff]  ;;  %v1448_v2 = vld [vmem:[%s342_s14 + $0x28] sm:$0xff]  ;;  %s352_s25 = scalar_lea.vmem %s1647_s9, %s1205_s11 }
  0x11   : > { %v377_v3 = vsel %vm364_vm0, %v1444_v0, 0.0  ;;  %v383_v4 = vsel %vm364_vm0, %v1446_v1, 0.0  ;;  %v1454_v5 = vld [vmem:[%s342_s14 + $0x38] sm:$0xff]  ;;  %v380_v6 = vsel %vm364_vm0, %v1448_v2, 0.0  ;;  %v1460_v8 = vld [vmem:[%s342_s14] sm:$0xff]  ;;  %v1462_v9 = vld [vmem:[%s342_s14 + $0x8] sm:$0xff] }
  0x12   : > { %378 = vadd.xlane.f32.xlu0 %v377_v3  ;;  %384 = vadd.xlane.f32.xlu1 %v383_v4  ;;  %v386_v7 = vsel %vm364_vm0, %v1454_v5, 0.0  ;;  %v365_v10 = vsel %vm364_vm0, %v1460_v8, 0.0  ;;  %v368_v11 = vsel %vm364_vm0, %v1462_v9, 0.0  ;;  %v1468_v12 = vld [vmem:[%s342_s14 + $0x10] sm:$0xff]  ;;  %v1470_v13 = vld [vmem:[%s342_s14 + $0x18] sm:$0xff] }
  0x13   : > { %v371_v14 = vsel %vm364_vm0, %v1468_v12, 0.0  ;;  %v374_v15 = vsel %vm364_vm0, %v1470_v13, 0.0 }
  0x16   : > { %381 = vadd.xlane.f32.xlu0 %v380_v6  ;;  %387 = vadd.xlane.f32.xlu1 %v386_v7 }
  0x1a   : > { %366 = vadd.xlane.f32.xlu0 %v365_v10  ;;  %369 = vadd.xlane.f32.xlu1 %v368_v11 }
  0x1e   : > { %372 = vadd.xlane.f32.xlu0 %v371_v14  ;;  %375 = vadd.xlane.f32.xlu1 %v374_v15 }
  0x9f   : > { %v379_v16 = vpop.xlane.xlu0 %378  ;;  %v385_v17 = vpop.xlane.xlu1 %384 }
  0xa0   : > { %v394_v18 = vmul.f32 0.03125, %v379_v16  ;;  %v396_v19 = vmul.f32 0.03125, %v385_v17 }
  0xa2   : > { %v1477_v20 = vsub.f32 %v1444_v0, %v394_v18  ;;  %v1480_v21 = vsub.f32 %v1446_v1, %v396_v19 }
  0xa3   : > { %v382_v22 = vpop.xlane.xlu0 %381  ;;  %v388_v23 = vpop.xlane.xlu1 %387 }
  0xa4   : > { %v395_v24 = vmul.f32 0.03125, %v382_v22  ;;  %v397_v25 = vmul.f32 0.03125, %v388_v23  ;;  %v410_v26 = vmul.f32 %v1477_v20, %v1477_v20  ;;  %v412_v27 = vmul.f32 %v1480_v21, %v1480_v21 }
  0xa6   : > { %v1487_v28 = vsub.f32 %v1448_v2, %v395_v24  ;;  %v1490_v29 = vsub.f32 %v1454_v5, %v397_v25  ;;  %v426_v30 = vsel %vm364_vm0, %v410_v26, 0.0  ;;  %v432_v33 = vsel %vm364_vm0, %v412_v27, 0.0 }
  0xa7   : > { %427 = vadd.xlane.f32.xlu0 %v426_v30  ;;  %v367_v31 = vpop.xlane.xlu0 %366  ;;  %v370_v32 = vpop.xlane.xlu1 %369 }
  0xa8   : > { %v390_v34 = vmul.f32 0.03125, %v367_v31  ;;  %v411_v35 = vmul.f32 %v1487_v28, %v1487_v28  ;;  %v391_v36 = vmul.f32 0.03125, %v370_v32  ;;  %v413_v37 = vmul.f32 %v1490_v29, %v1490_v29  ;;  %v1173_v32 = vld [vmem:[%s1640_s2] ss:$0 sm:$0xff] }
  0xaa   : > { %v1499_v38 = vsub.f32 %v1460_v8, %v390_v34  ;;  %v429_v39 = vsel %vm364_vm0, %v411_v35, 0.0  ;;  %v1503_v40 = vsub.f32 %v1462_v9, %v391_v36  ;;  %v435_v42 = vsel %vm364_vm0, %v413_v37, 0.0 }
  0xab   : > { %430 = vadd.xlane.f32.xlu1 %v429_v39  ;;  %433 = vadd.xlane.f32.xlu0 %v432_v33  ;;  %v373_v41 = vpop.xlane.xlu0 %372  ;;  %v376_v43 = vpop.xlane.xlu1 %375 }
  0xac   : > { %v392_v44 = vmul.f32 0.03125, %v373_v41  ;;  %v393_v45 = vmul.f32 0.03125, %v376_v43  ;;  %v406_v46 = vmul.f32 %v1499_v38, %v1499_v38  ;;  %v407_v47 = vmul.f32 %v1503_v40, %v1503_v40 }
  0xae   : > { %v1511_v48 = vsub.f32 %v1468_v12, %v392_v44  ;;  %v1514_v49 = vsub.f32 %v1470_v13, %v393_v45  ;;  %v414_v50 = vsel %vm364_vm0, %v406_v46, 0.0  ;;  %v417_v51 = vsel %vm364_vm0, %v407_v47, 0.0 }
  0xaf   : > { %436 = vadd.xlane.f32.xlu1 %v435_v42  ;;  %415 = vadd.xlane.f32.xlu0 %v414_v50 }
  0xb0   : > { %v408_v52 = vmul.f32 %v1511_v48, %v1511_v48  ;;  %v409_v53 = vmul.f32 %v1514_v49, %v1514_v49 }
  0xb2   : > { %v420_v54 = vsel %vm364_vm0, %v408_v52, 0.0  ;;  %v423_v55 = vsel %vm364_vm0, %v409_v53, 0.0 }
  0xb3   : > { %418 = vadd.xlane.f32.xlu1 %v417_v51  ;;  %421 = vadd.xlane.f32.xlu0 %v420_v54 }
  0xb7   : > { %424 = vadd.xlane.f32.xlu1 %v423_v55 }
 0x134   : > { %v428_v59 = vpop.xlane.xlu0 %427 }
 0x135   : > { %v442_v60 = vmul.f32 0.03125, %v428_v59 }
 0x137   : > { %v450_v61 = vadd.f32 1e-06, %v442_v60 }
 0x138   : > { %v431_v62 = vpop.xlane.xlu1 %430  ;;  %v434_v63 = vpop.xlane.xlu0 %433 }
 0x139   : > { %1320 = vrsqrt.f32 %v450_v61  ;;  %v443_v3 = vmul.f32 0.03125, %v431_v62  ;;  %v444_v4 = vmul.f32 0.03125, %v434_v63 }
 0x13b   : > { %v451_v6 = vadd.f32 1e-06, %v443_v3  ;;  %v452_v7 = vadd.f32 1e-06, %v444_v4 }
 0x13c   : > { %v437_v10 = vpop.xlane.xlu1 %436  ;;  %v416_v11 = vpop.xlane.xlu0 %415 }
 0x13d   : > { %1322 = vrsqrt.f32 %v451_v6  ;;  %v445_v14 = vmul.f32 0.03125, %v437_v10  ;;  %v438_v15 = vmul.f32 0.03125, %v416_v11  ;;  %v1316_v11 = vld [vmem:[%s1644_s6] sm:$0xff]  }
 0x13e   : > { %1324 = vrsqrt.f32 %v452_v7  ;;  %v1315_v7 = vld [vmem:[%s1535_s22] sm:$0xff]  }
 0x13f   : > { %v453_v16 = vadd.f32 1e-06, %v445_v14  ;;  %v446_v17 = vadd.f32 1e-06, %v438_v15  ;;  %v1317_v14 = vld [vmem:[%s1644_s6 + $0x8] sm:$0xff]  }
 0x140   : > { %v419_v18 = vpop.xlane.xlu1 %418  ;;  %v422_v19 = vpop.xlane.xlu0 %421 }
 0x141   : > { %1326 = vrsqrt.f32 %v453_v16  ;;  %v439_v22 = vmul.f32 0.03125, %v419_v18  ;;  %v440_v23 = vmul.f32 0.03125, %v422_v19 }
 0x142   : > { %1328 = vrsqrt.f32 %v446_v17 }
 0x143   : > { %v1321_v24 = vpop.eup %1320  ;;  %v447_v25 = vadd.f32 1e-06, %v439_v22  ;;  %v448_v26 = vadd.f32 1e-06, %v440_v23 }
 0x144   : > { %v425_v27 = vpop.xlane.xlu1 %424  ;;  %v466_v30 = vmul.f32 %v1321_v24, %v1477_v20  ;;  %v1174_v20 = vld [vmem:[%s1641_s3] ss:$0 sm:$0xff] }
 0x145   : > { %1330 = vrsqrt.f32 %v447_v25  ;;  %v441_v31 = vmul.f32 0.03125, %v425_v27 }
 0x146   : > { %1332 = vrsqrt.f32 %v448_v26  ;;  %v480_v37 = vmul.f32 %v1173_v32, %v466_v30 }
 0x147   : > { %v1323_v33 = vpop.eup %1322  ;;  %v449_v34 = vadd.f32 1e-06, %v441_v31 }
 0x148   : > { %v1325_v35 = vpop.eup %1324  ;;  %v467_v36 = vmul.f32 %v1323_v33, %v1487_v28  ;;  %v494_v45 = vadd.f32 %v1174_v20, %v480_v37 }
 0x149   : > { %v468_v39 = vmul.f32 %v1325_v35, %v1480_v21  ;;  %1334 = vrsqrt.f32 %v449_v34 }
 0x14a   : > { %v481_v41 = vmul.f32 %v1173_v32, %v467_v36 }
 0x14b   : > { %v1327_v42 = vpop.eup %1326  ;;  %v482_v47 = vmul.f32 %v1173_v32, %v468_v39 }
 0x14c   : > { %v1329_v43 = vpop.eup %1328  ;;  %v469_v44 = vmul.f32 %v1327_v42, %v1490_v29  ;;  %v495_v46 = vadd.f32 %v1174_v20, %v481_v41  ;;  %v1313_v29 = vld [vmem:[%s1643_s5] sm:$0xff]  }
 0x14d   : > { %v462_v50 = vmul.f32 %v1329_v43, %v1499_v38  ;;  %v496_v21 = vadd.f32 %v1174_v20, %v482_v47 }
 0x14e   : > { %v500_v51 = vpack.c.bf16 %v495_v46, %v494_v45  ;;  %v483_v28 = vmul.f32 %v1173_v32, %v469_v44 }
 0x14f   : > { %v1331_v52 = vpop.eup %1330  ;;  %v476_v56 = vmul.f32 %v1173_v32, %v462_v50 }
 0x150   : > { %v1333_v53 = vpop.eup %1332  ;;  %1244 = vmatprep.mubr.msk.bf16.mxu1 %vm364_vm0, %v500_v51  ;;  %v497_v54 = vadd.f32 %v1174_v20, %v483_v28  ;;  %v463_v55 = vmul.f32 %v1331_v52, %v1503_v40  ;;  %v1314_v40 = vld [vmem:[%s1643_s5 + $0x8] sm:$0xff]  }
 0x151   : > { %v464_v57 = vmul.f32 %v1333_v53, %v1511_v48  ;;  %v490_v62 = vadd.f32 %v1174_v20, %v476_v56 }
 0x152   : > { %v501_v59 = vpack.c.bf16 %v497_v54, %v496_v21  ;;  %v477_v60 = vmul.f32 %v1173_v32, %v463_v55 }
 0x153   : > { %v1335_v38 = vpop.eup %1334  ;;  %v478_v3 = vmul.f32 %v1173_v32, %v464_v57 }
 0x154   : > { %v465_v61 = vmul.f32 %v1335_v38, %v1514_v49  ;;  %1245 = vmatmul.mubr.msk.bf16.vlgmr.msra.gmra.mrb[0].mxu1 %vm364_vm0, %v501_v59  ;;  %v491_v63 = vadd.f32 %v1174_v20, %v477_v60 }
 0x155   : > { %1249 = vmatpush3.bf16.msra.mxu1 %v1313_v29  ;;  %1252 = vmatprep.mubr.msk.bf16.mxu1 %vm1377_vm1, %v1376_v58  ;;  %v492_v49 = vadd.f32 %v1174_v20, %v478_v3 }
 0x156   : > { %v498_v48 = vpack.c.bf16 %v491_v63, %v490_v62  ;;  %1250 = vmatprep.subr.bf16.mxu1 %v1376_v58  ;;  %v479_v4 = vmul.f32 %v1173_v32, %v465_v61 }
 0x158   : > { %1240 = vmatprep.mubr.msk.bf16.mxu0 %vm364_vm0, %v498_v48  ;;  %v493_v6 = vadd.f32 %v1174_v20, %v479_v4 }
 0x159   : > { %1251 = vmatpush3.bf16.msra.mxu1 %v1314_v40 }
 0x15a   : > { %v499_v10 = vpack.c.bf16 %v493_v6, %v492_v49  ;;  %1256 = vmatprep.subr.bf16.mxu1 %v1376_v58 }
 0x15c   : > { %1241 = vmatmul.mubr.msk.bf16.vlgmr.msra.gmra.mrb[0].mxu0 %vm364_vm0, %v499_v10  ;;  %1253 = vmatmul.mubr.msk.bf16.vlgmr.msra.gmra.mrb[4].mxu1 %vm364_vm0, %v1315_v7 }
 0x15d   : > { %1260 = vmatprep.mubr.msk.bf16.mxu1 %vm1377_vm1, %v1376_v58  ;;  %1257 = vmatpush3.bf16.msra.mxu1 %v1316_v11 }
 0x15e   : > { %1258 = vmatprep.subr.bf16.mxu1 %v1376_v58 }
 0x161   : > { %1259 = vmatpush3.bf16.msra.mxu1 %v1317_v14 }
 0x164   : > { %1261 = vmatmul.mubr.msk.bf16.vlgmr.msra.gmra.mrb[8].mxu1 %vm364_vm0, %v1315_v7 }
 0x227   : > { %v1246_v15 = vpop.f32.mrb[0].mxu1 }
 0x228   : > { %v580_v16 = vpop.f32.mrb[1].mxu1 }
 0x229   : > { %v1247_v17 = vpop.f32.mrb[2].mxu1 }
 0x22a   : > { %v722_v18 = vpack.c.bf16 %v1247_v17, %v1246_v15  ;;  %v583_v19 = vpop.f32.mrb[3].mxu1 }
 0x22b   : > { %v721_v22 = vpack.c.bf16 %v583_v19, %v580_v16 }
 0x22f   : > { %v1242_v23 = vpop.f32.mrb[0].mxu0  ;;  %v655_v24 = vpop.f32.mrb[4].mxu1 }
 0x230   : > { %v564_v25 = vpop.f32.mrb[1].mxu0  ;;  %v1254_v26 = vpop.f32.mrb[5].mxu1 }
 0x231   : > { %v1243_v27 = vpop.f32.mrb[2].mxu0  ;;  %v658_v30 = vpop.f32.mrb[6].mxu1 }
 0x232   : > { %v720_v31 = vpack.c.bf16 %v1243_v27, %v1242_v23  ;;  %v723_v32 = vpack.c.bf16 %v658_v30, %v655_v24  ;;  %v567_v33 = vpop.f32.mrb[3].mxu0  ;;  %v1255_v34 = vpop.f32.mrb[7].mxu1 }
 0x233   : > { %v719_v58 = vpack.c.bf16 %v567_v33, %v564_v25 }
 0x234   : > { %v738_v35 = vsel %vm364_vm0, %v723_v32, 0  ;;  %1300 = vmatprep.subr.msk.bf16.mxu0 %vm364_vm0, %v723_v32 }
 0x235   : > { %1265 = vmatpush3.bf16.xpose.msra.mxu0 %v738_v35  ;;  %1266 = vmatprep.mubr.msk.bf16.mxu0 %vm364_vm0, %v719_v58 }
 0x237   : > { %v712_v21 = vpop.f32.mrb[8].mxu1 }
 0x238   : > { %v1262_v54 = vpop.f32.mrb[9].mxu1 }
 0x239   : > { %v715_v55 = vpop.f32.mrb[10].mxu1 }
 0x23a   : > { %v724_v56 = vpack.c.bf16 %v715_v55, %v712_v21  ;;  %v1263_v57 = vpop.f32.mrb[11].mxu1 }
 0x23c   : > { %1267 = vmatmul.mubr.msk.bf16.vlgmr.msra.gmra.mrb[4].mxu0 %vm364_vm0, %v720_v31  ;;  %1274 = vmatprep.subr.bf16.mxu1 %v724_v56 }
 0x23d   : > { %1270 = vmatprep.mubr.msk.bf16.mxu0 %vm364_vm0, %v721_v22  ;;  %1275 = vmatpush3.bf16.msra.mxu1 %v724_v56 }
 0x244   : > { %1271 = vmatmul.mubr.msk.bf16.gmra.mrb[8].mxu0 %vm364_vm0, %v722_v18 }
 0x30f   : > { %v1268_v36 = vpop.f32.mrb[4].mxu0 }
 0x310   : > { %v774_v37 = vpop.f32.mrb[5].mxu0  ;;  %v812_v43 = vsel %vm805_vm2, %v1268_v36, -inf }
 0x311   : > { %v1269_v39 = vpop.f32.mrb[6].mxu0  ;;  %v806_v20 = vsel %vm805_vm2, %v774_v37, -inf }
 0x312   : > { %807 = vmax.xlane.f32.xlu0 %v806_v20  ;;  %v777_v41 = vpop.f32.mrb[7].mxu0  ;;  %v815_v45 = vsel %vm805_vm2, %v1269_v39, -inf }
 0x313   : > { %v809_v42 = vsel %vm805_vm2, %v777_v41, -inf }
 0x314   : > { %810 = vmax.xlane.f32.xlu1 %v809_v42 }
 0x316   : > { %813 = vmax.xlane.f32.xlu0 %v812_v43 }
 0x317   : > { %v1272_v44 = vpop.f32.mrb[8].mxu0 }
 0x318   : > { %816 = vmax.xlane.f32.xlu1 %v815_v45  ;;  %v790_v46 = vpop.f32.mrb[9].mxu0  ;;  %v824_v52 = vsel %vm805_vm2, %v1272_v44, -inf }
 0x319   : > { %v1273_v47 = vpop.f32.mrb[10].mxu0  ;;  %v818_v50 = vsel %vm805_vm2, %v790_v46, -inf }
 0x31a   : > { %819 = vmax.xlane.f32.xlu0 %v818_v50  ;;  %v793_v51 = vpop.f32.mrb[11].mxu0  ;;  %v827_v53 = vsel %vm805_vm2, %v1273_v47, -inf }
 0x31b   : > { %v821_v28 = vsel %vm805_vm2, %v793_v51, -inf }
 0x31c   : > { %822 = vmax.xlane.f32.xlu1 %v821_v28 }
 0x31e   : > { %825 = vmax.xlane.f32.xlu0 %v824_v52 }
 0x320   : > { %828 = vmax.xlane.f32.xlu1 %v827_v53 }
 0x39f   : > { %v808_v29 = vpop.xlane.xlu0 %807 }
 0x3a0   : > { %v830_v59 = vsub.f32 %v774_v37, %v808_v29 }
 0x3a1   : > { %v811_v60 = vpop.xlane.xlu1 %810 }
 0x3a2   : > { %v838_v38 = vmul.f32 1.442695, %v830_v59  ;;  %v831_v61 = vsub.f32 %v777_v41, %v811_v60 }
 0x3a3   : > { %v814_v62 = vpop.xlane.xlu0 %813 }
 0x3a4   : > { %1336 = vpow2.f32 %v838_v38  ;;  %v840_v63 = vmul.f32 1.442695, %v831_v61  ;;  %v832_v3 = vsub.f32 %v1268_v36, %v814_v62 }
 0x3a5   : > { %v817_v40 = vpop.xlane.xlu1 %816 }
 0x3a6   : > { %1338 = vpow2.f32 %v840_v63  ;;  %v842_v48 = vmul.f32 1.442695, %v832_v3  ;;  %v833_v4 = vsub.f32 %v1269_v39, %v817_v40 }
 0x3a7   : > { %v820_v49 = vpop.xlane.xlu0 %819 }
 0x3a8   : > { %1340 = vpow2.f32 %v842_v48  ;;  %v844_v6 = vmul.f32 1.442695, %v833_v4  ;;  %v834_v7 = vsub.f32 %v790_v46, %v820_v49  ;;  %v1318_v46 = vld [vmem:[%s1645_s7] sm:$0xff]  }
 0x3a9   : > { %v823_v10 = vpop.xlane.xlu1 %822  ;;  %1284 = vmatprep.subr.bf16.mxu0 %v1318_v46 }
 0x3aa   : > { %1342 = vpow2.f32 %v844_v6  ;;  %v846_v11 = vmul.f32 1.442695, %v834_v7  ;;  %v835_v14 = vsub.f32 %v793_v51, %v823_v10  ;;  %1285 = vmatpush3.bf16.msra.mxu0 %v1318_v46 }
 0x3ab   : > { %v826_v15 = vpop.xlane.xlu0 %825 }
 0x3ac   : > { %1344 = vpow2.f32 %v846_v11  ;;  %v848_v16 = vmul.f32 1.442695, %v835_v14  ;;  %v836_v17 = vsub.f32 %v1272_v44, %v826_v15 }
 0x3ad   : > { %v829_v18 = vpop.xlane.xlu1 %828 }
 0x3ae   : > { %v1337_v19 = vpop.eup %1336  ;;  %1346 = vpow2.f32 %v848_v16  ;;  %v850_v22 = vmul.f32 1.442695, %v836_v17  ;;  %v837_v23 = vsub.f32 %v1273_v47, %v829_v18  ;;  %v1319_v47 = vld [vmem:[%s1645_s7 + $0x8] sm:$0xff]  }
 0x3af   : > { %v854_v24 = vsel %vm805_vm2, %v1337_v19, 0.0  ;;  %1286 = vmatprep.subr.bf16.mxu0 %v1319_v47 }
 0x3b0   : > { %v1339_v25 = vpop.eup %1338  ;;  %1348 = vpow2.f32 %v850_v22  ;;  %v852_v26 = vmul.f32 1.442695, %v837_v23  ;;  %855 = vadd.xlane.f32.xlu0 %v854_v24  ;;  %1287 = vmatpush3.bf16.msra.mxu0 %v1319_v47 }
 0x3b1   : > { %v857_v27 = vsel %vm805_vm2, %v1339_v25, 0.0  ;;  %v886_v30 = vpack.c.bf16 %v1339_v25, %v1337_v19 }
 0x3b2   : > { %v1341_v31 = vpop.eup %1340  ;;  %1350 = vpow2.f32 %v852_v26  ;;  %858 = vadd.xlane.f32.xlu1 %v857_v27  ;;  %v1196_v26 = vld [vmem:[%s1646_s8] ss:$0 sm:$0xff] }
 0x3b3   : > { %1276 = vmatprep.mubr.msk.bf16.mxu1 %vm805_vm2, %v886_v30  ;;  %v860_v32 = vsel %vm805_vm2, %v1341_v31, 0.0 }
 0x3b4   : > { %v1343_v33 = vpop.eup %1342  ;;  %861 = vadd.xlane.f32.xlu0 %v860_v32 }
 0x3b5   : > { %v863_v34 = vsel %vm805_vm2, %v1343_v33, 0.0  ;;  %v887_v58 = vpack.c.bf16 %v1343_v33, %v1341_v31 }
 0x3b6   : > { %v1345_v35 = vpop.eup %1344  ;;  %864 = vadd.xlane.f32.xlu1 %v863_v34 }
 0x3b7   : > { %1277 = vmatmul.mubr.msk.bf16.vlgmr.msra.gmra.mrb[12].mxu1 %vm805_vm2, %v887_v58  ;;  %v866_v36 = vsel %vm805_vm2, %v1345_v35, 0.0 }
 0x3b8   : > { %v1347_v37 = vpop.eup %1346  ;;  %867 = vadd.xlane.f32.xlu0 %v866_v36 }
 0x3b9   : > { %v869_v39 = vsel %vm805_vm2, %v1347_v37, 0.0  ;;  %v888_v20 = vpack.c.bf16 %v1347_v37, %v1345_v35 }
 0x3ba   : > { %v1349_v41 = vpop.eup %1348  ;;  %870 = vadd.xlane.f32.xlu1 %v869_v39 }
 0x3bb   : > { %1280 = vmatprep.mubr.msk.bf16.mxu1 %vm805_vm2, %v888_v20  ;;  %v872_v42 = vsel %vm805_vm2, %v1349_v41, 0.0 }
 0x3bc   : > { %v1351_v43 = vpop.eup %1350  ;;  %873 = vadd.xlane.f32.xlu0 %v872_v42 }
 0x3bd   : > { %v875_v44 = vsel %vm805_vm2, %v1351_v43, 0.0  ;;  %v889_v45 = vpack.c.bf16 %v1351_v43, %v1349_v41 }
 0x3be   : > { %876 = vadd.xlane.f32.xlu1 %v875_v44 }
 0x3bf   : > { %1281 = vmatmul.mubr.msk.bf16.gmra.mrb[16].mxu1 %vm805_vm2, %v889_v45 }
 0x43d   : > { %v856_v50 = vpop.xlane.xlu0 %855 }
 0x43e   : > { %1352 = vrcp.f32 %v856_v50 }
 0x43f   : > { %v859_v51 = vpop.xlane.xlu1 %858 }
 0x441   : > { %v862_v28 = vpop.xlane.xlu0 %861 }
 0x442   : > { %1354 = vrcp.f32 %v862_v28 }
 0x443   : > { %v865_v52 = vpop.xlane.xlu1 %864 }
 0x444   : > { %1356 = vrcp.f32 %v865_v52 }
 0x445   : > { %v868_v53 = vpop.xlane.xlu0 %867  ;;  %1358 = vrcp.f32 %v859_v51 }
 0x446   : > { %1360 = vrcp.f32 %v868_v53 }
 0x447   : > { %v871_v21 = vpop.xlane.xlu1 %870 }
 0x448   : > { %v1353_v56 = vpop.eup %1352 }
 0x449   : > { %v874_v54 = vpop.xlane.xlu0 %873 }
 0x44a   : > { %1362 = vrcp.f32 %v874_v54 }
 0x44b   : > { %v877_v55 = vpop.xlane.xlu1 %876 }
 0x44c   : > { %1364 = vrcp.f32 %v877_v55  ;;  %v1355_v29 = vpop.eup %1354 }
 0x44d   : > { %1366 = vrcp.f32 %v871_v21 }
 0x44e   : > { %v1357_v60 = vpop.eup %1356 }
 0x44f   : > { %v1359_v61 = vpop.eup %1358 }
 0x450   : > { %v1361_v6 = vpop.eup %1360 }
 0x454   : > { %v1363_v10 = vpop.eup %1362 }
 0x456   : > { %v1365_v14 = vpop.eup %1364 }
 0x457   : > { %v1367_v16 = vpop.eup %1366 }
 0x48a   : > { %v1278_v57 = vpop.f32.mrb[12].mxu1 }
 0x48b   : > { %v936_v59 = vpop.f32.mrb[13].mxu1  ;;  %v969_v62 = vmul.f32 %v1355_v29, %v1278_v57 }
 0x48c   : > { %v1279_v38 = vpop.f32.mrb[14].mxu1  ;;  %v967_v40 = vmul.f32 %v1353_v56, %v936_v59 }
 0x48d   : > { %v970_v63 = vmul.f32 %v1357_v60, %v1279_v38  ;;  %v939_v3 = vpop.f32.mrb[15].mxu1 }
 0x48e   : > { %v968_v48 = vmul.f32 %v1359_v61, %v939_v3 }
 0x48f   : > { %v976_v4 = vpack.c.bf16 %v970_v63, %v969_v62 }
 0x490   : > { %v975_v49 = vpack.c.bf16 %v968_v48, %v967_v40 }
 0x492   : > { %v1282_v7 = vpop.f32.mrb[16].mxu1  ;;  %1288 = vmatprep.mubr.msk.bf16.mxu0 %vm364_vm0, %v975_v49 }
 0x493   : > { %v952_v11 = vpop.f32.mrb[17].mxu1  ;;  %1289 = vmatmul.mubr.msk.bf16.vlgmr.msra.gmra.mrb[12].mxu0 %vm364_vm0, %v976_v4  ;;  %v973_v17 = vmul.f32 %v1363_v10, %v1282_v7 }
 0x494   : > { %v1283_v15 = vpop.f32.mrb[18].mxu1  ;;  %v971_v22 = vmul.f32 %v1361_v6, %v952_v11 }
 0x495   : > { %v974_v18 = vmul.f32 %v1365_v14, %v1283_v15  ;;  %v955_v19 = vpop.f32.mrb[19].mxu1 }
 0x496   : > { %v972_v23 = vmul.f32 %v1367_v16, %v955_v19 }
 0x497   : > { %v978_v24 = vpack.c.bf16 %v974_v18, %v973_v17 }
 0x498   : > { %v977_v25 = vpack.c.bf16 %v972_v23, %v971_v22 }
 0x49a   : > { %1292 = vmatprep.mubr.msk.bf16.mxu0 %vm364_vm0, %v977_v25 }
 0x49b   : > { %1293 = vmatmul.mubr.msk.bf16.gmra.mrb[16].mxu0 %vm364_vm0, %v978_v24 }
 0x566   : > { %v1290_v27 = vpop.f32.mrb[12].mxu0 }
 0x567   : > { %v1057_v30 = vadd.f32 %v1290_v27, %v1196_v26  ;;  %v1048_v31 = vpop.f32.mrb[13].mxu0 }
 0x568   : > { %v1049_v32 = vadd.f32 %v1196_v26, %v1048_v31  ;;  %v1291_v33 = vpop.f32.mrb[14].mxu0 }
 0x569   : > { %v1081_v34 = vadd.f32 %v1057_v30, %v1468_v12  ;;  %v1060_v58 = vadd.f32 %v1291_v33, %v1196_v26  ;;  %v1051_v35 = vpop.f32.mrb[15].mxu0 }
 0x56a   : > { %v1079_v36 = vadd.f32 %v1049_v32, %v1460_v8  ;;  %v1052_v37 = vadd.f32 %v1196_v26, %v1051_v35 }
 0x56b   : > { %1089 = vst.msk [vmem:[%s352_s25 + $0x10] sm:$0xff] %vm364_vm0, %v1081_v34  ;;  %v1082_v39 = vadd.f32 %v1060_v58, %v1470_v13 }
 0x56c   : > { %1087 = vst.msk [vmem:[%s352_s25] sm:$0xff] %vm364_vm0, %v1079_v36  ;;  %v1080_v20 = vadd.f32 %v1052_v37, %v1462_v9 }
 0x56d   : > { %1090 = vst.msk [vmem:[%s352_s25 + $0x18] sm:$0xff] %vm364_vm0, %v1082_v39 }
 0x56e   : > { %1088 = vst.msk [vmem:[%s352_s25 + $0x8] sm:$0xff] %vm364_vm0, %v1080_v20  ;;  %v1294_v41 = vpop.f32.mrb[16].mxu0 }
 0x56f   : > { %v1073_v42 = vadd.f32 %v1294_v41, %v1196_v26  ;;  %v1064_v12 = vpop.f32.mrb[17].mxu0 }
 0x570   : > { %v1065_v43 = vadd.f32 %v1196_v26, %v1064_v12  ;;  %v1295_v44 = vpop.f32.mrb[18].mxu0 }
 0x571   : > { %v1085_v8 = vadd.f32 %v1073_v42, %v1446_v1  ;;  %v1076_v45 = vadd.f32 %v1295_v44, %v1196_v26  ;;  %v1067_v46 = vpop.f32.mrb[19].mxu0 }
 0x572   : > { %v1083_v47 = vadd.f32 %v1065_v43, %v1444_v0  ;;  %v1068_v13 = vadd.f32 %v1196_v26, %v1067_v46 }
 0x573   : > { %1093 = vst.msk [vmem:[%s352_s25 + $0x30] sm:$0xff] %vm364_vm0, %v1085_v8  ;;  %v1086_v9 = vadd.f32 %v1076_v45, %v1454_v5 }
 0x574   : > { %1091 = vst.msk [vmem:[%s352_s25 + $0x20] sm:$0xff] %vm364_vm0, %v1083_v47  ;;  %v1084_v50 = vadd.f32 %v1068_v13, %v1448_v2 }
 0x575   : > { %1094 = vst.msk [vmem:[%s352_s25 + $0x38] sm:$0xff] %vm364_vm0, %v1086_v9 }
 0x576   : > { %1092 = vst.msk [vmem:[%s352_s25 + $0x28] sm:$0xff] %vm364_vm0, %v1084_v50 }
 0x577 PF: > { %s19_s30 = sadd.s32 1, %s1374_s30  }
 0x578   : > { %p16_p4 = scmp.ge.s32.totalorder %s19_s30, 4  }
 0x57a   :  { %18 = sbr.rel (!%p16_p4) target bundleno = 1 (0x1), region = 89 }

// kernel: pvt_forward.36
= control target key start
LH: loop header
LB: loop body
LE: loop exit
PB: predicated region body
PF: predicated region fallthrough
CT: control target
= control target key end

     0   :  { %vm45_vm0 = vcmask 261120   ;;  %s1581_s0 = inlined_call_operand.vmem [shape: f32[128,32], index: 0, kind: input, shape index: {}]   ;;  %s1582_s3 = inlined_call_operand.vmem [shape: bf16[32,128], index: 3, kind: input, shape index: {}]   ;;  %s1583_s1 = inlined_call_operand.vmem [shape: f32[1,32], index: 1, kind: input, shape index: {}]   ;;  %s1584_s2 = inlined_call_operand.vmem [shape: f32[1,32], index: 2, kind: input, shape index: {}]   ;;  %s1585_s5 = inlined_call_operand.vmem [shape: bf16[128,32], index: 5, kind: input, shape index: {}]   ;;  %s1586_s4 = inlined_call_operand.vmem [shape: f32[1,128], index: 4, kind: input, shape index: {}]   ;;  %s1587_s6 = inlined_call_operand.vmem [shape: f32[1,32], index: 6, kind: input, shape index: {}]   ;;  %s1588_s7 = inlined_call_operand.vmem [shape: f32[128,32], index: 7, kind: output, shape index: {}]  }
   0x1   :  { %v27_v0 = vld [vmem:[%s1581_s0] sm:$0xff]  ;;  %v29_v1 = vld [vmem:[%s1581_s0 + $0x10] sm:$0xff]  ;;  %v28_v2 = vld [vmem:[%s1581_s0 + $0x8] sm:$0xff] }
   0x2   :  { %v46_v3 = vsel %vm45_vm0, %v27_v0, 0.0  ;;  %v52_v4 = vsel %vm45_vm0, %v29_v1, 0.0  ;;  %v30_v5 = vld [vmem:[%s1581_s0 + $0x18] sm:$0xff]  ;;  %v49_v6 = vsel %vm45_vm0, %v28_v2, 0.0  ;;  %v31_v8 = vld [vmem:[%s1581_s0 + $0x20] sm:$0xff]  ;;  %v32_v9 = vld [vmem:[%s1581_s0 + $0x28] sm:$0xff] }
   0x3   :  { %47 = vadd.xlane.f32.xlu0 %v46_v3  ;;  %53 = vadd.xlane.f32.xlu1 %v52_v4  ;;  %v55_v7 = vsel %vm45_vm0, %v30_v5, 0.0  ;;  %v58_v10 = vsel %vm45_vm0, %v31_v8, 0.0  ;;  %v61_v11 = vsel %vm45_vm0, %v32_v9, 0.0  ;;  %v1080_v12 = vld [vmem:[%s1581_s0 + $0x30] sm:$0xff]  ;;  %v1085_v13 = vld [vmem:[%s1581_s0 + $0x38] sm:$0xff]  ;;  %v1094_v16 = vld [vmem:[%s1581_s0 + $0x40] sm:$0xff] }
   0x4   :  { %v64_v14 = vsel %vm45_vm0, %v1080_v12, 0.0  ;;  %v67_v15 = vsel %vm45_vm0, %v1085_v13, 0.0  ;;  %v1099_v17 = vld [vmem:[%s1581_s0 + $0x48] sm:$0xff]  ;;  %v70_v18 = vsel %vm45_vm0, %v1094_v16, 0.0  ;;  %v1108_v20 = vld [vmem:[%s1581_s0 + $0x50] sm:$0xff]  ;;  %v1113_v21 = vld [vmem:[%s1581_s0 + $0x58] sm:$0xff] }
   0x5   :  { %v73_v19 = vsel %vm45_vm0, %v1099_v17, 0.0  ;;  %v76_v22 = vsel %vm45_vm0, %v1108_v20, 0.0  ;;  %v79_v23 = vsel %vm45_vm0, %v1113_v21, 0.0  ;;  %v1122_v24 = vld [vmem:[%s1581_s0 + $0x60] sm:$0xff]  ;;  %v1127_v25 = vld [vmem:[%s1581_s0 + $0x68] sm:$0xff]  ;;  %v1136_v28 = vld [vmem:[%s1581_s0 + $0x70] sm:$0xff] }
   0x6   :  { %v82_v26 = vsel %vm45_vm0, %v1122_v24, 0.0  ;;  %v85_v27 = vsel %vm45_vm0, %v1127_v25, 0.0  ;;  %v1141_v29 = vld [vmem:[%s1581_s0 + $0x78] sm:$0xff]  ;;  %v88_v30 = vsel %vm45_vm0, %v1136_v28, 0.0 }
   0x7   :  { %50 = vadd.xlane.f32.xlu0 %v49_v6  ;;  %56 = vadd.xlane.f32.xlu1 %v55_v7  ;;  %v91_v31 = vsel %vm45_vm0, %v1141_v29, 0.0 }
   0xb   :  { %59 = vadd.xlane.f32.xlu0 %v58_v10  ;;  %62 = vadd.xlane.f32.xlu1 %v61_v11 }
   0xf   :  { %65 = vadd.xlane.f32.xlu0 %v64_v14  ;;  %68 = vadd.xlane.f32.xlu1 %v67_v15 }
  0x13   :  { %71 = vadd.xlane.f32.xlu0 %v70_v18  ;;  %74 = vadd.xlane.f32.xlu1 %v73_v19 }
  0x17   :  { %77 = vadd.xlane.f32.xlu0 %v76_v22  ;;  %80 = vadd.xlane.f32.xlu1 %v79_v23 }
  0x1b   :  { %83 = vadd.xlane.f32.xlu0 %v82_v26  ;;  %86 = vadd.xlane.f32.xlu1 %v85_v27 }
  0x1f   :  { %89 = vadd.xlane.f32.xlu0 %v88_v30  ;;  %92 = vadd.xlane.f32.xlu1 %v91_v31 }
  0x90   :  { %v48_v32 = vpop.xlane.xlu0 %47  ;;  %v54_v33 = vpop.xlane.xlu1 %53 }
  0x91   :  { %v95_v34 = vmul.f32 0.03125, %v48_v32  ;;  %v97_v35 = vmul.f32 0.03125, %v54_v33 }
  0x93   :  { %v1147_v36 = vsub.f32 %v27_v0, %v95_v34  ;;  %v1149_v37 = vsub.f32 %v29_v1, %v97_v35 }
  0x94   :  { %v51_v38 = vpop.xlane.xlu0 %50  ;;  %v57_v39 = vpop.xlane.xlu1 %56 }
  0x95   :  { %v96_v40 = vmul.f32 0.03125, %v51_v38  ;;  %v98_v41 = vmul.f32 0.03125, %v57_v39  ;;  %v127_v42 = vmul.f32 %v1147_v36, %v1147_v36  ;;  %v129_v43 = vmul.f32 %v1149_v37, %v1149_v37 }
  0x97   :  { %v1155_v44 = vsub.f32 %v28_v2, %v96_v40  ;;  %v1157_v45 = vsub.f32 %v30_v5, %v98_v41  ;;  %v143_v46 = vsel %vm45_vm0, %v127_v42, 0.0  ;;  %v149_v49 = vsel %vm45_vm0, %v129_v43, 0.0 }
  0x98   :  { %144 = vadd.xlane.f32.xlu0 %v143_v46  ;;  %v60_v47 = vpop.xlane.xlu0 %59  ;;  %v63_v48 = vpop.xlane.xlu1 %62 }
  0x99   :  { %v99_v50 = vmul.f32 0.03125, %v60_v47  ;;  %v100_v51 = vmul.f32 0.03125, %v63_v48  ;;  %v128_v52 = vmul.f32 %v1155_v44, %v1155_v44  ;;  %v130_v53 = vmul.f32 %v1157_v45, %v1157_v45 }
  0x9b   :  { %v1165_v54 = vsub.f32 %v31_v8, %v99_v50  ;;  %v1167_v55 = vsub.f32 %v32_v9, %v100_v51  ;;  %v146_v56 = vsel %vm45_vm0, %v128_v52, 0.0  ;;  %v152_v59 = vsel %vm45_vm0, %v130_v53, 0.0  ;;  %v924_v53 = vld [vmem:[%s1582_s3 + $0x8] sm:$0xff]  }
  0x9c   :  { %150 = vadd.xlane.f32.xlu0 %v149_v49  ;;  %147 = vadd.xlane.f32.xlu1 %v146_v56  ;;  %v66_v57 = vpop.xlane.xlu0 %65  ;;  %v69_v58 = vpop.xlane.xlu1 %68 }
  0x9d   :  { %v101_v60 = vmul.f32 0.03125, %v66_v57  ;;  %v102_v61 = vmul.f32 0.03125, %v69_v58  ;;  %v131_v62 = vmul.f32 %v1165_v54, %v1165_v54  ;;  %v132_v63 = vmul.f32 %v1167_v55, %v1167_v55 }
  0x9f   :  { %v1176_v0 = vsub.f32 %v1080_v12, %v101_v60  ;;  %v1179_v1 = vsub.f32 %v1085_v13, %v102_v61  ;;  %v155_v2 = vsel %vm45_vm0, %v131_v62, 0.0  ;;  %v158_v5 = vsel %vm45_vm0, %v132_v63, 0.0 }
  0xa0   :  { %153 = vadd.xlane.f32.xlu1 %v152_v59  ;;  %156 = vadd.xlane.f32.xlu0 %v155_v2  ;;  %v72_v3 = vpop.xlane.xlu0 %71  ;;  %v75_v4 = vpop.xlane.xlu1 %74 }
  0xa1   :  { %v103_v6 = vmul.f32 0.03125, %v72_v3  ;;  %v104_v7 = vmul.f32 0.03125, %v75_v4  ;;  %v133_v8 = vmul.f32 %v1176_v0, %v1176_v0  ;;  %v134_v9 = vmul.f32 %v1179_v1, %v1179_v1 }
  0xa3   :  { %v1188_v10 = vsub.f32 %v1094_v16, %v103_v6  ;;  %v1191_v11 = vsub.f32 %v1099_v17, %v104_v7  ;;  %v161_v12 = vsel %vm45_vm0, %v133_v8, 0.0  ;;  %v164_v15 = vsel %vm45_vm0, %v134_v9, 0.0 }
  0xa4   :  { %159 = vadd.xlane.f32.xlu1 %v158_v5  ;;  %162 = vadd.xlane.f32.xlu0 %v161_v12  ;;  %v78_v13 = vpop.xlane.xlu0 %77  ;;  %v81_v14 = vpop.xlane.xlu1 %80 }
  0xa5   :  { %v105_v18 = vmul.f32 0.03125, %v78_v13  ;;  %v106_v19 = vmul.f32 0.03125, %v81_v14  ;;  %v135_v22 = vmul.f32 %v1188_v10, %v1188_v10  ;;  %v136_v16 = vmul.f32 %v1191_v11, %v1191_v11 }
  0xa7   :  { %v1200_v23 = vsub.f32 %v1108_v20, %v105_v18  ;;  %v1203_v17 = vsub.f32 %v1113_v21, %v106_v19  ;;  %v167_v26 = vsel %vm45_vm0, %v135_v22, 0.0  ;;  %v170_v31 = vsel %vm45_vm0, %v136_v16, 0.0 }
  0xa8   :  { %165 = vadd.xlane.f32.xlu1 %v164_v15  ;;  %168 = vadd.xlane.f32.xlu0 %v167_v26  ;;  %v84_v27 = vpop.xlane.xlu0 %83  ;;  %v87_v30 = vpop.xlane.xlu1 %86 }
  0xa9   :  { %v107_v32 = vmul.f32 0.03125, %v84_v27  ;;  %v108_v33 = vmul.f32 0.03125, %v87_v30  ;;  %v137_v34 = vmul.f32 %v1200_v23, %v1200_v23  ;;  %v138_v20 = vmul.f32 %v1203_v17, %v1203_v17 }
  0xab   :  { %v1212_v35 = vsub.f32 %v1122_v24, %v107_v32  ;;  %v1215_v21 = vsub.f32 %v1127_v25, %v108_v33  ;;  %v173_v38 = vsel %vm45_vm0, %v137_v34, 0.0  ;;  %v176_v41 = vsel %vm45_vm0, %v138_v20, 0.0 }
  0xac   :  { %171 = vadd.xlane.f32.xlu1 %v170_v31  ;;  %174 = vadd.xlane.f32.xlu0 %v173_v38  ;;  %v90_v39 = vpop.xlane.xlu0 %89  ;;  %v93_v40 = vpop.xlane.xlu1 %92  ;;  %v1247_v31 = vld [vmem:[%s1583_s1] ss:$0 sm:$0xff] }
  0xad   :  { %v109_v42 = vmul.f32 0.03125, %v90_v39  ;;  %v110_v43 = vmul.f32 0.03125, %v93_v40  ;;  %v139_v46 = vmul.f32 %v1212_v35, %v1212_v35  ;;  %v140_v24 = vmul.f32 %v1215_v21, %v1215_v21 }
  0xaf   :  { %v1224_v47 = vsub.f32 %v1136_v28, %v109_v42  ;;  %v1227_v25 = vsub.f32 %v1141_v29, %v110_v43  ;;  %v179_v48 = vsel %vm45_vm0, %v139_v46, 0.0  ;;  %v182_v49 = vsel %vm45_vm0, %v140_v24, 0.0  ;;  %v923_v29 = vld [vmem:[%s1582_s3] sm:$0xff]  }
  0xb0   :  { %177 = vadd.xlane.f32.xlu1 %v176_v41  ;;  %180 = vadd.xlane.f32.xlu0 %v179_v48  ;;  %v1255_v46 = vld [vmem:[%s1584_s2] ss:$0 sm:$0xff] }
  0xb1   :  { %v141_v50 = vmul.f32 %v1224_v47, %v1224_v47  ;;  %v142_v51 = vmul.f32 %v1227_v25, %v1227_v25  ;;  %855 = vmatprep.subr.bf16.mxu0 %v923_v29 }
  0xb2   :  { %856 = vmatpush3.bf16.msra.mxu0 %v923_v29 }
  0xb3   :  { %v185_v52 = vsel %vm45_vm0, %v141_v50, 0.0  ;;  %v188_v28 = vsel %vm45_vm0, %v142_v51, 0.0  ;;  %857 = vmatprep.subr.bf16.mxu0 %v924_v53 }
  0xb4   :  { %183 = vadd.xlane.f32.xlu1 %v182_v49  ;;  %186 = vadd.xlane.f32.xlu0 %v185_v52 }
  0xb6   :  { %858 = vmatpush3.bf16.msra.mxu0 %v924_v53 }
  0xb8   :  { %189 = vadd.xlane.f32.xlu1 %v188_v28 }
 0x125   :  { %v145_v56 = vpop.xlane.xlu0 %144 }
 0x126   :  { %v191_v57 = vmul.f32 0.03125, %v145_v56 }
 0x128   :  { %v207_v58 = vadd.f32 1e-06, %v191_v57 }
 0x129   :  { %v148_v59 = vpop.xlane.xlu1 %147  ;;  %v151_v60 = vpop.xlane.xlu0 %150 }
 0x12a   :  { %933 = vrsqrt.f32 %v207_v58  ;;  %v192_v61 = vmul.f32 0.03125, %v148_v59  ;;  %v193_v62 = vmul.f32 0.03125, %v151_v60 }
 0x12c   :  { %v208_v63 = vadd.f32 1e-06, %v192_v61  ;;  %v209_v2 = vadd.f32 1e-06, %v193_v62 }
 0x12d   :  { %v154_v3 = vpop.xlane.xlu1 %153  ;;  %v157_v4 = vpop.xlane.xlu0 %156 }
 0x12e   :  { %935 = vrsqrt.f32 %v208_v63  ;;  %v194_v5 = vmul.f32 0.03125, %v154_v3  ;;  %v195_v6 = vmul.f32 0.03125, %v157_v4 }
 0x12f   :  { %937 = vrsqrt.f32 %v209_v2 }
 0x130   :  { %v210_v7 = vadd.f32 1e-06, %v194_v5  ;;  %v211_v8 = vadd.f32 1e-06, %v195_v6 }
 0x131   :  { %v160_v9 = vpop.xlane.xlu1 %159  ;;  %v163_v12 = vpop.xlane.xlu0 %162 }
 0x132   :  { %939 = vrsqrt.f32 %v210_v7  ;;  %v196_v13 = vmul.f32 0.03125, %v160_v9  ;;  %v197_v14 = vmul.f32 0.03125, %v163_v12 }
 0x133   :  { %941 = vrsqrt.f32 %v211_v8 }
 0x134   :  { %v934_v15 = vpop.eup %933  ;;  %v212_v18 = vadd.f32 1e-06, %v196_v13  ;;  %v213_v19 = vadd.f32 1e-06, %v197_v14 }
 0x135   :  { %v166_v22 = vpop.xlane.xlu1 %165  ;;  %v169_v16 = vpop.xlane.xlu0 %168  ;;  %v239_v26 = vmul.f32 %v934_v15, %v1147_v36 }
 0x136   :  { %943 = vrsqrt.f32 %v212_v18  ;;  %v198_v27 = vmul.f32 0.03125, %v166_v22  ;;  %v199_v30 = vmul.f32 0.03125, %v169_v16 }
 0x137   :  { %945 = vrsqrt.f32 %v213_v19  ;;  %v261_v41 = vmul.f32 %v1247_v31, %v239_v26 }
 0x138   :  { %v936_v32 = vpop.eup %935  ;;  %v214_v33 = vadd.f32 1e-06, %v198_v27  ;;  %v215_v34 = vadd.f32 1e-06, %v199_v30 }
 0x139   :  { %v938_v20 = vpop.eup %937  ;;  %v172_v38 = vpop.xlane.xlu1 %171  ;;  %v240_v40 = vmul.f32 %v936_v32, %v1155_v44 }
 0x13a   :  { %v175_v39 = vpop.xlane.xlu0 %174  ;;  %v241_v36 = vmul.f32 %v938_v20, %v1149_v37  ;;  %947 = vrsqrt.f32 %v214_v33  ;;  %v200_v42 = vmul.f32 0.03125, %v172_v38  ;;  %v283_v37 = vadd.f32 %v1255_v46, %v261_v41 }
 0x13b   :  { %v201_v43 = vmul.f32 0.03125, %v175_v39  ;;  %949 = vrsqrt.f32 %v215_v34  ;;  %v262_v24 = vmul.f32 %v1247_v31, %v240_v40 }
 0x13c   :  { %v940_v48 = vpop.eup %939  ;;  %v216_v49 = vadd.f32 1e-06, %v200_v42  ;;  %v263_v53 = vmul.f32 %v1247_v31, %v241_v36 }
 0x13d   :  { %v217_v50 = vadd.f32 1e-06, %v201_v43  ;;  %v942_v51 = vpop.eup %941  ;;  %v242_v44 = vmul.f32 %v940_v48, %v1157_v45  ;;  %v178_v52 = vpop.xlane.xlu1 %177  ;;  %v284_v29 = vadd.f32 %v1255_v46, %v262_v24 }
 0x13e   :  { %v181_v28 = vpop.xlane.xlu0 %180  ;;  %v243_v56 = vmul.f32 %v942_v51, %v1165_v54  ;;  %951 = vrsqrt.f32 %v216_v49  ;;  %v202_v57 = vmul.f32 0.03125, %v178_v52  ;;  %v285_v5 = vadd.f32 %v1255_v46, %v263_v53 }
 0x13f   :  { %v203_v58 = vmul.f32 0.03125, %v181_v28  ;;  %953 = vrsqrt.f32 %v217_v50  ;;  %v299_v59 = vpack.c.bf16 %v284_v29, %v283_v37  ;;  %v264_v60 = vmul.f32 %v1247_v31, %v242_v44 }
 0x140   :  { %v944_v61 = vpop.eup %943  ;;  %v218_v62 = vadd.f32 1e-06, %v202_v57  ;;  %v265_v6 = vmul.f32 %v1247_v31, %v243_v56 }
 0x141   :  { %v219_v45 = vadd.f32 1e-06, %v203_v58  ;;  %v946_v63 = vpop.eup %945  ;;  %v244_v2 = vmul.f32 %v944_v61, %v1167_v55  ;;  %v184_v3 = vpop.xlane.xlu1 %183  ;;  %859 = vmatprep.mubr.msk.bf16.mxu0 %vm45_vm0, %v299_v59  ;;  %v286_v54 = vadd.f32 %v1255_v46, %v264_v60 }
 0x142   :  { %v187_v4 = vpop.xlane.xlu0 %186  ;;  %v245_v7 = vmul.f32 %v946_v63, %v1176_v0  ;;  %955 = vrsqrt.f32 %v218_v62  ;;  %v204_v8 = vmul.f32 0.03125, %v184_v3  ;;  %v287_v16 = vadd.f32 %v1255_v46, %v265_v6  ;;  %v928_v3 = vld [vmem:[%s1585_s5 + $0x18] sm:$0xff]  }
 0x143   :  { %v205_v9 = vmul.f32 0.03125, %v187_v4  ;;  %957 = vrsqrt.f32 %v219_v45  ;;  %v300_v12 = vpack.c.bf16 %v286_v54, %v285_v5  ;;  %v266_v13 = vmul.f32 %v1247_v31, %v244_v2  ;;  %v929_v4 = vld [vmem:[%s1585_s5 + $0x20] sm:$0xff]   ;;  %v930_v5 = vld [vmem:[%s1585_s5 + $0x28] sm:$0xff]   ;;  %v931_v54 = vld [vmem:[%s1585_s5 + $0x30] sm:$0xff]  }
 0x144   :  { %v948_v55 = vpop.eup %947  ;;  %v220_v14 = vadd.f32 1e-06, %v204_v8  ;;  %v267_v26 = vmul.f32 %v1247_v31, %v245_v7  ;;  %v932_v6 = vld [vmem:[%s1585_s5 + $0x38] sm:$0xff]   ;;  %v1336_v7 = vld [vmem:[%s1586_s4] ss:$0 sm:$0xff] }
 0x145   :  { %v221_v15 = vadd.f32 1e-06, %v205_v9  ;;  %v950_v18 = vpop.eup %949  ;;  %v246_v19 = vmul.f32 %v948_v55, %v1179_v1  ;;  %v190_v22 = vpop.xlane.xlu1 %189  ;;  %860 = vmatmul.mubr.msk.bf16.vlgmr.msra.gmra.mrb[0].mxu0 %vm45_vm0, %v300_v12  ;;  %v288_v0 = vadd.f32 %v1255_v46, %v266_v13 }
 0x146   :  { %v247_v27 = vmul.f32 %v950_v18, %v1188_v10  ;;  %959 = vrsqrt.f32 %v220_v14  ;;  %v206_v30 = vmul.f32 0.03125, %v190_v22  ;;  %v289_v39 = vadd.f32 %v1255_v46, %v267_v26 }
 0x147   :  { %961 = vrsqrt.f32 %v221_v15  ;;  %v301_v32 = vpack.c.bf16 %v288_v0, %v287_v16  ;;  %v268_v33 = vmul.f32 %v1247_v31, %v246_v19 }
 0x148   :  { %v952_v34 = vpop.eup %951  ;;  %v222_v20 = vadd.f32 1e-06, %v206_v30  ;;  %v269_v41 = vmul.f32 %v1247_v31, %v247_v27 }
 0x149   :  { %v954_v1 = vpop.eup %953  ;;  %v248_v38 = vmul.f32 %v952_v34, %v1191_v11  ;;  %863 = vmatprep.mubr.msk.bf16.mxu0 %vm45_vm0, %v301_v32  ;;  %v290_v40 = vadd.f32 %v1255_v46, %v268_v33 }
 0x14a   :  { %v249_v10 = vmul.f32 %v954_v1, %v1200_v23  ;;  %963 = vrsqrt.f32 %v222_v20  ;;  %v291_v11 = vadd.f32 %v1255_v46, %v269_v41 }
 0x14b   :  { %v302_v36 = vpack.c.bf16 %v290_v40, %v289_v39  ;;  %v270_v42 = vmul.f32 %v1247_v31, %v248_v38 }
 0x14c   :  { %v956_v43 = vpop.eup %955  ;;  %v271_v50 = vmul.f32 %v1247_v31, %v249_v10 }
 0x14d   :  { %v958_v24 = vpop.eup %957  ;;  %v250_v48 = vmul.f32 %v956_v43, %v1203_v17  ;;  %864 = vmatmul.mubr.msk.bf16.gmra.mrb[4].mxu0 %vm45_vm0, %v302_v36  ;;  %v292_v49 = vadd.f32 %v1255_v46, %v270_v42 }
 0x14e   :  { %v251_v51 = vmul.f32 %v958_v24, %v1212_v35  ;;  %v293_v17 = vadd.f32 %v1255_v46, %v271_v50 }
 0x14f   :  { %v303_v44 = vpack.c.bf16 %v292_v49, %v291_v11  ;;  %v272_v23 = vmul.f32 %v1247_v31, %v250_v48 }
 0x150   :  { %v960_v52 = vpop.eup %959  ;;  %v273_v53 = vmul.f32 %v1247_v31, %v251_v51 }
 0x151   :  { %v962_v28 = vpop.eup %961  ;;  %v252_v37 = vmul.f32 %v960_v52, %v1215_v21  ;;  %867 = vmatprep.mubr.msk.bf16.mxu0 %vm45_vm0, %v303_v44  ;;  %v294_v29 = vadd.f32 %v1255_v46, %v272_v23 }
 0x152   :  { %v253_v56 = vmul.f32 %v962_v28, %v1224_v47  ;;  %v295_v21 = vadd.f32 %v1255_v46, %v273_v53 }
 0x153   :  { %v304_v57 = vpack.c.bf16 %v294_v29, %v293_v17  ;;  %v274_v35 = vmul.f32 %v1247_v31, %v252_v37 }
 0x154   :  { %v964_v58 = vpop.eup %963  ;;  %v275_v61 = vmul.f32 %v1247_v31, %v253_v56 }
 0x155   :  { %v254_v59 = vmul.f32 %v964_v58, %v1227_v25  ;;  %868 = vmatmul.mubr.msk.bf16.gmra.mrb[8].mxu0 %vm45_vm0, %v304_v57  ;;  %v296_v60 = vadd.f32 %v1255_v46, %v274_v35  ;;  %v925_v25 = vld [vmem:[%s1585_s5] sm:$0xff]  }
 0x156   :  { %v297_v47 = vadd.f32 %v1255_v46, %v275_v61  ;;  %875 = vmatprep.subr.bf16.mxu0 %v925_v25  ;;  %907 = vmatprep.subr.bf16.mxu1 %v925_v25 }
 0x157   :  { %v305_v62 = vpack.c.bf16 %v296_v60, %v295_v21  ;;  %v276_v45 = vmul.f32 %v1247_v31, %v254_v59  ;;  %876 = vmatpush3.bf16.msra.mxu0 %v925_v25  ;;  %915 = vmatpush3.bf16.msra.mxu1 %v925_v25  ;;  %v926_v31 = vld [vmem:[%s1585_s5 + $0x8] sm:$0xff]  }
 0x158   :  { %877 = vmatprep.subr.bf16.mxu0 %v926_v31  ;;  %908 = vmatprep.subr.bf16.mxu1 %v926_v31 }
 0x159   :  { %871 = vmatprep.mubr.msk.bf16.mxu0 %vm45_vm0, %v305_v62  ;;  %v298_v63 = vadd.f32 %v1255_v46, %v276_v45  ;;  %v927_v46 = vld [vmem:[%s1585_s5 + $0x10] sm:$0xff]  }
 0x15b   :  { %v306_v2 = vpack.c.bf16 %v298_v63, %v297_v47  ;;  %878 = vmatpush3.bf16.msra.mxu0 %v926_v31  ;;  %916 = vmatpush3.bf16.msra.mxu1 %v926_v31 }
 0x15c   :  { %879 = vmatprep.subr.bf16.mxu0 %v927_v46  ;;  %909 = vmatprep.subr.bf16.mxu1 %v927_v46 }
 0x15d   :  { %872 = vmatmul.mubr.msk.bf16.gmra.mrb[12].mxu0 %vm45_vm0, %v306_v2 }
 0x15f   :  { %880 = vmatpush3.bf16.msra.mxu0 %v927_v46  ;;  %917 = vmatpush3.bf16.msra.mxu1 %v927_v46 }
 0x160   :  { %881 = vmatprep.subr.bf16.mxu0 %v928_v3  ;;  %910 = vmatprep.subr.bf16.mxu1 %v928_v3 }
 0x163   :  { %882 = vmatpush3.bf16.msra.mxu0 %v928_v3  ;;  %918 = vmatpush3.bf16.msra.mxu1 %v928_v3 }
 0x164   :  { %883 = vmatprep.subr.bf16.mxu0 %v929_v4  ;;  %911 = vmatprep.subr.bf16.mxu1 %v929_v4 }
 0x167   :  { %884 = vmatpush3.bf16.msra.mxu0 %v929_v4  ;;  %919 = vmatpush3.bf16.msra.mxu1 %v929_v4 }
 0x168   :  { %885 = vmatprep.subr.bf16.mxu0 %v930_v5  ;;  %912 = vmatprep.subr.bf16.mxu1 %v930_v5 }
 0x16b   :  { %886 = vmatpush3.bf16.msra.mxu0 %v930_v5  ;;  %920 = vmatpush3.bf16.msra.mxu1 %v930_v5 }
 0x16c   :  { %887 = vmatprep.subr.bf16.mxu0 %v931_v54  ;;  %913 = vmatprep.subr.bf16.mxu1 %v931_v54 }
 0x16f   :  { %888 = vmatpush3.bf16.msra.mxu0 %v931_v54  ;;  %921 = vmatpush3.bf16.msra.mxu1 %v931_v54 }
 0x170   :  { %889 = vmatprep.subr.bf16.mxu0 %v932_v6  ;;  %914 = vmatprep.subr.bf16.mxu1 %v932_v6 }
 0x173   :  { %890 = vmatpush3.bf16.msra.mxu0 %v932_v6  ;;  %922 = vmatpush3.bf16.msra.mxu1 %v932_v6 }
 0x218   :  { %v861_v8 = vpop.f32.mrb[0].mxu0 }
 0x219   :  { %v397_v9 = vadd.f32 %v861_v8, %v1336_v7  ;;  %v388_v12 = vpop.f32.mrb[1].mxu0 }
 0x21a   :  { %v389_v13 = vadd.f32 %v1336_v7, %v388_v12  ;;  %v862_v55 = vpop.f32.mrb[2].mxu0 }
 0x21b   :  { %v469_v14 = vmul.f32 0.044715, %v397_v9  ;;  %v1341_v15 = vadd.f32 %v862_v55, %v1336_v7  ;;  %v391_v18 = vpop.f32.mrb[3].mxu0  ;;  %v453_v59 = vmul.f32 0.5, %v397_v9 }
 0x21c   :  { %v467_v19 = vmul.f32 0.044715, %v389_v13  ;;  %v1344_v22 = vadd.f32 %v1336_v7, %v391_v18  ;;  %v451_v63 = vmul.f32 0.5, %v389_v13 }
 0x21d   :  { %v485_v16 = vmul.f32 %v469_v14, %v397_v9  ;;  %v470_v0 = vmul.f32 0.044715, %v1341_v15 }
 0x21e   :  { %v483_v26 = vmul.f32 %v467_v19, %v389_v13  ;;  %v468_v27 = vmul.f32 0.044715, %v1344_v22 }
 0x21f   :  { %v501_v30 = vmul.f32 %v485_v16, %v397_v9  ;;  %v486_v32 = vmul.f32 %v470_v0, %v1341_v15 }
 0x220   :  { %v499_v33 = vmul.f32 %v483_v26, %v389_v13  ;;  %v484_v34 = vmul.f32 %v468_v27, %v1344_v22  ;;  %v865_v20 = vpop.f32.mrb[4].mxu0  ;;  %v454_v26 = vmul.f32 0.5, %v1341_v15  ;;  %v452_v27 = vmul.f32 0.5, %v1344_v22 }
 0x221   :  { %v517_v1 = vadd.f32 %v501_v30, %v397_v9  ;;  %v502_v38 = vmul.f32 %v486_v32, %v1341_v15  ;;  %v1352_v39 = vadd.f32 %v865_v20, %v1336_v7  ;;  %v404_v40 = vpop.f32.mrb[5].mxu0 }
 0x222   :  { %v500_v41 = vmul.f32 %v484_v34, %v1344_v22  ;;  %v405_v10 = vadd.f32 %v1336_v7, %v404_v40  ;;  %v866_v36 = vpop.f32.mrb[6].mxu0  ;;  %v515_v42 = vadd.f32 %v499_v33, %v389_v13 }
 0x223   :  { %v533_v43 = vmul.f32 0.7978846, %v517_v1  ;;  %v518_v24 = vadd.f32 %v502_v38, %v1341_v15  ;;  %v473_v48 = vmul.f32 0.044715, %v1352_v39  ;;  %v1359_v11 = vadd.f32 %v866_v36, %v1336_v7  ;;  %v407_v49 = vpop.f32.mrb[7].mxu0 }
 0x224   :  { %v471_v50 = vmul.f32 0.044715, %v405_v10  ;;  %v1362_v51 = vadd.f32 %v1336_v7, %v407_v49  ;;  %v516_v44 = vadd.f32 %v500_v41, %v1344_v22  ;;  %v531_v23 = vmul.f32 0.7978846, %v515_v42 }
 0x225   :  { %965 = vtanh.f32 %v533_v43  ;;  %v534_v52 = vmul.f32 0.7978846, %v518_v24  ;;  %v489_v28 = vmul.f32 %v473_v48, %v1352_v39  ;;  %v474_v37 = vmul.f32 0.044715, %v1359_v11 }
 0x226   :  { %v472_v17 = vmul.f32 0.044715, %v1362_v51  ;;  %v532_v29 = vmul.f32 0.7978846, %v516_v44  ;;  %967 = vtanh.f32 %v531_v23  ;;  %v487_v35 = vmul.f32 %v471_v50, %v405_v10 }
 0x227   :  { %969 = vtanh.f32 %v534_v52  ;;  %v505_v53 = vmul.f32 %v489_v28, %v1352_v39  ;;  %v490_v56 = vmul.f32 %v474_v37, %v1359_v11  ;;  %v1396_v30 = vmul.f32 0.5, %v405_v10 }
 0x228   :  { %v869_v57 = vpop.f32.mrb[8].mxu0  ;;  %971 = vtanh.f32 %v532_v29  ;;  %v488_v58 = vmul.f32 %v472_v17, %v1362_v51  ;;  %v503_v2 = vmul.f32 %v487_v35, %v405_v10 }
 0x229   :  { %v506_v21 = vmul.f32 %v490_v56, %v1359_v11  ;;  %v1373_v60 = vadd.f32 %v869_v57, %v1336_v7  ;;  %v420_v61 = vpop.f32.mrb[9].mxu0  ;;  %v521_v62 = vadd.f32 %v505_v53, %v1352_v39 }
 0x22a   :  { %v1377_v45 = vadd.f32 %v1336_v7, %v420_v61  ;;  %v870_v47 = vpop.f32.mrb[10].mxu0  ;;  %v504_v25 = vmul.f32 %v488_v58, %v1362_v51  ;;  %v519_v8 = vadd.f32 %v503_v2, %v405_v10 }
 0x22b   :  { %v477_v31 = vmul.f32 0.044715, %v1373_v60  ;;  %v1382_v46 = vadd.f32 %v870_v47, %v1336_v7  ;;  %v423_v3 = vpop.f32.mrb[11].mxu0  ;;  %v522_v4 = vadd.f32 %v506_v21, %v1359_v11  ;;  %v537_v5 = vmul.f32 0.7978846, %v521_v62 }
 0x22c   :  { %v475_v54 = vmul.f32 0.044715, %v1377_v45  ;;  %v1387_v6 = vadd.f32 %v1336_v7, %v423_v3  ;;  %v520_v9 = vadd.f32 %v504_v25, %v1362_v51  ;;  %v535_v19 = vmul.f32 0.7978846, %v519_v8 }
 0x22d   :  { %v493_v12 = vmul.f32 %v477_v31, %v1373_v60  ;;  %v478_v13 = vmul.f32 0.044715, %v1382_v46  ;;  %v538_v55 = vmul.f32 0.7978846, %v522_v4  ;;  %973 = vtanh.f32 %v537_v5 }
 0x22e   :  { %v491_v14 = vmul.f32 %v475_v54, %v1377_v45  ;;  %v476_v18 = vmul.f32 0.044715, %v1387_v6  ;;  %v536_v16 = vmul.f32 0.7978846, %v520_v9  ;;  %v456_v54 = vmul.f32 0.5, %v1362_v51 }
 0x22f   :  { %v966_v0 = vpop.eup %965  ;;  %975 = vtanh.f32 %v538_v55  ;;  %v509_v33 = vmul.f32 %v493_v12, %v1373_v60  ;;  %v494_v10 = vmul.f32 %v478_v13, %v1382_v46  ;;  %v457_v8 = vmul.f32 0.5, %v1352_v39 }
 0x230   :  { %v968_v32 = vpop.eup %967  ;;  %v492_v34 = vmul.f32 %v476_v18, %v1387_v6  ;;  %v873_v20 = vpop.f32.mrb[12].mxu0  ;;  %v565_v1 = vadd.f32 1.0, %v966_v0  ;;  %977 = vtanh.f32 %v535_v19  ;;  %v507_v40 = vmul.f32 %v491_v14, %v1377_v45 }
 0x231   :  { %v970_v38 = vpop.eup %969  ;;  %v1402_v41 = vadd.f32 %v873_v20, %v1336_v7  ;;  %v436_v15 = vpop.f32.mrb[13].mxu0  ;;  %v563_v36 = vadd.f32 1.0, %v968_v32  ;;  %979 = vtanh.f32 %v536_v16  ;;  %v458_v9 = vmul.f32 0.5, %v1359_v11 }
 0x232   :  { %v972_v22 = vpop.eup %971  ;;  %v508_v42 = vmul.f32 %v492_v34, %v1387_v6  ;;  %v1407_v43 = vadd.f32 %v1336_v7, %v436_v15  ;;  %v874_v24 = vpop.f32.mrb[14].mxu0  ;;  %v566_v48 = vadd.f32 1.0, %v970_v38  ;;  %v581_v52 = vmul.f32 %v565_v1, %v453_v59 }
 0x233   :  { %v481_v49 = vmul.f32 0.044715, %v1402_v41  ;;  %v1411_v50 = vadd.f32 %v874_v24, %v1336_v7  ;;  %v439_v44 = vpop.f32.mrb[15].mxu0  ;;  %v564_v23 = vadd.f32 1.0, %v972_v22  ;;  %v579_v17 = vmul.f32 %v563_v36, %v451_v63 }
 0x234   :  { %v479_v28 = vmul.f32 0.044715, %v1407_v43  ;;  %v1415_v37 = vadd.f32 %v1336_v7, %v439_v44  ;;  %v582_v29 = vmul.f32 %v566_v48, %v454_v26  ;;  %v523_v35 = vadd.f32 %v507_v40, %v1377_v45 }
 0x235   :  { %v497_v53 = vmul.f32 %v481_v49, %v1402_v41  ;;  %v482_v56 = vmul.f32 0.044715, %v1411_v50  ;;  %v580_v57 = vmul.f32 %v564_v23, %v452_v27  ;;  %v524_v59 = vadd.f32 %v508_v42, %v1387_v6 }
 0x236   :  { %v495_v58 = vmul.f32 %v479_v28, %v1407_v43  ;;  %v480_v21 = vmul.f32 0.044715, %v1415_v37  ;;  %v596_v61 = vpack.c.bf16 %v582_v29, %v581_v52  ;;  %v510_v7 = vmul.f32 %v494_v10, %v1382_v46 }
 0x237   :  { %v974_v62 = vpop.eup %973  ;;  %v498_v47 = vmul.f32 %v482_v56, %v1411_v50  ;;  %v595_v63 = vpack.c.bf16 %v580_v57, %v579_v17  ;;  %v539_v2 = vmul.f32 0.7978846, %v523_v35  ;;  %v540_v4 = vmul.f32 0.7978846, %v524_v59 }
 0x238   :  { %v511_v25 = vmul.f32 %v495_v58, %v1407_v43  ;;  %v496_v31 = vmul.f32 %v480_v21, %v1415_v37  ;;  %v569_v3 = vadd.f32 1.0, %v974_v62  ;;  %v513_v13 = vmul.f32 %v497_v53, %v1402_v41 }
 0x239   :  { %v976_v5 = vpop.eup %975  ;;  %891 = vmatprep.mubr.bf16.mxu0 %v595_v63  ;;  %981 = vtanh.f32 %v539_v2  ;;  %v514_v19 = vmul.f32 %v498_v47, %v1411_v50  ;;  %v525_v0 = vadd.f32 %v509_v33, %v1373_v60  ;;  %v526_v51 = vadd.f32 %v510_v7, %v1382_v46 }
 0x23a   :  { %v978_v12 = vpop.eup %977  ;;  %v512_v55 = vmul.f32 %v496_v31, %v1415_v37  ;;  %892 = vmatmul.mubr.bf16.vlgmr.msra.gmra.mrb[16].mxu0 %v596_v61  ;;  %v570_v14 = vadd.f32 1.0, %v976_v5  ;;  %983 = vtanh.f32 %v540_v4  ;;  %v585_v26 = vmul.f32 %v569_v3, %v457_v8 }
 0x23b   :  { %v980_v18 = vpop.eup %979  ;;  %v567_v16 = vadd.f32 1.0, %v978_v12  ;;  %v527_v27 = vadd.f32 %v511_v25, %v1407_v43  ;;  %v541_v32 = vmul.f32 0.7978846, %v525_v0  ;;  %v542_v34 = vmul.f32 0.7978846, %v526_v51  ;;  %v998_v51 = vld [vmem:[%s1581_s0] sm:$0xff] }
 0x23c   :  { %v568_v39 = vadd.f32 1.0, %v980_v18  ;;  %v586_v11 = vmul.f32 %v570_v14, %v458_v9  ;;  %v528_v20 = vadd.f32 %v512_v55, %v1415_v37  ;;  %v529_v33 = vadd.f32 %v513_v13, %v1402_v41  ;;  %v997_v18 = vld [vmem:[%s1581_s0 + $0x10] sm:$0xff] }
 0x23d   :  { %v583_v1 = vmul.f32 %v567_v16, %v1396_v30  ;;  %v543_v15 = vmul.f32 0.7978846, %v527_v27  ;;  %985 = vtanh.f32 %v541_v32  ;;  %v530_v10 = vadd.f32 %v514_v19, %v1411_v50  ;;  %v1000_v32 = vld [vmem:[%s1581_s0 + $0x8] sm:$0xff] }
 0x23e   :  { %v584_v38 = vmul.f32 %v568_v39, %v456_v54  ;;  %v598_v40 = vpack.c.bf16 %v586_v11, %v585_v26  ;;  %v544_v36 = vmul.f32 0.7978846, %v528_v20  ;;  %987 = vtanh.f32 %v542_v34  ;;  %v999_v11 = vld [vmem:[%s1581_s0 + $0x18] sm:$0xff] }
 0x23f   :  { %989 = vtanh.f32 %v543_v15  ;;  %v545_v42 = vmul.f32 0.7978846, %v529_v33  ;;  %v546_v24 = vmul.f32 0.7978846, %v530_v10  ;;  %v459_v44 = vmul.f32 0.5, %v1377_v45 }
 0x240   :  { %v597_v22 = vpack.c.bf16 %v584_v38, %v583_v1  ;;  %991 = vtanh.f32 %v544_v36  ;;  %v460_v23 = vmul.f32 0.5, %v1387_v6  ;;  %v461_v58 = vmul.f32 0.5, %v1373_v60  ;;  %v1001_v36 = vld [vmem:[%s1581_s0 + $0x30] sm:$0xff] }
 0x241   :  { %993 = vtanh.f32 %v545_v42  ;;  %v462_v21 = vmul.f32 0.5, %v1382_v46  ;;  %v463_v62 = vmul.f32 0.5, %v1407_v43  ;;  %v464_v63 = vmul.f32 0.5, %v1415_v37  ;;  %v1451_v37 = vld [vmem:[%s1587_s6] ss:$0 sm:$0xff] }
 0x242   :  { %895 = vmatprep.mubr.bf16.mxu1 %v597_v22  ;;  %995 = vtanh.f32 %v546_v24  ;;  %v465_v31 = vmul.f32 0.5, %v1402_v41  ;;  %v466_v3 = vmul.f32 0.5, %v1411_v50  ;;  %v1002_v42 = vld [vmem:[%s1581_s0 + $0x20] sm:$0xff] }
 0x243   :  { %v982_v48 = vpop.eup %981  ;;  %896 = vmatmul.mubr.bf16.vlgmr.msra.gmra.mrb[0].mxu1 %v598_v40 }
 0x244   :  { %v984_v30 = vpop.eup %983  ;;  %v571_v49 = vadd.f32 1.0, %v982_v48 }
 0x245   :  { %v572_v52 = vadd.f32 1.0, %v984_v30  ;;  %v1003_v30 = vld [vmem:[%s1581_s0 + $0x38] sm:$0xff] }
 0x246   :  { %v587_v28 = vmul.f32 %v571_v49, %v459_v44  ;;  %v1004_v44 = vld [vmem:[%s1581_s0 + $0x28] sm:$0xff] }
 0x247   :  { %v588_v17 = vmul.f32 %v572_v52, %v460_v23  ;;  %v986_v29 = vpop.eup %985 }
 0x248   :  { %v988_v56 = vpop.eup %987  ;;  %v573_v57 = vadd.f32 1.0, %v986_v29 }
 0x249   :  { %v599_v53 = vpack.c.bf16 %v588_v17, %v587_v28  ;;  %v990_v35 = vpop.eup %989  ;;  %v574_v61 = vadd.f32 1.0, %v988_v56  ;;  %v1005_v56 = vld [vmem:[%s1581_s0 + $0x50] sm:$0xff] }
 0x24a   :  { %v992_v59 = vpop.eup %991  ;;  %v575_v45 = vadd.f32 1.0, %v990_v35  ;;  %v589_v6 = vmul.f32 %v573_v57, %v461_v58 }
 0x24b   :  { %899 = vmatprep.mubr.bf16.mxu1 %v599_v53  ;;  %v994_v7 = vpop.eup %993  ;;  %v590_v47 = vmul.f32 %v574_v61, %v462_v21  ;;  %v576_v2 = vadd.f32 1.0, %v992_v59  ;;  %v1006_v21 = vld [vmem:[%s1581_s0 + $0x40] sm:$0xff] }
 0x24c   :  { %v996_v25 = vpop.eup %995  ;;  %v577_v4 = vadd.f32 1.0, %v994_v7  ;;  %v591_v5 = vmul.f32 %v575_v45, %v463_v62  ;;  %v1007_v62 = vld [vmem:[%s1581_s0 + $0x58] sm:$0xff]  ;;  %v1008_v7 = vld [vmem:[%s1581_s0 + $0x48] sm:$0xff] }
 0x24d   :  { %v600_v60 = vpack.c.bf16 %v590_v47, %v589_v6  ;;  %v592_v46 = vmul.f32 %v576_v2, %v464_v63  ;;  %v578_v54 = vadd.f32 1.0, %v996_v25 }
 0x24e   :  { %v593_v43 = vmul.f32 %v577_v4, %v465_v31 }
 0x24f   :  { %900 = vmatmul.mubr.bf16.gmra.mrb[4].mxu1 %v600_v60  ;;  %v601_v8 = vpack.c.bf16 %v592_v46, %v591_v5  ;;  %v594_v9 = vmul.f32 %v578_v54, %v466_v3  ;;  %v1009_v3 = vld [vmem:[%s1581_s0 + $0x70] sm:$0xff]  ;;  %v1010_v46 = vld [vmem:[%s1581_s0 + $0x60] sm:$0xff] }
 0x251   :  { %903 = vmatprep.mubr.bf16.mxu1 %v601_v8  ;;  %v602_v12 = vpack.c.bf16 %v594_v9, %v593_v43  ;;  %v1011_v43 = vld [vmem:[%s1581_s0 + $0x78] sm:$0xff] }
 0x257   :  { %904 = vmatmul.mubr.bf16.gmra.mrb[8].mxu1 %v602_v12  ;;  %v1012_v12 = vld [vmem:[%s1581_s0 + $0x68] sm:$0xff] }
 0x30d   :  { %v893_v41 = vpop.f32.mrb[16].mxu0 }
 0x30e   :  { %v717_v50 = vadd.f32 %v893_v41, %v1451_v37  ;;  %v708_v13 = vpop.f32.mrb[17].mxu0 }
 0x30f   :  { %v709_v55 = vadd.f32 %v1451_v37, %v708_v13  ;;  %v894_v14 = vpop.f32.mrb[18].mxu0 }
 0x310   :  { %v773_v19 = vadd.f32 %v997_v18, %v717_v50  ;;  %v720_v16 = vadd.f32 %v894_v14, %v1451_v37  ;;  %v711_v0 = vpop.f32.mrb[19].mxu0 }
 0x311   :  { %v771_v39 = vadd.f32 %v998_v51, %v709_v55  ;;  %v712_v26 = vadd.f32 %v1451_v37, %v711_v0 }
 0x312   :  { %789 = vst.msk [vmem:[%s1588_s7 + $0x10] sm:$0xff] %vm45_vm0, %v773_v19  ;;  %v774_v27 = vadd.f32 %v999_v11, %v720_v16 }
 0x313   :  { %787 = vst.msk [vmem:[%s1588_s7] sm:$0xff] %vm45_vm0, %v771_v39  ;;  %v772_v34 = vadd.f32 %v1000_v32, %v712_v26 }
 0x314   :  { %790 = vst.msk [vmem:[%s1588_s7 + $0x18] sm:$0xff] %vm45_vm0, %v774_v27 }
 0x315   :  { %788 = vst.msk [vmem:[%s1588_s7 + $0x8] sm:$0xff] %vm45_vm0, %v772_v34 }
 0x316   :  { %v897_v20 = vpop.f32.mrb[0].mxu1 }
 0x317   :  { %v733_v1 = vadd.f32 %v897_v20, %v1451_v37  ;;  %v724_v38 = vpop.f32.mrb[1].mxu1 }
 0x318   :  { %v725_v40 = vadd.f32 %v1451_v37, %v724_v38  ;;  %v898_v15 = vpop.f32.mrb[2].mxu1 }
 0x319   :  { %v777_v33 = vadd.f32 %v1001_v36, %v733_v1  ;;  %v736_v22 = vadd.f32 %v898_v15, %v1451_v37  ;;  %v727_v10 = vpop.f32.mrb[3].mxu1 }
 0x31a   :  { %v775_v24 = vadd.f32 %v1002_v42, %v725_v40  ;;  %v728_v48 = vadd.f32 %v1451_v37, %v727_v10 }
 0x31b   :  { %793 = vst.msk [vmem:[%s1588_s7 + $0x30] sm:$0xff] %vm45_vm0, %v777_v33  ;;  %v778_v49 = vadd.f32 %v1003_v30, %v736_v22 }
 0x31c   :  { %791 = vst.msk [vmem:[%s1588_s7 + $0x20] sm:$0xff] %vm45_vm0, %v775_v24  ;;  %v776_v23 = vadd.f32 %v1004_v44, %v728_v48 }
 0x31d   :  { %794 = vst.msk [vmem:[%s1588_s7 + $0x38] sm:$0xff] %vm45_vm0, %v778_v49 }
 0x31e   :  { %792 = vst.msk [vmem:[%s1588_s7 + $0x28] sm:$0xff] %vm45_vm0, %v776_v23 }
 0x322   :  { %v901_v52 = vpop.f32.mrb[4].mxu1 }
 0x323   :  { %v749_v28 = vadd.f32 %v901_v52, %v1451_v37  ;;  %v740_v17 = vpop.f32.mrb[5].mxu1 }
 0x324   :  { %v741_v29 = vadd.f32 %v1451_v37, %v740_v17  ;;  %v902_v53 = vpop.f32.mrb[6].mxu1 }
 0x325   :  { %v781_v57 = vadd.f32 %v1005_v56, %v749_v28  ;;  %v752_v35 = vadd.f32 %v902_v53, %v1451_v37  ;;  %v743_v58 = vpop.f32.mrb[7].mxu1 }
 0x326   :  { %v779_v61 = vadd.f32 %v1006_v21, %v741_v29  ;;  %v744_v59 = vadd.f32 %v1451_v37, %v743_v58 }
 0x327   :  { %797 = vst.msk [vmem:[%s1588_s7 + $0x50] sm:$0xff] %vm45_vm0, %v781_v57  ;;  %v782_v45 = vadd.f32 %v1007_v62, %v752_v35 }
 0x328   :  { %795 = vst.msk [vmem:[%s1588_s7 + $0x40] sm:$0xff] %vm45_vm0, %v779_v61  ;;  %v780_v6 = vadd.f32 %v1008_v7, %v744_v59 }
 0x329   :  { %798 = vst.msk [vmem:[%s1588_s7 + $0x58] sm:$0xff] %vm45_vm0, %v782_v45 }
 0x32a   :  { %796 = vst.msk [vmem:[%s1588_s7 + $0x48] sm:$0xff] %vm45_vm0, %v780_v6  ;;  %v905_v47 = vpop.f32.mrb[8].mxu1 }
 0x32b   :  { %v765_v63 = vadd.f32 %v905_v47, %v1451_v37  ;;  %v756_v2 = vpop.f32.mrb[9].mxu1 }
 0x32c   :  { %v757_v25 = vadd.f32 %v1451_v37, %v756_v2  ;;  %v906_v31 = vpop.f32.mrb[10].mxu1 }
 0x32d   :  { %v785_v4 = vadd.f32 %v1009_v3, %v765_v63  ;;  %v768_v60 = vadd.f32 %v906_v31, %v1451_v37  ;;  %v759_v5 = vpop.f32.mrb[11].mxu1 }
 0x32e   :  { %v783_v54 = vadd.f32 %v1010_v46, %v757_v25  ;;  %v760_v8 = vadd.f32 %v1451_v37, %v759_v5 }
 0x32f   :  { %801 = vst.msk [vmem:[%s1588_s7 + $0x70] sm:$0xff] %vm45_vm0, %v785_v4  ;;  %v786_v9 = vadd.f32 %v1011_v43, %v768_v60 }
 0x330   :  { %799 = vst.msk [vmem:[%s1588_s7 + $0x60] sm:$0xff] %vm45_vm0, %v783_v54  ;;  %v784_v37 = vadd.f32 %v1012_v12, %v760_v8 }
 0x331   :  { %802 = vst.msk [vmem:[%s1588_s7 + $0x78] sm:$0xff] %vm45_vm0, %v786_v9 }
 0x332   :  { %800 = vst.msk [vmem:[%s1588_s7 + $0x68] sm:$0xff] %vm45_vm0, %v784_v37 }

// kernel: pvt_forward.42
= control target key start
LH: loop header
LB: loop body
LE: loop exit
PB: predicated region body
PF: predicated region fallthrough
CT: control target
= control target key end

     0   :  { %vm20_vm0 = vcmask 523264   ;;  %vm110_vm1 = vcmask 519168   ;;  %s199_s0 = inlined_call_operand.vmem [shape: f32[32,64], index: 0, kind: input, shape index: {}]   ;;  %s200_s1 = inlined_call_operand.vmem [shape: f32[1,64], index: 1, kind: input, shape index: {}]   ;;  %s201_s2 = inlined_call_operand.vmem [shape: f32[1,64], index: 2, kind: input, shape index: {}]   ;;  %s202_s3 = inlined_call_operand.vmem [shape: bf16[32,64], index: 3, kind: output, shape index: {}]  }
   0x1   :  { %v14_v0 = vld [vmem:[%s199_s0] sm:$0xff]  ;;  %v16_v1 = vld [vmem:[%s199_s0 + $0x10] sm:$0xff]  ;;  %v15_v2 = vld [vmem:[%s199_s0 + $0x8] sm:$0xff] }
   0x2   :  { %v21_v3 = vsel %vm20_vm0, %v14_v0, 0.0  ;;  %v27_v4 = vsel %vm20_vm0, %v16_v1, 0.0  ;;  %v17_v5 = vld [vmem:[%s199_s0 + $0x18] sm:$0xff]  ;;  %v24_v6 = vsel %vm20_vm0, %v15_v2, 0.0  ;;  %v119_v41 = vld [vmem:[%s200_s1] ss:$0 sm:$0xff] }
   0x3   :  { %22 = vadd.xlane.f32.xlu0 %v21_v3  ;;  %28 = vadd.xlane.f32.xlu1 %v27_v4  ;;  %v30_v7 = vsel %vm20_vm0, %v17_v5, 0.0  ;;  %v120_v43 = vld [vmem:[%s201_s2] ss:$0 sm:$0xff] }
   0x7   :  { %25 = vadd.xlane.f32.xlu0 %v24_v6  ;;  %31 = vadd.xlane.f32.xlu1 %v30_v7 }
  0x90   :  { %v23_v8 = vpop.xlane.xlu0 %22  ;;  %v29_v9 = vpop.xlane.xlu1 %28 }
  0x91   :  { %v34_v10 = vmul.f32 0.015625, %v23_v8  ;;  %v36_v11 = vmul.f32 0.015625, %v29_v9 }
  0x93   :  { %v38_v12 = vsub.f32 %v14_v0, %v34_v10  ;;  %v40_v13 = vsub.f32 %v16_v1, %v36_v11 }
  0x94   :  { %v26_v14 = vpop.xlane.xlu0 %25  ;;  %v32_v15 = vpop.xlane.xlu1 %31 }
  0x95   :  { %v35_v16 = vmul.f32 0.015625, %v26_v14  ;;  %v37_v17 = vmul.f32 0.015625, %v32_v15  ;;  %v42_v18 = vmul.f32 %v38_v12, %v38_v12  ;;  %v44_v19 = vmul.f32 %v40_v13, %v40_v13 }
  0x97   :  { %v39_v20 = vsub.f32 %v15_v2, %v35_v16  ;;  %v41_v21 = vsub.f32 %v17_v5, %v37_v17  ;;  %v46_v22 = vsel %vm20_vm0, %v42_v18, 0.0  ;;  %v52_v23 = vsel %vm20_vm0, %v44_v19, 0.0 }
  0x98   :  { %47 = vadd.xlane.f32.xlu0 %v46_v22 }
  0x99   :  { %v43_v24 = vmul.f32 %v39_v20, %v39_v20  ;;  %v45_v25 = vmul.f32 %v41_v21, %v41_v21 }
  0x9b   :  { %v49_v26 = vsel %vm20_vm0, %v43_v24, 0.0  ;;  %v55_v27 = vsel %vm20_vm0, %v45_v25, 0.0 }
  0x9c   :  { %53 = vadd.xlane.f32.xlu0 %v52_v23  ;;  %50 = vadd.xlane.f32.xlu1 %v49_v26 }
  0xa0   :  { %56 = vadd.xlane.f32.xlu1 %v55_v27 }
 0x125   :  { %v48_v28 = vpop.xlane.xlu0 %47 }
 0x126   :  { %v58_v29 = vmul.f32 0.015625, %v48_v28 }
 0x128   :  { %v62_v30 = vadd.f32 1e-06, %v58_v29 }
 0x129   :  { %v51_v31 = vpop.xlane.xlu1 %50  ;;  %v54_v32 = vpop.xlane.xlu0 %53 }
 0x12a   :  { %129 = vrsqrt.f32 %v62_v30  ;;  %v59_v33 = vmul.f32 0.015625, %v51_v31  ;;  %v60_v34 = vmul.f32 0.015625, %v54_v32 }
 0x12c   :  { %v63_v35 = vadd.f32 1e-06, %v59_v33  ;;  %v64_v36 = vadd.f32 1e-06, %v60_v34 }
 0x12d   :  { %v57_v37 = vpop.xlane.xlu1 %56 }
 0x12e   :  { %131 = vrsqrt.f32 %v63_v35  ;;  %v61_v38 = vmul.f32 0.015625, %v57_v37 }
 0x12f   :  { %133 = vrsqrt.f32 %v64_v36 }
 0x130   :  { %v65_v39 = vadd.f32 1e-06, %v61_v38 }
 0x132   :  { %135 = vrsqrt.f32 %v65_v39 }
 0x134   :  { %v130_v40 = vpop.eup %129 }
 0x135   :  { %v70_v42 = vmul.f32 %v130_v40, %v38_v12 }
 0x137   :  { %v80_v44 = vmul.f32 %v119_v41, %v70_v42 }
 0x138   :  { %v132_v45 = vpop.eup %131 }
 0x139   :  { %v134_v46 = vpop.eup %133  ;;  %v90_v47 = vadd.f32 %v120_v43, %v80_v44  ;;  %v71_v48 = vmul.f32 %v132_v45, %v39_v20 }
 0x13a   :  { %v72_v49 = vmul.f32 %v134_v46, %v40_v13 }
 0x13b   :  { %v125_v50 = vpack.c.bf16 %v90_v47, %v90_v47  ;;  %v81_v51 = vmul.f32 %v119_v41, %v71_v48 }
 0x13c   :  { %v136_v52 = vpop.eup %135  ;;  %v82_v53 = vmul.f32 %v119_v41, %v72_v49 }
 0x13d   :  { %111 = vst.msk [vmem:[%s202_s3] sm:$0xf] %vm110_vm1, %v125_v50  ;;  %v91_v54 = vadd.f32 %v120_v43, %v81_v51  ;;  %v73_v55 = vmul.f32 %v136_v52, %v41_v21 }
 0x13e   :  { %v92_v56 = vadd.f32 %v120_v43, %v82_v53 }
 0x13f   :  { %v126_v57 = vpack.c.bf16 %v91_v54, %v91_v54  ;;  %v83_v58 = vmul.f32 %v119_v41, %v73_v55 }
 0x140   :  { %v127_v59 = vpack.c.bf16 %v92_v56, %v92_v56 }
 0x141   :  { %112 = vst.msk [vmem:[%s202_s3 + $0x4] sm:$0xf] %vm110_vm1, %v126_v57  ;;  %v93_v60 = vadd.f32 %v120_v43, %v83_v58 }
 0x142   :  { %113 = vst.msk [vmem:[%s202_s3 + $0x8] sm:$0xf] %vm110_vm1, %v127_v59 }
 0x143   :  { %v128_v61 = vpack.c.bf16 %v93_v60, %v93_v60 }
 0x145   :  { %114 = vst.msk [vmem:[%s202_s3 + $0xc] sm:$0xf] %vm110_vm1, %v128_v61 }

// kernel: pvt_forward.41
= control target key start
LH: loop header
LB: loop body
LE: loop exit
PB: predicated region body
PF: predicated region fallthrough
CT: control target
= control target key end

     0   :  { %s602_s21 = smov 0   ;;  %s668_s0 = inlined_call_operand.vmem [shape: bf16[2,16,128], index: 0, kind: input, shape index: {}]   ;;  %s669_s1 = inlined_call_operand.vmem [shape: bf16[128,64], index: 1, kind: input, shape index: {}]   ;;  %s670_s2 = inlined_call_operand.vmem [shape: f32[1,64], index: 2, kind: input, shape index: {}]   ;;  %s671_s3 = inlined_call_operand.vmem [shape: f32[1,64], index: 3, kind: input, shape index: {}]   ;;  %s672_s4 = inlined_call_operand.vmem [shape: f32[1,64], index: 4, kind: input, shape index: {}]   ;;  %s673_s5 = inlined_call_operand.vmem [shape: f32[16,64], index: 5, kind: input, shape index: {}]   ;;  %s674_s6 = inlined_call_operand.vmem [shape: f32[2,16,64], index: 6, kind: output, shape index: {}]  }
   0x1 LB: > { %s480_s22 = sadd.s32 4294967295, %s563_s21   ;;  %p484_p0 = scmp.ge.s32.totalorder %s563_s21, 1  ;;  %s563_s21 = sphi %s602_s21, %s16_s21  }
   0x2   : > { %p212_p1 = scmp.lt.s32.totalorder %s563_s21, 3 }
   0x4   : > { %p213_p2 = pnand %p484_p0, %p212_p1 }
   0x5   : > { %v544_v0 = vld [vmem:[%s669_s1] sm:$0xff] (!%p213_p2)   ;;  %v565_v1 = vmov (!%p213_p2), 0.0   ;;  %v545_v2 = vld [vmem:[%s669_s1 + $0x8] sm:$0xff] (!%p213_p2)   ;;  %vm566_vm0 = vmmov (!%p213_p2), 0   ;;  %p242_p3 = scmp.lt.s32.totalorder (!%p213_p2), %s480_s22, 1  ;;  %v546_v3 = vld [vmem:[%s669_s1 + $0x10] sm:$0xff] (!%p213_p2)  }
   0x6   : > { %216 = sbr.rel (%p213_p2) target bundleno = 572 (0x23c), region = 44  ;;  %514 = vmatprep.subr.bf16.mxu0 (!%p213_p2), %v565_v1  ;;  %530 = vmatprep.mubr.msk.bf16.mxu0 (!%p213_p2), %vm566_vm0, %v565_v1  ;;  %v547_v4 = vld [vmem:[%s669_s1 + $0x18] sm:$0xff] (!%p213_p2)   ;;  %v548_v5 = vld [vmem:[%s669_s1 + $0x20] sm:$0xff] (!%p213_p2)   ;;  %v549_v6 = vld [vmem:[%s669_s1 + $0x28] sm:$0xff] (!%p213_p2)   ;;  %vm375_vm1 = vcmask (!%p213_p2), 523264  }
   0x7   : > { %515 = vmatpush3.bf16.msra.mxu0 (!%p213_p2), %v544_v0  ;;  %v550_v7 = vld [vmem:[%s669_s1 + $0x30] sm:$0xff] (!%p213_p2)   ;;  %v551_v8 = vld [vmem:[%s669_s1 + $0x38] sm:$0xff] (!%p213_p2)   ;;  %v489_v10 = vld [vmem:[%s670_s2] ss:$0 sm:$0xff] (!%p213_p2) }
   0x8   : > { %516 = vmatprep.subr.bf16.mxu0 (!%p213_p2), %v565_v1  ;;  %v499_v36 = vld [vmem:[%s671_s3] ss:$0 sm:$0xff] (!%p213_p2)  ;;  %v420_v46 = vld [vmem:[%s673_s5 + $0x8] sm:$0xff] (!%p213_p2) }
   0x9   : > { %v500_v38 = vld [vmem:[%s672_s4] ss:$0 sm:$0xff] (!%p213_p2) }
   0xa   : > { %v419_v41 = vld [vmem:[%s673_s5] sm:$0xff] (!%p213_p2) }
   0xb   : > { %517 = vmatpush3.bf16.msra.mxu0 (!%p213_p2), %v545_v2 }
   0xc   : > { %518 = vmatprep.subr.bf16.mxu0 (!%p213_p2), %v565_v1 }
   0xd   : > { %s676_s22 = smov (!%p242_p3, %s480_s22), 1 }
   0xe   : > { %s503_s29 = sshll.u32 %s676_s22, 3  ;;  %s504_s27 = sshll.u32 %s676_s22, 4 }
   0xf   : > { %s246_s8 = scalar_lea.vmem %s668_s0, %s503_s29  ;;  %519 = vmatpush3.bf16.msra.mxu0 %v546_v3 }
  0x10   : > { %520 = vmatprep.subr.bf16.mxu0 %v565_v1  ;;  %v552_v9 = vld [vmem:[%s246_s8] sm:$0xff]   ;;  %s251_s8 = scalar_lea.vmem %s674_s6, %s504_s27 }
  0x13   : > { %521 = vmatpush3.bf16.msra.mxu0 %v547_v4 }
  0x14   : > { %522 = vmatprep.subr.bf16.mxu0 %v565_v1 }
  0x17   : > { %523 = vmatpush3.bf16.msra.mxu0 %v548_v5 }
  0x18   : > { %524 = vmatprep.subr.bf16.mxu0 %v565_v1 }
  0x1b   : > { %525 = vmatpush3.bf16.msra.mxu0 %v549_v6 }
  0x1c   : > { %526 = vmatprep.subr.bf16.mxu0 %v565_v1 }
  0x1f   : > { %527 = vmatpush3.bf16.msra.mxu0 %v550_v7 }
  0x20   : > { %528 = vmatprep.subr.bf16.mxu0 %v565_v1 }
  0x23   : > { %529 = vmatpush3.bf16.msra.mxu0 %v551_v8 }
  0x26   : > { %531 = vmatmul.mubr.bf16.vlgmr.msra.gmra.mrb[0].mxu0 %v552_v9 }
  0xf9   : > { %v366_v11 = vpop.f32.mrb[0].mxu0 }
  0xfa   : > { %v367_v12 = vadd.f32 %v489_v10, %v366_v11  ;;  %v532_v13 = vpop.f32.mrb[1].mxu0 }
  0xfb   : > { %v369_v14 = vpop.f32.mrb[2].mxu0 }
  0xfc   : > { %v370_v15 = vadd.f32 %v489_v10, %v369_v14  ;;  %v533_v16 = vpop.f32.mrb[3].mxu0  ;;  %v376_v17 = vsel %vm375_vm1, %v367_v12, 0.0 }
  0xfd   : > { %377 = vadd.xlane.f32.xlu0 %v376_v17 }
  0xfe   : > { %v379_v18 = vsel %vm375_vm1, %v370_v15, 0.0 }
 0x101   : > { %380 = vadd.xlane.f32.xlu0 %v379_v18 }
 0x18a   : > { %v378_v19 = vpop.xlane.xlu0 %377 }
 0x18b   : > { %v383_v20 = vmul.f32 0.015625, %v378_v19 }
 0x18d   : > { %v385_v21 = vsub.f32 %v367_v12, %v383_v20 }
 0x18e   : > { %v381_v22 = vpop.xlane.xlu0 %380 }
 0x18f   : > { %v384_v23 = vmul.f32 0.015625, %v381_v22  ;;  %v387_v24 = vmul.f32 %v385_v21, %v385_v21 }
 0x191   : > { %v386_v25 = vsub.f32 %v370_v15, %v384_v23  ;;  %v389_v26 = vsel %vm375_vm1, %v387_v24, 0.0 }
 0x192   : > { %390 = vadd.xlane.f32.xlu1 %v389_v26 }
 0x193   : > { %v388_v27 = vmul.f32 %v386_v25, %v386_v25 }
 0x195   : > { %v392_v28 = vsel %vm375_vm1, %v388_v27, 0.0 }
 0x196   : > { %393 = vadd.xlane.f32.xlu1 %v392_v28 }
 0x21f   : > { %v391_v29 = vpop.xlane.xlu1 %390 }
 0x220   : > { %v395_v30 = vmul.f32 0.015625, %v391_v29 }
 0x222   : > { %v397_v31 = vadd.f32 1e-06, %v395_v30 }
 0x223   : > { %v394_v32 = vpop.xlane.xlu1 %393 }
 0x224   : > { %553 = vrsqrt.f32 %v397_v31  ;;  %v396_v33 = vmul.f32 0.015625, %v394_v32 }
 0x226   : > { %v398_v34 = vadd.f32 1e-06, %v396_v33 }
 0x228   : > { %555 = vrsqrt.f32 %v398_v34 }
 0x22e   : > { %v554_v35 = vpop.eup %553 }
 0x22f   : > { %v401_v37 = vmul.f32 %v554_v35, %v385_v21 }
 0x231   : > { %v409_v39 = vmul.f32 %v499_v36, %v401_v37 }
 0x232   : > { %v556_v40 = vpop.eup %555 }
 0x233   : > { %v417_v42 = vadd.f32 %v500_v38, %v409_v39  ;;  %v402_v43 = vmul.f32 %v556_v40, %v386_v25 }
 0x235   : > { %v421_v44 = vadd.f32 %v419_v41, %v417_v42  ;;  %v410_v45 = vmul.f32 %v499_v36, %v402_v43 }
 0x237   : > { %423 = vst.msk [vmem:[%s251_s8] sm:$0xff] %vm375_vm1, %v421_v44  ;;  %v418_v47 = vadd.f32 %v500_v38, %v410_v45 }
 0x239   : > { %v422_v48 = vadd.f32 %v420_v46, %v418_v47 }
 0x23b   : > { %424 = vst.msk [vmem:[%s251_s8 + $0x8] sm:$0xff] %vm375_vm1, %v422_v48 }
 0x23c PF: > { %s16_s21 = sadd.s32 1, %s563_s21  }
 0x23d   : > { %p13_p4 = scmp.ge.s32.totalorder %s16_s21, 4  }
 0x23f   :  { %15 = sbr.rel (!%p13_p4) target bundleno = 1 (0x1), region = 74 }

// kernel: pvt_forward.43
= control target key start
LH: loop header
LB: loop body
LE: loop exit
PB: predicated region body
PF: predicated region fallthrough
CT: control target
= control target key end

     0   :  { %vm225_vm0 = vcmask 523264   ;;  %vm277_vm1 = vcmask 519168   ;;  %s466_s1 = inlined_call_operand.vmem [shape: bf16[256,64], index: 1, kind: input, shape index: {}]   ;;  %s467_s0 = inlined_call_operand.vmem [shape: bf16[16,256], index: 0, kind: input, shape index: {}]   ;;  %s468_s2 = inlined_call_operand.vmem [shape: f32[1,64], index: 2, kind: input, shape index: {}]   ;;  %s469_s3 = inlined_call_operand.vmem [shape: f32[1,64], index: 3, kind: input, shape index: {}]   ;;  %s470_s4 = inlined_call_operand.vmem [shape: f32[1,64], index: 4, kind: input, shape index: {}]   ;;  %s471_s5 = inlined_call_operand.vmem [shape: f32[1,64], index: 5, kind: input, shape index: {}]   ;;  %s472_s6 = inlined_call_operand.vmem [shape: bf16[16,64], index: 6, kind: output, shape index: {}]  }
   0x1   :  { %v332_v0 = vld [vmem:[%s466_s1 + $0x40] sm:$0xff]   ;;  %v334_v2 = vld [vmem:[%s466_s1 + $0x48] sm:$0xff]   ;;  %v336_v4 = vld [vmem:[%s466_s1 + $0x50] sm:$0xff]  }
   0x2   :  { %v333_v1 = vld [vmem:[%s466_s1] sm:$0xff]   ;;  %310 = vmatprep.subr.bf16.mxu0 %v332_v0  ;;  %v335_v3 = vld [vmem:[%s466_s1 + $0x8] sm:$0xff]   ;;  %v337_v5 = vld [vmem:[%s466_s1 + $0x10] sm:$0xff]  }
   0x3   :  { %311 = vmatpush3.bf16.msra.mxu0 %v333_v1  ;;  %v338_v6 = vld [vmem:[%s466_s1 + $0x58] sm:$0xff]   ;;  %v340_v8 = vld [vmem:[%s466_s1 + $0x60] sm:$0xff]   ;;  %v342_v10 = vld [vmem:[%s466_s1 + $0x68] sm:$0xff]  }
   0x4   :  { %312 = vmatprep.subr.bf16.mxu0 %v334_v2  ;;  %v339_v7 = vld [vmem:[%s466_s1 + $0x18] sm:$0xff]   ;;  %v341_v9 = vld [vmem:[%s466_s1 + $0x20] sm:$0xff]   ;;  %v343_v12 = vld [vmem:[%s466_s1 + $0x28] sm:$0xff]  }
   0x5   :  { %v350_v11 = vld [vmem:[%s467_s0 + $0x4] ss:$8 sps:$4 sm:$0xff]   ;;  %v344_v13 = vld [vmem:[%s466_s1 + $0x70] sm:$0xff]   ;;  %v346_v15 = vld [vmem:[%s466_s1 + $0x78] sm:$0xff]  }
   0x6   :  { %196 = vmatprep.mubr.bf16.mxu0 %v350_v11  ;;  %v345_v14 = vld [vmem:[%s466_s1 + $0x30] sm:$0xff]   ;;  %v347_v16 = vld [vmem:[%s466_s1 + $0x38] sm:$0xff]   ;;  %v348_v17 = vld [vmem:[%s467_s0] ss:$8 sps:$4 sm:$0xff]  }
   0x7   :  { %313 = vmatpush3.bf16.msra.mxu0 %v335_v3  ;;  %v302_v20 = vld [vmem:[%s468_s2] ss:$0 sm:$0xff] }
   0x8   :  { %314 = vmatprep.subr.bf16.mxu0 %v336_v4  ;;  %v303_v24 = vld [vmem:[%s469_s3] ss:$0 sm:$0xff] }
   0x9   :  { %v304_v49 = vld [vmem:[%s470_s4] ss:$0 sm:$0xff] }
   0xa   :  { %v305_v51 = vld [vmem:[%s471_s5] ss:$0 sm:$0xff] }
   0xb   :  { %315 = vmatpush3.bf16.msra.mxu0 %v337_v5 }
   0xc   :  { %316 = vmatprep.subr.bf16.mxu0 %v338_v6 }
   0xf   :  { %317 = vmatpush3.bf16.msra.mxu0 %v339_v7 }
  0x10   :  { %318 = vmatprep.subr.bf16.mxu0 %v340_v8 }
  0x13   :  { %319 = vmatpush3.bf16.msra.mxu0 %v341_v9 }
  0x14   :  { %320 = vmatprep.subr.bf16.mxu0 %v342_v10 }
  0x17   :  { %321 = vmatpush3.bf16.msra.mxu0 %v343_v12 }
  0x18   :  { %322 = vmatprep.subr.bf16.mxu0 %v344_v13 }
  0x1b   :  { %323 = vmatpush3.bf16.msra.mxu0 %v345_v14 }
  0x1c   :  { %324 = vmatprep.subr.bf16.mxu0 %v346_v15 }
  0x1f   :  { %325 = vmatpush3.bf16.msra.mxu0 %v347_v16 }
  0x22   :  { %197 = vmatmul.mubr.bf16.vlgmr.msra.gmra.mrb[0].mxu0 %v348_v17 }
  0xf5   :  { %v326_v18 = vpop.f32.mrb[0].mxu0 }
  0xf6   :  { %v327_v19 = vpop.f32.mrb[1].mxu0 }
  0xf7   :  { %v328_v21 = vadd.f32 %v327_v19, %v326_v18  ;;  %v329_v22 = vpop.f32.mrb[2].mxu0 }
  0xf8   :  { %v330_v23 = vpop.f32.mrb[3].mxu0 }
  0xf9   :  { %v212_v25 = vmul.f32 %v328_v21, %v302_v20  ;;  %v331_v26 = vadd.f32 %v330_v23, %v329_v22 }
  0xfb   :  { %v213_v27 = vmul.f32 %v331_v26, %v302_v20  ;;  %v221_v28 = vadd.f32 %v303_v24, %v212_v25 }
  0xfd   :  { %v226_v29 = vsel %vm225_vm0, %v221_v28, 0.0  ;;  %v222_v30 = vadd.f32 %v303_v24, %v213_v27 }
  0xfe   :  { %227 = vadd.xlane.f32.xlu0 %v226_v29 }
  0xff   :  { %v229_v31 = vsel %vm225_vm0, %v222_v30, 0.0 }
 0x102   :  { %230 = vadd.xlane.f32.xlu0 %v229_v31 }
 0x18b   :  { %v228_v32 = vpop.xlane.xlu0 %227 }
 0x18c   :  { %v233_v33 = vmul.f32 0.015625, %v228_v32 }
 0x18e   :  { %v235_v34 = vsub.f32 %v221_v28, %v233_v33 }
 0x18f   :  { %v231_v35 = vpop.xlane.xlu0 %230 }
 0x190   :  { %v234_v36 = vmul.f32 0.015625, %v231_v35  ;;  %v237_v37 = vmul.f32 %v235_v34, %v235_v34 }
 0x192   :  { %v236_v38 = vsub.f32 %v222_v30, %v234_v36  ;;  %v239_v39 = vsel %vm225_vm0, %v237_v37, 0.0 }
 0x193   :  { %240 = vadd.xlane.f32.xlu1 %v239_v39 }
 0x194   :  { %v238_v40 = vmul.f32 %v236_v38, %v236_v38 }
 0x196   :  { %v242_v41 = vsel %vm225_vm0, %v238_v40, 0.0 }
 0x197   :  { %243 = vadd.xlane.f32.xlu1 %v242_v41 }
 0x220   :  { %v241_v42 = vpop.xlane.xlu1 %240 }
 0x221   :  { %v245_v43 = vmul.f32 0.015625, %v241_v42 }
 0x223   :  { %v247_v44 = vadd.f32 1e-06, %v245_v43 }
 0x224   :  { %v244_v45 = vpop.xlane.xlu1 %243 }
 0x225   :  { %351 = vrsqrt.f32 %v247_v44  ;;  %v246_v46 = vmul.f32 0.015625, %v244_v45 }
 0x227   :  { %v248_v47 = vadd.f32 1e-06, %v246_v46 }
 0x229   :  { %353 = vrsqrt.f32 %v248_v47 }
 0x22f   :  { %v352_v48 = vpop.eup %351 }
 0x230   :  { %v251_v50 = vmul.f32 %v352_v48, %v235_v34 }
 0x232   :  { %v259_v52 = vmul.f32 %v304_v49, %v251_v50 }
 0x233   :  { %v354_v53 = vpop.eup %353 }
 0x234   :  { %v267_v54 = vadd.f32 %v305_v51, %v259_v52  ;;  %v252_v55 = vmul.f32 %v354_v53, %v236_v38 }
 0x236   :  { %v308_v56 = vpack.c.bf16 %v267_v54, %v267_v54  ;;  %v260_v57 = vmul.f32 %v304_v49, %v252_v55 }
 0x238   :  { %278 = vst.msk [vmem:[%s472_s6] sm:$0xf] %vm277_vm1, %v308_v56  ;;  %v268_v58 = vadd.f32 %v305_v51, %v260_v57 }
 0x23a   :  { %v309_v59 = vpack.c.bf16 %v268_v58, %v268_v58 }
 0x23c   :  { %279 = vst.msk [vmem:[%s472_s6 + $0x4] sm:$0xf] %vm277_vm1, %v309_v59 }

// kernel: pvt_forward.44
= control target key start
LH: loop header
LB: loop body
LE: loop exit
PB: predicated region body
PF: predicated region fallthrough
CT: control target
= control target key end

     0   :  { %s1330_s30 = smov 0   ;;  %s1493_s0 = inlined_call_operand.vmem [shape: f32[2,16,64], index: 0, kind: input, shape index: {}]   ;;  %s1494_s1 = inlined_call_operand.vmem [shape: bf16[2,4,64], index: 1, kind: input, shape index: {}]   ;;  %s1495_s2 = inlined_call_operand.vmem [shape: f32[1,64], index: 2, kind: input, shape index: {}]   ;;  %s1496_s3 = inlined_call_operand.vmem [shape: f32[1,64], index: 3, kind: input, shape index: {}]   ;;  %s1497_s4 = inlined_call_operand.vmem [shape: bf16[64,64], index: 4, kind: input, shape index: {}]   ;;  %s1498_s5 = inlined_call_operand.vmem [shape: bf16[64,64], index: 5, kind: input, shape index: {}]   ;;  %s1499_s6 = inlined_call_operand.vmem [shape: bf16[64,64], index: 6, kind: input, shape index: {}]   ;;  %s1500_s7 = inlined_call_operand.vmem [shape: bf16[64,64], index: 7, kind: input, shape index: {}]   ;;  %s1501_s8 = inlined_call_operand.vmem [shape: f32[1,64], index: 8, kind: input, shape index: {}]   ;;  %s1502_s9 = inlined_call_operand.vmem [shape: f32[2,16,64], index: 9, kind: output, shape index: {}]  }
   0x1 LB: > { %s1075_s10 = sadd.s32 4294967295, %s1275_s30   ;;  %p1079_p0 = scmp.ge.s32.totalorder %s1275_s30, 1  ;;  %s1275_s30 = sphi %s1330_s30, %s19_s30  }
   0x2   : > { %p296_p1 = scmp.lt.s32.totalorder %s1275_s30, 3 }
   0x4   : > { %p297_p2 = pnand %p1079_p0, %p296_p1 }
   0x5   : > { %p336_p3 = scmp.lt.s32.totalorder (!%p297_p2), %s1075_s10, 1  ;;  %vm355_vm0 = vcmask (!%p297_p2), 523264   ;;  %v1233_v14 = vld [vmem:[%s1498_s5] sm:$0xff] (!%p297_p2)   ;;  %v1277_v15 = vmov (!%p297_p2), 0.0   ;;  %v1234_v16 = vld [vmem:[%s1498_s5 + $0x8] sm:$0xff] (!%p297_p2)   ;;  %v1235_v17 = vld [vmem:[%s1498_s5 + $0x10] sm:$0xff] (!%p297_p2)  }
   0x6   : > { %300 = sbr.rel (%p297_p2) target bundleno = 1480 (0x5c8), region = 56  ;;  %1158 = vmatprep.subr.bf16.mxu1 (!%p297_p2), %v1277_v15  ;;  %1146 = vmatprep.subr.bf16.mxu0 (!%p297_p2), %v1277_v15  ;;  %v1236_v18 = vld [vmem:[%s1497_s4] sm:$0xff] (!%p297_p2)   ;;  %v1237_v19 = vld [vmem:[%s1498_s5 + $0x18] sm:$0xff] (!%p297_p2)   ;;  %v1238_v20 = vld [vmem:[%s1497_s4 + $0x8] sm:$0xff] (!%p297_p2)   ;;  %vm1278_vm1 = vmmov (!%p297_p2), 0   ;;  %vm627_vm2 = vcmask (!%p297_p2), 261120  }
   0x7   : > { %1159 = vmatpush3.bf16.msra.mxu1 (!%p297_p2), %v1233_v14  ;;  %1147 = vmatpush3.bf16.msra.mxu0 (!%p297_p2), %v1236_v18  ;;  %v1239_v22 = vld [vmem:[%s1497_s4 + $0x10] sm:$0xff] (!%p297_p2)   ;;  %v1240_v23 = vld [vmem:[%s1497_s4 + $0x18] sm:$0xff] (!%p297_p2)   ;;  %v1085_v32 = vld [vmem:[%s1495_s2] ss:$0 sm:$0xff] (!%p297_p2)  ;;  %s1279_s21 = smov (!%p297_p2), 96   ;;  %vm700_vm3 = vcmask (!%p297_p2), 1041408  }
   0x8   : > { %1160 = vmatprep.subr.bf16.mxu1 (!%p297_p2), %v1277_v15  ;;  %1148 = vmatprep.subr.bf16.mxu0 (!%p297_p2), %v1277_v15  ;;  %v1086_v36 = vld [vmem:[%s1496_s3] ss:$0 sm:$0xff] (!%p297_p2)  ;;  %v1242_v48 = vld [vmem:[%s1499_s6 + $0x8] sm:$0xff] (!%p297_p2)   ;;  %v1243_v49 = vld [vmem:[%s1499_s6 + $0x10] sm:$0xff] (!%p297_p2)   ;;  %vm675_vm4 = vcmask (!%p297_p2), 31744  }
   0x9   : > { %1166 = vmatprep.mubr.msk.bf16.mxu1 (!%p297_p2), %vm1278_vm1, %v1277_v15  ;;  %1154 = vmatprep.mubr.msk.bf16.mxu0 (!%p297_p2), %vm1278_vm1, %v1277_v15  ;;  %v1241_v47 = vld [vmem:[%s1499_s6] sm:$0xff] (!%p297_p2)   ;;  %v1244_v50 = vld [vmem:[%s1499_s6 + $0x18] sm:$0xff] (!%p297_p2)  }
   0xb   : > { %1161 = vmatpush3.bf16.msra.mxu1 (!%p297_p2), %v1234_v16  ;;  %1149 = vmatpush3.bf16.msra.mxu0 (!%p297_p2), %v1238_v20 }
   0xc   : > { %1162 = vmatprep.subr.bf16.mxu1 (!%p297_p2), %v1277_v15  ;;  %1150 = vmatprep.subr.bf16.mxu0 (!%p297_p2), %v1277_v15 }
   0xd   : > { %s1504_s10 = smov (!%p336_p3, %s1075_s10), 1 }
   0xe   : > { %s1115_s11 = sshll.u32 %s1504_s10, 4  ;;  %s1082_s27 = sshll.u32 %s1504_s10, 1 }
   0xf   : > { %s340_s14 = scalar_lea.vmem %s1493_s0, %s1115_s11  ;;  %1163 = vmatpush3.bf16.msra.mxu1 %v1235_v17  ;;  %s344_s12 = scalar_lea.vmem %s1494_s1, %s1082_s27  ;;  %1151 = vmatpush3.bf16.msra.mxu0 %v1239_v22 }
  0x10   : > { %v1346_v0 = vld [vmem:[%s340_s14] sm:$0xff]  ;;  %v1348_v1 = vld [vmem:[%s340_s14 + $0x8] sm:$0xff]  ;;  %1164 = vmatprep.subr.bf16.mxu1 %v1277_v15  ;;  %1152 = vmatprep.subr.bf16.mxu0 %v1277_v15  ;;  %s349_s24 = scalar_lea.vmem %s1502_s9, %s1115_s11 }
  0x11   : > { %v356_v2 = vsel %vm355_vm0, %v1346_v0, 0.0  ;;  %v359_v3 = vsel %vm355_vm0, %v1348_v1, 0.0  ;;  %v476_v21 = vld [vmem:[%s344_s12] sm:$0x3] }
  0x12   : > { %357 = vadd.xlane.f32.xlu0 %v356_v2 }
  0x13   : > { %1165 = vmatpush3.bf16.msra.mxu1 %v1237_v19  ;;  %1153 = vmatpush3.bf16.msra.mxu0 %v1240_v23 }
  0x14   : > { %1182 = vmatprep.subr.bf16.mxu1 %v1277_v15  ;;  %1170 = vmatprep.subr.bf16.mxu0 %v1277_v15 }
  0x16   : > { %360 = vadd.xlane.f32.xlu0 %v359_v3  ;;  %1167 = vmatmul.mubr.msk.bf16.vlgmr.msra.gmra.mrb[0].mxu1 %vm355_vm0, %v476_v21 }
  0x17   : > { %1184 = vmatprep.mubr.msk.bf16.mxu1 %vm1278_vm1, %v1277_v15 }
  0x9f   : > { %v358_v4 = vpop.xlane.xlu0 %357 }
  0xa0   : > { %v363_v5 = vmul.f32 0.015625, %v358_v4 }
  0xa2   : > { %v365_v6 = vsub.f32 %v1346_v0, %v363_v5 }
  0xa3   : > { %v361_v7 = vpop.xlane.xlu0 %360 }
  0xa4   : > { %v364_v8 = vmul.f32 0.015625, %v361_v7  ;;  %v367_v9 = vmul.f32 %v365_v6, %v365_v6 }
  0xa6   : > { %v366_v10 = vsub.f32 %v1348_v1, %v364_v8  ;;  %v369_v11 = vsel %vm355_vm0, %v367_v9, 0.0 }
  0xa7   : > { %370 = vadd.xlane.f32.xlu1 %v369_v11 }
  0xa8   : > { %v368_v12 = vmul.f32 %v366_v10, %v366_v10 }
  0xaa   : > { %v372_v13 = vsel %vm355_vm0, %v368_v12, 0.0 }
  0xab   : > { %373 = vadd.xlane.f32.xlu1 %v372_v13 }
  0xe9   : > { %v546_v41 = vpop.f32.mrb[0].mxu1 }
  0xea   : > { %v625_v42 = vpack.c.bf16 %v546_v41, %v546_v41  ;;  %v1168_v43 = vpop.f32.mrb[1].mxu1  ;;  %v1246_v41 = vld [vmem:[%s1500_s7 + $0x8] sm:$0xff]  }
  0xeb   : > { %v549_v44 = vpop.f32.mrb[2].mxu1 }
  0xec   : > { %v632_v45 = vsel %vm627_vm2, %v625_v42, 0  ;;  %v1169_v46 = vpop.f32.mrb[3].mxu1  ;;  %756 = vrot.lane.b32.xlu0 %v625_v42, %s1279_s21  ;;  %v1247_v42 = vld [vmem:[%s1500_s7 + $0x10] sm:$0xff]  }
  0xed   : > { %1183 = vmatpush3.bf16.xpose.msra.mxu1 %v632_v45  ;;  %v1248_v45 = vld [vmem:[%s1500_s7 + $0x18] sm:$0xff]  }
  0xee   : > { %1188 = vmatprep.subr.bf16.mxu1 %v1277_v15 }
 0x134   : > { %v371_v24 = vpop.xlane.xlu1 %370 }
 0x135   : > { %v375_v25 = vmul.f32 0.015625, %v371_v24 }
 0x137   : > { %v377_v26 = vadd.f32 1e-06, %v375_v25 }
 0x138   : > { %v374_v27 = vpop.xlane.xlu1 %373 }
 0x139   : > { %1249 = vrsqrt.f32 %v377_v26  ;;  %v376_v28 = vmul.f32 0.015625, %v374_v27 }
 0x13b   : > { %v378_v29 = vadd.f32 1e-06, %v376_v28 }
 0x13d   : > { %1251 = vrsqrt.f32 %v378_v29 }
 0x143   : > { %v1250_v30 = vpop.eup %1249 }
 0x144   : > { %v381_v31 = vmul.f32 %v1250_v30, %v365_v6 }
 0x146   : > { %v389_v35 = vmul.f32 %v1085_v32, %v381_v31 }
 0x147   : > { %v1252_v33 = vpop.eup %1251 }
 0x148   : > { %v382_v34 = vmul.f32 %v1252_v33, %v366_v10  ;;  %v397_v38 = vadd.f32 %v1086_v36, %v389_v35 }
 0x14a   : > { %v390_v37 = vmul.f32 %v1085_v32, %v382_v34 }
 0x14c   : > { %v398_v39 = vadd.f32 %v1086_v36, %v390_v37 }
 0x14e   : > { %v399_v40 = vpack.c.bf16 %v398_v39, %v397_v38  ;;  %v1245_v38 = vld [vmem:[%s1500_s7] sm:$0xff]  }
 0x150   : > { %1155 = vmatmul.mubr.msk.bf16.vlgmr.msra.gmra.mrb[0].mxu0 %vm355_vm0, %v399_v40 }
 0x151   : > { %1178 = vmatprep.mubr.msk.bf16.mxu0 %vm1278_vm1, %v1277_v15  ;;  %1171 = vmatpush3.bf16.msra.mxu0 %v1241_v47 }
 0x152   : > { %1172 = vmatprep.subr.bf16.mxu0 %v1277_v15 }
 0x155   : > { %1173 = vmatpush3.bf16.msra.mxu0 %v1242_v48 }
 0x156   : > { %1174 = vmatprep.subr.bf16.mxu0 %v1277_v15 }
 0x159   : > { %1175 = vmatpush3.bf16.msra.mxu0 %v1243_v49 }
 0x15a   : > { %1176 = vmatprep.subr.bf16.mxu0 %v1277_v15 }
 0x15d   : > { %1177 = vmatpush3.bf16.msra.mxu0 %v1244_v50 }
 0x15e   : > { %1194 = vmatprep.subr.bf16.mxu0 %v1277_v15  ;;  %v757_v51 = vpop.permute.xlu0 %756 }
 0x15f   : > { %v762_v52 = vsel %vm627_vm2, %v757_v51, 0 }
 0x160   : > { %1179 = vmatmul.mubr.msk.bf16.vlgmr.msra.gmra.mrb[4].mxu0 %vm355_vm0, %v476_v21 }
 0x161   : > { %1196 = vmatprep.mubr.msk.bf16.mxu0 %vm1278_vm1, %v1277_v15 }
 0x166   : > { %1195 = vmatpush3.bf16.xpose.msra.mxu0 %v762_v52 }
 0x167   : > { %1206 = vmatprep.subr.bf16.mxu0 %v1277_v15 }
 0x223   : > { %v469_v53 = vpop.f32.mrb[0].mxu0 }
 0x224   : > { %v1156_v54 = vpop.f32.mrb[1].mxu0 }
 0x225   : > { %v472_v55 = vpop.f32.mrb[2].mxu0 }
 0x226   : > { %v624_v56 = vpack.c.bf16 %v472_v55, %v469_v53  ;;  %v1157_v57 = vpop.f32.mrb[3].mxu0 }
 0x228   : > { %753 = vrot.lane.b32.xlu1 %v624_v56, %s1279_s21  ;;  %1185 = vmatmul.mubr.msk.bf16.vlgmr.msra.gmra.mrb[4].mxu1 %vm627_vm2, %v624_v56 }
 0x229   : > { %1190 = vmatprep.mubr.msk.bf16.mxu1 %vm1278_vm1, %v1277_v15 }
 0x233   : > { %v618_v58 = vpop.f32.mrb[4].mxu0 }
 0x234   : > { %v626_v59 = vpack.c.bf16 %v618_v58, %v618_v58  ;;  %v1180_v60 = vpop.f32.mrb[5].mxu0 }
 0x235   : > { %v621_v61 = vpop.f32.mrb[6].mxu0 }
 0x236   : > { %v702_v62 = vsel %vm700_vm3, %v626_v59, 0  ;;  %v1181_v63 = vpop.f32.mrb[7].mxu0 }
 0x237   : > { %1189 = vmatpush3.bf16.msra.mxu1 %v702_v62 }
 0x238   : > { %1200 = vmatprep.subr.bf16.mxu1 %v1277_v15 }
 0x29a   : > { %v754_v2 = vpop.permute.xlu1 %753 }
 0x29b   : > { %1197 = vmatmul.mubr.msk.bf16.vlgmr.msra.gmra.mrb[8].mxu0 %vm627_vm2, %v754_v2 }
 0x29c   : > { %1210 = vmatprep.mubr.msk.bf16.mxu0 %vm1278_vm1, %v1277_v15  ;;  %1207 = vmatpush3.bf16.msra.mxu0 %v1247_v42 }
 0x29d   : > { %1208 = vmatprep.subr.bf16.mxu0 %v1277_v15 }
 0x2a0   : > { %1209 = vmatpush3.bf16.msra.mxu0 %v1248_v45 }
 0x2fb   : > { %v668_v3 = vpop.f32.mrb[4].mxu1 }
 0x2fc   : > { %v1186_v4 = vpop.f32.mrb[5].mxu1  ;;  %v676_v5 = vsel %vm675_vm4, %v668_v3, -inf }
 0x2fd   : > { %677 = vmax.xlane.f32.xlu1 %v676_v5  ;;  %v671_v6 = vpop.f32.mrb[6].mxu1 }
 0x2fe   : > { %v1187_v7 = vpop.f32.mrb[7].mxu1  ;;  %v679_v8 = vsel %vm675_vm4, %v671_v6, -inf }
 0x2ff   : > { %680 = vmax.xlane.f32.xlu0 %v679_v8  ;;  %v1112_v8 = vld [vmem:[%s1501_s8] ss:$0 sm:$0xff] }
 0x36e   : > { %v798_v9 = vpop.f32.mrb[8].mxu0 }
 0x36f   : > { %v1198_v10 = vpop.f32.mrb[9].mxu0  ;;  %v805_v11 = vsel %vm675_vm4, %v798_v9, -inf }
 0x370   : > { %806 = vmax.xlane.f32.xlu0 %v805_v11  ;;  %v801_v12 = vpop.f32.mrb[10].mxu0 }
 0x371   : > { %v1199_v13 = vpop.f32.mrb[11].mxu0  ;;  %v808_v14 = vsel %vm675_vm4, %v801_v12, -inf }
 0x372   : > { %809 = vmax.xlane.f32.xlu1 %v808_v14 }
 0x386   : > { %827 = vrot.lane.b32.xlu0 %v626_v59, %s1279_s21 }
 0x38a   : > { %v678_v16 = vpop.xlane.xlu1 %677 }
 0x38b   : > { %v682_v17 = vsub.f32 %v668_v3, %v678_v16 }
 0x38c   : > { %v681_v18 = vpop.xlane.xlu0 %680 }
 0x38d   : > { %v684_v19 = vmul.f32 1.442695, %v682_v17  ;;  %v683_v20 = vsub.f32 %v671_v6, %v681_v18 }
 0x38f   : > { %1253 = vpow2.f32 %v684_v19  ;;  %v686_v21 = vmul.f32 1.442695, %v683_v20 }
 0x391   : > { %1255 = vpow2.f32 %v686_v21 }
 0x399   : > { %v1254_v22 = vpop.eup %1253 }
 0x39a   : > { %v688_v23 = vsel %vm675_vm4, %v1254_v22, 0.0 }
 0x39b   : > { %v1256_v24 = vpop.eup %1255  ;;  %689 = vadd.xlane.f32.xlu1 %v688_v23 }
 0x39c   : > { %v696_v25 = vpack.c.bf16 %v1256_v24, %v1254_v22  ;;  %v691_v26 = vsel %vm675_vm4, %v1256_v24, 0.0 }
 0x39e   : > { %1191 = vmatmul.mubr.msk.bf16.vlgmr.msra.gmra.mrb[8].mxu1 %vm675_vm4, %v696_v25 }
 0x39f   : > { %692 = vadd.xlane.f32.xlu1 %v691_v26  ;;  %1202 = vmatprep.mubr.msk.bf16.mxu1 %vm1278_vm1, %v1277_v15 }
 0x3fd   : > { %v807_v27 = vpop.xlane.xlu0 %806 }
 0x3fe   : > { %v811_v28 = vsub.f32 %v798_v9, %v807_v27 }
 0x3ff   : > { %v810_v29 = vpop.xlane.xlu1 %809 }
 0x400   : > { %v813_v30 = vmul.f32 1.442695, %v811_v28  ;;  %v812_v31 = vsub.f32 %v801_v12, %v810_v29 }
 0x401   : > { %v828_v32 = vpop.permute.xlu0 %827 }
 0x402   : > { %1257 = vpow2.f32 %v813_v30  ;;  %v815_v33 = vmul.f32 1.442695, %v812_v31  ;;  %v833_v34 = vsel %vm700_vm3, %v828_v32, 0 }
 0x403   : > { %1201 = vmatpush3.bf16.msra.mxu1 %v833_v34 }
 0x404   : > { %1259 = vpow2.f32 %v815_v33  ;;  %1214 = vmatprep.subr.bf16.mxu1 %v1277_v15 }
 0x40c   : > { %v1258_v35 = vpop.eup %1257 }
 0x40d   : > { %v817_v36 = vsel %vm675_vm4, %v1258_v35, 0.0 }
 0x40e   : > { %v1260_v37 = vpop.eup %1259  ;;  %818 = vadd.xlane.f32.xlu1 %v817_v36 }
 0x40f   : > { %v825_v39 = vpack.c.bf16 %v1260_v37, %v1258_v35  ;;  %v820_v40 = vsel %vm675_vm4, %v1260_v37, 0.0 }
 0x411   : > { %1203 = vmatmul.mubr.msk.bf16.vlgmr.msra.gmra.mrb[12].mxu1 %vm675_vm4, %v825_v39 }
 0x412   : > { %821 = vadd.xlane.f32.xlu1 %v820_v40  ;;  %1215 = vmatpush3.bf16.msra.mxu1 %v1245_v38 }
 0x413   : > { %1216 = vmatprep.subr.bf16.mxu1 %v1277_v15  ;;  %1218 = vmatprep.mubr.msk.bf16.mxu1 %vm1278_vm1, %v1277_v15 }
 0x416   : > { %1217 = vmatpush3.bf16.msra.mxu1 %v1246_v41 }
 0x428   : > { %v690_v43 = vpop.xlane.xlu1 %689 }
 0x429   : > { %1261 = vrcp.f32 %v690_v43 }
 0x42c   : > { %v693_v44 = vpop.xlane.xlu1 %692 }
 0x42d   : > { %1263 = vrcp.f32 %v693_v44 }
 0x433   : > { %v1262_v47 = vpop.eup %1261 }
 0x437   : > { %v1264_v49 = vpop.eup %1263 }
 0x471   : > { %v738_v46 = vpop.f32.mrb[8].mxu1 }
 0x472   : > { %v1192_v48 = vpop.f32.mrb[9].mxu1  ;;  %v745_v51 = vmul.f32 %v1262_v47, %v738_v46 }
 0x473   : > { %v741_v50 = vpop.f32.mrb[10].mxu1 }
 0x474   : > { %v746_v52 = vmul.f32 %v1264_v49, %v741_v50  ;;  %v1193_v53 = vpop.f32.mrb[11].mxu1 }
 0x476   : > { %v747_v54 = vpack.c.bf16 %v746_v52, %v745_v51 }
 0x478   : > { %1219 = vmatmul.mubr.msk.bf16.vlgmr.msra.gmra.mrb[16].mxu1 %vm627_vm2, %v747_v54 }
 0x49b   : > { %v819_v15 = vpop.xlane.xlu1 %818 }
 0x49c   : > { %1265 = vrcp.f32 %v819_v15 }
 0x49f   : > { %v822_v55 = vpop.xlane.xlu1 %821 }
 0x4a0   : > { %1267 = vrcp.f32 %v822_v55 }
 0x4a6   : > { %v1266_v57 = vpop.eup %1265 }
 0x4aa   : > { %v1268_v59 = vpop.eup %1267 }
 0x4e4   : > { %v869_v56 = vpop.f32.mrb[12].mxu1 }
 0x4e5   : > { %v1204_v58 = vpop.f32.mrb[13].mxu1  ;;  %v876_v61 = vmul.f32 %v1266_v57, %v869_v56 }
 0x4e6   : > { %v872_v60 = vpop.f32.mrb[14].mxu1 }
 0x4e7   : > { %v877_v62 = vmul.f32 %v1268_v59, %v872_v60  ;;  %v1205_v63 = vpop.f32.mrb[15].mxu1 }
 0x4e9   : > { %v878_v2 = vpack.c.bf16 %v877_v62, %v876_v61 }
 0x4eb   : > { %1211 = vmatmul.mubr.msk.bf16.vlgmr.msra.gmra.mrb[12].mxu0 %vm627_vm2, %v878_v2 }
 0x54b   : > { %v988_v3 = vpop.f32.mrb[16].mxu1 }
 0x54c   : > { %v1220_v4 = vpop.f32.mrb[17].mxu1 }
 0x54d   : > { %v991_v5 = vpop.f32.mrb[18].mxu1 }
 0x54e   : > { %v1221_v6 = vpop.f32.mrb[19].mxu1 }
 0x5be   : > { %v932_v7 = vpop.f32.mrb[12].mxu0 }
 0x5bf   : > { %v989_v9 = vadd.f32 %v988_v3, %v932_v7  ;;  %v1212_v10 = vpop.f32.mrb[13].mxu0 }
 0x5c0   : > { %v935_v11 = vpop.f32.mrb[14].mxu0 }
 0x5c1   : > { %v1002_v12 = vadd.f32 %v1112_v8, %v989_v9  ;;  %v992_v13 = vadd.f32 %v991_v5, %v935_v11  ;;  %v1213_v14 = vpop.f32.mrb[15].mxu0 }
 0x5c3   : > { %v1004_v16 = vadd.f32 %v1002_v12, %v1346_v0  ;;  %v1003_v17 = vadd.f32 %v1112_v8, %v992_v13 }
 0x5c5   : > { %1006 = vst.msk [vmem:[%s349_s24] sm:$0xff] %vm355_vm0, %v1004_v16  ;;  %v1005_v18 = vadd.f32 %v1003_v17, %v1348_v1 }
 0x5c7   : > { %1007 = vst.msk [vmem:[%s349_s24 + $0x8] sm:$0xff] %vm355_vm0, %v1005_v18 }
 0x5c8 PF: > { %s19_s30 = sadd.s32 1, %s1275_s30  }
 0x5c9   : > { %p16_p4 = scmp.ge.s32.totalorder %s19_s30, 4  }
 0x5cb   :  { %18 = sbr.rel (!%p16_p4) target bundleno = 1 (0x1), region = 89 }

// kernel: pvt_forward.45
= control target key start
LH: loop header
LB: loop body
LE: loop exit
PB: predicated region body
PF: predicated region fallthrough
CT: control target
= control target key end

     0   :  { %vm33_vm0 = vcmask 523264   ;;  %v610_v36 = vmov 0   ;;  %s840_s0 = inlined_call_operand.vmem [shape: f32[32,64], index: 0, kind: input, shape index: {}]   ;;  %s841_s3 = inlined_call_operand.vmem [shape: bf16[64,256], index: 3, kind: input, shape index: {}]   ;;  %s842_s1 = inlined_call_operand.vmem [shape: f32[1,64], index: 1, kind: input, shape index: {}]   ;;  %s843_s2 = inlined_call_operand.vmem [shape: f32[1,64], index: 2, kind: input, shape index: {}]   ;;  %s844_s5 = inlined_call_operand.vmem [shape: bf16[256,64], index: 5, kind: input, shape index: {}]   ;;  %s845_s4 = inlined_call_operand.vmem [shape: f32[1,256], index: 4, kind: input, shape index: {}]   ;;  %s846_s6 = inlined_call_operand.vmem [shape: f32[1,64], index: 6, kind: input, shape index: {}]   ;;  %s847_s7 = inlined_call_operand.vmem [shape: f32[32,64], index: 7, kind: output, shape index: {}]  }
   0x1   :  { %v654_v0 = vld [vmem:[%s840_s0] sm:$0xff]  ;;  %v659_v1 = vld [vmem:[%s840_s0 + $0x10] sm:$0xff]  ;;  %v664_v2 = vld [vmem:[%s840_s0 + $0x8] sm:$0xff]  ;;  %207 = vmatprep.mubr.bf16.mxu0 %v610_v36 }
   0x2   :  { %v34_v3 = vsel %vm33_vm0, %v654_v0, 0.0  ;;  %v40_v4 = vsel %vm33_vm0, %v659_v1, 0.0  ;;  %v673_v5 = vld [vmem:[%s840_s0 + $0x18] sm:$0xff]  ;;  %v37_v6 = vsel %vm33_vm0, %v664_v2, 0.0  ;;  %v558_v28 = vld [vmem:[%s841_s3 + $0x4] ss:$8 sps:$4 sm:$0xff]  }
   0x3   :  { %35 = vadd.xlane.f32.xlu0 %v34_v3  ;;  %41 = vadd.xlane.f32.xlu1 %v40_v4  ;;  %v43_v7 = vsel %vm33_vm0, %v673_v5, 0.0  ;;  %v560_v29 = vld [vmem:[%s841_s3] ss:$8 sps:$4 sm:$0xff]   ;;  %v561_v30 = vld [vmem:[%s841_s3 + $0x14] ss:$8 sps:$4 sm:$0xff]  }
   0x4   :  { %175 = vmatprep.subr.bf16.mxu0 %v558_v28  ;;  %v563_v31 = vld [vmem:[%s841_s3 + $0x10] ss:$8 sps:$4 sm:$0xff]   ;;  %v564_v32 = vld [vmem:[%s841_s3 + $0x24] ss:$8 sps:$4 sm:$0xff]   ;;  %v566_v33 = vld [vmem:[%s841_s3 + $0x20] ss:$8 sps:$4 sm:$0xff]  }
   0x5   :  { %176 = vmatpush1.bf16.msra.mxu0 %v560_v29  ;;  %v567_v34 = vld [vmem:[%s841_s3 + $0x34] ss:$8 sps:$4 sm:$0xff]   ;;  %v569_v35 = vld [vmem:[%s841_s3 + $0x30] ss:$8 sps:$4 sm:$0xff]   ;;  %v500_v51 = vld [vmem:[%s842_s1] ss:$0 sm:$0xff] }
   0x6   :  { %177 = vmatprep.subr.bf16.mxu0 %v561_v30  ;;  %v501_v56 = vld [vmem:[%s843_s2] ss:$0 sm:$0xff] }
   0x7   :  { %38 = vadd.xlane.f32.xlu0 %v37_v6  ;;  %44 = vadd.xlane.f32.xlu1 %v43_v7  ;;  %v117_v28 = vld [vmem:[%s845_s4] sm:$0x3] }
   0x9   :  { %178 = vmatpush1.bf16.msra.mxu0 %v563_v31 }
   0xa   :  { %179 = vmatprep.subr.bf16.mxu0 %v564_v32 }
   0xd   :  { %180 = vmatpush1.bf16.msra.mxu0 %v566_v33 }
   0xe   :  { %181 = vmatprep.subr.bf16.mxu0 %v567_v34 }
  0x11   :  { %182 = vmatpush1.bf16.msra.mxu0 %v569_v35 }
  0x90   :  { %v36_v8 = vpop.xlane.xlu0 %35  ;;  %v42_v9 = vpop.xlane.xlu1 %41 }
  0x91   :  { %v47_v10 = vmul.f32 0.015625, %v36_v8  ;;  %v49_v11 = vmul.f32 0.015625, %v42_v9  ;;  %v570_v9 = vld [vmem:[%s844_s5 + $0x40] sm:$0xff]  }
  0x92   :  { %529 = vmatprep.subr.bf16.mxu1 %v570_v9 }
  0x93   :  { %v51_v12 = vsub.f32 %v654_v0, %v47_v10  ;;  %v681_v13 = vsub.f32 %v659_v1, %v49_v11  ;;  %v571_v10 = vld [vmem:[%s844_s5] sm:$0xff]   ;;  %v572_v11 = vld [vmem:[%s844_s5 + $0x48] sm:$0xff]  }
  0x94   :  { %v39_v14 = vpop.xlane.xlu0 %38  ;;  %v45_v15 = vpop.xlane.xlu1 %44  ;;  %530 = vmatpush3.bf16.msra.mxu1 %v571_v10 }
  0x95   :  { %v48_v16 = vmul.f32 0.015625, %v39_v14  ;;  %v50_v17 = vmul.f32 0.015625, %v45_v15  ;;  %v55_v18 = vmul.f32 %v51_v12, %v51_v12  ;;  %v57_v19 = vmul.f32 %v681_v13, %v681_v13  ;;  %531 = vmatprep.subr.bf16.mxu1 %v572_v11  ;;  %v575_v14 = vld [vmem:[%s844_s5 + $0x10] sm:$0xff]   ;;  %v576_v15 = vld [vmem:[%s844_s5 + $0x58] sm:$0xff]  }
  0x97   :  { %v52_v20 = vsub.f32 %v664_v2, %v48_v16  ;;  %v54_v21 = vsub.f32 %v673_v5, %v50_v17  ;;  %v59_v22 = vsel %vm33_vm0, %v55_v18, 0.0  ;;  %v65_v23 = vsel %vm33_vm0, %v57_v19, 0.0  ;;  %v577_v16 = vld [vmem:[%s844_s5 + $0x18] sm:$0xff]   ;;  %v578_v17 = vld [vmem:[%s844_s5 + $0x60] sm:$0xff]   ;;  %v580_v19 = vld [vmem:[%s844_s5 + $0x68] sm:$0xff]  }
  0x98   :  { %60 = vadd.xlane.f32.xlu0 %v59_v22  ;;  %v579_v18 = vld [vmem:[%s844_s5 + $0x20] sm:$0xff]   ;;  %v583_v22 = vld [vmem:[%s844_s5 + $0x30] sm:$0xff]  }
  0x99   :  { %v56_v24 = vmul.f32 %v52_v20, %v52_v20  ;;  %v58_v25 = vmul.f32 %v54_v21, %v54_v21 }
  0x9b   :  { %v62_v26 = vsel %vm33_vm0, %v56_v24, 0.0  ;;  %v68_v27 = vsel %vm33_vm0, %v58_v25, 0.0  ;;  %v585_v24 = vld [vmem:[%s844_s5 + $0x38] sm:$0xff]   ;;  %v119_v25 = vlaneseq }
  0x9c   :  { %66 = vadd.xlane.f32.xlu0 %v65_v23  ;;  %63 = vadd.xlane.f32.xlu1 %v62_v26  ;;  %v584_v23 = vld [vmem:[%s844_s5 + $0x78] sm:$0xff]  }
  0x9d   :  { %v120_v26 = vshrl.u32 %v119_v25, 7 }
  0x9f   :  { %v125_v29 = vsub.s32 1, %v120_v26 }
  0xa0   :  { %69 = vadd.xlane.f32.xlu1 %v68_v27  ;;  %v121_v27 = vsub.s32 0, %v120_v26 }
  0xa1   :  { %v126_v31 = vrot.slane %v117_v28, %v125_v29 }
  0xa2   :  { %v122_v30 = vrot.slane %v117_v28, %v121_v27 }
 0x125   :  { %v61_v37 = vpop.xlane.xlu0 %60 }
 0x126   :  { %v71_v38 = vmul.f32 0.015625, %v61_v37 }
 0x128   :  { %v75_v39 = vadd.f32 1e-06, %v71_v38 }
 0x129   :  { %v64_v40 = vpop.xlane.xlu1 %63  ;;  %v67_v41 = vpop.xlane.xlu0 %66 }
 0x12a   :  { %586 = vrsqrt.f32 %v75_v39  ;;  %v72_v42 = vmul.f32 0.015625, %v64_v40  ;;  %v73_v43 = vmul.f32 0.015625, %v67_v41 }
 0x12c   :  { %v76_v44 = vadd.f32 1e-06, %v72_v42  ;;  %v77_v45 = vadd.f32 1e-06, %v73_v43 }
 0x12d   :  { %v70_v46 = vpop.xlane.xlu1 %69 }
 0x12e   :  { %588 = vrsqrt.f32 %v76_v44  ;;  %v74_v47 = vmul.f32 0.015625, %v70_v46 }
 0x12f   :  { %590 = vrsqrt.f32 %v77_v45 }
 0x130   :  { %v78_v48 = vadd.f32 1e-06, %v74_v47 }
 0x132   :  { %592 = vrsqrt.f32 %v78_v48 }
 0x134   :  { %v587_v49 = vpop.eup %586 }
 0x135   :  { %v83_v50 = vmul.f32 %v587_v49, %v51_v12  ;;  %v573_v12 = vld [vmem:[%s844_s5 + $0x8] sm:$0xff]  }
 0x136   :  { %532 = vmatpush3.bf16.msra.mxu1 %v573_v12 }
 0x137   :  { %v93_v54 = vmul.f32 %v500_v51, %v83_v50 }
 0x138   :  { %v589_v52 = vpop.eup %588 }
 0x139   :  { %v84_v53 = vmul.f32 %v589_v52, %v52_v20  ;;  %v591_v55 = vpop.eup %590  ;;  %v103_v61 = vadd.f32 %v501_v56, %v93_v54  ;;  %v581_v20 = vld [vmem:[%s844_s5 + $0x28] sm:$0xff]  }
 0x13a   :  { %v85_v59 = vmul.f32 %v591_v55, %v681_v13  ;;  %v574_v13 = vld [vmem:[%s844_s5 + $0x50] sm:$0xff]  }
 0x13b   :  { %v94_v57 = vmul.f32 %v500_v51, %v84_v53  ;;  %533 = vmatprep.subr.bf16.mxu1 %v574_v13 }
 0x13c   :  { %v593_v58 = vpop.eup %592  ;;  %v95_v4 = vmul.f32 %v500_v51, %v85_v59  ;;  %534 = vmatpush3.bf16.msra.mxu1 %v575_v14 }
 0x13d   :  { %v86_v60 = vmul.f32 %v593_v58, %v54_v21  ;;  %v104_v62 = vadd.f32 %v501_v56, %v94_v57  ;;  %535 = vmatprep.subr.bf16.mxu1 %v576_v15  ;;  %v582_v21 = vld [vmem:[%s844_s5 + $0x70] sm:$0xff]  }
 0x13e   :  { %v105_v7 = vadd.f32 %v501_v56, %v95_v4 }
 0x13f   :  { %v107_v63 = vpack.c.bf16 %v104_v62, %v103_v61  ;;  %v96_v3 = vmul.f32 %v500_v51, %v86_v60 }
 0x140   :  { %536 = vmatpush3.bf16.msra.mxu1 %v577_v16 }
 0x141   :  { %510 = vmatmul.mubr.msk.bf16.vlgmr.msra.gmra.mrb[0].mxu0 %vm33_vm0, %v107_v63  ;;  %v106_v6 = vadd.f32 %v501_v56, %v96_v3  ;;  %537 = vmatprep.subr.bf16.mxu1 %v578_v17 }
 0x142   :  { %217 = vmatprep.mubr.bf16.mxu0 %v610_v36 }
 0x143   :  { %v108_v8 = vpack.c.bf16 %v106_v6, %v105_v7 }
 0x144   :  { %538 = vmatpush3.bf16.msra.mxu1 %v579_v18 }
 0x145   :  { %539 = vmatprep.subr.bf16.mxu1 %v580_v19 }
 0x148   :  { %540 = vmatpush3.bf16.msra.mxu1 %v581_v20 }
 0x149   :  { %511 = vmatmul.mubr.msk.bf16.gmra.mrb[4].mxu0 %vm33_vm0, %v108_v8  ;;  %541 = vmatprep.subr.bf16.mxu1 %v582_v21 }
 0x14c   :  { %542 = vmatpush3.bf16.msra.mxu1 %v583_v22 }
 0x14d   :  { %543 = vmatprep.subr.bf16.mxu1 %v584_v23 }
 0x150   :  { %544 = vmatpush3.bf16.msra.mxu1 %v585_v24 }
 0x214   :  { %v209_v32 = vpop.f32.mrb[0].mxu0 }
 0x215   :  { %v775_v33 = vadd.f32 %v209_v32, %v122_v30  ;;  %v211_v34 = vpop.f32.mrb[1].mxu0 }
 0x216   :  { %v777_v35 = vadd.f32 %v211_v34, %v126_v31  ;;  %v213_v36 = vpop.f32.mrb[2].mxu0 }
 0x217   :  { %v236_v37 = vmul.f32 0.044715, %v775_v33  ;;  %v780_v38 = vadd.f32 %v213_v36, %v122_v30  ;;  %v215_v39 = vpop.f32.mrb[3].mxu0  ;;  %v228_v36 = vmul.f32 0.5, %v775_v33 }
 0x218   :  { %v237_v40 = vmul.f32 0.044715, %v777_v35  ;;  %v783_v41 = vadd.f32 %v215_v39, %v126_v31 }
 0x219   :  { %v244_v42 = vmul.f32 %v236_v37, %v775_v33  ;;  %v238_v43 = vmul.f32 0.044715, %v780_v38  ;;  %v230_v37 = vmul.f32 0.5, %v780_v38 }
 0x21a   :  { %v239_v44 = vmul.f32 0.044715, %v783_v41  ;;  %v245_v45 = vmul.f32 %v237_v40, %v777_v35  ;;  %v229_v40 = vmul.f32 0.5, %v777_v35 }
 0x21b   :  { %v252_v46 = vmul.f32 %v244_v42, %v775_v33  ;;  %v246_v47 = vmul.f32 %v238_v43, %v780_v38  ;;  %v231_v42 = vmul.f32 0.5, %v783_v41 }
 0x21c   :  { %v219_v48 = vpop.f32.mrb[4].mxu0  ;;  %v247_v49 = vmul.f32 %v239_v44, %v783_v41  ;;  %v253_v50 = vmul.f32 %v245_v45, %v777_v35 }
 0x21d   :  { %v254_v51 = vmul.f32 %v246_v47, %v780_v38  ;;  %v794_v52 = vadd.f32 %v219_v48, %v122_v30  ;;  %v221_v53 = vpop.f32.mrb[5].mxu0  ;;  %v260_v54 = vadd.f32 %v252_v46, %v775_v33 }
 0x21e   :  { %v797_v55 = vadd.f32 %v221_v53, %v126_v31  ;;  %v223_v56 = vpop.f32.mrb[6].mxu0  ;;  %v255_v57 = vmul.f32 %v247_v49, %v783_v41  ;;  %v261_v58 = vadd.f32 %v253_v50, %v777_v35 }
 0x21f   :  { %v240_v59 = vmul.f32 0.044715, %v794_v52  ;;  %v224_v60 = vadd.f32 %v223_v56, %v122_v30  ;;  %v225_v61 = vpop.f32.mrb[7].mxu0  ;;  %v262_v62 = vadd.f32 %v254_v51, %v780_v38  ;;  %v268_v63 = vmul.f32 0.7978846, %v260_v54 }
 0x220   :  { %v241_v3 = vmul.f32 0.044715, %v797_v55  ;;  %v226_v4 = vadd.f32 %v225_v61, %v126_v31  ;;  %v263_v6 = vadd.f32 %v255_v57, %v783_v41  ;;  %v269_v7 = vmul.f32 0.7978846, %v261_v58 }
 0x221   :  { %v248_v8 = vmul.f32 %v240_v59, %v794_v52  ;;  %v242_v9 = vmul.f32 0.044715, %v224_v60  ;;  %v270_v10 = vmul.f32 0.7978846, %v262_v62  ;;  %594 = vtanh.f32 %v268_v63 }
 0x222   :  { %v249_v11 = vmul.f32 %v241_v3, %v797_v55  ;;  %v243_v12 = vmul.f32 0.044715, %v226_v4  ;;  %v271_v13 = vmul.f32 0.7978846, %v263_v6  ;;  %596 = vtanh.f32 %v269_v7 }
 0x223   :  { %v256_v14 = vmul.f32 %v248_v8, %v794_v52  ;;  %v250_v15 = vmul.f32 %v242_v9, %v224_v60  ;;  %598 = vtanh.f32 %v270_v10  ;;  %v232_v38 = vmul.f32 0.5, %v794_v52  ;;  %v512_v9 = vld [vmem:[%s846_s6] ss:$0 sm:$0xff] }
 0x224   :  { %v257_v16 = vmul.f32 %v249_v11, %v797_v55  ;;  %v251_v17 = vmul.f32 %v243_v12, %v226_v4  ;;  %600 = vtanh.f32 %v271_v13  ;;  %v234_v35 = vmul.f32 0.5, %v224_v60 }
 0x225   :  { %v258_v18 = vmul.f32 %v250_v15, %v224_v60  ;;  %v264_v19 = vadd.f32 %v256_v14, %v794_v52  ;;  %v233_v41 = vmul.f32 0.5, %v797_v55  ;;  %v235_v58 = vmul.f32 0.5, %v226_v4 }
 0x226   :  { %v259_v20 = vmul.f32 %v251_v17, %v226_v4  ;;  %v265_v21 = vadd.f32 %v257_v16, %v797_v55 }
 0x227   :  { %v266_v22 = vadd.f32 %v258_v18, %v224_v60  ;;  %v272_v23 = vmul.f32 0.7978846, %v264_v19 }
 0x228   :  { %v267_v24 = vadd.f32 %v259_v20, %v226_v4  ;;  %v273_v25 = vmul.f32 0.7978846, %v265_v21 }
 0x229   :  { %v274_v26 = vmul.f32 0.7978846, %v266_v22  ;;  %602 = vtanh.f32 %v272_v23 }
 0x22a   :  { %v275_v27 = vmul.f32 0.7978846, %v267_v24  ;;  %604 = vtanh.f32 %v273_v25 }
 0x22b   :  { %v595_v28 = vpop.eup %594  ;;  %606 = vtanh.f32 %v274_v26 }
 0x22c   :  { %v597_v29 = vpop.eup %596  ;;  %v284_v30 = vadd.f32 1.0, %v595_v28  ;;  %608 = vtanh.f32 %v275_v27 }
 0x22d   :  { %v599_v31 = vpop.eup %598  ;;  %v285_v32 = vadd.f32 1.0, %v597_v29 }
 0x22e   :  { %v601_v34 = vpop.eup %600  ;;  %v286_v39 = vadd.f32 1.0, %v599_v31  ;;  %v292_v44 = vmul.f32 %v284_v30, %v228_v36 }
 0x22f   :  { %v287_v43 = vadd.f32 1.0, %v601_v34  ;;  %v293_v46 = vmul.f32 %v285_v32, %v229_v40 }
 0x230   :  { %v294_v45 = vmul.f32 %v286_v39, %v230_v37 }
 0x231   :  { %v295_v47 = vmul.f32 %v287_v43, %v231_v42 }
 0x232   :  { %v300_v48 = vpack.c.bf16 %v294_v45, %v292_v44 }
 0x233   :  { %v603_v49 = vpop.eup %602  ;;  %v301_v50 = vpack.c.bf16 %v295_v47, %v293_v46 }
 0x234   :  { %v605_v51 = vpop.eup %604  ;;  %v288_v53 = vadd.f32 1.0, %v603_v49 }
 0x235   :  { %v607_v54 = vpop.eup %606  ;;  %471 = vmatprep.mubr.bf16.mxu1 %v301_v50  ;;  %v289_v33 = vadd.f32 1.0, %v605_v51 }
 0x236   :  { %v609_v56 = vpop.eup %608  ;;  %472 = vmatmul.mubr.bf16.vlgmr.msra.gmra.mrb[0].mxu1 %v300_v48  ;;  %v290_v57 = vadd.f32 1.0, %v607_v54  ;;  %v296_v61 = vmul.f32 %v288_v53, %v232_v38 }
 0x237   :  { %v291_v59 = vadd.f32 1.0, %v609_v56  ;;  %v297_v63 = vmul.f32 %v289_v33, %v233_v41 }
 0x238   :  { %v298_v62 = vmul.f32 %v290_v57, %v234_v35 }
 0x239   :  { %v299_v3 = vmul.f32 %v291_v59, %v235_v58 }
 0x23a   :  { %v302_v6 = vpack.c.bf16 %v298_v62, %v296_v61 }
 0x23b   :  { %v303_v7 = vpack.c.bf16 %v299_v3, %v297_v63 }
 0x23d   :  { %479 = vmatprep.mubr.bf16.mxu1 %v303_v7 }
 0x23e   :  { %480 = vmatmul.mubr.bf16.gmra.mrb[4].mxu1 %v302_v6 }
 0x309   :  { %v545_v8 = vpop.f32.mrb[0].mxu1 }
 0x30a   :  { %v546_v52 = vpop.f32.mrb[1].mxu1 }
 0x30b   :  { %v547_v60 = vadd.f32 %v546_v52, %v545_v8  ;;  %v548_v10 = vpop.f32.mrb[2].mxu1 }
 0x30c   :  { %v549_v11 = vpop.f32.mrb[3].mxu1 }
 0x30d   :  { %v474_v55 = vadd.f32 %v547_v60, %v512_v9  ;;  %v550_v4 = vadd.f32 %v549_v11, %v548_v10 }
 0x30f   :  { %v488_v12 = vadd.f32 %v474_v55, %v654_v0  ;;  %v477_v13 = vadd.f32 %v550_v4, %v512_v9 }
 0x311   :  { %492 = vst.msk [vmem:[%s847_s7] sm:$0xff] %vm33_vm0, %v488_v12  ;;  %v489_v14 = vadd.f32 %v477_v13, %v664_v2  ;;  %v551_v15 = vpop.f32.mrb[4].mxu1 }
 0x312   :  { %v552_v16 = vpop.f32.mrb[5].mxu1 }
 0x313   :  { %493 = vst.msk [vmem:[%s847_s7 + $0x8] sm:$0xff] %vm33_vm0, %v489_v14  ;;  %v553_v17 = vadd.f32 %v552_v16, %v551_v15  ;;  %v554_v18 = vpop.f32.mrb[6].mxu1 }
 0x314   :  { %v555_v19 = vpop.f32.mrb[7].mxu1 }
 0x315   :  { %v482_v20 = vadd.f32 %v553_v17, %v512_v9  ;;  %v556_v0 = vadd.f32 %v555_v19, %v554_v18 }
 0x317   :  { %v490_v21 = vadd.f32 %v482_v20, %v659_v1  ;;  %v485_v22 = vadd.f32 %v556_v0, %v512_v9 }
 0x319   :  { %494 = vst.msk [vmem:[%s847_s7 + $0x10] sm:$0xff] %vm33_vm0, %v490_v21  ;;  %v491_v2 = vadd.f32 %v485_v22, %v673_v5 }
 0x31b   :  { %495 = vst.msk [vmem:[%s847_s7 + $0x18] sm:$0xff] %vm33_vm0, %v491_v2 }

// kernel: pvt_forward.50
= control target key start
LH: loop header
LB: loop body
LE: loop exit
PB: predicated region body
PF: predicated region fallthrough
CT: control target
= control target key end

     0   :  { %s647_s21 = smov 0   ;;  %s731_s0 = inlined_call_operand.vmem [shape: bf16[2,4,256], index: 0, kind: input, shape index: {}]   ;;  %s732_s1 = inlined_call_operand.vmem [shape: bf16[256,128], index: 1, kind: input, shape index: {}]   ;;  %s733_s2 = inlined_call_operand.vmem [shape: f32[1,128], index: 2, kind: input, shape index: {}]   ;;  %s734_s3 = inlined_call_operand.vmem [shape: f32[1,128], index: 3, kind: input, shape index: {}]   ;;  %s735_s4 = inlined_call_operand.vmem [shape: f32[1,128], index: 4, kind: input, shape index: {}]   ;;  %s736_s5 = inlined_call_operand.vmem [shape: f32[4,128], index: 5, kind: input, shape index: {}]   ;;  %s737_s6 = inlined_call_operand.vmem [shape: f32[2,4,128], index: 6, kind: output, shape index: {}]  }
   0x1 LB: > { %s525_s22 = sadd.s32 4294967295, %s610_s21   ;;  %p529_p0 = scmp.ge.s32.totalorder %s610_s21, 1  ;;  %s610_s21 = sphi %s647_s21, %s16_s21  }
   0x2   : > { %p212_p1 = scmp.lt.s32.totalorder %s610_s21, 3 }
   0x4   : > { %p213_p2 = pnand %p529_p0, %p212_p1 }
   0x5   : > { %v586_v0 = vld [vmem:[%s732_s1 + $0x40] sm:$0xff] (!%p213_p2)   ;;  %v588_v2 = vld [vmem:[%s732_s1 + $0x48] sm:$0xff] (!%p213_p2)   ;;  %p241_p3 = scmp.lt.s32.totalorder (!%p213_p2), %s525_s22, 1  ;;  %v590_v4 = vld [vmem:[%s732_s1 + $0x50] sm:$0xff] (!%p213_p2)   ;;  %vm440_vm0 = vcmask (!%p213_p2), 1043456  }
   0x6   : > { %216 = sbr.rel (%p213_p2) target bundleno = 571 (0x23b), region = 44  ;;  %v587_v1 = vld [vmem:[%s732_s1] sm:$0xff] (!%p213_p2)   ;;  %556 = vmatprep.subr.bf16.mxu0 (!%p213_p2), %v586_v0  ;;  %v589_v3 = vld [vmem:[%s732_s1 + $0x8] sm:$0xff] (!%p213_p2)   ;;  %v591_v5 = vld [vmem:[%s732_s1 + $0x10] sm:$0xff] (!%p213_p2)  }
   0x7   : > { %557 = vmatpush3.bf16.msra.mxu0 (!%p213_p2), %v587_v1  ;;  %v592_v6 = vld [vmem:[%s732_s1 + $0x58] sm:$0xff] (!%p213_p2)   ;;  %v594_v8 = vld [vmem:[%s732_s1 + $0x60] sm:$0xff] (!%p213_p2)   ;;  %v596_v10 = vld [vmem:[%s732_s1 + $0x68] sm:$0xff] (!%p213_p2)  }
   0x8   : > { %558 = vmatprep.subr.bf16.mxu0 (!%p213_p2), %v588_v2  ;;  %v593_v7 = vld [vmem:[%s732_s1 + $0x18] sm:$0xff] (!%p213_p2)   ;;  %v595_v9 = vld [vmem:[%s732_s1 + $0x20] sm:$0xff] (!%p213_p2)   ;;  %v597_v13 = vld [vmem:[%s732_s1 + $0x28] sm:$0xff] (!%p213_p2)  }
   0x9   : > { %v598_v14 = vld [vmem:[%s732_s1 + $0x70] sm:$0xff] (!%p213_p2)   ;;  %v600_v16 = vld [vmem:[%s732_s1 + $0x78] sm:$0xff] (!%p213_p2)   ;;  %v533_v20 = vld [vmem:[%s733_s2] ss:$0 sm:$0xff] (!%p213_p2) }
   0xa   : > { %v599_v15 = vld [vmem:[%s732_s1 + $0x30] sm:$0xff] (!%p213_p2)   ;;  %v601_v17 = vld [vmem:[%s732_s1 + $0x38] sm:$0xff] (!%p213_p2)   ;;  %v551_v35 = vld [vmem:[%s734_s3] ss:$0 sm:$0xff] (!%p213_p2) }
   0xb   : > { %559 = vmatpush3.bf16.msra.mxu0 (!%p213_p2), %v589_v3  ;;  %v552_v37 = vld [vmem:[%s735_s4] ss:$0 sm:$0xff] (!%p213_p2) }
   0xc   : > { %560 = vmatprep.subr.bf16.mxu0 (!%p213_p2), %v590_v4  ;;  %v469_v39 = vld [vmem:[%s736_s5] sm:$0xf] (!%p213_p2) }
   0xd   : > { %s739_s22 = smov (!%p241_p3, %s525_s22), 1 }
   0xe   : > { %s555_s13 = sshll.u32 %s739_s22, 2 }
   0xf   : > { %561 = vmatpush3.bf16.msra.mxu0 %v591_v5  ;;  %s245_s20 = scalar_lea.vmem %s731_s0, %s555_s13  ;;  %s249_s26 = scalar_lea.vmem %s737_s6, %s555_s13 }
  0x10   : > { %562 = vmatprep.subr.bf16.mxu0 %v592_v6  ;;  %v534_v11 = vld.sshfl [vmem:[%s245_s20] sm:$0x33 pattern:$0x76325410] }
  0x11   : > { %v299_v12 = vcombine.high %v534_v11, %v534_v11 }
  0x13   : > { %563 = vmatpush3.bf16.msra.mxu0 %v593_v7  ;;  %430 = vmatprep.mubr.bf16.mxu0 %v299_v12 }
  0x14   : > { %564 = vmatprep.subr.bf16.mxu0 %v594_v8 }
  0x17   : > { %565 = vmatpush3.bf16.msra.mxu0 %v595_v9 }
  0x18   : > { %566 = vmatprep.subr.bf16.mxu0 %v596_v10 }
  0x1b   : > { %567 = vmatpush3.bf16.msra.mxu0 %v597_v13 }
  0x1c   : > { %568 = vmatprep.subr.bf16.mxu0 %v598_v14 }
  0x1f   : > { %569 = vmatpush3.bf16.msra.mxu0 %v599_v15 }
  0x20   : > { %570 = vmatprep.subr.bf16.mxu0 %v600_v16 }
  0x23   : > { %571 = vmatpush3.bf16.msra.mxu0 %v601_v17 }
  0x26   : > { %431 = vmatmul.mubr.bf16.vlgmr.msra.gmra.mrb[0].mxu0 %v534_v11 }
  0xf9   : > { %v572_v18 = vpop.f32.mrb[0].mxu0 }
  0xfa   : > { %v573_v19 = vpop.f32.mrb[1].mxu0 }
  0xfb   : > { %v574_v21 = vadd.f32 %v573_v19, %v572_v18  ;;  %v575_v22 = vpop.f32.mrb[2].mxu0 }
  0xfc   : > { %v576_v23 = vpop.f32.mrb[3].mxu0 }
  0xfd   : > { %v433_v24 = vadd.f32 %v574_v21, %v533_v20 }
  0xff   : > { %v441_v25 = vsel %vm440_vm0, %v433_v24, 0.0 }
 0x100   : > { %442 = vadd.xlane.f32.xlu0 %v441_v25 }
 0x18d   : > { %v443_v26 = vpop.xlane.xlu0 %442 }
 0x18e   : > { %v445_v27 = vmul.f32 0.0078125, %v443_v26 }
 0x190   : > { %v446_v28 = vsub.f32 %v433_v24, %v445_v27 }
 0x192   : > { %v447_v29 = vmul.f32 %v446_v28, %v446_v28 }
 0x194   : > { %v448_v30 = vsel %vm440_vm0, %v447_v29, 0.0 }
 0x195   : > { %449 = vadd.xlane.f32.xlu0 %v448_v30 }
 0x222   : > { %v450_v31 = vpop.xlane.xlu0 %449 }
 0x223   : > { %v451_v32 = vmul.f32 0.0078125, %v450_v31 }
 0x225   : > { %v452_v33 = vadd.f32 1e-06, %v451_v32 }
 0x227   : > { %602 = vrsqrt.f32 %v452_v33 }
 0x231   : > { %v603_v34 = vpop.eup %602 }
 0x232   : > { %v454_v36 = vmul.f32 %v603_v34, %v446_v28 }
 0x234   : > { %v461_v38 = vmul.f32 %v551_v35, %v454_v36 }
 0x236   : > { %v468_v40 = vadd.f32 %v552_v37, %v461_v38 }
 0x238   : > { %v470_v41 = vadd.f32 %v469_v39, %v468_v40 }
 0x23a   : > { %471 = vst [vmem:[%s249_s26] sm:$0xf] %v470_v41 }
 0x23b PF: > { %s16_s21 = sadd.s32 1, %s610_s21  }
 0x23c   : > { %p13_p4 = scmp.ge.s32.totalorder %s16_s21, 4  }
 0x23e   :  { %15 = sbr.rel (!%p13_p4) target bundleno = 1 (0x1), region = 74 }

// kernel: pvt_forward.51
= control target key start
LH: loop header
LB: loop body
LE: loop exit
PB: predicated region body
PF: predicated region fallthrough
CT: control target
= control target key end

     0   :  { %s1768_s27 = smov 0   ;;  %s2026_s0 = inlined_call_operand.vmem [shape: f32[2,4,128], index: 0, kind: input, shape index: {}]   ;;  %s2027_s1 = inlined_call_operand.vmem [shape: f32[1,128], index: 1, kind: input, shape index: {}]   ;;  %s2028_s2 = inlined_call_operand.vmem [shape: f32[1,128], index: 2, kind: input, shape index: {}]   ;;  %s2029_s3 = inlined_call_operand.vmem [shape: bf16[128,128], index: 3, kind: input, shape index: {}]   ;;  %s2030_s4 = inlined_call_operand.vmem [shape: bf16[128,128], index: 4, kind: input, shape index: {}]   ;;  %s2031_s5 = inlined_call_operand.vmem [shape: bf16[128,128], index: 5, kind: input, shape index: {}]   ;;  %s2032_s6 = inlined_call_operand.vmem [shape: bf16[128,128], index: 6, kind: input, shape index: {}]   ;;  %s2033_s7 = inlined_call_operand.vmem [shape: f32[1,128], index: 7, kind: input, shape index: {}]   ;;  %s2034_s8 = inlined_call_operand.vmem [shape: f32[2,4,128], index: 8, kind: output, shape index: {}]  }
   0x1 LB: > { %s1396_s28 = sadd.s32 4294967295, %s1716_s27   ;;  %p1400_p0 = scmp.ge.s32.totalorder %s1716_s27, 1  ;;  %s1716_s27 = sphi %s1768_s27, %s18_s27  }
   0x2   : > { %p261_p1 = scmp.lt.s32.totalorder %s1716_s27, 3 }
   0x4   : > { %p262_p2 = pnand %p1400_p0, %p261_p1 }
   0x5   : > { %p293_p3 = scmp.lt.s32.totalorder (!%p262_p2), %s1396_s28, 1  ;;  %vm305_vm0 = vcmask (!%p262_p2), 1043456   ;;  %v1660_v2 = vld [vmem:[%s2029_s3] sm:$0xff] (!%p262_p2)   ;;  %v1718_v4 = vmov (!%p262_p2), 0.0   ;;  %v1662_v5 = vld [vmem:[%s2029_s3 + $0x8] sm:$0xff] (!%p262_p2)   ;;  %v1664_v7 = vld [vmem:[%s2029_s3 + $0x10] sm:$0xff] (!%p262_p2)  }
   0x6   : > { %265 = sbr.rel (%p262_p2) target bundleno = 2717 (0xa9d), region = 52  ;;  %v1661_v3 = vld [vmem:[%s2030_s4] sm:$0xff] (!%p262_p2)   ;;  %1507 = vmatprep.subr.bf16.mxu0 (!%p262_p2), %v1718_v4  ;;  %1527 = vmatprep.subr.bf16.mxu1 (!%p262_p2), %v1718_v4  ;;  %v1663_v6 = vld [vmem:[%s2030_s4 + $0x8] sm:$0xff] (!%p262_p2)   ;;  %v1665_v13 = vld [vmem:[%s2030_s4 + $0x10] sm:$0xff] (!%p262_p2)   ;;  %vm1719_vm1 = vmmov (!%p262_p2), 0   ;;  %vm650_vm2 = vcmask (!%p262_p2), 261120  }
   0x7   : > { %1508 = vmatpush3.bf16.msra.mxu0 (!%p262_p2), %v1660_v2  ;;  %1528 = vmatpush3.bf16.msra.mxu1 (!%p262_p2), %v1661_v3  ;;  %v1666_v14 = vld [vmem:[%s2029_s3 + $0x18] sm:$0xff] (!%p262_p2)   ;;  %v1668_v16 = vld [vmem:[%s2029_s3 + $0x20] sm:$0xff] (!%p262_p2)   ;;  %v1670_v18 = vld [vmem:[%s2029_s3 + $0x28] sm:$0xff] (!%p262_p2)   ;;  %s1720_s25 = smov (!%p262_p2), 96   ;;  %vm713_vm3 = vcmask (!%p262_p2), 1041408   ;;  %vm697_vm4 = vcmask (!%p262_p2), 27648  }
   0x8   : > { %1509 = vmatprep.subr.bf16.mxu0 (!%p262_p2), %v1718_v4  ;;  %1529 = vmatprep.subr.bf16.mxu1 (!%p262_p2), %v1718_v4  ;;  %v1667_v15 = vld [vmem:[%s2030_s4 + $0x18] sm:$0xff] (!%p262_p2)   ;;  %v1669_v17 = vld [vmem:[%s2030_s4 + $0x20] sm:$0xff] (!%p262_p2)   ;;  %v1671_v19 = vld [vmem:[%s2030_s4 + $0x28] sm:$0xff] (!%p262_p2)   ;;  %vm709_vm5 = vcmask (!%p262_p2), 31744   ;;  %s1721_s26 = smov (!%p262_p2), 64   ;;  %s1722_s30 = smov (!%p262_p2), 32  }
   0x9   : > { %1523 = vmatprep.mubr.msk.bf16.mxu0 (!%p262_p2), %vm1719_vm1, %v1718_v4  ;;  %1543 = vmatprep.mubr.msk.bf16.mxu1 (!%p262_p2), %vm1719_vm1, %v1718_v4  ;;  %v1672_v20 = vld [vmem:[%s2029_s3 + $0x30] sm:$0xff] (!%p262_p2)   ;;  %v1674_v22 = vld [vmem:[%s2029_s3 + $0x38] sm:$0xff] (!%p262_p2)   ;;  %v1403_v28 = vld [vmem:[%s2027_s1] ss:$0 sm:$0xff] (!%p262_p2) }
   0xa   : > { %v1673_v21 = vld [vmem:[%s2030_s4 + $0x30] sm:$0xff] (!%p262_p2)   ;;  %v1675_v23 = vld [vmem:[%s2030_s4 + $0x38] sm:$0xff] (!%p262_p2)   ;;  %v1404_v30 = vld [vmem:[%s2028_s2] ss:$0 sm:$0xff] (!%p262_p2) }
   0xb   : > { %1510 = vmatpush3.bf16.msra.mxu0 (!%p262_p2), %v1662_v5  ;;  %1530 = vmatpush3.bf16.msra.mxu1 (!%p262_p2), %v1663_v6  ;;  %v1676_v33 = vld [vmem:[%s2031_s5] sm:$0xff] (!%p262_p2)   ;;  %v1677_v35 = vld [vmem:[%s2031_s5 + $0x8] sm:$0xff] (!%p262_p2)   ;;  %v1678_v36 = vld [vmem:[%s2031_s5 + $0x10] sm:$0xff] (!%p262_p2)  }
   0xc   : > { %1511 = vmatprep.subr.bf16.mxu0 (!%p262_p2), %v1718_v4  ;;  %1531 = vmatprep.subr.bf16.mxu1 (!%p262_p2), %v1718_v4  ;;  %v1679_v37 = vld [vmem:[%s2031_s5 + $0x18] sm:$0xff] (!%p262_p2)   ;;  %v1680_v38 = vld [vmem:[%s2031_s5 + $0x20] sm:$0xff] (!%p262_p2)   ;;  %v1681_v39 = vld [vmem:[%s2031_s5 + $0x28] sm:$0xff] (!%p262_p2)  }
   0xd   : > { %s2036_s28 = smov (!%p293_p3, %s1396_s28), 1  ;;  %v1682_v40 = vld [vmem:[%s2031_s5 + $0x30] sm:$0xff]   ;;  %v1683_v41 = vld [vmem:[%s2031_s5 + $0x38] sm:$0xff]  }
   0xe   : > { %s1401_s29 = sshll.u32 %s2036_s28, 2 }
   0xf   : > { %s296_s10 = scalar_lea.vmem %s2026_s0, %s1401_s29  ;;  %1512 = vmatpush3.bf16.msra.mxu0 %v1664_v7  ;;  %1532 = vmatpush3.bf16.msra.mxu1 %v1665_v13 }
  0x10   : > { %v1784_v0 = vld [vmem:[%s296_s10] sm:$0xf]  ;;  %1513 = vmatprep.subr.bf16.mxu0 %v1718_v4  ;;  %1533 = vmatprep.subr.bf16.mxu1 %v1718_v4  ;;  %s300_s10 = scalar_lea.vmem %s2034_s8, %s1401_s29 }
  0x11   : > { %v306_v1 = vsel %vm305_vm0, %v1784_v0, 0.0 }
  0x12   : > { %307 = vadd.xlane.f32.xlu0 %v306_v1 }
  0x13   : > { %1514 = vmatpush3.bf16.msra.mxu0 %v1666_v14  ;;  %1534 = vmatpush3.bf16.msra.mxu1 %v1667_v15 }
  0x14   : > { %1515 = vmatprep.subr.bf16.mxu0 %v1718_v4  ;;  %1535 = vmatprep.subr.bf16.mxu1 %v1718_v4 }
  0x17   : > { %1516 = vmatpush3.bf16.msra.mxu0 %v1668_v16  ;;  %1536 = vmatpush3.bf16.msra.mxu1 %v1669_v17 }
  0x18   : > { %1517 = vmatprep.subr.bf16.mxu0 %v1718_v4  ;;  %1537 = vmatprep.subr.bf16.mxu1 %v1718_v4 }
  0x1b   : > { %1518 = vmatpush3.bf16.msra.mxu0 %v1670_v18  ;;  %1538 = vmatpush3.bf16.msra.mxu1 %v1671_v19 }
  0x1c   : > { %1519 = vmatprep.subr.bf16.mxu0 %v1718_v4  ;;  %1539 = vmatprep.subr.bf16.mxu1 %v1718_v4 }
  0x1f   : > { %1520 = vmatpush3.bf16.msra.mxu0 %v1672_v20  ;;  %1540 = vmatpush3.bf16.msra.mxu1 %v1673_v21 }
  0x20   : > { %1521 = vmatprep.subr.bf16.mxu0 %v1718_v4  ;;  %1541 = vmatprep.subr.bf16.mxu1 %v1718_v4 }
  0x23   : > { %1522 = vmatpush3.bf16.msra.mxu0 %v1674_v22  ;;  %1542 = vmatpush3.bf16.msra.mxu1 %v1675_v23 }
  0x24   : > { %1547 = vmatprep.subr.bf16.mxu0 %v1718_v4  ;;  %1567 = vmatprep.subr.bf16.mxu1 %v1718_v4 }
  0x9f   : > { %v308_v8 = vpop.xlane.xlu0 %307 }
  0xa0   : > { %v310_v9 = vmul.f32 0.0078125, %v308_v8 }
  0xa2   : > { %v311_v10 = vsub.f32 %v1784_v0, %v310_v9 }
  0xa4   : > { %v312_v11 = vmul.f32 %v311_v10, %v311_v10 }
  0xa6   : > { %v313_v12 = vsel %vm305_vm0, %v312_v11, 0.0 }
  0xa7   : > { %314 = vadd.xlane.f32.xlu0 %v313_v12 }
 0x134   : > { %v315_v24 = vpop.xlane.xlu0 %314 }
 0x135   : > { %v316_v25 = vmul.f32 0.0078125, %v315_v24 }
 0x137   : > { %v317_v26 = vadd.f32 1e-06, %v316_v25 }
 0x139   : > { %1692 = vrsqrt.f32 %v317_v26  ;;  %v1684_v26 = vld [vmem:[%s2032_s6] sm:$0xff]  }
 0x143   : > { %v1693_v27 = vpop.eup %1692 }
 0x144   : > { %v319_v29 = vmul.f32 %v1693_v27, %v311_v10 }
 0x146   : > { %v326_v31 = vmul.f32 %v1403_v28, %v319_v29  ;;  %v1685_v29 = vld [vmem:[%s2032_s6 + $0x8] sm:$0xff]  }
 0x148   : > { %v333_v32 = vadd.f32 %v1404_v30, %v326_v31  ;;  %v1686_v30 = vld [vmem:[%s2032_s6 + $0x10] sm:$0xff]   ;;  %v1687_v31 = vld [vmem:[%s2032_s6 + $0x18] sm:$0xff]  }
 0x14a   : > { %v334_v34 = vpack.c.bf16 %v333_v32, %v333_v32 }
 0x14c   : > { %1524 = vmatmul.mubr.bf16.vlgmr.msra.gmra.mrb[0].mxu0 %v334_v34  ;;  %1544 = vmatmul.mubr.bf16.vlgmr.msra.gmra.mrb[0].mxu1 %v334_v34 }
 0x14d   : > { %1548 = vmatpush3.bf16.msra.mxu0 %v1676_v33  ;;  %1563 = vmatprep.mubr.msk.bf16.mxu0 %vm1719_vm1, %v1718_v4 }
 0x14e   : > { %1549 = vmatprep.subr.bf16.mxu0 %v1718_v4  ;;  %1569 = vmatprep.mubr.msk.bf16.mxu1 %vm1719_vm1, %v1718_v4 }
 0x151   : > { %1550 = vmatpush3.bf16.msra.mxu0 %v1677_v35 }
 0x152   : > { %1551 = vmatprep.subr.bf16.mxu0 %v1718_v4 }
 0x155   : > { %1552 = vmatpush3.bf16.msra.mxu0 %v1678_v36 }
 0x156   : > { %1553 = vmatprep.subr.bf16.mxu0 %v1718_v4 }
 0x159   : > { %1554 = vmatpush3.bf16.msra.mxu0 %v1679_v37 }
 0x15a   : > { %1555 = vmatprep.subr.bf16.mxu0 %v1718_v4 }
 0x15d   : > { %1556 = vmatpush3.bf16.msra.mxu0 %v1680_v38 }
 0x15e   : > { %1557 = vmatprep.subr.bf16.mxu0 %v1718_v4 }
 0x161   : > { %1558 = vmatpush3.bf16.msra.mxu0 %v1681_v39 }
 0x162   : > { %1559 = vmatprep.subr.bf16.mxu0 %v1718_v4 }
 0x165   : > { %1560 = vmatpush3.bf16.msra.mxu0 %v1682_v40 }
 0x166   : > { %1561 = vmatprep.subr.bf16.mxu0 %v1718_v4 }
 0x169   : > { %1562 = vmatpush3.bf16.msra.mxu0 %v1683_v41 }
 0x16a   : > { %1591 = vmatprep.subr.bf16.mxu0 %v1718_v4 }
 0x16c   : > { %1564 = vmatmul.mubr.bf16.vlgmr.msra.gmra.mrb[4].mxu0 %v334_v34 }
 0x16d   : > { %1595 = vmatprep.mubr.msk.bf16.mxu0 %vm1719_vm1, %v1718_v4  ;;  %1592 = vmatpush3.bf16.msra.mxu0 %v1686_v30 }
 0x16e   : > { %1593 = vmatprep.subr.bf16.mxu0 %v1718_v4 }
 0x171   : > { %1594 = vmatpush3.bf16.msra.mxu0 %v1687_v31 }
 0x172   : > { %1607 = vmatprep.subr.bf16.mxu0 %v1718_v4 }
 0x21f   : > { %v433_v42 = vpop.f32.mrb[0].mxu0  ;;  %v537_v43 = vpop.f32.mrb[0].mxu1 }
 0x220   : > { %v1904_v44 = vpack.c.bf16 %v433_v42, %v433_v42  ;;  %v1906_v45 = vpack.c.bf16 %v537_v43, %v537_v43  ;;  %v1525_v46 = vpop.f32.mrb[1].mxu0  ;;  %v1545_v47 = vpop.f32.mrb[1].mxu1 }
 0x221   : > { %v436_v48 = vpop.f32.mrb[2].mxu0  ;;  %v540_v49 = vpop.f32.mrb[2].mxu1 }
 0x222   : > { %v1546_v50 = vpop.f32.mrb[3].mxu1  ;;  %764 = vrot.lane.b32.xlu0 %v1904_v44, %s1720_s25  ;;  %v1526_v51 = vpop.f32.mrb[3].mxu0  ;;  %v655_v52 = vsel %vm650_vm2, %v1906_v45, 0 }
 0x223   : > { %1568 = vmatpush3.bf16.xpose.msra.mxu1 %v655_v52 }
 0x224   : > { %1573 = vmatprep.subr.bf16.mxu1 %v1718_v4 }
 0x22a   : > { %1570 = vmatmul.mubr.msk.bf16.vlgmr.msra.gmra.mrb[4].mxu1 %vm650_vm2, %v1904_v44 }
 0x22b   : > { %1575 = vmatprep.mubr.msk.bf16.mxu1 %vm1719_vm1, %v1718_v4 }
 0x23f   : > { %v641_v53 = vpop.f32.mrb[4].mxu0 }
 0x240   : > { %v1916_v54 = vpack.c.bf16 %v641_v53, %v641_v53  ;;  %v1565_v55 = vpop.f32.mrb[5].mxu0 }
 0x241   : > { %v644_v56 = vpop.f32.mrb[6].mxu0 }
 0x242   : > { %827 = vrot.lane.b32.xlu0 %v1916_v54, %s1720_s25  ;;  %v1566_v57 = vpop.f32.mrb[7].mxu0  ;;  %v715_v58 = vsel %vm713_vm3, %v1916_v54, 0 }
 0x243   : > { %1574 = vmatpush3.bf16.msra.mxu1 %v715_v58 }
 0x244   : > { %1579 = vmatprep.subr.bf16.mxu1 %v1718_v4 }
 0x294   : > { %v765_v9 = vpop.permute.xlu0 %764 }
 0x2b4   : > { %v828_v10 = vpop.permute.xlu0 %827 }
 0x2b5   : > { %v833_v11 = vsel %vm713_vm3, %v828_v10, 0 }
 0x2fd   : > { %v691_v59 = vpop.f32.mrb[4].mxu1 }
 0x2fe   : > { %v1571_v60 = vpop.f32.mrb[5].mxu1  ;;  %v698_v61 = vsel %vm697_vm4, %v691_v59, -inf }
 0x2ff   : > { %699 = vmax.xlane.f32.xlu1 %v698_v61  ;;  %v694_v62 = vpop.f32.mrb[6].mxu1 }
 0x300   : > { %v1572_v63 = vpop.f32.mrb[7].mxu1 }
 0x310   : > { %767 = vrot.lane.b32.xlu1 %v1906_v45, %s1720_s25 }
 0x38c   : > { %v700_v1 = vpop.xlane.xlu1 %699 }
 0x38d   : > { %v701_v2 = vsub.f32 %v691_v59, %v700_v1 }
 0x38f   : > { %v702_v3 = vmul.f32 1.442695, %v701_v2 }
 0x390   : > { %v768_v6 = vpop.permute.xlu1 %767 }
 0x391   : > { %1694 = vpow2.f32 %v702_v3  ;;  %v773_v8 = vsel %vm650_vm2, %v768_v6, 0 }
 0x39b   : > { %v1695_v5 = vpop.eup %1694 }
 0x39c   : > { %v708_v7 = vpack.c.bf16 %v1695_v5, %v1695_v5  ;;  %v704_v21 = vsel %vm697_vm4, %v1695_v5, 0.0 }
 0x39e   : > { %1576 = vmatmul.mubr.msk.bf16.vlgmr.msra.gmra.mrb[8].mxu1 %vm709_vm5, %v708_v7 }
 0x39f   : > { %1580 = vmatpush3.bf16.xpose.msra.mxu1 %v773_v8  ;;  %1581 = vmatprep.mubr.msk.bf16.mxu1 %vm1719_vm1, %v1718_v4 }
 0x3a0   : > { %1585 = vmatprep.subr.bf16.mxu1 %v1718_v4 }
 0x3a6   : > { %1582 = vmatmul.mubr.msk.bf16.vlgmr.msra.gmra.mrb[12].mxu1 %vm650_vm2, %v765_v9 }
 0x3a7   : > { %1586 = vmatpush3.bf16.msra.mxu1 %v833_v11  ;;  %1587 = vmatprep.mubr.msk.bf16.mxu1 %vm1719_vm1, %v1718_v4  ;;  %v1688_v11 = vld [vmem:[%s2032_s6 + $0x20] sm:$0xff]  }
 0x3a8   : > { %1599 = vmatprep.subr.bf16.mxu1 %v1718_v4 }
 0x471   : > { %v751_v12 = vpop.f32.mrb[8].mxu1 }
 0x472   : > { %v1577_v13 = vpop.f32.mrb[9].mxu1 }
 0x473   : > { %v754_v14 = vpop.f32.mrb[10].mxu1 }
 0x474   : > { %v1578_v15 = vpop.f32.mrb[11].mxu1 }
 0x479   : > { %v809_v16 = vpop.f32.mrb[12].mxu1 }
 0x47a   : > { %v1583_v17 = vpop.f32.mrb[13].mxu1  ;;  %v815_v18 = vsel %vm697_vm4, %v809_v16, -inf }
 0x47b   : > { %816 = vmax.xlane.f32.xlu1 %v815_v18  ;;  %v812_v19 = vpop.f32.mrb[14].mxu1 }
 0x47c   : > { %v1584_v20 = vpop.f32.mrb[15].mxu1 }
 0x48c   : > { %993 = vrot.lane.b32.xlu1 %v1906_v45, %s1721_s26 }
 0x4b0   : > { %705 = vadd.xlane.f32.xlu1 %v704_v21 }
 0x4c1   : > { %1052 = vrot.lane.b32.xlu1 %v1916_v54, %s1721_s26 }
 0x4c5   : > { %1162 = vrot.lane.b32.xlu1 %v1904_v44, %s1722_s30 }
 0x508   : > { %v817_v22 = vpop.xlane.xlu1 %816 }
 0x509   : > { %v818_v23 = vsub.f32 %v809_v16, %v817_v22 }
 0x50b   : > { %v819_v24 = vmul.f32 1.442695, %v818_v23 }
 0x50c   : > { %v994_v32 = vpop.permute.xlu1 %993 }
 0x50d   : > { %1696 = vpow2.f32 %v819_v24  ;;  %v999_v48 = vsel %vm650_vm2, %v994_v32, 0 }
 0x517   : > { %v1697_v25 = vpop.eup %1696 }
 0x518   : > { %v821_v27 = vsel %vm697_vm4, %v1697_v25, 0.0  ;;  %v825_v28 = vpack.c.bf16 %v1697_v25, %v1697_v25 }
 0x519   : > { %822 = vadd.xlane.f32.xlu0 %v821_v27 }
 0x51a   : > { %1588 = vmatmul.mubr.msk.bf16.vlgmr.msra.gmra.mrb[16].mxu1 %vm709_vm5, %v825_v28 }
 0x51b   : > { %1600 = vmatpush3.bf16.msra.mxu1 %v1684_v26  ;;  %1603 = vmatprep.mubr.msk.bf16.mxu1 %vm1719_vm1, %v1718_v4 }
 0x51c   : > { %1601 = vmatprep.subr.bf16.mxu1 %v1718_v4 }
 0x51f   : > { %1602 = vmatpush3.bf16.msra.mxu1 %v1685_v29 }
 0x520   : > { %1613 = vmatprep.subr.bf16.mxu1 %v1718_v4 }
 0x52f   : > { %991 = vrot.lane.b32.xlu0 %v1904_v44, %s1721_s26 }
 0x53d   : > { %v706_v33 = vpop.xlane.xlu1 %705 }
 0x53e   : > { %1698 = vrcp.f32 %v706_v33  ;;  %v1690_v33 = vld [vmem:[%s2032_s6 + $0x30] sm:$0xff]  }
 0x541   : > { %v1053_v36 = vpop.permute.xlu1 %1052 }
 0x542   : > { %v1058_v38 = vsel %vm713_vm3, %v1053_v36, 0 }
 0x548   : > { %v1699_v34 = vpop.eup %1698 }
 0x549   : > { %v757_v35 = vmul.f32 %v1699_v34, %v751_v12  ;;  %v1689_v12 = vld [vmem:[%s2032_s6 + $0x28] sm:$0xff]  }
 0x54b   : > { %v758_v37 = vpack.c.bf16 %v757_v35, %v757_v35 }
 0x54d   : > { %1604 = vmatmul.mubr.msk.bf16.vlgmr.msra.gmra.mrb[20].mxu1 %vm650_vm2, %v758_v37 }
 0x54e   : > { %1614 = vmatpush3.bf16.msra.mxu1 %v1058_v38  ;;  %1615 = vmatprep.mubr.msk.bf16.mxu1 %vm1719_vm1, %v1718_v4 }
 0x54f   : > { %1627 = vmatprep.subr.bf16.mxu1 %v1718_v4 }
 0x5a6   : > { %v823_v39 = vpop.xlane.xlu0 %822 }
 0x5a7   : > { %1700 = vrcp.f32 %v823_v39  ;;  %v1691_v39 = vld [vmem:[%s2032_s6 + $0x38] sm:$0xff]  }
 0x5aa   : > { %v992_v49 = vpop.permute.xlu0 %991 }
 0x5b1   : > { %v1701_v40 = vpop.eup %1700 }
 0x5ed   : > { %v869_v41 = vpop.f32.mrb[16].mxu1 }
 0x5ee   : > { %v875_v42 = vmul.f32 %v1701_v40, %v869_v41  ;;  %v1589_v43 = vpop.f32.mrb[17].mxu1 }
 0x5ef   : > { %v872_v44 = vpop.f32.mrb[18].mxu1 }
 0x5f0   : > { %v876_v46 = vpack.c.bf16 %v875_v42, %v875_v42  ;;  %v1590_v47 = vpop.f32.mrb[19].mxu1 }
 0x5f2   : > { %1596 = vmatmul.mubr.msk.bf16.vlgmr.msra.gmra.mrb[8].mxu0 %vm650_vm2, %v876_v46 }
 0x5f3   : > { %1608 = vmatpush3.bf16.xpose.msra.mxu0 %v999_v48  ;;  %1609 = vmatprep.mubr.msk.bf16.mxu0 %vm1719_vm1, %v1718_v4 }
 0x5f4   : > { %1619 = vmatprep.subr.bf16.mxu0 %v1718_v4 }
 0x5fa   : > { %1610 = vmatmul.mubr.msk.bf16.vlgmr.msra.gmra.mrb[12].mxu0 %vm650_vm2, %v992_v49  ;;  %v1449_v49 = vld [vmem:[%s2033_s7] ss:$0 sm:$0xff] }
 0x5fb   : > { %1623 = vmatprep.mubr.msk.bf16.mxu0 %vm1719_vm1, %v1718_v4  ;;  %1620 = vmatpush3.bf16.msra.mxu0 %v1688_v11 }
 0x5fc   : > { %1621 = vmatprep.subr.bf16.mxu0 %v1718_v4 }
 0x5ff   : > { %1622 = vmatpush3.bf16.msra.mxu0 %v1689_v12 }
 0x600   : > { %1633 = vmatprep.subr.bf16.mxu0 %v1718_v4 }
 0x620   : > { %v985_v50 = vpop.f32.mrb[20].mxu1 }
 0x621   : > { %v1605_v51 = vpop.f32.mrb[21].mxu1 }
 0x622   : > { %v988_v52 = vpop.f32.mrb[22].mxu1 }
 0x623   : > { %v1606_v53 = vpop.f32.mrb[23].mxu1 }
 0x6c5   : > { %v930_v55 = vpop.f32.mrb[8].mxu0 }
 0x6c6   : > { %v1974_v56 = vadd.f32 %v985_v50, %v930_v55  ;;  %v1597_v57 = vpop.f32.mrb[9].mxu0 }
 0x6c7   : > { %v933_v58 = vpop.f32.mrb[10].mxu0 }
 0x6c8   : > { %v1598_v59 = vpop.f32.mrb[11].mxu0 }
 0x6cd   : > { %v1035_v60 = vpop.f32.mrb[12].mxu0 }
 0x6ce   : > { %v1611_v61 = vpop.f32.mrb[13].mxu0  ;;  %v1041_v62 = vsel %vm697_vm4, %v1035_v60, -inf }
 0x6cf   : > { %1042 = vmax.xlane.f32.xlu0 %v1041_v62  ;;  %v1038_v63 = vpop.f32.mrb[14].mxu0 }
 0x6d0   : > { %v1612_v1 = vpop.f32.mrb[15].mxu0 }
 0x6e5   : > { %1164 = vrot.lane.b32.xlu0 %v1906_v45, %s1722_s30  ;;  %v1163_v45 = vpop.permute.xlu1 %1162 }
 0x75c   : > { %v1043_v2 = vpop.xlane.xlu0 %1042 }
 0x75d   : > { %v1044_v3 = vsub.f32 %v1035_v60, %v1043_v2 }
 0x75f   : > { %v1045_v5 = vmul.f32 1.442695, %v1044_v3 }
 0x760   : > { %v1165_v7 = vpop.permute.xlu0 %1164 }
 0x761   : > { %1702 = vpow2.f32 %v1045_v5  ;;  %v1170_v10 = vsel %vm650_vm2, %v1165_v7, 0 }
 0x76b   : > { %v1703_v6 = vpop.eup %1702 }
 0x76c   : > { %v1047_v8 = vsel %vm697_vm4, %v1703_v6, 0.0  ;;  %v1051_v9 = vpack.c.bf16 %v1703_v6, %v1703_v6 }
 0x76d   : > { %1048 = vadd.xlane.f32.xlu1 %v1047_v8 }
 0x76e   : > { %1616 = vmatmul.mubr.msk.bf16.vlgmr.msra.gmra.mrb[24].mxu1 %vm709_vm5, %v1051_v9 }
 0x76f   : > { %1628 = vmatpush3.bf16.xpose.msra.mxu1 %v1170_v10  ;;  %1629 = vmatprep.mubr.msk.bf16.mxu1 %vm1719_vm1, %v1718_v4 }
 0x770   : > { %1639 = vmatprep.subr.bf16.mxu1 %v1718_v4 }
 0x776   : > { %1630 = vmatmul.mubr.msk.bf16.vlgmr.msra.gmra.mrb[28].mxu1 %vm650_vm2, %v1163_v45 }
 0x777   : > { %1643 = vmatprep.mubr.msk.bf16.mxu1 %vm1719_vm1, %v1718_v4  ;;  %1640 = vmatpush3.bf16.msra.mxu1 %v1690_v33 }
 0x778   : > { %1641 = vmatprep.subr.bf16.mxu1 %v1718_v4 }
 0x77b   : > { %1642 = vmatpush3.bf16.msra.mxu1 %v1691_v39 }
 0x77e   : > { %1223 = vrot.lane.b32.xlu1 %v1916_v54, %s1722_s30 }
 0x7fa   : > { %v1049_v13 = vpop.xlane.xlu1 %1048 }
 0x7fb   : > { %1704 = vrcp.f32 %v1049_v13 }
 0x7fe   : > { %v1224_v17 = vpop.permute.xlu1 %1223 }
 0x7ff   : > { %v1229_v21 = vsel %vm713_vm3, %v1224_v17, 0 }
 0x805   : > { %v1705_v14 = vpop.eup %1704 }
 0x841   : > { %v1094_v15 = vpop.f32.mrb[24].mxu1 }
 0x842   : > { %v1100_v16 = vmul.f32 %v1705_v14, %v1094_v15  ;;  %v1617_v54 = vpop.f32.mrb[25].mxu1 }
 0x843   : > { %v1097_v18 = vpop.f32.mrb[26].mxu1 }
 0x844   : > { %v1101_v19 = vpack.c.bf16 %v1100_v16, %v1100_v16  ;;  %v1618_v20 = vpop.f32.mrb[27].mxu1 }
 0x846   : > { %1624 = vmatmul.mubr.msk.bf16.vlgmr.msra.gmra.mrb[16].mxu0 %vm650_vm2, %v1101_v19 }
 0x847   : > { %1634 = vmatpush3.bf16.msra.mxu0 %v1229_v21  ;;  %1635 = vmatprep.mubr.msk.bf16.mxu0 %vm1719_vm1, %v1718_v4 }
 0x849   : > { %v1206_v22 = vpop.f32.mrb[28].mxu1 }
 0x84a   : > { %v1631_v23 = vpop.f32.mrb[29].mxu1  ;;  %v1212_v24 = vsel %vm697_vm4, %v1206_v22, -inf }
 0x84b   : > { %1213 = vmax.xlane.f32.xlu0 %v1212_v24  ;;  %v1209_v25 = vpop.f32.mrb[30].mxu1 }
 0x84c   : > { %v1632_v26 = vpop.f32.mrb[31].mxu1 }
 0x8d8   : > { %v1214_v27 = vpop.xlane.xlu0 %1213 }
 0x8d9   : > { %v1215_v28 = vsub.f32 %v1206_v22, %v1214_v27 }
 0x8db   : > { %v1216_v29 = vmul.f32 1.442695, %v1215_v28 }
 0x8dd   : > { %1706 = vpow2.f32 %v1216_v29 }
 0x8e7   : > { %v1707_v30 = vpop.eup %1706 }
 0x8e8   : > { %v1218_v31 = vsel %vm697_vm4, %v1707_v30, 0.0  ;;  %v1222_v32 = vpack.c.bf16 %v1707_v30, %v1707_v30 }
 0x8e9   : > { %1219 = vadd.xlane.f32.xlu0 %v1218_v31 }
 0x8ea   : > { %1636 = vmatmul.mubr.msk.bf16.vlgmr.msra.gmra.mrb[20].mxu0 %vm709_vm5, %v1222_v32 }
 0x919   : > { %v1155_v34 = vpop.f32.mrb[16].mxu0 }
 0x91a   : > { %v1161_v35 = vadd.f32 %v1155_v34, %v1974_v56  ;;  %v1625_v36 = vpop.f32.mrb[17].mxu0 }
 0x91b   : > { %v1158_v37 = vpop.f32.mrb[18].mxu0 }
 0x91c   : > { %v1626_v38 = vpop.f32.mrb[19].mxu0 }
 0x976   : > { %v1220_v40 = vpop.xlane.xlu0 %1219 }
 0x977   : > { %1708 = vrcp.f32 %v1220_v40 }
 0x981   : > { %v1709_v41 = vpop.eup %1708 }
 0x9bd   : > { %v1265_v42 = vpop.f32.mrb[20].mxu0 }
 0x9be   : > { %v1271_v43 = vmul.f32 %v1709_v41, %v1265_v42  ;;  %v1637_v44 = vpop.f32.mrb[21].mxu0 }
 0x9bf   : > { %v1268_v46 = vpop.f32.mrb[22].mxu0 }
 0x9c0   : > { %v1272_v4 = vpack.c.bf16 %v1271_v43, %v1271_v43  ;;  %v1638_v47 = vpop.f32.mrb[23].mxu0 }
 0x9c2   : > { %1644 = vmatmul.mubr.msk.bf16.vlgmr.msra.gmra.mrb[32].mxu1 %vm650_vm2, %v1272_v4 }
 0xa95   : > { %v1326_v48 = vpop.f32.mrb[32].mxu1 }
 0xa96   : > { %v1332_v50 = vadd.f32 %v1326_v48, %v1161_v35  ;;  %v1645_v51 = vpop.f32.mrb[33].mxu1 }
 0xa97   : > { %v1329_v52 = vpop.f32.mrb[34].mxu1 }
 0xa98   : > { %v1340_v53 = vadd.f32 %v1449_v49, %v1332_v50  ;;  %v1646_v55 = vpop.f32.mrb[35].mxu1 }
 0xa9a   : > { %v1341_v56 = vadd.f32 %v1340_v53, %v1784_v0 }
 0xa9c   : > { %1342 = vst [vmem:[%s300_s10] sm:$0xf] %v1341_v56 }
 0xa9d PF: > { %s18_s27 = sadd.s32 1, %s1716_s27  }
 0xa9e   : > { %p15_p4 = scmp.ge.s32.totalorder %s18_s27, 4  }
 0xaa0   :  { %17 = sbr.rel (!%p15_p4) target bundleno = 1 (0x1), region = 82 }

// kernel: pvt_forward.52
= control target key start
LH: loop header
LB: loop body
LE: loop exit
PB: predicated region body
PF: predicated region fallthrough
CT: control target
= control target key end

     0   :  { %v1012_v36 = vmov 0   ;;  %s1331_s0 = inlined_call_operand.vmem [shape: f32[16,128], index: 0, kind: input, shape index: {}]   ;;  %s1332_s3 = inlined_call_operand.vmem [shape: bf16[128,512], index: 3, kind: input, shape index: {}]   ;;  %s1333_s1 = inlined_call_operand.vmem [shape: f32[1,128], index: 1, kind: input, shape index: {}]   ;;  %s1334_s2 = inlined_call_operand.vmem [shape: f32[1,128], index: 2, kind: input, shape index: {}]   ;;  %s1335_s5 = inlined_call_operand.vmem [shape: bf16[512,128], index: 5, kind: input, shape index: {}]   ;;  %s1336_s4 = inlined_call_operand.vmem [shape: f32[1,512], index: 4, kind: input, shape index: {}]   ;;  %s1337_s6 = inlined_call_operand.vmem [shape: f32[1,128], index: 6, kind: input, shape index: {}]   ;;  %s1338_s7 = inlined_call_operand.vmem [shape: f32[16,128], index: 7, kind: output, shape index: {}]  }
   0x1   :  { %v1056_v0 = vld [vmem:[%s1331_s0] sm:$0xff]  ;;  %v1062_v1 = vld [vmem:[%s1331_s0 + $0x8] sm:$0xff]  ;;  %317 = vmatprep.mubr.bf16.mxu0 %v1012_v36  ;;  %360 = vmatprep.mubr.bf16.mxu1 %v1012_v36 }
   0x2   :  { %31 = vadd.xlane.f32.xlu0 %v1056_v0  ;;  %v912_v2 = vld [vmem:[%s1332_s3 + $0x4] ss:$16 sps:$4 sm:$0xff]   ;;  %v914_v3 = vld [vmem:[%s1332_s3 + $0xc] ss:$16 sps:$4 sm:$0xff]   ;;  %v916_v4 = vld [vmem:[%s1332_s3] ss:$16 sps:$4 sm:$0xff]  }
   0x3   :  { %285 = vmatprep.subr.bf16.mxu0 %v912_v2  ;;  %v917_v5 = vld [vmem:[%s1332_s3 + $0x8] ss:$16 sps:$4 sm:$0xff]   ;;  %328 = vmatprep.subr.bf16.mxu1 %v914_v3  ;;  %v918_v6 = vld [vmem:[%s1332_s3 + $0x24] ss:$16 sps:$4 sm:$0xff]   ;;  %v920_v7 = vld [vmem:[%s1332_s3 + $0x2c] ss:$16 sps:$4 sm:$0xff]  }
   0x4   :  { %286 = vmatpush1.bf16.msra.mxu0 %v916_v4  ;;  %329 = vmatpush1.bf16.msra.mxu1 %v917_v5  ;;  %v922_v16 = vld [vmem:[%s1332_s3 + $0x20] ss:$16 sps:$4 sm:$0xff]   ;;  %v923_v17 = vld [vmem:[%s1332_s3 + $0x28] ss:$16 sps:$4 sm:$0xff]   ;;  %v924_v18 = vld [vmem:[%s1332_s3 + $0x44] ss:$16 sps:$4 sm:$0xff]  }
   0x5   :  { %287 = vmatprep.subr.bf16.mxu0 %v918_v6  ;;  %330 = vmatprep.subr.bf16.mxu1 %v920_v7  ;;  %v926_v19 = vld [vmem:[%s1332_s3 + $0x4c] ss:$16 sps:$4 sm:$0xff]   ;;  %v928_v20 = vld [vmem:[%s1332_s3 + $0x40] ss:$16 sps:$4 sm:$0xff]   ;;  %v929_v21 = vld [vmem:[%s1332_s3 + $0x48] ss:$16 sps:$4 sm:$0xff]  }
   0x6   :  { %33 = vadd.xlane.f32.xlu0 %v1062_v1  ;;  %v930_v22 = vld [vmem:[%s1332_s3 + $0x64] ss:$16 sps:$4 sm:$0xff]   ;;  %v932_v23 = vld [vmem:[%s1332_s3 + $0x6c] ss:$16 sps:$4 sm:$0xff]   ;;  %v934_v24 = vld [vmem:[%s1332_s3 + $0x60] ss:$16 sps:$4 sm:$0xff]  }
   0x7   :  { %v935_v25 = vld [vmem:[%s1332_s3 + $0x68] ss:$16 sps:$4 sm:$0xff]   ;;  %v936_v26 = vld [vmem:[%s1332_s3 + $0x84] ss:$16 sps:$4 sm:$0xff]   ;;  %v938_v27 = vld [vmem:[%s1332_s3 + $0x8c] ss:$16 sps:$4 sm:$0xff]  }
   0x8   :  { %288 = vmatpush1.bf16.msra.mxu0 %v922_v16  ;;  %331 = vmatpush1.bf16.msra.mxu1 %v923_v17  ;;  %v940_v28 = vld [vmem:[%s1332_s3 + $0x80] ss:$16 sps:$4 sm:$0xff]   ;;  %v941_v29 = vld [vmem:[%s1332_s3 + $0x88] ss:$16 sps:$4 sm:$0xff]   ;;  %v942_v30 = vld [vmem:[%s1332_s3 + $0xa4] ss:$16 sps:$4 sm:$0xff]  }
   0x9   :  { %289 = vmatprep.subr.bf16.mxu0 %v924_v18  ;;  %332 = vmatprep.subr.bf16.mxu1 %v926_v19  ;;  %v944_v31 = vld [vmem:[%s1332_s3 + $0xac] ss:$16 sps:$4 sm:$0xff]   ;;  %v946_v32 = vld [vmem:[%s1332_s3 + $0xa0] ss:$16 sps:$4 sm:$0xff]   ;;  %v947_v33 = vld [vmem:[%s1332_s3 + $0xa8] ss:$16 sps:$4 sm:$0xff]  }
   0xa   :  { %v948_v34 = vld [vmem:[%s1332_s3 + $0xc4] ss:$16 sps:$4 sm:$0xff]   ;;  %v950_v35 = vld [vmem:[%s1332_s3 + $0xcc] ss:$16 sps:$4 sm:$0xff]   ;;  %v952_v37 = vld [vmem:[%s1332_s3 + $0xc0] ss:$16 sps:$4 sm:$0xff]  }
   0xb   :  { %v953_v38 = vld [vmem:[%s1332_s3 + $0xc8] ss:$16 sps:$4 sm:$0xff]   ;;  %v954_v39 = vld [vmem:[%s1332_s3 + $0xe4] ss:$16 sps:$4 sm:$0xff]   ;;  %v956_v40 = vld [vmem:[%s1332_s3 + $0xec] ss:$16 sps:$4 sm:$0xff]  }
   0xc   :  { %290 = vmatpush1.bf16.msra.mxu0 %v928_v20  ;;  %333 = vmatpush1.bf16.msra.mxu1 %v929_v21  ;;  %v958_v41 = vld [vmem:[%s1332_s3 + $0xe0] ss:$16 sps:$4 sm:$0xff]   ;;  %v959_v42 = vld [vmem:[%s1332_s3 + $0xe8] ss:$16 sps:$4 sm:$0xff]  }
   0xd   :  { %291 = vmatprep.subr.bf16.mxu0 %v930_v22  ;;  %334 = vmatprep.subr.bf16.mxu1 %v932_v23  ;;  %v800_v51 = vld [vmem:[%s1333_s1] ss:$0 sm:$0xff]  ;;  %v964_v2 = vld [vmem:[%s1335_s5 + $0x48] sm:$0xff]   ;;  %v968_v6 = vld [vmem:[%s1335_s5 + $0x50] sm:$0xff]  }
   0xe   :  { %v801_v55 = vld [vmem:[%s1334_s2] ss:$0 sm:$0xff]  ;;  %v965_v3 = vld [vmem:[%s1335_s5 + $0xc8] sm:$0xff]   ;;  %v969_v7 = vld [vmem:[%s1335_s5 + $0xd0] sm:$0xff]  }
   0xf   :  { %v960_v60 = vld [vmem:[%s1335_s5 + $0x40] sm:$0xff]   ;;  %v966_v4 = vld [vmem:[%s1335_s5 + $0x8] sm:$0xff]   ;;  %v984_v22 = vld [vmem:[%s1335_s5 + $0x70] sm:$0xff]  }
  0x10   :  { %292 = vmatpush1.bf16.msra.mxu0 %v934_v24  ;;  %335 = vmatpush1.bf16.msra.mxu1 %v935_v25  ;;  %v961_v61 = vld [vmem:[%s1335_s5 + $0xc0] sm:$0xff]   ;;  %v967_v5 = vld [vmem:[%s1335_s5 + $0x88] sm:$0xff]   ;;  %v985_v23 = vld [vmem:[%s1335_s5 + $0xf0] sm:$0xff]  }
  0x11   :  { %293 = vmatprep.subr.bf16.mxu0 %v936_v26  ;;  %336 = vmatprep.subr.bf16.mxu1 %v938_v27  ;;  %v962_v62 = vld [vmem:[%s1335_s5] sm:$0xff]   ;;  %v980_v18 = vld [vmem:[%s1335_s5 + $0x68] sm:$0xff]   ;;  %v986_v24 = vld [vmem:[%s1335_s5 + $0x30] sm:$0xff]  }
  0x12   :  { %v963_v63 = vld [vmem:[%s1335_s5 + $0x80] sm:$0xff]   ;;  %v981_v19 = vld [vmem:[%s1335_s5 + $0xe8] sm:$0xff]   ;;  %v987_v25 = vld [vmem:[%s1335_s5 + $0xb0] sm:$0xff]  }
  0x13   :  { %v978_v16 = vld [vmem:[%s1335_s5 + $0x20] sm:$0xff]   ;;  %v982_v20 = vld [vmem:[%s1335_s5 + $0x28] sm:$0xff]   ;;  %v988_v26 = vld [vmem:[%s1335_s5 + $0x78] sm:$0xff]  }
  0x14   :  { %294 = vmatpush1.bf16.msra.mxu0 %v940_v28  ;;  %337 = vmatpush1.bf16.msra.mxu1 %v941_v29  ;;  %v979_v17 = vld [vmem:[%s1335_s5 + $0xa0] sm:$0xff]   ;;  %v983_v21 = vld [vmem:[%s1335_s5 + $0xa8] sm:$0xff]   ;;  %v989_v27 = vld [vmem:[%s1335_s5 + $0xf8] sm:$0xff]  }
  0x15   :  { %295 = vmatprep.subr.bf16.mxu0 %v942_v30  ;;  %338 = vmatprep.subr.bf16.mxu1 %v944_v31  ;;  %v990_v28 = vld [vmem:[%s1335_s5 + $0x38] sm:$0xff]   ;;  %v105_v30 = vlaneseq }
  0x16   :  { %v991_v29 = vld [vmem:[%s1335_s5 + $0xb8] sm:$0xff]  }
  0x17   :  { %v106_v31 = vshrl.u32 %v105_v30, 7 }
  0x18   :  { %296 = vmatpush1.bf16.msra.mxu0 %v946_v32  ;;  %339 = vmatpush1.bf16.msra.mxu1 %v947_v33 }
  0x19   :  { %297 = vmatprep.subr.bf16.mxu0 %v948_v34  ;;  %340 = vmatprep.subr.bf16.mxu1 %v950_v35  ;;  %v107_v32 = vsub.s32 0, %v106_v31  ;;  %v115_v33 = vsub.s32 2, %v106_v31  ;;  %v103_v34 = vld [vmem:[%s1336_s4] sm:$0xf]  ;;  %v111_v35 = vsub.s32 1, %v106_v31  ;;  %v119_v36 = vsub.s32 3, %v106_v31 }
  0x1c   :  { %298 = vmatpush1.bf16.msra.mxu0 %v952_v37  ;;  %341 = vmatpush1.bf16.msra.mxu1 %v953_v38  ;;  %v108_v37 = vrot.slane %v103_v34, %v107_v32  ;;  %v116_v38 = vrot.slane %v103_v34, %v115_v33 }
  0x1d   :  { %299 = vmatprep.subr.bf16.mxu0 %v954_v39  ;;  %342 = vmatprep.subr.bf16.mxu1 %v956_v40  ;;  %v112_v39 = vrot.slane %v103_v34, %v111_v35  ;;  %v120_v40 = vrot.slane %v103_v34, %v119_v36 }
  0x20   :  { %300 = vmatpush1.bf16.msra.mxu0 %v958_v41  ;;  %343 = vmatpush1.bf16.msra.mxu1 %v959_v42 }
  0x21   :  { %867 = vmatprep.subr.bf16.mxu0 %v960_v60  ;;  %889 = vmatprep.subr.bf16.mxu1 %v961_v61 }
  0x8f   :  { %v32_v8 = vpop.xlane.xlu0 %31 }
  0x90   :  { %v36_v9 = vmul.f32 0.0078125, %v32_v8  ;;  %v970_v8 = vld [vmem:[%s1335_s5 + $0x10] sm:$0xff]  }
  0x92   :  { %v1084_v10 = vsub.f32 %v1056_v0, %v36_v9  ;;  %v971_v9 = vld [vmem:[%s1335_s5 + $0x90] sm:$0xff]  }
  0x93   :  { %v34_v11 = vpop.xlane.xlu0 %33 }
  0x94   :  { %v37_v12 = vmul.f32 0.0078125, %v34_v11  ;;  %v40_v13 = vmul.f32 %v1084_v10, %v1084_v10  ;;  %v973_v11 = vld [vmem:[%s1335_s5 + $0xd8] sm:$0xff]  }
  0x96   :  { %v1089_v14 = vsub.f32 %v1062_v1, %v37_v12  ;;  %42 = vadd.xlane.f32.xlu1 %v40_v13  ;;  %v974_v12 = vld [vmem:[%s1335_s5 + $0x18] sm:$0xff]  }
  0x97   :  { %v975_v13 = vld [vmem:[%s1335_s5 + $0x98] sm:$0xff]  }
  0x98   :  { %v41_v15 = vmul.f32 %v1089_v14, %v1089_v14 }
  0x9a   :  { %44 = vadd.xlane.f32.xlu1 %v41_v15  ;;  %v977_v15 = vld [vmem:[%s1335_s5 + $0xe0] sm:$0xff]  }
 0x123   :  { %v43_v43 = vpop.xlane.xlu1 %42 }
 0x124   :  { %v46_v44 = vmul.f32 0.0078125, %v43_v43 }
 0x126   :  { %v48_v45 = vadd.f32 1e-06, %v46_v44 }
 0x127   :  { %v45_v46 = vpop.xlane.xlu1 %44 }
 0x128   :  { %992 = vrsqrt.f32 %v48_v45  ;;  %v47_v47 = vmul.f32 0.0078125, %v45_v46 }
 0x12a   :  { %v49_v48 = vadd.f32 1e-06, %v47_v47 }
 0x12c   :  { %994 = vrsqrt.f32 %v49_v48 }
 0x132   :  { %v993_v49 = vpop.eup %992 }
 0x133   :  { %v52_v50 = vmul.f32 %v993_v49, %v1084_v10  ;;  %v972_v10 = vld [vmem:[%s1335_s5 + $0x58] sm:$0xff]  }
 0x135   :  { %v60_v54 = vmul.f32 %v800_v51, %v52_v50 }
 0x136   :  { %v995_v52 = vpop.eup %994 }
 0x137   :  { %v53_v53 = vmul.f32 %v995_v52, %v1089_v14  ;;  %v68_v57 = vadd.f32 %v801_v55, %v60_v54  ;;  %v976_v14 = vld [vmem:[%s1335_s5 + $0x60] sm:$0xff]  }
 0x139   :  { %v61_v56 = vmul.f32 %v800_v51, %v53_v53 }
 0x13b   :  { %v69_v58 = vadd.f32 %v801_v55, %v61_v56 }
 0x13d   :  { %v70_v59 = vpack.c.bf16 %v69_v58, %v68_v57 }
 0x13f   :  { %318 = vmatmul.mubr.bf16.vlgmr.msra.gmra.mrb[0].mxu0 %v70_v59  ;;  %361 = vmatmul.mubr.bf16.vlgmr.msra.gmra.mrb[0].mxu1 %v70_v59 }
 0x140   :  { %868 = vmatpush3.bf16.msra.mxu0 %v962_v62  ;;  %890 = vmatpush3.bf16.msra.mxu1 %v963_v63 }
 0x141   :  { %869 = vmatprep.subr.bf16.mxu0 %v964_v2  ;;  %891 = vmatprep.subr.bf16.mxu1 %v965_v3 }
 0x144   :  { %870 = vmatpush3.bf16.msra.mxu0 %v966_v4  ;;  %892 = vmatpush3.bf16.msra.mxu1 %v967_v5 }
 0x145   :  { %871 = vmatprep.subr.bf16.mxu0 %v968_v6  ;;  %893 = vmatprep.subr.bf16.mxu1 %v969_v7 }
 0x148   :  { %872 = vmatpush3.bf16.msra.mxu0 %v970_v8  ;;  %894 = vmatpush3.bf16.msra.mxu1 %v971_v9 }
 0x149   :  { %873 = vmatprep.subr.bf16.mxu0 %v972_v10  ;;  %895 = vmatprep.subr.bf16.mxu1 %v973_v11 }
 0x14c   :  { %874 = vmatpush3.bf16.msra.mxu0 %v974_v12  ;;  %896 = vmatpush3.bf16.msra.mxu1 %v975_v13 }
 0x14d   :  { %875 = vmatprep.subr.bf16.mxu0 %v976_v14  ;;  %897 = vmatprep.subr.bf16.mxu1 %v977_v15 }
 0x150   :  { %876 = vmatpush3.bf16.msra.mxu0 %v978_v16  ;;  %898 = vmatpush3.bf16.msra.mxu1 %v979_v17 }
 0x151   :  { %877 = vmatprep.subr.bf16.mxu0 %v980_v18  ;;  %899 = vmatprep.subr.bf16.mxu1 %v981_v19 }
 0x154   :  { %878 = vmatpush3.bf16.msra.mxu0 %v982_v20  ;;  %900 = vmatpush3.bf16.msra.mxu1 %v983_v21 }
 0x155   :  { %879 = vmatprep.subr.bf16.mxu0 %v984_v22  ;;  %901 = vmatprep.subr.bf16.mxu1 %v985_v23 }
 0x158   :  { %880 = vmatpush3.bf16.msra.mxu0 %v986_v24  ;;  %902 = vmatpush3.bf16.msra.mxu1 %v987_v25 }
 0x159   :  { %881 = vmatprep.subr.bf16.mxu0 %v988_v26  ;;  %903 = vmatprep.subr.bf16.mxu1 %v989_v27 }
 0x15c   :  { %882 = vmatpush3.bf16.msra.mxu0 %v990_v28  ;;  %904 = vmatpush3.bf16.msra.mxu1 %v991_v29 }
 0x212   :  { %v319_v41 = vpop.f32.mrb[0].mxu0  ;;  %v362_v42 = vpop.f32.mrb[0].mxu1 }
 0x213   :  { %v1278_v43 = vadd.f32 %v319_v41, %v108_v37  ;;  %v1280_v44 = vadd.f32 %v362_v42, %v116_v38  ;;  %v321_v45 = vpop.f32.mrb[1].mxu0  ;;  %v364_v46 = vpop.f32.mrb[1].mxu1 }
 0x214   :  { %v1282_v47 = vadd.f32 %v321_v45, %v112_v39  ;;  %v1284_v48 = vadd.f32 %v364_v46, %v120_v40  ;;  %v323_v49 = vpop.f32.mrb[2].mxu0  ;;  %v366_v50 = vpop.f32.mrb[2].mxu1 }
 0x215   :  { %v379_v51 = vmul.f32 0.044715, %v1278_v43  ;;  %v381_v52 = vmul.f32 0.044715, %v1280_v44  ;;  %v324_v53 = vadd.f32 %v323_v49, %v108_v37  ;;  %v367_v54 = vadd.f32 %v366_v50, %v116_v38  ;;  %v325_v55 = vpop.f32.mrb[3].mxu0  ;;  %v368_v56 = vpop.f32.mrb[3].mxu1 }
 0x216   :  { %v380_v57 = vmul.f32 0.044715, %v1282_v47  ;;  %v382_v58 = vmul.f32 0.044715, %v1284_v48  ;;  %v1290_v59 = vadd.f32 %v325_v55, %v112_v39  ;;  %v1292_v60 = vadd.f32 %v368_v56, %v120_v40 }
 0x217   :  { %v387_v61 = vmul.f32 %v379_v51, %v1278_v43  ;;  %v389_v62 = vmul.f32 %v381_v52, %v1280_v44  ;;  %v383_v63 = vmul.f32 0.044715, %v324_v53  ;;  %v385_v2 = vmul.f32 0.044715, %v367_v54 }
 0x218   :  { %v388_v3 = vmul.f32 %v380_v57, %v1282_v47  ;;  %v390_v4 = vmul.f32 %v382_v58, %v1284_v48  ;;  %v384_v5 = vmul.f32 0.044715, %v1290_v59  ;;  %v386_v6 = vmul.f32 0.044715, %v1292_v60 }
 0x219   :  { %v395_v7 = vmul.f32 %v387_v61, %v1278_v43  ;;  %v397_v8 = vmul.f32 %v389_v62, %v1280_v44  ;;  %v391_v9 = vmul.f32 %v383_v63, %v324_v53  ;;  %v393_v10 = vmul.f32 %v385_v2, %v367_v54 }
 0x21a   :  { %v396_v11 = vmul.f32 %v388_v3, %v1282_v47  ;;  %v398_v12 = vmul.f32 %v390_v4, %v1284_v48  ;;  %v392_v13 = vmul.f32 %v384_v5, %v1290_v59  ;;  %v394_v14 = vmul.f32 %v386_v6, %v1292_v60 }
 0x21b   :  { %v403_v15 = vadd.f32 %v395_v7, %v1278_v43  ;;  %v405_v16 = vadd.f32 %v397_v8, %v1280_v44  ;;  %v399_v17 = vmul.f32 %v391_v9, %v324_v53  ;;  %v401_v18 = vmul.f32 %v393_v10, %v367_v54 }
 0x21c   :  { %v400_v19 = vmul.f32 %v392_v13, %v1290_v59  ;;  %v402_v20 = vmul.f32 %v394_v14, %v1292_v60  ;;  %v404_v25 = vadd.f32 %v396_v11, %v1282_v47  ;;  %v406_v29 = vadd.f32 %v398_v12, %v1284_v48 }
 0x21d   :  { %v411_v21 = vmul.f32 0.7978846, %v403_v15  ;;  %v413_v22 = vmul.f32 0.7978846, %v405_v16  ;;  %v407_v23 = vadd.f32 %v399_v17, %v324_v53  ;;  %v409_v24 = vadd.f32 %v401_v18, %v367_v54 }
 0x21e   :  { %v408_v26 = vadd.f32 %v400_v19, %v1290_v59  ;;  %v412_v30 = vmul.f32 0.7978846, %v404_v25  ;;  %v410_v32 = vadd.f32 %v402_v20, %v1292_v60  ;;  %v414_v33 = vmul.f32 0.7978846, %v406_v29 }
 0x21f   :  { %996 = vtanh.f32 %v411_v21  ;;  %v415_v27 = vmul.f32 0.7978846, %v407_v23  ;;  %v417_v28 = vmul.f32 0.7978846, %v409_v24  ;;  %v371_v41 = vmul.f32 0.5, %v1278_v43 }
 0x220   :  { %998 = vtanh.f32 %v413_v22  ;;  %v416_v31 = vmul.f32 0.7978846, %v408_v26  ;;  %v418_v34 = vmul.f32 0.7978846, %v410_v32  ;;  %v375_v42 = vmul.f32 0.5, %v324_v53 }
 0x221   :  { %1000 = vtanh.f32 %v415_v27  ;;  %v373_v49 = vmul.f32 0.5, %v1280_v44  ;;  %v377_v50 = vmul.f32 0.5, %v367_v54  ;;  %v372_v55 = vmul.f32 0.5, %v1282_v47 }
 0x222   :  { %1002 = vtanh.f32 %v417_v28  ;;  %v376_v62 = vmul.f32 0.5, %v1290_v59  ;;  %v374_v53 = vmul.f32 0.5, %v1284_v48  ;;  %v378_v4 = vmul.f32 0.5, %v1292_v60  ;;  %v834_v48 = vld [vmem:[%s1337_s6] ss:$0 sm:$0xff] }
 0x223   :  { %1004 = vtanh.f32 %v412_v30 }
 0x224   :  { %1006 = vtanh.f32 %v416_v31 }
 0x225   :  { %1008 = vtanh.f32 %v414_v33 }
 0x226   :  { %1010 = vtanh.f32 %v418_v34 }
 0x229   :  { %v997_v35 = vpop.eup %996 }
 0x22a   :  { %v999_v36 = vpop.eup %998  ;;  %v427_v37 = vadd.f32 1.0, %v997_v35 }
 0x22b   :  { %v1001_v38 = vpop.eup %1000  ;;  %v429_v39 = vadd.f32 1.0, %v999_v36 }
 0x22c   :  { %v1003_v40 = vpop.eup %1002  ;;  %v431_v45 = vadd.f32 1.0, %v1001_v38  ;;  %v435_v57 = vmul.f32 %v427_v37, %v371_v41 }
 0x22d   :  { %v1005_v46 = vpop.eup %1004  ;;  %v433_v51 = vadd.f32 1.0, %v1003_v40  ;;  %v437_v2 = vmul.f32 %v429_v39, %v373_v49 }
 0x22e   :  { %v1007_v52 = vpop.eup %1006  ;;  %v428_v56 = vadd.f32 1.0, %v1005_v46  ;;  %v439_v58 = vmul.f32 %v431_v45, %v375_v42 }
 0x22f   :  { %v1009_v61 = vpop.eup %1008  ;;  %v432_v63 = vadd.f32 1.0, %v1007_v52  ;;  %v441_v3 = vmul.f32 %v433_v51, %v377_v50 }
 0x230   :  { %v1011_v43 = vpop.eup %1010  ;;  %v430_v44 = vadd.f32 1.0, %v1009_v61  ;;  %v443_v54 = vpack.c.bf16 %v439_v58, %v435_v57  ;;  %v436_v5 = vmul.f32 %v428_v56, %v372_v55 }
 0x231   :  { %v440_v6 = vmul.f32 %v432_v63, %v376_v62  ;;  %v434_v7 = vadd.f32 1.0, %v1011_v43  ;;  %v445_v47 = vpack.c.bf16 %v441_v3, %v437_v2 }
 0x232   :  { %v438_v9 = vmul.f32 %v430_v44, %v374_v53 }
 0x233   :  { %v444_v8 = vpack.c.bf16 %v440_v6, %v436_v5  ;;  %v442_v10 = vmul.f32 %v434_v7, %v378_v4 }
 0x235   :  { %742 = vmatprep.mubr.bf16.mxu0 %v444_v8  ;;  %v446_v11 = vpack.c.bf16 %v442_v10, %v438_v9 }
 0x236   :  { %743 = vmatmul.mubr.bf16.vlgmr.msra.gmra.mrb[4].mxu0 %v443_v54 }
 0x237   :  { %783 = vmatprep.mubr.bf16.mxu1 %v446_v11 }
 0x238   :  { %784 = vmatmul.mubr.bf16.vlgmr.msra.gmra.mrb[4].mxu1 %v445_v47 }
 0x309   :  { %v883_v59 = vpop.f32.mrb[4].mxu0 }
 0x30a   :  { %v884_v60 = vpop.f32.mrb[5].mxu0 }
 0x30b   :  { %v905_v12 = vpop.f32.mrb[4].mxu1  ;;  %v885_v13 = vadd.f32 %v884_v60, %v883_v59  ;;  %v886_v14 = vpop.f32.mrb[6].mxu0 }
 0x30c   :  { %v906_v15 = vpop.f32.mrb[5].mxu1  ;;  %v887_v16 = vpop.f32.mrb[7].mxu0 }
 0x30d   :  { %v745_v17 = vadd.f32 %v885_v13, %v834_v48  ;;  %v907_v18 = vadd.f32 %v906_v15, %v905_v12  ;;  %v908_v19 = vpop.f32.mrb[6].mxu1  ;;  %v888_v20 = vadd.f32 %v887_v16, %v886_v14 }
 0x30e   :  { %v909_v21 = vpop.f32.mrb[7].mxu1 }
 0x30f   :  { %v786_v22 = vadd.f32 %v907_v18, %v745_v17  ;;  %v748_v23 = vadd.f32 %v888_v20, %v834_v48  ;;  %v910_v24 = vadd.f32 %v909_v21, %v908_v19 }
 0x311   :  { %v792_v25 = vadd.f32 %v786_v22, %v1056_v0  ;;  %v789_v26 = vadd.f32 %v910_v24, %v748_v23 }
 0x313   :  { %794 = vst [vmem:[%s1338_s7] sm:$0xff] %v792_v25  ;;  %v793_v27 = vadd.f32 %v789_v26, %v1062_v1 }
 0x315   :  { %795 = vst [vmem:[%s1338_s7 + $0x8] sm:$0xff] %v793_v27 }

// kernel: pvt_forward.55
= control target key start
LH: loop header
LB: loop body
LE: loop exit
PB: predicated region body
PF: predicated region fallthrough
CT: control target
= control target key end

     0   :  { %s854_s21 = smov 0   ;;  %s987_s0 = inlined_call_operand.vmem [shape: bf16[2,1,512], index: 0, kind: input, shape index: {}]   ;;  %s988_s1 = inlined_call_operand.vmem [shape: bf16[512,128], index: 1, kind: input, shape index: {}]   ;;  %s989_s2 = inlined_call_operand.vmem [shape: f32[1,128], index: 2, kind: input, shape index: {}]   ;;  %s990_s3 = inlined_call_operand.vmem [shape: f32[1,128], index: 3, kind: input, shape index: {}]   ;;  %s991_s4 = inlined_call_operand.vmem [shape: f32[1,128], index: 4, kind: input, shape index: {}]   ;;  %s992_s5 = inlined_call_operand.vmem [shape: f32[1,128], index: 5, kind: input, shape index: {}]   ;;  %s993_s6 = inlined_call_operand.vmem [shape: f32[2,1,128], index: 6, kind: output, shape index: {}]  }
   0x1 LB: > { %s682_s22 = sadd.s32 4294967295, %s816_s21   ;;  %p686_p0 = scmp.ge.s32.totalorder %s816_s21, 1  ;;  %s816_s21 = sphi %s854_s21, %s16_s21  }
   0x2   : > { %p211_p1 = scmp.lt.s32.totalorder %s816_s21, 3 }
   0x4   : > { %p212_p2 = pnand %p686_p0, %p211_p1 }
   0x5   : > { %v776_v0 = vld [vmem:[%s988_s1 + $0x40] sm:$0xff] (!%p212_p2)   ;;  %v780_v4 = vld [vmem:[%s988_s1 + $0x48] sm:$0xff] (!%p212_p2)   ;;  %v784_v8 = vld [vmem:[%s988_s1 + $0x50] sm:$0xff] (!%p212_p2)   ;;  %p238_p3 = scmp.lt.s32.totalorder (!%p212_p2), %s682_s22, 1  ;;  %v324_v30 = vlaneseq (!%p212_p2)  ;;  %v818_v34 = vmov (!%p212_p2), 1966171168  }
   0x6   : > { %215 = sbr.rel (%p212_p2) target bundleno = 574 (0x23e), region = 44  ;;  %v777_v1 = vld [vmem:[%s988_s1 + $0xc0] sm:$0xff] (!%p212_p2)   ;;  %723 = vmatprep.subr.bf16.mxu0 (!%p212_p2), %v776_v0  ;;  %v781_v5 = vld [vmem:[%s988_s1 + $0xc8] sm:$0xff] (!%p212_p2)   ;;  %v785_v9 = vld [vmem:[%s988_s1 + $0xd0] sm:$0xff] (!%p212_p2)   ;;  %v322_v35 = vunpack.c.l.s4 (!%p212_p2), %v818_v34  ;;  %vm615_vm0 = vcmask (!%p212_p2), 1040384  }
   0x7   : > { %v778_v2 = vld [vmem:[%s988_s1] sm:$0xff] (!%p212_p2)   ;;  %745 = vmatprep.subr.bf16.mxu1 (!%p212_p2), %v777_v1  ;;  %v782_v6 = vld [vmem:[%s988_s1 + $0x8] sm:$0xff] (!%p212_p2)   ;;  %v786_v10 = vld [vmem:[%s988_s1 + $0x10] sm:$0xff] (!%p212_p2)   ;;  %v325_v36 = vshrl.u32 (!%p212_p2), %v324_v30, 7 }
   0x8   : > { %v779_v3 = vld [vmem:[%s988_s1 + $0x80] sm:$0xff] (!%p212_p2)   ;;  %724 = vmatpush3.bf16.msra.mxu0 (!%p212_p2), %v778_v2  ;;  %v783_v7 = vld [vmem:[%s988_s1 + $0x88] sm:$0xff] (!%p212_p2)   ;;  %v787_v11 = vld [vmem:[%s988_s1 + $0x90] sm:$0xff] (!%p212_p2)   ;;  %v323_v38 = vunpack.c.0.s8 (!%p212_p2), %v322_v35 }
   0x9   : > { %746 = vmatpush3.bf16.msra.mxu1 (!%p212_p2), %v779_v3  ;;  %725 = vmatprep.subr.bf16.mxu0 (!%p212_p2), %v780_v4  ;;  %v788_v12 = vld [vmem:[%s988_s1 + $0x58] sm:$0xff] (!%p212_p2)   ;;  %v792_v16 = vld [vmem:[%s988_s1 + $0x60] sm:$0xff] (!%p212_p2)   ;;  %v796_v20 = vld [vmem:[%s988_s1 + $0x68] sm:$0xff] (!%p212_p2)  }
   0xa   : > { %747 = vmatprep.subr.bf16.mxu1 (!%p212_p2), %v781_v5  ;;  %v789_v13 = vld [vmem:[%s988_s1 + $0xd8] sm:$0xff] (!%p212_p2)   ;;  %v793_v17 = vld [vmem:[%s988_s1 + $0xe0] sm:$0xff] (!%p212_p2)   ;;  %v797_v21 = vld [vmem:[%s988_s1 + $0xe8] sm:$0xff] (!%p212_p2)   ;;  %v326_v39 = vsub.s32 (!%p212_p2), %v323_v38, %v325_v36 }
   0xb   : > { %v790_v14 = vld [vmem:[%s988_s1 + $0x18] sm:$0xff] (!%p212_p2)   ;;  %v794_v18 = vld [vmem:[%s988_s1 + $0x20] sm:$0xff] (!%p212_p2)   ;;  %v798_v22 = vld [vmem:[%s988_s1 + $0x28] sm:$0xff] (!%p212_p2)  }
   0xc   : > { %726 = vmatpush3.bf16.msra.mxu0 (!%p212_p2), %v782_v6  ;;  %v791_v15 = vld [vmem:[%s988_s1 + $0x98] sm:$0xff] (!%p212_p2)   ;;  %v795_v19 = vld [vmem:[%s988_s1 + $0xa0] sm:$0xff] (!%p212_p2)   ;;  %v799_v23 = vld [vmem:[%s988_s1 + $0xa8] sm:$0xff] (!%p212_p2)  }
   0xd   : > { %748 = vmatpush3.bf16.msra.mxu1 %v783_v7  ;;  %727 = vmatprep.subr.bf16.mxu0 %v784_v8  ;;  %s995_s22 = smov (!%p238_p3, %s682_s22), 1  ;;  %v800_v24 = vld [vmem:[%s988_s1 + $0x70] sm:$0xff]   ;;  %v804_v28 = vld [vmem:[%s988_s1 + $0x78] sm:$0xff]   ;;  %v311_v45 = vld [vmem:[%s989_s2] sm:$0x1] }
   0xe   : > { %749 = vmatprep.subr.bf16.mxu1 %v785_v9  ;;  %v801_v25 = vld [vmem:[%s988_s1 + $0xf0] sm:$0xff]   ;;  %s687_s9 = sshll.u32 %s995_s22, 2  ;;  %v805_v29 = vld [vmem:[%s988_s1 + $0xf8] sm:$0xff]   ;;  %v613_v3 = vld [vmem:[%s990_s3] sm:$0x1]  ;;  %s244_s11 = scalar_lea.vmem %s993_s6, %s995_s22 }
   0xf   : > { %v802_v26 = vld [vmem:[%s988_s1 + $0x30] sm:$0xff]   ;;  %s241_s18 = scalar_lea.vmem %s987_s0, %s687_s9  ;;  %v806_v31 = vld [vmem:[%s988_s1 + $0x38] sm:$0xff]   ;;  %v614_v5 = vld [vmem:[%s991_s4] sm:$0x1] }
  0x10   : > { %728 = vmatpush3.bf16.msra.mxu0 %v786_v10  ;;  %v803_v27 = vld [vmem:[%s988_s1 + $0xb0] sm:$0xff]   ;;  %v807_v32 = vld [vmem:[%s988_s1 + $0xb8] sm:$0xff]   ;;  %v688_v33 = vld.sshfl [vmem:[%s241_s18] sm:$0x33 pattern:$0x75316420] }
  0x11   : > { %750 = vmatpush3.bf16.msra.mxu1 %v787_v11  ;;  %729 = vmatprep.subr.bf16.mxu0 %v788_v12  ;;  %v320_v37 = vcombine.high %v688_v33, %v688_v33  ;;  %v327_v41 = vrot.slane %v688_v33, %v326_v39  ;;  %v632_v7 = vld [vmem:[%s992_s5] sm:$0x1] }
  0x12   : > { %751 = vmatprep.subr.bf16.mxu1 %v789_v13 }
  0x13   : > { %v334_v40 = vrot.slane %v320_v37, %v326_v39  ;;  %v335_v43 = vcombine.high %v327_v41, %v327_v41 }
  0x14   : > { %730 = vmatpush3.bf16.msra.mxu0 %v790_v14 }
  0x15   : > { %752 = vmatpush3.bf16.msra.mxu1 %v791_v15  ;;  %731 = vmatprep.subr.bf16.mxu0 %v792_v16  ;;  %v336_v42 = vcombine.high %v334_v40, %v334_v40 }
  0x16   : > { %753 = vmatprep.subr.bf16.mxu1 %v793_v17  ;;  %565 = vmatprep.mubr.bf16.mxu0 %v334_v40 }
  0x17   : > { %605 = vmatprep.mubr.bf16.mxu1 %v336_v42 }
  0x18   : > { %732 = vmatpush3.bf16.msra.mxu0 %v794_v18 }
  0x19   : > { %754 = vmatpush3.bf16.msra.mxu1 %v795_v19  ;;  %733 = vmatprep.subr.bf16.mxu0 %v796_v20 }
  0x1a   : > { %755 = vmatprep.subr.bf16.mxu1 %v797_v21 }
  0x1c   : > { %734 = vmatpush3.bf16.msra.mxu0 %v798_v22 }
  0x1d   : > { %756 = vmatpush3.bf16.msra.mxu1 %v799_v23  ;;  %735 = vmatprep.subr.bf16.mxu0 %v800_v24 }
  0x1e   : > { %757 = vmatprep.subr.bf16.mxu1 %v801_v25 }
  0x20   : > { %736 = vmatpush3.bf16.msra.mxu0 %v802_v26 }
  0x21   : > { %758 = vmatpush3.bf16.msra.mxu1 %v803_v27  ;;  %737 = vmatprep.subr.bf16.mxu0 %v804_v28 }
  0x22   : > { %759 = vmatprep.subr.bf16.mxu1 %v805_v29 }
  0x24   : > { %738 = vmatpush3.bf16.msra.mxu0 %v806_v31 }
  0x25   : > { %760 = vmatpush3.bf16.msra.mxu1 %v807_v32 }
  0x27   : > { %566 = vmatmul.mubr.bf16.vlgmr.msra.gmra.mrb[0].mxu0 %v327_v41 }
  0x28   : > { %606 = vmatmul.mubr.bf16.vlgmr.msra.gmra.mrb[0].mxu1 %v335_v43 }
  0xfa   : > { %v739_v44 = vpop.f32.mrb[0].mxu0 }
  0xfb   : > { %v740_v46 = vpop.f32.mrb[1].mxu0  ;;  %v761_v47 = vpop.f32.mrb[0].mxu1 }
  0xfc   : > { %v741_v48 = vadd.f32 %v740_v46, %v739_v44  ;;  %v742_v49 = vpop.f32.mrb[2].mxu0  ;;  %v762_v50 = vpop.f32.mrb[1].mxu1 }
  0xfd   : > { %v743_v51 = vpop.f32.mrb[3].mxu0  ;;  %v763_v53 = vadd.f32 %v762_v50, %v761_v47  ;;  %v764_v54 = vpop.f32.mrb[2].mxu1 }
  0xfe   : > { %v568_v52 = vadd.f32 %v741_v48, %v311_v45  ;;  %v765_v55 = vpop.f32.mrb[3].mxu1 }
 0x100   : > { %v608_v56 = vadd.f32 %v763_v53, %v568_v52 }
 0x102   : > { %v616_v57 = vsel %vm615_vm0, %v608_v56, 0.0 }
 0x103   : > { %617 = vadd.xlane.f32.xlu0 %v616_v57 }
 0x190   : > { %v618_v58 = vpop.xlane.xlu0 %617 }
 0x191   : > { %v620_v59 = vmul.f32 0.0078125, %v618_v58 }
 0x193   : > { %v621_v60 = vsub.f32 %v608_v56, %v620_v59 }
 0x195   : > { %v622_v61 = vmul.f32 %v621_v60, %v621_v60 }
 0x197   : > { %v623_v62 = vsel %vm615_vm0, %v622_v61, 0.0 }
 0x198   : > { %624 = vadd.xlane.f32.xlu0 %v623_v62 }
 0x225   : > { %v625_v63 = vpop.xlane.xlu0 %624 }
 0x226   : > { %v626_v0 = vmul.f32 0.0078125, %v625_v63 }
 0x228   : > { %v627_v1 = vadd.f32 1e-06, %v626_v0 }
 0x22a   : > { %808 = vrsqrt.f32 %v627_v1 }
 0x234   : > { %v809_v2 = vpop.eup %808 }
 0x235   : > { %v629_v4 = vmul.f32 %v809_v2, %v621_v60 }
 0x237   : > { %v630_v6 = vmul.f32 %v629_v4, %v613_v3 }
 0x239   : > { %v631_v8 = vadd.f32 %v630_v6, %v614_v5 }
 0x23b   : > { %v633_v9 = vadd.f32 %v632_v7, %v631_v8 }
 0x23d   : > { %634 = vst [vmem:[%s244_s11] sm:$0x1] %v633_v9 }
 0x23e PF: > { %s16_s21 = sadd.s32 1, %s816_s21  }
 0x23f   : > { %p13_p4 = scmp.ge.s32.totalorder %s16_s21, 4  }
 0x241   :  { %15 = sbr.rel (!%p13_p4) target bundleno = 1 (0x1), region = 74 }

// kernel: pvt_forward.56
= control target key start
LH: loop header
LB: loop body
LE: loop exit
PB: predicated region body
PF: predicated region fallthrough
CT: control target
= control target key end

     0   :  { %s2013_s27 = smov 0   ;;  %s2309_s0 = inlined_call_operand.vmem [shape: f32[2,1,128], index: 0, kind: input, shape index: {}]   ;;  %s2310_s1 = inlined_call_operand.vmem [shape: f32[1,128], index: 1, kind: input, shape index: {}]   ;;  %s2311_s2 = inlined_call_operand.vmem [shape: f32[1,128], index: 2, kind: input, shape index: {}]   ;;  %s2312_s3 = inlined_call_operand.vmem [shape: bf16[128,128], index: 3, kind: input, shape index: {}]   ;;  %s2313_s4 = inlined_call_operand.vmem [shape: bf16[128,128], index: 4, kind: input, shape index: {}]   ;;  %s2314_s5 = inlined_call_operand.vmem [shape: bf16[128,128], index: 5, kind: input, shape index: {}]   ;;  %s2315_s6 = inlined_call_operand.vmem [shape: bf16[128,128], index: 6, kind: input, shape index: {}]   ;;  %s2316_s7 = inlined_call_operand.vmem [shape: f32[1,128], index: 7, kind: input, shape index: {}]   ;;  %s2317_s8 = inlined_call_operand.vmem [shape: f32[2,1,128], index: 8, kind: output, shape index: {}]  }
   0x1 LB: > { %s1596_s28 = sadd.s32 4294967295, %s1956_s27   ;;  %p1600_p0 = scmp.ge.s32.totalorder %s1956_s27, 1  ;;  %s1956_s27 = sphi %s2013_s27, %s18_s27  }
   0x2   : > { %p260_p1 = scmp.lt.s32.totalorder %s1956_s27, 3 }
   0x4   : > { %p261_p2 = pnand %p1600_p0, %p260_p1 }
   0x5   : > { %p290_p3 = scmp.lt.s32.totalorder (!%p261_p2), %s1596_s28, 1  ;;  %vm300_vm0 = vcmask (!%p261_p2), 1040384   ;;  %v1884_v2 = vld [vmem:[%s2312_s3] sm:$0xff] (!%p261_p2)   ;;  %v1958_v4 = vmov (!%p261_p2), 0.0   ;;  %v1886_v5 = vld [vmem:[%s2312_s3 + $0x8] sm:$0xff] (!%p261_p2)   ;;  %v1888_v7 = vld [vmem:[%s2312_s3 + $0x10] sm:$0xff] (!%p261_p2)  }
   0x6   : > { %264 = sbr.rel (%p261_p2) target bundleno = 1336 (0x538), region = 52  ;;  %v1885_v3 = vld [vmem:[%s2313_s4] sm:$0xff] (!%p261_p2)   ;;  %1710 = vmatprep.subr.bf16.mxu0 (!%p261_p2), %v1958_v4  ;;  %1730 = vmatprep.subr.bf16.mxu1 (!%p261_p2), %v1958_v4  ;;  %v1887_v6 = vld [vmem:[%s2313_s4 + $0x8] sm:$0xff] (!%p261_p2)   ;;  %v1889_v13 = vld [vmem:[%s2313_s4 + $0x10] sm:$0xff] (!%p261_p2)   ;;  %vm1959_vm1 = vmmov (!%p261_p2), 0   ;;  %s1960_s22 = smov (!%p261_p2), 80  }
   0x7   : > { %1711 = vmatpush3.bf16.msra.mxu0 (!%p261_p2), %v1884_v2  ;;  %1731 = vmatpush3.bf16.msra.mxu1 (!%p261_p2), %v1885_v3  ;;  %v1890_v14 = vld [vmem:[%s2312_s3 + $0x18] sm:$0xff] (!%p261_p2)   ;;  %v1892_v16 = vld [vmem:[%s2312_s3 + $0x20] sm:$0xff] (!%p261_p2)   ;;  %v1894_v18 = vld [vmem:[%s2312_s3 + $0x28] sm:$0xff] (!%p261_p2)   ;;  %s1961_s23 = smov (!%p261_p2), 112   ;;  %s1962_s24 = smov (!%p261_p2), 16   ;;  %v1967_v55 = vmov (!%p261_p2), 0  }
   0x8   : > { %1712 = vmatprep.subr.bf16.mxu0 (!%p261_p2), %v1958_v4  ;;  %1732 = vmatprep.subr.bf16.mxu1 (!%p261_p2), %v1958_v4  ;;  %v1891_v15 = vld [vmem:[%s2313_s4 + $0x18] sm:$0xff] (!%p261_p2)   ;;  %v1893_v17 = vld [vmem:[%s2313_s4 + $0x20] sm:$0xff] (!%p261_p2)   ;;  %v1895_v19 = vld [vmem:[%s2313_s4 + $0x28] sm:$0xff] (!%p261_p2)   ;;  %s1963_s25 = smov (!%p261_p2), 96   ;;  %s1964_s26 = smov (!%p261_p2), 64   ;;  %v2153_v56 = vsel (!%p261_p2), %vm300_vm0, 65535, %v1967_v55 }
   0x9   : > { %1726 = vmatprep.mubr.msk.bf16.mxu0 (!%p261_p2), %vm1959_vm1, %v1958_v4  ;;  %1746 = vmatprep.mubr.msk.bf16.mxu1 (!%p261_p2), %vm1959_vm1, %v1958_v4  ;;  %v1896_v20 = vld [vmem:[%s2312_s3 + $0x30] sm:$0xff] (!%p261_p2)   ;;  %v1898_v22 = vld [vmem:[%s2312_s3 + $0x38] sm:$0xff] (!%p261_p2)   ;;  %v298_v28 = vld [vmem:[%s2310_s1] sm:$0x1] (!%p261_p2)  ;;  %s1965_s29 = smov (!%p261_p2), 48   ;;  %s1966_s30 = smov (!%p261_p2), 32  }
   0xa   : > { %v1897_v21 = vld [vmem:[%s2313_s4 + $0x30] sm:$0xff] (!%p261_p2)   ;;  %v1899_v23 = vld [vmem:[%s2313_s4 + $0x38] sm:$0xff] (!%p261_p2)   ;;  %v299_v30 = vld [vmem:[%s2311_s2] sm:$0x1] (!%p261_p2)  ;;  %vm636_vm2 = vcmask (!%p261_p2), 122880   ;;  %vm646_vm3 = vcmask (!%p261_p2), 7168  }
   0xb   : > { %1713 = vmatpush3.bf16.msra.mxu0 (!%p261_p2), %v1886_v5  ;;  %1733 = vmatpush3.bf16.msra.mxu1 (!%p261_p2), %v1887_v6  ;;  %v1900_v33 = vld [vmem:[%s2314_s5] sm:$0xff] (!%p261_p2)   ;;  %v1901_v35 = vld [vmem:[%s2314_s5 + $0x8] sm:$0xff] (!%p261_p2)   ;;  %v1902_v36 = vld [vmem:[%s2314_s5 + $0x10] sm:$0xff] (!%p261_p2)   ;;  %vm771_vm4 = vcmask (!%p261_p2), 130048  }
   0xc   : > { %1714 = vmatprep.subr.bf16.mxu0 (!%p261_p2), %v1958_v4  ;;  %1734 = vmatprep.subr.bf16.mxu1 (!%p261_p2), %v1958_v4  ;;  %v1903_v37 = vld [vmem:[%s2314_s5 + $0x18] sm:$0xff] (!%p261_p2)   ;;  %v1904_v38 = vld [vmem:[%s2314_s5 + $0x20] sm:$0xff] (!%p261_p2)   ;;  %v1905_v39 = vld [vmem:[%s2314_s5 + $0x28] sm:$0xff] (!%p261_p2)  }
   0xd   : > { %s2319_s28 = smov (!%p290_p3, %s1596_s28), 1  ;;  %v1906_v40 = vld [vmem:[%s2314_s5 + $0x30] sm:$0xff]   ;;  %v1907_v41 = vld [vmem:[%s2314_s5 + $0x38] sm:$0xff]  }
   0xe   : > { %s292_s9 = scalar_lea.vmem %s2309_s0, %s2319_s28 }
   0xf   : > { %v2027_v0 = vld [vmem:[%s292_s9] sm:$0x1]  ;;  %1715 = vmatpush3.bf16.msra.mxu0 %v1888_v7  ;;  %1735 = vmatpush3.bf16.msra.mxu1 %v1889_v13  ;;  %s295_s9 = scalar_lea.vmem %s2317_s8, %s2319_s28 }
  0x10   : > { %v301_v1 = vsel %vm300_vm0, %v2027_v0, 0.0  ;;  %1716 = vmatprep.subr.bf16.mxu0 %v1958_v4  ;;  %1736 = vmatprep.subr.bf16.mxu1 %v1958_v4 }
  0x11   : > { %302 = vadd.xlane.f32.xlu0 %v301_v1 }
  0x13   : > { %1717 = vmatpush3.bf16.msra.mxu0 %v1890_v14  ;;  %1737 = vmatpush3.bf16.msra.mxu1 %v1891_v15 }
  0x14   : > { %1718 = vmatprep.subr.bf16.mxu0 %v1958_v4  ;;  %1738 = vmatprep.subr.bf16.mxu1 %v1958_v4 }
  0x17   : > { %1719 = vmatpush3.bf16.msra.mxu0 %v1892_v16  ;;  %1739 = vmatpush3.bf16.msra.mxu1 %v1893_v17 }
  0x18   : > { %1720 = vmatprep.subr.bf16.mxu0 %v1958_v4  ;;  %1740 = vmatprep.subr.bf16.mxu1 %v1958_v4 }
  0x1b   : > { %1721 = vmatpush3.bf16.msra.mxu0 %v1894_v18  ;;  %1741 = vmatpush3.bf16.msra.mxu1 %v1895_v19 }
  0x1c   : > { %1722 = vmatprep.subr.bf16.mxu0 %v1958_v4  ;;  %1742 = vmatprep.subr.bf16.mxu1 %v1958_v4 }
  0x1f   : > { %1723 = vmatpush3.bf16.msra.mxu0 %v1896_v20  ;;  %1743 = vmatpush3.bf16.msra.mxu1 %v1897_v21 }
  0x20   : > { %1724 = vmatprep.subr.bf16.mxu0 %v1958_v4  ;;  %1744 = vmatprep.subr.bf16.mxu1 %v1958_v4 }
  0x23   : > { %1725 = vmatpush3.bf16.msra.mxu0 %v1898_v22  ;;  %1745 = vmatpush3.bf16.msra.mxu1 %v1899_v23 }
  0x24   : > { %1750 = vmatprep.subr.bf16.mxu0 %v1958_v4  ;;  %1770 = vmatprep.subr.bf16.mxu1 %v1958_v4 }
  0x9e   : > { %v303_v8 = vpop.xlane.xlu0 %302 }
  0x9f   : > { %v305_v9 = vmul.f32 0.0078125, %v303_v8 }
  0xa1   : > { %v306_v10 = vsub.f32 %v2027_v0, %v305_v9 }
  0xa3   : > { %v307_v11 = vmul.f32 %v306_v10, %v306_v10 }
  0xa5   : > { %v308_v12 = vsel %vm300_vm0, %v307_v11, 0.0 }
  0xa6   : > { %309 = vadd.xlane.f32.xlu0 %v308_v12 }
 0x133   : > { %v310_v24 = vpop.xlane.xlu0 %309 }
 0x134   : > { %v311_v25 = vmul.f32 0.0078125, %v310_v24 }
 0x136   : > { %v312_v26 = vadd.f32 1e-06, %v311_v25 }
 0x138   : > { %1916 = vrsqrt.f32 %v312_v26 }
 0x142   : > { %v1917_v27 = vpop.eup %1916 }
 0x143   : > { %v314_v29 = vmul.f32 %v1917_v27, %v306_v10 }
 0x145   : > { %v315_v31 = vmul.f32 %v314_v29, %v298_v28 }
 0x147   : > { %v316_v32 = vadd.f32 %v315_v31, %v299_v30 }
 0x149   : > { %v317_v34 = vpack.c.bf16 %v316_v32, %v316_v32 }
 0x14b   : > { %1727 = vmatmul.mubr.bf16.vlgmr.msra.gmra.mrb[0].mxu0 %v317_v34  ;;  %1747 = vmatmul.mubr.bf16.vlgmr.msra.gmra.mrb[0].mxu1 %v317_v34 }
 0x14c   : > { %1751 = vmatpush3.bf16.msra.mxu0 %v1900_v33  ;;  %1766 = vmatprep.mubr.msk.bf16.mxu0 %vm1959_vm1, %v1958_v4 }
 0x14d   : > { %1752 = vmatprep.subr.bf16.mxu0 %v1958_v4  ;;  %1772 = vmatprep.mubr.msk.bf16.mxu1 %vm1959_vm1, %v1958_v4 }
 0x150   : > { %1753 = vmatpush3.bf16.msra.mxu0 %v1901_v35 }
 0x151   : > { %1754 = vmatprep.subr.bf16.mxu0 %v1958_v4 }
 0x154   : > { %1755 = vmatpush3.bf16.msra.mxu0 %v1902_v36 }
 0x155   : > { %1756 = vmatprep.subr.bf16.mxu0 %v1958_v4 }
 0x158   : > { %1757 = vmatpush3.bf16.msra.mxu0 %v1903_v37 }
 0x159   : > { %1758 = vmatprep.subr.bf16.mxu0 %v1958_v4 }
 0x15c   : > { %1759 = vmatpush3.bf16.msra.mxu0 %v1904_v38 }
 0x15d   : > { %1760 = vmatprep.subr.bf16.mxu0 %v1958_v4 }
 0x160   : > { %1761 = vmatpush3.bf16.msra.mxu0 %v1905_v39 }
 0x161   : > { %1762 = vmatprep.subr.bf16.mxu0 %v1958_v4 }
 0x164   : > { %1763 = vmatpush3.bf16.msra.mxu0 %v1906_v40 }
 0x165   : > { %1764 = vmatprep.subr.bf16.mxu0 %v1958_v4 }
 0x168   : > { %1765 = vmatpush3.bf16.msra.mxu0 %v1907_v41 }
 0x169   : > { %1794 = vmatprep.subr.bf16.mxu0 %v1958_v4 }
 0x16b   : > { %1767 = vmatmul.mubr.bf16.vlgmr.msra.gmra.mrb[4].mxu0 %v317_v34 }
 0x16c   : > { %1796 = vmatprep.mubr.msk.bf16.mxu0 %vm1959_vm1, %v1958_v4 }
 0x21e   : > { %v416_v42 = vpop.f32.mrb[0].mxu0  ;;  %v520_v43 = vpop.f32.mrb[0].mxu1 }
 0x21f   : > { %v630_v44 = vpack.c.bf16 %v416_v42, %v416_v42  ;;  %v631_v45 = vpack.c.bf16 %v520_v43, %v520_v43  ;;  %v1728_v46 = vpop.f32.mrb[1].mxu0  ;;  %v1748_v47 = vpop.f32.mrb[1].mxu1 }
 0x220   : > { %v419_v48 = vpop.f32.mrb[2].mxu0  ;;  %v523_v49 = vpop.f32.mrb[2].mxu1 }
 0x221   : > { %v633_v50 = vunpack.c.l.bf16 %v630_v44  ;;  %v634_v51 = vunpack.c.l.bf16 %v631_v45  ;;  %v1729_v52 = vpop.f32.mrb[3].mxu0  ;;  %v1749_v53 = vpop.f32.mrb[3].mxu1 }
 0x223   : > { %v635_v54 = vmul.f32 %v634_v51, %v633_v50 }
 0x225   : > { %978 = vrot.lane.b32.xlu0 %v635_v54, %s1960_s22  ;;  %700 = vrot.lane.b32.xlu1 %v635_v54, %s1961_s23  ;;  %v637_v63 = vsel %vm636_vm2, %v635_v54, 0.0 }
 0x229   : > { %1434 = vrot.lane.b32.xlu0 %v635_v54, %s1962_s24  ;;  %864 = vrot.lane.b32.xlu1 %v635_v54, %s1963_s25 }
 0x22d   : > { %1092 = vrot.lane.b32.xlu1 %v635_v54, %s1964_s26 }
 0x231   : > { %1206 = vrot.lane.b32.xlu1 %v635_v54, %s1965_s29 }
 0x235   : > { %1320 = vrot.lane.b32.xlu1 %v635_v54, %s1966_s30 }
 0x23e   : > { %v624_v57 = vpop.f32.mrb[4].mxu0 }
 0x23f   : > { %v632_v58 = vpack.c.bf16 %v624_v57, %v624_v57  ;;  %v1768_v59 = vpop.f32.mrb[5].mxu0 }
 0x240   : > { %v627_v60 = vpop.f32.mrb[6].mxu0 }
 0x241   : > { %876 = vrot.lane.b32.xlu0 %v632_v58, %s1963_s25  ;;  %v1769_v61 = vpop.f32.mrb[7].mxu0  ;;  %v653_v62 = vand.u32 %v2153_v56, %v632_v58 }
 0x243   : > { %1771 = vmatpush3.bf16.msra.mxu1 %v653_v62 }
 0x244   : > { %1776 = vmatprep.subr.bf16.mxu1 %v1958_v4 }
 0x259   : > { %638 = vadd.xlane.f32.xlu1 %v637_v63 }
 0x26a   : > { %713 = vrot.lane.b32.xlu1 %v632_v58, %s1961_s23 }
 0x297   : > { %v701_v1 = vpop.permute.xlu1 %700  ;;  %v979_v6 = vpop.permute.xlu0 %978 }
 0x298   : > { %v703_v2 = vsel %vm636_vm2, %v701_v1, 0.0  ;;  %v981_v7 = vsel %vm636_vm2, %v979_v6, 0.0 }
 0x299   : > { %704 = vadd.xlane.f32.xlu0 %v703_v2 }
 0x29b   : > { %v865_v3 = vpop.permute.xlu1 %864  ;;  %v1435_v8 = vpop.permute.xlu0 %1434 }
 0x29c   : > { %v867_v5 = vsel %vm636_vm2, %v865_v3, 0.0  ;;  %v1437_v16 = vsel %vm636_vm2, %v1435_v8, 0.0 }
 0x29d   : > { %868 = vadd.xlane.f32.xlu1 %v867_v5 }
 0x29f   : > { %v1093_v11 = vpop.permute.xlu1 %1092 }
 0x2a0   : > { %v1095_v13 = vsel %vm636_vm2, %v1093_v11, 0.0 }
 0x2a1   : > { %982 = vadd.xlane.f32.xlu1 %v981_v7 }
 0x2a3   : > { %v1207_v12 = vpop.permute.xlu1 %1206 }
 0x2a4   : > { %v1209_v14 = vsel %vm636_vm2, %v1207_v12, 0.0 }
 0x2a7   : > { %v1321_v15 = vpop.permute.xlu1 %1320 }
 0x2a8   : > { %v1323_v17 = vsel %vm636_vm2, %v1321_v15, 0.0 }
 0x2af   : > { %990 = vrot.lane.b32.xlu0 %v632_v58, %s1960_s22 }
 0x2b2   : > { %1104 = vrot.lane.b32.xlu1 %v632_v58, %s1964_s26 }
 0x2b3   : > { %v877_v9 = vpop.permute.xlu0 %876 }
 0x2b4   : > { %v882_v10 = vand.u32 %v877_v9, %v2153_v56  ;;  %v1908_v9 = vld [vmem:[%s2315_s6 + $0x8] sm:$0xff]  }
 0x2b6   : > { %1795 = vmatpush3.bf16.msra.mxu0 %v882_v10 }
 0x2b7   : > { %1806 = vmatprep.subr.bf16.mxu0 %v1958_v4 }
 0x2ce   : > { %1096 = vadd.xlane.f32.xlu0 %v1095_v13 }
 0x2d2   : > { %1210 = vadd.xlane.f32.xlu0 %v1209_v14 }
 0x2d6   : > { %1438 = vadd.xlane.f32.xlu0 %v1437_v16  ;;  %1324 = vadd.xlane.f32.xlu1 %v1323_v17 }
 0x2e6   : > { %v639_v18 = vpop.xlane.xlu1 %638 }
 0x2e7   : > { %v640_v19 = vsub.f32 %v639_v18, %v639_v18  ;;  %1332 = vrot.lane.b32.xlu1 %v632_v58, %s1966_s30 }
 0x2e9   : > { %v641_v20 = vmul.f32 1.442695, %v640_v19 }
 0x2ea   : > { %v714_v21 = vpop.permute.xlu1 %713 }
 0x2eb   : > { %1918 = vpow2.f32 %v641_v20  ;;  %1446 = vrot.lane.b32.xlu1 %v632_v58, %s1962_s24  ;;  %v719_v24 = vand.u32 %v714_v21, %v2153_v56  ;;  %v1909_v20 = vld [vmem:[%s2315_s6] sm:$0xff]  }
 0x2ec   : > { %1218 = vrot.lane.b32.xlu0 %v632_v58, %s1965_s29 }
 0x2f5   : > { %v2172_v22 = vpop.eup %1918 }
 0x2f6   : > { %v645_v23 = vpack.c.bf16 %v2172_v22, %v2172_v22 }
 0x2f8   : > { %1773 = vmatmul.mubr.msk.bf16.vlgmr.msra.gmra.mrb[4].mxu1 %vm646_vm3, %v645_v23 }
 0x2f9   : > { %1777 = vmatpush3.bf16.msra.mxu1 %v719_v24  ;;  %1778 = vmatprep.mubr.msk.bf16.mxu1 %vm1959_vm1, %v1958_v4 }
 0x2fa   : > { %1782 = vmatprep.subr.bf16.mxu1 %v1958_v4 }
 0x326   : > { %v705_v25 = vpop.xlane.xlu0 %704 }
 0x327   : > { %v706_v26 = vsub.f32 %v705_v25, %v705_v25 }
 0x329   : > { %v707_v27 = vmul.f32 1.442695, %v706_v26 }
 0x32a   : > { %v869_v28 = vpop.xlane.xlu1 %868  ;;  %v991_v36 = vpop.permute.xlu0 %990 }
 0x32b   : > { %1920 = vpow2.f32 %v707_v27  ;;  %v870_v29 = vsub.f32 %v869_v28, %v869_v28  ;;  %v996_v39 = vand.u32 %v991_v36, %v2153_v56 }
 0x32d   : > { %v871_v30 = vmul.f32 1.442695, %v870_v29  ;;  %v1910_v29 = vld [vmem:[%s2315_s6 + $0x10] sm:$0xff]  }
 0x32e   : > { %v983_v31 = vpop.xlane.xlu1 %982 }
 0x32f   : > { %1922 = vpow2.f32 %v871_v30  ;;  %v984_v32 = vsub.f32 %v983_v31, %v983_v31 }
 0x331   : > { %v985_v33 = vmul.f32 1.442695, %v984_v32 }
 0x332   : > { %v1105_v41 = vpop.permute.xlu1 %1104 }
 0x333   : > { %1924 = vpow2.f32 %v985_v33  ;;  %v1110_v43 = vand.u32 %v1105_v41, %v2153_v56 }
 0x335   : > { %v2181_v34 = vpop.eup %1920 }
 0x336   : > { %v711_v35 = vpack.c.bf16 %v2181_v34, %v2181_v34 }
 0x338   : > { %1779 = vmatmul.mubr.msk.bf16.vlgmr.msra.gmra.mrb[8].mxu1 %vm646_vm3, %v711_v35 }
 0x339   : > { %v2186_v37 = vpop.eup %1922  ;;  %1784 = vmatprep.mubr.msk.bf16.mxu1 %vm1959_vm1, %v1958_v4  ;;  %1783 = vmatpush3.bf16.msra.mxu1 %v1908_v9 }
 0x33a   : > { %v875_v38 = vpack.c.bf16 %v2186_v37, %v2186_v37  ;;  %1788 = vmatprep.subr.bf16.mxu1 %v1958_v4 }
 0x33c   : > { %1797 = vmatmul.mubr.msk.bf16.vlgmr.msra.gmra.mrb[8].mxu0 %vm646_vm3, %v875_v38 }
 0x33d   : > { %1807 = vmatpush3.bf16.msra.mxu0 %v996_v39  ;;  %1808 = vmatprep.mubr.msk.bf16.mxu0 %vm1959_vm1, %v1958_v4  ;;  %v2197_v40 = vpop.eup %1924  ;;  %v1912_v39 = vld [vmem:[%s2315_s6 + $0x20] sm:$0xff]  }
 0x33e   : > { %1818 = vmatprep.subr.bf16.mxu0 %v1958_v4  ;;  %v989_v42 = vpack.c.bf16 %v2197_v40, %v2197_v40 }
 0x344   : > { %1809 = vmatmul.mubr.msk.bf16.vlgmr.msra.gmra.mrb[12].mxu0 %vm646_vm3, %v989_v42 }
 0x345   : > { %1819 = vmatpush3.bf16.msra.mxu0 %v1110_v43  ;;  %1820 = vmatprep.mubr.msk.bf16.mxu0 %vm1959_vm1, %v1958_v4 }
 0x346   : > { %1830 = vmatprep.subr.bf16.mxu0 %v1958_v4 }
 0x35b   : > { %v1097_v44 = vpop.xlane.xlu0 %1096 }
 0x35c   : > { %v1098_v45 = vsub.f32 %v1097_v44, %v1097_v44 }
 0x35e   : > { %v1099_v46 = vmul.f32 1.442695, %v1098_v45 }
 0x35f   : > { %v1211_v47 = vpop.xlane.xlu0 %1210 }
 0x360   : > { %1926 = vpow2.f32 %v1099_v46  ;;  %v1212_v48 = vsub.f32 %v1211_v47, %v1211_v47  ;;  %v1913_v46 = vld [vmem:[%s2315_s6 + $0x28] sm:$0xff]  }
 0x362   : > { %v1213_v49 = vmul.f32 1.442695, %v1212_v48 }
 0x363   : > { %v1439_v50 = vpop.xlane.xlu0 %1438  ;;  %v1325_v51 = vpop.xlane.xlu1 %1324 }
 0x364   : > { %1928 = vpow2.f32 %v1213_v49  ;;  %v1326_v52 = vsub.f32 %v1325_v51, %v1325_v51  ;;  %v1440_v59 = vsub.f32 %v1439_v50, %v1439_v50 }
 0x366   : > { %v1327_v55 = vmul.f32 1.442695, %v1326_v52  ;;  %v1441_v62 = vmul.f32 1.442695, %v1440_v59 }
 0x367   : > { %v1219_v53 = vpop.permute.xlu0 %1218  ;;  %v1333_v61 = vpop.permute.xlu1 %1332 }
 0x368   : > { %v1224_v58 = vand.u32 %v1219_v53, %v2153_v56  ;;  %1930 = vpow2.f32 %v1327_v55  ;;  %v1338_v1 = vand.u32 %v1333_v61, %v2153_v56 }
 0x369   : > { %1932 = vpow2.f32 %v1441_v62 }
 0x36a   : > { %v2206_v54 = vpop.eup %1926  ;;  %1934 = vrcp.f32 %v2172_v22 }
 0x36b   : > { %v1103_v57 = vpack.c.bf16 %v2206_v54, %v2206_v54  ;;  %v1447_v3 = vpop.permute.xlu1 %1446  ;;  %1936 = vrcp.f32 %v2181_v34 }
 0x36c   : > { %v1452_v6 = vand.u32 %v1447_v3, %v2153_v56  ;;  %1938 = vrcp.f32 %v2186_v37  ;;  %v1911_v37 = vld [vmem:[%s2315_s6 + $0x18] sm:$0xff]  }
 0x36d   : > { %1821 = vmatmul.mubr.msk.bf16.vlgmr.msra.gmra.mrb[16].mxu0 %vm646_vm3, %v1103_v57  ;;  %1940 = vrcp.f32 %v2197_v40 }
 0x36e   : > { %1831 = vmatpush3.bf16.msra.mxu0 %v1224_v58  ;;  %1832 = vmatprep.mubr.msk.bf16.mxu0 %vm1959_vm1, %v1958_v4  ;;  %v2215_v60 = vpop.eup %1928  ;;  %1942 = vrcp.f32 %v2206_v54  ;;  %v1914_v54 = vld [vmem:[%s2315_s6 + $0x30] sm:$0xff]  }
 0x36f   : > { %1842 = vmatprep.subr.bf16.mxu0 %v1958_v4  ;;  %v1217_v63 = vpack.c.bf16 %v2215_v60, %v2215_v60  ;;  %1944 = vrcp.f32 %v2215_v60 }
 0x372   : > { %v2224_v2 = vpop.eup %1930 }
 0x373   : > { %v1331_v5 = vpack.c.bf16 %v2224_v2, %v2224_v2  ;;  %v2232_v7 = vpop.eup %1932  ;;  %1946 = vrcp.f32 %v2224_v2 }
 0x374   : > { %v1445_v8 = vpack.c.bf16 %v2232_v7, %v2232_v7  ;;  %v1935_v56 = vpop.eup %1934  ;;  %1948 = vrcp.f32 %v2232_v7 }
 0x375   : > { %1833 = vmatmul.mubr.msk.bf16.vlgmr.msra.gmra.mrb[20].mxu0 %vm646_vm3, %v1217_v63  ;;  %v1937_v15 = vpop.eup %1936  ;;  %v1915_v63 = vld [vmem:[%s2315_s6 + $0x38] sm:$0xff]  }
 0x376   : > { %1843 = vmatpush3.bf16.msra.mxu0 %v1338_v1  ;;  %1844 = vmatprep.mubr.msk.bf16.mxu0 %vm1959_vm1, %v1958_v4  ;;  %v1939_v23 = vpop.eup %1938 }
 0x377   : > { %1854 = vmatprep.subr.bf16.mxu0 %v1958_v4  ;;  %v1941_v31 = vpop.eup %1940 }
 0x378   : > { %v1943_v41 = vpop.eup %1942 }
 0x379   : > { %v1945_v49 = vpop.eup %1944 }
 0x37d   : > { %1845 = vmatmul.mubr.msk.bf16.vlgmr.msra.gmra.mrb[24].mxu0 %vm646_vm3, %v1331_v5  ;;  %v1947_v58 = vpop.eup %1946 }
 0x37e   : > { %1855 = vmatpush3.bf16.msra.mxu0 %v1452_v6  ;;  %1856 = vmatprep.mubr.msk.bf16.mxu0 %vm1959_vm1, %v1958_v4  ;;  %v1949_v3 = vpop.eup %1948 }
 0x385   : > { %1857 = vmatmul.mubr.msk.bf16.vlgmr.msra.gmra.mrb[28].mxu0 %vm646_vm3, %v1445_v8 }
 0x3cb   : > { %v689_v10 = vpop.f32.mrb[4].mxu1 }
 0x3cc   : > { %v695_v11 = vmul.f32 %v1935_v56, %v689_v10  ;;  %v1774_v12 = vpop.f32.mrb[5].mxu1 }
 0x3cd   : > { %v692_v13 = vpop.f32.mrb[6].mxu1 }
 0x3ce   : > { %v1775_v14 = vpop.f32.mrb[7].mxu1  ;;  %v696_v30 = vpack.c.bf16 %v695_v11, %v695_v11 }
 0x40b   : > { %v755_v16 = vpop.f32.mrb[8].mxu1 }
 0x40c   : > { %v761_v17 = vmul.f32 %v1937_v15, %v755_v16  ;;  %v1780_v18 = vpop.f32.mrb[9].mxu1 }
 0x40d   : > { %v758_v19 = vpop.f32.mrb[10].mxu1 }
 0x40e   : > { %v762_v21 = vpack.c.bf16 %v761_v17, %v761_v17  ;;  %v1781_v22 = vpop.f32.mrb[11].mxu1 }
 0x40f   : > { %v918_v24 = vpop.f32.mrb[8].mxu0 }
 0x410   : > { %v924_v25 = vmul.f32 %v1939_v23, %v918_v24  ;;  %1785 = vmatmul.mubr.msk.bf16.vlgmr.msra.gmra.mrb[12].mxu1 %vm771_vm4, %v762_v21  ;;  %v1798_v26 = vpop.f32.mrb[9].mxu0 }
 0x411   : > { %v921_v27 = vpop.f32.mrb[10].mxu0  ;;  %1789 = vmatpush3.bf16.msra.mxu1 %v1909_v20  ;;  %1790 = vmatprep.mubr.msk.bf16.mxu1 %vm1959_vm1, %v1958_v4 }
 0x412   : > { %v1799_v28 = vpop.f32.mrb[11].mxu0  ;;  %1800 = vmatprep.subr.bf16.mxu1 %v1958_v4  ;;  %v925_v38 = vpack.c.bf16 %v924_v25, %v924_v25 }
 0x417   : > { %v1032_v32 = vpop.f32.mrb[12].mxu0 }
 0x418   : > { %v1038_v33 = vmul.f32 %v1941_v31, %v1032_v32  ;;  %1791 = vmatmul.mubr.msk.bf16.vlgmr.msra.gmra.mrb[16].mxu1 %vm771_vm4, %v696_v30  ;;  %v1810_v34 = vpop.f32.mrb[13].mxu0 }
 0x419   : > { %v1035_v35 = vpop.f32.mrb[14].mxu0  ;;  %1801 = vmatpush3.bf16.msra.mxu1 %v1910_v29  ;;  %1802 = vmatprep.mubr.msk.bf16.mxu1 %vm1959_vm1, %v1958_v4 }
 0x41a   : > { %v1811_v36 = vpop.f32.mrb[15].mxu0  ;;  %1812 = vmatprep.subr.bf16.mxu1 %v1958_v4  ;;  %v1039_v40 = vpack.c.bf16 %v1038_v33, %v1038_v33 }
 0x420   : > { %1803 = vmatmul.mubr.msk.bf16.vlgmr.msra.gmra.mrb[20].mxu1 %vm771_vm4, %v925_v38 }
 0x421   : > { %1813 = vmatpush3.bf16.msra.mxu1 %v1911_v37  ;;  %1814 = vmatprep.mubr.msk.bf16.mxu1 %vm1959_vm1, %v1958_v4 }
 0x422   : > { %1824 = vmatprep.subr.bf16.mxu1 %v1958_v4 }
 0x428   : > { %1815 = vmatmul.mubr.msk.bf16.vlgmr.msra.gmra.mrb[24].mxu1 %vm771_vm4, %v1039_v40 }
 0x429   : > { %1825 = vmatpush3.bf16.msra.mxu1 %v1912_v39  ;;  %1826 = vmatprep.mubr.msk.bf16.mxu1 %vm1959_vm1, %v1958_v4 }
 0x42a   : > { %1836 = vmatprep.subr.bf16.mxu1 %v1958_v4 }
 0x440   : > { %v1146_v42 = vpop.f32.mrb[16].mxu0 }
 0x441   : > { %v1152_v43 = vmul.f32 %v1943_v41, %v1146_v42  ;;  %v1822_v44 = vpop.f32.mrb[17].mxu0 }
 0x442   : > { %v1149_v45 = vpop.f32.mrb[18].mxu0  ;;  %v1548_v44 = vld [vmem:[%s2316_s7] sm:$0x1] }
 0x443   : > { %v1153_v47 = vpack.c.bf16 %v1152_v43, %v1152_v43  ;;  %v1823_v48 = vpop.f32.mrb[19].mxu0 }
 0x445   : > { %1827 = vmatmul.mubr.msk.bf16.vlgmr.msra.gmra.mrb[28].mxu1 %vm771_vm4, %v1153_v47 }
 0x446   : > { %1837 = vmatpush3.bf16.msra.mxu1 %v1913_v46  ;;  %1838 = vmatprep.mubr.msk.bf16.mxu1 %vm1959_vm1, %v1958_v4 }
 0x447   : > { %1848 = vmatprep.subr.bf16.mxu1 %v1958_v4 }
 0x448   : > { %v1260_v50 = vpop.f32.mrb[20].mxu0 }
 0x449   : > { %v1266_v51 = vmul.f32 %v1945_v49, %v1260_v50  ;;  %v1834_v52 = vpop.f32.mrb[21].mxu0 }
 0x44a   : > { %v1263_v53 = vpop.f32.mrb[22].mxu0 }
 0x44b   : > { %v1267_v55 = vpack.c.bf16 %v1266_v51, %v1266_v51  ;;  %v1835_v57 = vpop.f32.mrb[23].mxu0 }
 0x44d   : > { %1839 = vmatmul.mubr.msk.bf16.vlgmr.msra.gmra.mrb[32].mxu1 %vm771_vm4, %v1267_v55 }
 0x44e   : > { %1849 = vmatpush3.bf16.msra.mxu1 %v1914_v54  ;;  %1850 = vmatprep.mubr.msk.bf16.mxu1 %vm1959_vm1, %v1958_v4 }
 0x44f   : > { %1860 = vmatprep.subr.bf16.mxu1 %v1958_v4 }
 0x450   : > { %v1374_v59 = vpop.f32.mrb[24].mxu0 }
 0x451   : > { %v1380_v60 = vmul.f32 %v1947_v58, %v1374_v59  ;;  %v1846_v61 = vpop.f32.mrb[25].mxu0 }
 0x452   : > { %v1377_v62 = vpop.f32.mrb[26].mxu0 }
 0x453   : > { %v1381_v1 = vpack.c.bf16 %v1380_v60, %v1380_v60  ;;  %v1847_v2 = vpop.f32.mrb[27].mxu0 }
 0x455   : > { %1851 = vmatmul.mubr.msk.bf16.vlgmr.msra.gmra.mrb[36].mxu1 %vm771_vm4, %v1381_v1 }
 0x456   : > { %1861 = vmatpush3.bf16.msra.mxu1 %v1915_v63  ;;  %1862 = vmatprep.mubr.msk.bf16.mxu1 %vm1959_vm1, %v1958_v4 }
 0x458   : > { %v1488_v5 = vpop.f32.mrb[28].mxu0 }
 0x459   : > { %v1494_v6 = vmul.f32 %v1949_v3, %v1488_v5  ;;  %v1858_v7 = vpop.f32.mrb[29].mxu0 }
 0x45a   : > { %v1491_v8 = vpop.f32.mrb[30].mxu0 }
 0x45b   : > { %v1495_v9 = vpack.c.bf16 %v1494_v6, %v1494_v6  ;;  %v1859_v56 = vpop.f32.mrb[31].mxu0 }
 0x45d   : > { %1863 = vmatmul.mubr.msk.bf16.vlgmr.msra.gmra.mrb[40].mxu1 %vm771_vm4, %v1495_v9 }
 0x4e3   : > { %v809_v10 = vpop.f32.mrb[12].mxu1 }
 0x4e4   : > { %v1786_v11 = vpop.f32.mrb[13].mxu1 }
 0x4e5   : > { %v812_v12 = vpop.f32.mrb[14].mxu1 }
 0x4e6   : > { %v1787_v13 = vpop.f32.mrb[15].mxu1 }
 0x4eb   : > { %v858_v14 = vpop.f32.mrb[16].mxu1 }
 0x4ec   : > { %v859_v15 = vadd.f32 %v858_v14, %v809_v10  ;;  %v1792_v16 = vpop.f32.mrb[17].mxu1 }
 0x4ed   : > { %v861_v17 = vpop.f32.mrb[18].mxu1 }
 0x4ee   : > { %v1793_v18 = vpop.f32.mrb[19].mxu1 }
 0x4f3   : > { %v971_v19 = vpop.f32.mrb[20].mxu1 }
 0x4f4   : > { %v977_v4 = vadd.f32 %v971_v19, %v859_v15  ;;  %v1804_v20 = vpop.f32.mrb[21].mxu1 }
 0x4f5   : > { %v974_v21 = vpop.f32.mrb[22].mxu1 }
 0x4f6   : > { %v1805_v22 = vpop.f32.mrb[23].mxu1 }
 0x4fb   : > { %v1085_v23 = vpop.f32.mrb[24].mxu1 }
 0x4fc   : > { %v1091_v24 = vadd.f32 %v1085_v23, %v977_v4  ;;  %v1816_v25 = vpop.f32.mrb[25].mxu1 }
 0x4fd   : > { %v1088_v26 = vpop.f32.mrb[26].mxu1 }
 0x4fe   : > { %v1817_v27 = vpop.f32.mrb[27].mxu1 }
 0x518   : > { %v1199_v28 = vpop.f32.mrb[28].mxu1 }
 0x519   : > { %v1205_v29 = vadd.f32 %v1199_v28, %v1091_v24  ;;  %v1828_v30 = vpop.f32.mrb[29].mxu1 }
 0x51a   : > { %v1202_v31 = vpop.f32.mrb[30].mxu1 }
 0x51b   : > { %v1829_v32 = vpop.f32.mrb[31].mxu1 }
 0x520   : > { %v1313_v33 = vpop.f32.mrb[32].mxu1 }
 0x521   : > { %v1319_v34 = vadd.f32 %v1313_v33, %v1205_v29  ;;  %v1840_v35 = vpop.f32.mrb[33].mxu1 }
 0x522   : > { %v1316_v36 = vpop.f32.mrb[34].mxu1 }
 0x523   : > { %v1841_v37 = vpop.f32.mrb[35].mxu1 }
 0x528   : > { %v1427_v38 = vpop.f32.mrb[36].mxu1 }
 0x529   : > { %v1433_v39 = vadd.f32 %v1427_v38, %v1319_v34  ;;  %v1852_v40 = vpop.f32.mrb[37].mxu1 }
 0x52a   : > { %v1430_v41 = vpop.f32.mrb[38].mxu1 }
 0x52b   : > { %v1853_v42 = vpop.f32.mrb[39].mxu1 }
 0x530   : > { %v1541_v43 = vpop.f32.mrb[40].mxu1 }
 0x531   : > { %v1547_v45 = vadd.f32 %v1541_v43, %v1433_v39  ;;  %v1864_v46 = vpop.f32.mrb[41].mxu1 }
 0x532   : > { %v1544_v47 = vpop.f32.mrb[42].mxu1 }
 0x533   : > { %v1549_v48 = vadd.f32 %v1548_v44, %v1547_v45  ;;  %v1865_v49 = vpop.f32.mrb[43].mxu1 }
 0x535   : > { %v1550_v50 = vadd.f32 %v1549_v48, %v2027_v0 }
 0x537   : > { %1551 = vst [vmem:[%s295_s9] sm:$0x1] %v1550_v50 }
 0x538 PF: > { %s18_s27 = sadd.s32 1, %s1956_s27  }
 0x539   : > { %p15_p4 = scmp.ge.s32.totalorder %s18_s27, 4  }
 0x53b   :  { %17 = sbr.rel (!%p15_p4) target bundleno = 1 (0x1), region = 82 }

</bundles_post_ra>
